<compile_context>
chip_gen: v7x
topology: tpu7x:2x2x1
jax: 0.10.0
libtpu: 0.0.40
codegen_flags: <defaults>
</compile_context>

<pallas_src>
import functools

import jax
import jax.numpy as jnp
from jax.experimental import pallas as pl
from jax.experimental.pallas import tpu as pltpu

_LANE = 128            # pad all feature dims to a multiple of the lane width
_TM = 512              # output-row tile of the aggregation grid
_TK = 1024             # contraction (neighbor) tile of the aggregation grid
_NODE_PAD = 1024       # lcm(_TM, _TK): pad node count to a multiple of this
                       # (>= 2 row tiles -> v7x megacore sharding stays active)


def _round_up(x, m):
    return ((x + m - 1) // m) * m


# ----------------------------- Pallas kernel --------------------------------

def _gcn_layer_kernel(a_ref, x_ref, w_ref, b_ref, o_ref, acc_ref, *, apply_relu):
    """out[i] = act( sum_k A[i,k] @ (X[k] @ W) + b )  -- fused transform+aggregate.

    Grid = (row tiles, contraction tiles).  W and b use constant index_maps so
    they are DMA'd once and stay VMEM-resident; acc_ref is an f32 accumulator.
    """
    k = pl.program_id(1)

    @pl.when(k == 0)
    def _():
        acc_ref[...] = jnp.zeros_like(acc_ref)

    # X tile @ W on the MXU (f32 accumulate, cast back to bf16 for the next MXU op).
    xw = jnp.dot(
        x_ref[...], w_ref[...], preferred_element_type=jnp.float32
    ).astype(jnp.bfloat16)

    # A tile @ XW tile, accumulated in f32.
    acc_ref[...] += jnp.dot(a_ref[...], xw, preferred_element_type=jnp.float32)

    @pl.when(k == pl.num_programs(1) - 1)
    def _():
        h = acc_ref[...] + b_ref[...]
        if apply_relu:
            h = jnp.maximum(h, 0.0)
        o_ref[...] = h.astype(o_ref.dtype)


def gcn_layer(a_hat, x, w, b, *, apply_relu, out_dtype, tm=_TM, tk=_TK):
    """One GCNConv layer: act(A_hat @ (x @ w) + b), fully fused in one pallas_call.

    a_hat: (Np, Np) bf16, x: (Np, Fin_p) bf16, w: (Fin_p, Fout_p) bf16,
    b: (1, Fout_p) f32.  Np % lcm(tm, tk) == 0, feature dims % 128 == 0.
    """
    n = a_hat.shape[0]
    f_in = x.shape[1]
    f_out = w.shape[1]
    kernel = functools.partial(_gcn_layer_kernel, apply_relu=apply_relu)
    return pl.pallas_call(
        kernel,
        out_shape=jax.ShapeDtypeStruct((n, f_out), out_dtype),
        grid_spec=pltpu.PrefetchScalarGridSpec(
            num_scalar_prefetch=0,
            grid=(n // tm, n // tk),
            in_specs=[
                pl.BlockSpec((tm, tk), lambda i, k: (i, k)),       # A_hat tile (HBM stream)
                pl.BlockSpec((tk, f_in), lambda i, k: (k, 0)),     # X tile (per k-step)
                pl.BlockSpec((f_in, f_out), lambda i, k: (0, 0)),  # W  (VMEM-resident)
                pl.BlockSpec((1, f_out), lambda i, k: (0, 0)),     # bias (VMEM-resident)
            ],
            out_specs=pl.BlockSpec((tm, f_out), lambda i, k: (i, 0)),
            scratch_shapes=[pltpu.VMEM((tm, f_out), jnp.float32)],
        ),
        compiler_params=pltpu.CompilerParams(
            dimension_semantics=("parallel", "arbitrary"),
            vmem_limit_bytes=48 * 1024 * 1024,
        ),
    )(a_hat, x, w, b)


# ------------------------------- JAX glue -----------------------------------

def build_normalized_adjacency(edge_index, num_nodes):
    """Dense A_hat = D^{-1/2} (A + I) D^{-1/2}, matching GCNConv's gcn_norm."""
    src = edge_index[0]
    dst = edge_index[1]
    adj = jnp.zeros((num_nodes, num_nodes), jnp.float32)
    # message flows src -> dst : row = target, col = source.
    # NOTE: duplicate (parallel) edges are deduplicated here (set, not scatter-add).
    adj = adj.at[dst, src].set(1.0)
    # add_remaining_self_loops: self-loop weight is exactly 1 (unweighted graph).
    adj = jnp.where(jnp.eye(num_nodes, dtype=bool), 1.0, adj)
    deg = jnp.sum(adj, axis=1)
    d_inv_sqrt = jnp.where(deg > 0, 1.0 / jnp.sqrt(deg), 0.0)
    return d_inv_sqrt[:, None] * adj * d_inv_sqrt[None, :]


def _pad2d(x, rows, cols, dtype):
    out = jnp.zeros((rows, cols), dtype)
    return out.at[: x.shape[0], : x.shape[1]].set(x.astype(dtype))


def glorot_uniform(key, fan_in, fan_out):
    limit = jnp.sqrt(6.0 / (fan_in + fan_out))
    return jax.random.uniform(key, (fan_in, fan_out), jnp.float32, -limit, limit)


def init_gcn_params(key, in_channels, hidden_channels, out_channels):
    k1, k2 = jax.random.split(key)
    return {
        "w1": glorot_uniform(k1, in_channels, hidden_channels),
        "b1": jnp.zeros((hidden_channels,), jnp.float32),
        "w2": glorot_uniform(k2, hidden_channels, out_channels),
        "b2": jnp.zeros((out_channels,), jnp.float32),
    }


def gcn_forward(params, x, a_hat):
    n, f_in = x.shape
    hidden = params["w1"].shape[1]
    f_out = params["w2"].shape[1]

    n_p = _round_up(n, _NODE_PAD)
    f_in_p = _round_up(f_in, _LANE)
    hid_p = _round_up(hidden, _LANE)
    f_out_p = _round_up(f_out, _LANE)

    # One cached bf16 padded A_hat reused by both layers (values in [0,1]).
    # For very large graphs, build A_hat straight into this bf16 buffer to avoid
    # keeping a transient f32 N x N copy in HBM (v5e capacity concern).
    a_p = _pad2d(a_hat, n_p, n_p, jnp.bfloat16)
    x_p = _pad2d(x, n_p, f_in_p, jnp.bfloat16)
    w1_p = _pad2d(params["w1"], f_in_p, hid_p, jnp.bfloat16)
    w2_p = _pad2d(params["w2"], hid_p, f_out_p, jnp.bfloat16)
    b1_p = _pad2d(params["b1"][None, :], 1, hid_p, jnp.float32)
    b2_p = _pad2d(params["b2"][None, :], 1, f_out_p, jnp.float32)

    # ----- layer 1: h = relu(A_hat @ (X @ W1) + b1), fully fused -----
    h = gcn_layer(a_p, x_p, w1_p, b1_p, apply_relu=True, out_dtype=jnp.bfloat16)
    # TODO(synk): F.dropout(p=0.5) is identity in eval mode; training-mode RNG
    # masking is omitted.

    # ----- layer 2: out = A_hat @ (h @ W2) + b2, fully fused -----
    out = gcn_layer(a_p, h, w2_p, b2_p, apply_relu=False, out_dtype=jnp.float32)

    return out[:n, :f_out]


# --------------------------------- main --------------------------------------

if __name__ == "__main__":
    num_nodes = 8
    in_channels, hidden_channels, out_channels = 4, 32, 8

    key = jax.random.PRNGKey(0)
    k_x, k_p = jax.random.split(key)

    # Node features (N, in_channels).
    x = jax.random.normal(k_x, (num_nodes, in_channels), jnp.float32)

    # Ring graph, both directions: edge_index shape (2, 2*N).
    src = jnp.arange(num_nodes, dtype=jnp.int32)
    dst = (src + 1) % num_nodes
    edge_index = jnp.stack(
        [jnp.concatenate([src, dst]), jnp.concatenate([dst, src])], axis=0
    )

    a_hat = build_normalized_adjacency(edge_index, num_nodes)
    params = init_gcn_params(k_p, in_channels, hidden_channels, out_channels)

    out = jax.jit(gcn_forward)(params, x, a_hat)
    jax.block_until_ready(out)

    # Pure-JAX f32 reference of the same math (kernel uses bf16 operands,
    # f32 accumulation -> loose tolerance).
    ref_h = jnp.maximum(a_hat @ (x @ params["w1"]) + params["b1"][None, :], 0.0)
    ref_out = a_hat @ (ref_h @ params["w2"]) + params["b2"][None, :]
    assert out.shape == (num_nodes, out_channels)
    assert jnp.allclose(out, ref_out, atol=5e-2, rtol=5e-2), "mismatch vs reference"

    print("KERNEL_OK")
</pallas_src>

<mosaic_0001>
module attributes {stable_mosaic.version = 11 : i64} {
  func.func @_gcn_layer_kernel(%arg0: i32, %arg1: i32, %arg2: memref<512x1024xbf16, #tpu.memory_space<vmem>>, %arg3: memref<1024x128xbf16, #tpu.memory_space<vmem>>, %arg4: memref<128x128xbf16, #tpu.memory_space<vmem>>, %arg5: memref<1x128xf32, #tpu.memory_space<vmem>>, %arg6: memref<512x128xf32, #tpu.memory_space<vmem>>, %arg7: memref<512x128xf32, #tpu.memory_space<vmem>>) attributes {dimension_semantics = [#tpu.dimension_semantics<parallel>, #tpu.dimension_semantics<arbitrary>], iteration_bounds = array<i64: 2, 1>, scalar_prefetch = 0 : i64, scratch_operands = 1 : i64, tpu.core_type = #tpu.core_type<tc>, window_params = [{transform_indices = @transform_0, window_bounds = array<i64: 512, 1024>}, {transform_indices = @transform_1, window_bounds = array<i64: 1024, 128>}, {pipeline_mode = #tpu.pipeline_mode<synchronous>, transform_indices = @transform_2, window_bounds = array<i64: 128, 128>}, {pipeline_mode = #tpu.pipeline_mode<synchronous>, transform_indices = @transform_3, window_bounds = array<i64: 1, 128>}, {transform_indices = @transform_4, window_bounds = array<i64: 512, 128>}]} {
    %c0_i32 = arith.constant 0 : i32
    %0 = arith.cmpi eq, %arg1, %c0_i32 : i32
    %1 = arith.extui %0 : i1 to i32
    %c0_i32_0 = arith.constant 0 : i32
    %2 = arith.cmpi ne, %1, %c0_i32_0 : i32
    scf.if %2 {
      %cst_13 = arith.constant 0.000000e+00 : f32
      %15 = vector.broadcast %cst_13 : f32 to vector<512x128xf32>
      %c0_14 = arith.constant 0 : index
      %c0_15 = arith.constant 0 : index
      %16 = vector.load %arg7[%c0_14, %c0_15] : memref<512x128xf32, #tpu.memory_space<vmem>>, vector<512x128xf32>
      tpu.vector_store %arg7[%c0_14, %c0_15], %15 {strides = array<i32>} : memref<512x128xf32, #tpu.memory_space<vmem>>, vector<512x128xf32>,
    } else {
    }
    %c0 = arith.constant 0 : index
    %c0_1 = arith.constant 0 : index
    %3 = vector.load %arg3[%c0, %c0_1] : memref<1024x128xbf16, #tpu.memory_space<vmem>>, vector<1024x128xbf16>
    %c0_2 = arith.constant 0 : index
    %c0_3 = arith.constant 0 : index
    %4 = vector.load %arg4[%c0_2, %c0_3] : memref<128x128xbf16, #tpu.memory_space<vmem>>, vector<128x128xbf16>
    %cst = arith.constant dense<0.000000e+00> : vector<1024x128xf32>
    %5 = tpu.matmul %3, %4, %cst {dimension_numbers = #tpu.dot_dimension_numbers<[1], [0], [0], [1], [0, 0, 1, 1], [], []>} : vector<1024x128xbf16>, vector<128x128xbf16>, vector<1024x128xf32> -> vector<1024x128xf32>
    %6 = arith.truncf %5 : vector<1024x128xf32> to vector<1024x128xbf16>
    %c0_4 = arith.constant 0 : index
    %c0_5 = arith.constant 0 : index
    %7 = vector.load %arg7[%c0_4, %c0_5] : memref<512x128xf32, #tpu.memory_space<vmem>>, vector<512x128xf32>
    %c0_6 = arith.constant 0 : index
    %c0_7 = arith.constant 0 : index
    %8 = vector.load %arg2[%c0_6, %c0_7] : memref<512x1024xbf16, #tpu.memory_space<vmem>>, vector<512x1024xbf16>
    %cst_8 = arith.constant dense<0.000000e+00> : vector<512x128xf32>
    %9 = tpu.matmul %8, %6, %cst_8 {dimension_numbers = #tpu.dot_dimension_numbers<[1], [0], [0], [1], [0, 0, 1, 1], [], []>} : vector<512x1024xbf16>, vector<1024x128xbf16>, vector<512x128xf32> -> vector<512x128xf32>
    %10 = arith.addf %7, %9 : vector<512x128xf32>
    %c0_9 = arith.constant 0 : index
    %c0_10 = arith.constant 0 : index
    %11 = vector.load %arg7[%c0_9, %c0_10] : memref<512x128xf32, #tpu.memory_space<vmem>>, vector<512x128xf32>
    tpu.vector_store %arg7[%c0_9, %c0_10], %10 {strides = array<i32>} : memref<512x128xf32, #tpu.memory_space<vmem>>, vector<512x128xf32>,
    %c0_i32_11 = arith.constant 0 : i32
    %12 = arith.cmpi eq, %arg1, %c0_i32_11 : i32
    %13 = arith.extui %12 : i1 to i32
    %c0_i32_12 = arith.constant 0 : i32
    %14 = arith.cmpi ne, %13, %c0_i32_12 : i32
    scf.if %14 {
      %c0_13 = arith.constant 0 : index
      %c0_14 = arith.constant 0 : index
      %15 = vector.load %arg7[%c0_13, %c0_14] : memref<512x128xf32, #tpu.memory_space<vmem>>, vector<512x128xf32>
      %c0_15 = arith.constant 0 : index
      %c0_16 = arith.constant 0 : index
      %16 = vector.load %arg5[%c0_15, %c0_16] : memref<1x128xf32, #tpu.memory_space<vmem>>, vector<1x128xf32>
      %17 = vector.broadcast %16 : vector<1x128xf32> to vector<512x128xf32>
      %18 = arith.addf %15, %17 : vector<512x128xf32>
      %c0_17 = arith.constant 0 : index
      %c0_18 = arith.constant 0 : index
      %19 = vector.load %arg6[%c0_17, %c0_18] : memref<512x128xf32, #tpu.memory_space<vmem>>, vector<512x128xf32>
      tpu.vector_store %arg6[%c0_17, %c0_18], %18 {strides = array<i32>} : memref<512x128xf32, #tpu.memory_space<vmem>>, vector<512x128xf32>,
    } else {
    }
    return
  }
  func.func @transform_0(%arg0: i32, %arg1: i32) -> (i32, i32) {
    %c0_i32 = arith.constant 0 : i32
    return %arg0, %arg1 : i32, i32
  }
  func.func @transform_1(%arg0: i32, %arg1: i32) -> (i32, i32) {
    %c0_i32 = arith.constant 0 : i32
    %c0_i32_0 = arith.constant 0 : i32
    return %arg1, %c0_i32 : i32, i32
  }
  func.func @transform_2(%arg0: i32, %arg1: i32) -> (i32, i32) {
    %c0_i32 = arith.constant 0 : i32
    %c0_i32_0 = arith.constant 0 : i32
    %c0_i32_1 = arith.constant 0 : i32
    return %c0_i32, %c0_i32_0 : i32, i32
  }
  func.func @transform_3(%arg0: i32, %arg1: i32) -> (i32, i32) {
    %c0_i32 = arith.constant 0 : i32
    %c0_i32_0 = arith.constant 0 : i32
    %c0_i32_1 = arith.constant 0 : i32
    return %c0_i32, %c0_i32_0 : i32, i32
  }
  func.func @transform_4(%arg0: i32, %arg1: i32) -> (i32, i32) {
    %c0_i32 = arith.constant 0 : i32
    %c0_i32_0 = arith.constant 0 : i32
    return %arg0, %c0_i32 : i32, i32
  }
}

module attributes {stable_mosaic.version = 11 : i64} {
  func.func @_gcn_layer_kernel(%arg0: i32, %arg1: i32, %arg2: memref<512x1024xbf16, #tpu.memory_space<vmem>>, %arg3: memref<1024x128xbf16, #tpu.memory_space<vmem>>, %arg4: memref<128x128xbf16, #tpu.memory_space<vmem>>, %arg5: memref<1x128xf32, #tpu.memory_space<vmem>>, %arg6: memref<512x128xbf16, #tpu.memory_space<vmem>>, %arg7: memref<512x128xf32, #tpu.memory_space<vmem>>) attributes {dimension_semantics = [#tpu.dimension_semantics<parallel>, #tpu.dimension_semantics<arbitrary>], iteration_bounds = array<i64: 2, 1>, scalar_prefetch = 0 : i64, scratch_operands = 1 : i64, tpu.core_type = #tpu.core_type<tc>, window_params = [{transform_indices = @transform_0, window_bounds = array<i64: 512, 1024>}, {transform_indices = @transform_1, window_bounds = array<i64: 1024, 128>}, {pipeline_mode = #tpu.pipeline_mode<synchronous>, transform_indices = @transform_2, window_bounds = array<i64: 128, 128>}, {pipeline_mode = #tpu.pipeline_mode<synchronous>, transform_indices = @transform_3, window_bounds = array<i64: 1, 128>}, {transform_indices = @transform_4, window_bounds = array<i64: 512, 128>}]} {
    %c0_i32 = arith.constant 0 : i32
    %0 = arith.cmpi eq, %arg1, %c0_i32 : i32
    %1 = arith.extui %0 : i1 to i32
    %c0_i32_0 = arith.constant 0 : i32
    %2 = arith.cmpi ne, %1, %c0_i32_0 : i32
    scf.if %2 {
      %cst_13 = arith.constant 0.000000e+00 : f32
      %15 = vector.broadcast %cst_13 : f32 to vector<512x128xf32>
      %c0_14 = arith.constant 0 : index
      %c0_15 = arith.constant 0 : index
      %16 = vector.load %arg7[%c0_14, %c0_15] : memref<512x128xf32, #tpu.memory_space<vmem>>, vector<512x128xf32>
      tpu.vector_store %arg7[%c0_14, %c0_15], %15 {strides = array<i32>} : memref<512x128xf32, #tpu.memory_space<vmem>>, vector<512x128xf32>,
    } else {
    }
    %c0 = arith.constant 0 : index
    %c0_1 = arith.constant 0 : index
    %3 = vector.load %arg3[%c0, %c0_1] : memref<1024x128xbf16, #tpu.memory_space<vmem>>, vector<1024x128xbf16>
    %c0_2 = arith.constant 0 : index
    %c0_3 = arith.constant 0 : index
    %4 = vector.load %arg4[%c0_2, %c0_3] : memref<128x128xbf16, #tpu.memory_space<vmem>>, vector<128x128xbf16>
    %cst = arith.constant dense<0.000000e+00> : vector<1024x128xf32>
    %5 = tpu.matmul %3, %4, %cst {dimension_numbers = #tpu.dot_dimension_numbers<[1], [0], [0], [1], [0, 0, 1, 1], [], []>} : vector<1024x128xbf16>, vector<128x128xbf16>, vector<1024x128xf32> -> vector<1024x128xf32>
    %6 = arith.truncf %5 : vector<1024x128xf32> to vector<1024x128xbf16>
    %c0_4 = arith.constant 0 : index
    %c0_5 = arith.constant 0 : index
    %7 = vector.load %arg7[%c0_4, %c0_5] : memref<512x128xf32, #tpu.memory_space<vmem>>, vector<512x128xf32>
    %c0_6 = arith.constant 0 : index
    %c0_7 = arith.constant 0 : index
    %8 = vector.load %arg2[%c0_6, %c0_7] : memref<512x1024xbf16, #tpu.memory_space<vmem>>, vector<512x1024xbf16>
    %cst_8 = arith.constant dense<0.000000e+00> : vector<512x128xf32>
    %9 = tpu.matmul %8, %6, %cst_8 {dimension_numbers = #tpu.dot_dimension_numbers<[1], [0], [0], [1], [0, 0, 1, 1], [], []>} : vector<512x1024xbf16>, vector<1024x128xbf16>, vector<512x128xf32> -> vector<512x128xf32>
    %10 = arith.addf %7, %9 : vector<512x128xf32>
    %c0_9 = arith.constant 0 : index
    %c0_10 = arith.constant 0 : index
    %11 = vector.load %arg7[%c0_9, %c0_10] : memref<512x128xf32, #tpu.memory_space<vmem>>, vector<512x128xf32>
    tpu.vector_store %arg7[%c0_9, %c0_10], %10 {strides = array<i32>} : memref<512x128xf32, #tpu.memory_space<vmem>>, vector<512x128xf32>,
    %c0_i32_11 = arith.constant 0 : i32
    %12 = arith.cmpi eq, %arg1, %c0_i32_11 : i32
    %13 = arith.extui %12 : i1 to i32
    %c0_i32_12 = arith.constant 0 : i32
    %14 = arith.cmpi ne, %13, %c0_i32_12 : i32
    scf.if %14 {
      %c0_13 = arith.constant 0 : index
      %c0_14 = arith.constant 0 : index
      %15 = vector.load %arg7[%c0_13, %c0_14] : memref<512x128xf32, #tpu.memory_space<vmem>>, vector<512x128xf32>
      %c0_15 = arith.constant 0 : index
      %c0_16 = arith.constant 0 : index
      %16 = vector.load %arg5[%c0_15, %c0_16] : memref<1x128xf32, #tpu.memory_space<vmem>>, vector<1x128xf32>
      %17 = vector.broadcast %16 : vector<1x128xf32> to vector<512x128xf32>
      %18 = arith.addf %15, %17 : vector<512x128xf32>
      %cst_17 = arith.constant 0.000000e+00 : f32
      %19 = vector.broadcast %cst_17 : f32 to vector<512x128xf32>
      %20 = arith.maximumf %18, %19 : vector<512x128xf32>
      %21 = arith.truncf %20 : vector<512x128xf32> to vector<512x128xbf16>
      %c0_18 = arith.constant 0 : index
      %c0_19 = arith.constant 0 : index
      %22 = vector.load %arg6[%c0_18, %c0_19] : memref<512x128xbf16, #tpu.memory_space<vmem>>, vector<512x128xbf16>
      tpu.vector_store %arg6[%c0_18, %c0_19], %21 {strides = array<i32>} : memref<512x128xbf16, #tpu.memory_space<vmem>>, vector<512x128xbf16>,
    } else {
    }
    return
  }
  func.func @transform_0(%arg0: i32, %arg1: i32) -> (i32, i32) {
    %c0_i32 = arith.constant 0 : i32
    return %arg0, %arg1 : i32, i32
  }
  func.func @transform_1(%arg0: i32, %arg1: i32) -> (i32, i32) {
    %c0_i32 = arith.constant 0 : i32
    %c0_i32_0 = arith.constant 0 : i32
    return %arg1, %c0_i32 : i32, i32
  }
  func.func @transform_2(%arg0: i32, %arg1: i32) -> (i32, i32) {
    %c0_i32 = arith.constant 0 : i32
    %c0_i32_0 = arith.constant 0 : i32
    %c0_i32_1 = arith.constant 0 : i32
    return %c0_i32, %c0_i32_0 : i32, i32
  }
  func.func @transform_3(%arg0: i32, %arg1: i32) -> (i32, i32) {
    %c0_i32 = arith.constant 0 : i32
    %c0_i32_0 = arith.constant 0 : i32
    %c0_i32_1 = arith.constant 0 : i32
    return %c0_i32, %c0_i32_0 : i32, i32
  }
  func.func @transform_4(%arg0: i32, %arg1: i32) -> (i32, i32) {
    %c0_i32 = arith.constant 0 : i32
    %c0_i32_0 = arith.constant 0 : i32
    return %arg0, %c0_i32 : i32, i32
  }
}

</mosaic_0001>

<bundles_post_ra>
// kernel: gcn_forward.3
= control target key start
LH: loop header
LB: loop body
LE: loop exit
PB: predicated region body
PF: predicated region fallthrough
CT: control target
= control target key end

     0   :  { %s5402_s15 = smov 0   ;;  %s5404_s16 = smov 0   ;;  %s6911_s0 = inlined_call_operand.vmem [shape: bf16[1024,1024], index: 0, kind: input, shape index: {}]   ;;  %s6912_s1 = inlined_call_operand.vmem [shape: bf16[1024,128], index: 1, kind: input, shape index: {}]   ;;  %s6913_s2 = inlined_call_operand.vmem [shape: bf16[128,128], index: 2, kind: input, shape index: {}]   ;;  %s6914_s3 = inlined_call_operand.vmem [shape: f32[1,128], index: 3, kind: input, shape index: {}]   ;;  %s6915_s4 = inlined_call_operand.vmem [shape: f32[1024,128], index: 4, kind: output, shape index: {}]  }
   0x1   :  { %s5406_s17 = smov 0  }
   0x2 LB: > { %s26_s18 = sadd.s32 1, %s5370_s16  ;;  %p4685_p0 = scmp.ge.s32.totalorder %s5374_s17, 1  ;;  %s5374_s17 = sphi %s5406_s17, %s14_s17   ;;  %s5370_s16 = sphi %s5404_s16, %s6963_s16   ;;  %s5366_s15 = sphi %s5402_s15, %s6962_s15  }
   0x3   : > { %p28_p1 = scmp.ge.s32.totalorder %s26_s18, 2  ;;  %p194_p2 = scmp.lt.s32.totalorder %s5374_s17, 3 }
   0x5   : > { %s6965_s18 = smov (%p28_p1, %s26_s18), 0  ;;  %p195_p3 = pnand %p4685_p0, %p194_p2 }
   0x7   : > { %198 = sbr.rel (%p195_p3) target bundleno = 1114 (0x45a), region = 36 }
   0xe   : > { %v5280_v0 = vld [vmem:[%s6913_s2] sm:$0xff]   ;;  %v5281_v1 = vld [vmem:[%s6913_s2 + $0x8] sm:$0xff]   ;;  %v5282_v2 = vld [vmem:[%s6913_s2 + $0x10] sm:$0xff]   ;;  %v5376_v53 = vmov 0   ;;  %s4686_s29 = sshll.u32 %s5366_s15, 6 }
   0xf   : > { %5095 = vmatprep.subr.bf16.mxu0 %v5280_v0  ;;  %5239 = vmatprep.subr.bf16.mxu1 %v5280_v0  ;;  %v5283_v3 = vld [vmem:[%s6913_s2 + $0x18] sm:$0xff]   ;;  %v5288_v4 = vld [vmem:[%s6912_s1] sm:$0xff]   ;;  %v5285_v6 = vld [vmem:[%s6913_s2 + $0x28] sm:$0xff]   ;;  %p232_p4 = scmp.lt.s32.totalorder %s4686_s29, 127 }
  0x10   : > { %5096 = vmatpush3.bf16.msra.mxu0 %v5280_v0  ;;  %5247 = vmatpush3.bf16.msra.mxu1 %v5280_v0  ;;  %v5284_v5 = vld [vmem:[%s6913_s2 + $0x20] sm:$0xff]   ;;  %v5286_v7 = vld [vmem:[%s6913_s2 + $0x30] sm:$0xff]   ;;  %v5287_v8 = vld [vmem:[%s6913_s2 + $0x38] sm:$0xff]  }
  0x11   : > { %5097 = vmatprep.subr.bf16.mxu0 %v5281_v1  ;;  %5240 = vmatprep.subr.bf16.mxu1 %v5281_v1  ;;  %v5289_v9 = vld [vmem:[%s6912_s1 + $0x8] sm:$0xff]   ;;  %v5290_v10 = vld [vmem:[%s6912_s1 + $0x10] sm:$0xff]   ;;  %v5291_v11 = vld [vmem:[%s6912_s1 + $0x18] sm:$0xff]   ;;  %s6967_s29 = smov (!%p232_p4, %s4686_s29), 127 }
  0x12   : > { %5111 = vmatprep.mubr.bf16.mxu0 %v5288_v4  ;;  %v5292_v12 = vld [vmem:[%s6912_s1 + $0x20] sm:$0xff]   ;;  %v5321_v14 = vld [vmem:[%s6912_s1 + $0x108] sm:$0xff]   ;;  %v5322_v15 = vld [vmem:[%s6912_s1 + $0x110] sm:$0xff]   ;;  %s5022_s6 = sshll.u32 %s6967_s29, 5  ;;  %s4690_s15 = sshll.u32 %s6967_s29, 3 }
  0x13   : > { %v5320_v13 = vld [vmem:[%s6912_s1 + $0x100] sm:$0xff]   ;;  %v5293_v16 = vld [vmem:[%s6912_s1 + $0x28] sm:$0xff]   ;;  %v5294_v17 = vld [vmem:[%s6912_s1 + $0x30] sm:$0xff]   ;;  %s5647_s9 = scalar_lea.vmem %s6911_s0, %s5022_s6  ;;  %s6562_s14 = scalar_lea.vmem %s6915_s4, %s4690_s15 }
  0x14   : > { %5098 = vmatpush3.bf16.msra.mxu0 %v5281_v1  ;;  %5248 = vmatpush3.bf16.msra.mxu1 %v5281_v1  ;;  %v5323_v18 = vld [vmem:[%s6912_s1 + $0x118] sm:$0xff]   ;;  %v5324_v19 = vld [vmem:[%s6912_s1 + $0x120] sm:$0xff]   ;;  %v5325_v22 = vld [vmem:[%s6912_s1 + $0x128] sm:$0xff]  }
  0x15   : > { %5099 = vmatprep.subr.bf16.mxu0 %v5282_v2  ;;  %5241 = vmatprep.subr.bf16.mxu1 %v5282_v2  ;;  %v5295_v20 = vld [vmem:[%s6912_s1 + $0x38] sm:$0xff]   ;;  %v5296_v21 = vld [vmem:[%s6912_s1 + $0x40] sm:$0xff]   ;;  %v5326_v23 = vld [vmem:[%s6912_s1 + $0x130] sm:$0xff]  }
  0x16   : > { %5175 = vmatprep.mubr.bf16.mxu1 %v5320_v13  ;;  %v5297_v24 = vld [vmem:[%s6912_s1 + $0x48] sm:$0xff]   ;;  %v5298_v25 = vld [vmem:[%s6912_s1 + $0x50] sm:$0xff]   ;;  %v5327_v26 = vld [vmem:[%s6912_s1 + $0x138] sm:$0xff]  }
  0x17   : > { %v5328_v27 = vld [vmem:[%s6912_s1 + $0x140] sm:$0xff]   ;;  %v5299_v28 = vld [vmem:[%s6912_s1 + $0x58] sm:$0xff]   ;;  %v5329_v30 = vld [vmem:[%s6912_s1 + $0x148] sm:$0xff]  }
  0x18   : > { %5100 = vmatpush3.bf16.msra.mxu0 %v5282_v2  ;;  %5249 = vmatpush3.bf16.msra.mxu1 %v5282_v2  ;;  %v5300_v29 = vld [vmem:[%s6912_s1 + $0x60] sm:$0xff]   ;;  %v5330_v31 = vld [vmem:[%s6912_s1 + $0x150] sm:$0xff]   ;;  %v5301_v32 = vld [vmem:[%s6912_s1 + $0x68] sm:$0xff]  }
  0x19   : > { %5101 = vmatprep.subr.bf16.mxu0 %v5283_v3  ;;  %5242 = vmatprep.subr.bf16.mxu1 %v5283_v3  ;;  %v5302_v33 = vld [vmem:[%s6912_s1 + $0x70] sm:$0xff]   ;;  %v5331_v34 = vld [vmem:[%s6912_s1 + $0x158] sm:$0xff]   ;;  %v5332_v35 = vld [vmem:[%s6912_s1 + $0x160] sm:$0xff]  }
  0x1a   : > { %v5303_v36 = vld [vmem:[%s6912_s1 + $0x78] sm:$0xff]   ;;  %v5304_v37 = vld [vmem:[%s6912_s1 + $0x80] sm:$0xff]   ;;  %v5333_v38 = vld [vmem:[%s6912_s1 + $0x168] sm:$0xff]  }
  0x1b   : > { %v5334_v39 = vld [vmem:[%s6912_s1 + $0x170] sm:$0xff]   ;;  %v5305_v40 = vld [vmem:[%s6912_s1 + $0x88] sm:$0xff]   ;;  %v5335_v42 = vld [vmem:[%s6912_s1 + $0x178] sm:$0xff]  }
  0x1c   : > { %5102 = vmatpush3.bf16.msra.mxu0 %v5283_v3  ;;  %5250 = vmatpush3.bf16.msra.mxu1 %v5283_v3  ;;  %v5306_v41 = vld [vmem:[%s6912_s1 + $0x90] sm:$0xff]   ;;  %v5336_v43 = vld [vmem:[%s6912_s1 + $0x180] sm:$0xff]   ;;  %v5307_v44 = vld [vmem:[%s6912_s1 + $0x98] sm:$0xff]  }
  0x1d   : > { %5103 = vmatprep.subr.bf16.mxu0 %v5284_v5  ;;  %5243 = vmatprep.subr.bf16.mxu1 %v5284_v5  ;;  %v5308_v45 = vld [vmem:[%s6912_s1 + $0xa0] sm:$0xff]   ;;  %v5337_v46 = vld [vmem:[%s6912_s1 + $0x188] sm:$0xff]   ;;  %v5310_v48 = vld [vmem:[%s6912_s1 + $0xb0] sm:$0xff]  }
  0x1e   : > { %v5309_v47 = vld [vmem:[%s6912_s1 + $0xa8] sm:$0xff]   ;;  %v5311_v49 = vld [vmem:[%s6912_s1 + $0xb8] sm:$0xff]   ;;  %v5312_v50 = vld [vmem:[%s6912_s1 + $0xc0] sm:$0xff]  }
  0x1f   : > { %v5338_v51 = vld [vmem:[%s6912_s1 + $0x190] sm:$0xff]   ;;  %v5339_v52 = vld [vmem:[%s6912_s1 + $0x198] sm:$0xff]   ;;  %v5313_v54 = vld [vmem:[%s6912_s1 + $0xc8] sm:$0xff]  }
  0x20   : > { %5104 = vmatpush3.bf16.msra.mxu0 %v5284_v5  ;;  %5251 = vmatpush3.bf16.msra.mxu1 %v5284_v5  ;;  %v5314_v55 = vld [vmem:[%s6912_s1 + $0xd0] sm:$0xff]   ;;  %v5315_v56 = vld [vmem:[%s6912_s1 + $0xd8] sm:$0xff]   ;;  %v5316_v57 = vld [vmem:[%s6912_s1 + $0xe0] sm:$0xff]  }
  0x21   : > { %5105 = vmatprep.subr.bf16.mxu0 %v5285_v6  ;;  %5244 = vmatprep.subr.bf16.mxu1 %v5285_v6  ;;  %v5340_v58 = vld [vmem:[%s6912_s1 + $0x1a0] sm:$0xff]   ;;  %v5341_v59 = vld [vmem:[%s6912_s1 + $0x1a8] sm:$0xff]   ;;  %v5318_v61 = vld [vmem:[%s6912_s1 + $0xf0] sm:$0xff]  }
  0x22   : > { %v5317_v60 = vld [vmem:[%s6912_s1 + $0xe8] sm:$0xff]   ;;  %v5342_v62 = vld [vmem:[%s6912_s1 + $0x1b0] sm:$0xff]   ;;  %v5343_v63 = vld [vmem:[%s6912_s1 + $0x1b8] sm:$0xff]  }
  0x23   : > { %v5319_v0 = vld [vmem:[%s6912_s1 + $0xf8] sm:$0xff]   ;;  %v5344_v1 = vld [vmem:[%s6912_s1 + $0x1c0] sm:$0xff]   ;;  %v5345_v2 = vld [vmem:[%s6912_s1 + $0x1c8] sm:$0xff]  }
  0x24   : > { %5106 = vmatpush3.bf16.msra.mxu0 %v5285_v6  ;;  %5252 = vmatpush3.bf16.msra.mxu1 %v5285_v6  ;;  %v5346_v3 = vld [vmem:[%s6912_s1 + $0x1d0] sm:$0xff]   ;;  %v5347_v4 = vld [vmem:[%s6912_s1 + $0x1d8] sm:$0xff]   ;;  %v5348_v5 = vld [vmem:[%s6912_s1 + $0x1e0] sm:$0xff]  }
  0x25   : > { %5107 = vmatprep.subr.bf16.mxu0 %v5286_v7  ;;  %5245 = vmatprep.subr.bf16.mxu1 %v5286_v7  ;;  %v5349_v6 = vld [vmem:[%s6912_s1 + $0x1e8] sm:$0xff]  }
  0x28   : > { %5108 = vmatpush3.bf16.msra.mxu0 %v5286_v7  ;;  %5253 = vmatpush3.bf16.msra.mxu1 %v5286_v7  ;;  %v5350_v7 = vld [vmem:[%s6912_s1 + $0x1f0] sm:$0xff]  }
  0x29   : > { %5109 = vmatprep.subr.bf16.mxu0 %v5287_v8  ;;  %5246 = vmatprep.subr.bf16.mxu1 %v5287_v8 }
  0x2c   : > { %5110 = vmatpush3.bf16.msra.mxu0 %v5287_v8  ;;  %5254 = vmatpush3.bf16.msra.mxu1 %v5287_v8  ;;  %v5351_v8 = vld [vmem:[%s6912_s1 + $0x1f8] sm:$0xff]  }
  0x2d   : > { %3108 = vmatprep.subr.bf16.mxu1 %v5376_v53  ;;  %3397 = vmatprep.subr.bf16.mxu0 %v5376_v53 }
  0x2f   : > { %5112 = vmatmul.mubr.bf16.vlgmr.msra.gmra.mrb[0].mxu0 %v5289_v9  ;;  %5176 = vmatmul.mubr.bf16.vlgmr.msra.gmra.mrb[0].mxu1 %v5321_v14  ;;  %v5650_v9 = vld [vmem:[%s5647_s9] sm:$0xff] }
  0x30   : > { %5115 = vmatprep.mubr.bf16.mxu0 %v5290_v10  ;;  %5179 = vmatprep.mubr.bf16.mxu1 %v5322_v15  ;;  %v5653_v10 = vld [vmem:[%s5647_s9 + $0x20] sm:$0xff]  ;;  %v5660_v15 = vld [vmem:[%s5647_s9 + $0x8] sm:$0xff] }
  0x37   : > { %5116 = vmatmul.mubr.bf16.gmra.mrb[4].mxu0 %v5291_v11  ;;  %5180 = vmatmul.mubr.bf16.gmra.mrb[4].mxu1 %v5323_v18  ;;  %v4764_v11 = vcombine.high %v5650_v9, %v5653_v10 }
  0x38   : > { %5119 = vmatprep.mubr.bf16.mxu0 %v5292_v12  ;;  %5183 = vmatprep.mubr.bf16.mxu1 %v5324_v19  ;;  %v4763_v12 = vcombine.low %v5650_v9, %v5653_v10 }
  0x3f   : > { %5120 = vmatmul.mubr.bf16.gmra.mrb[8].mxu0 %v5293_v16  ;;  %5184 = vmatmul.mubr.bf16.gmra.mrb[8].mxu1 %v5325_v22 }
  0x40   : > { %5123 = vmatprep.mubr.bf16.mxu0 %v5294_v17  ;;  %5187 = vmatprep.mubr.bf16.mxu1 %v5326_v23  ;;  %v5663_v17 = vld [vmem:[%s5647_s9 + $0x28] sm:$0xff] }
  0x47   : > { %5124 = vmatmul.mubr.bf16.gmra.mrb[12].mxu0 %v5295_v20  ;;  %5188 = vmatmul.mubr.bf16.gmra.mrb[12].mxu1 %v5327_v26 }
  0x48   : > { %5127 = vmatprep.mubr.bf16.mxu0 %v5296_v21  ;;  %5191 = vmatprep.mubr.bf16.mxu1 %v5328_v27  ;;  %v4766_v21 = vcombine.high %v5660_v15, %v5663_v17 }
  0x4f   : > { %5128 = vmatmul.mubr.bf16.gmra.mrb[16].mxu0 %v5297_v24  ;;  %5192 = vmatmul.mubr.bf16.gmra.mrb[16].mxu1 %v5329_v30 }
  0x50   : > { %5131 = vmatprep.mubr.bf16.mxu0 %v5298_v25  ;;  %5195 = vmatprep.mubr.bf16.mxu1 %v5330_v31 }
  0x57   : > { %5132 = vmatmul.mubr.bf16.gmra.mrb[20].mxu0 %v5299_v28  ;;  %5196 = vmatmul.mubr.bf16.gmra.mrb[20].mxu1 %v5331_v34 }
  0x58   : > { %5135 = vmatprep.mubr.bf16.mxu0 %v5300_v29  ;;  %5199 = vmatprep.mubr.bf16.mxu1 %v5332_v35 }
  0x5f   : > { %5136 = vmatmul.mubr.bf16.gmra.mrb[24].mxu0 %v5301_v32  ;;  %5200 = vmatmul.mubr.bf16.gmra.mrb[24].mxu1 %v5333_v38 }
  0x60   : > { %5139 = vmatprep.mubr.bf16.mxu0 %v5302_v33  ;;  %5203 = vmatprep.mubr.bf16.mxu1 %v5334_v39 }
  0x67   : > { %5140 = vmatmul.mubr.bf16.gmra.mrb[28].mxu0 %v5303_v36  ;;  %5204 = vmatmul.mubr.bf16.gmra.mrb[28].mxu1 %v5335_v42 }
  0x68   : > { %5143 = vmatprep.mubr.bf16.mxu0 %v5304_v37  ;;  %5207 = vmatprep.mubr.bf16.mxu1 %v5336_v43 }
  0x6f   : > { %5144 = vmatmul.mubr.bf16.gmra.mrb[32].mxu0 %v5305_v40  ;;  %5208 = vmatmul.mubr.bf16.gmra.mrb[32].mxu1 %v5337_v46 }
  0x70   : > { %5147 = vmatprep.mubr.bf16.mxu0 %v5306_v41  ;;  %5211 = vmatprep.mubr.bf16.mxu1 %v5338_v51 }
  0x77   : > { %5148 = vmatmul.mubr.bf16.gmra.mrb[36].mxu0 %v5307_v44  ;;  %5212 = vmatmul.mubr.bf16.gmra.mrb[36].mxu1 %v5339_v52 }
  0x78   : > { %5151 = vmatprep.mubr.bf16.mxu0 %v5308_v45  ;;  %5215 = vmatprep.mubr.bf16.mxu1 %v5340_v58 }
  0x7f   : > { %5152 = vmatmul.mubr.bf16.gmra.mrb[40].mxu0 %v5309_v47  ;;  %5216 = vmatmul.mubr.bf16.gmra.mrb[40].mxu1 %v5341_v59 }
  0x80   : > { %5155 = vmatprep.mubr.bf16.mxu0 %v5310_v48  ;;  %5219 = vmatprep.mubr.bf16.mxu1 %v5342_v62 }
  0x87   : > { %5156 = vmatmul.mubr.bf16.gmra.mrb[44].mxu0 %v5311_v49  ;;  %5220 = vmatmul.mubr.bf16.gmra.mrb[44].mxu1 %v5343_v63 }
  0x88   : > { %5159 = vmatprep.mubr.bf16.mxu0 %v5312_v50  ;;  %5223 = vmatprep.mubr.bf16.mxu1 %v5344_v1 }
  0x8f   : > { %5160 = vmatmul.mubr.bf16.gmra.mrb[48].mxu0 %v5313_v54  ;;  %5224 = vmatmul.mubr.bf16.gmra.mrb[48].mxu1 %v5345_v2 }
  0x90   : > { %5163 = vmatprep.mubr.bf16.mxu0 %v5314_v55  ;;  %5227 = vmatprep.mubr.bf16.mxu1 %v5346_v3 }
  0x97   : > { %5164 = vmatmul.mubr.bf16.gmra.mrb[52].mxu0 %v5315_v56  ;;  %5228 = vmatmul.mubr.bf16.gmra.mrb[52].mxu1 %v5347_v4 }
  0x98   : > { %5167 = vmatprep.mubr.bf16.mxu0 %v5316_v57  ;;  %5231 = vmatprep.mubr.bf16.mxu1 %v5348_v5 }
  0x9f   : > { %5168 = vmatmul.mubr.bf16.gmra.mrb[56].mxu0 %v5317_v60  ;;  %5232 = vmatmul.mubr.bf16.gmra.mrb[56].mxu1 %v5349_v6 }
  0xa0   : > { %5171 = vmatprep.mubr.bf16.mxu0 %v5318_v61  ;;  %5235 = vmatprep.mubr.bf16.mxu1 %v5350_v7 }
  0xa7   : > { %5172 = vmatmul.mubr.bf16.gmra.mrb[60].mxu0 %v5319_v0  ;;  %5236 = vmatmul.mubr.bf16.gmra.mrb[60].mxu1 %v5351_v8 }
  0xa8   : > { %3140 = vmatprep.mubr.bf16.mxu1 %v4764_v11  ;;  %3429 = vmatprep.mubr.bf16.mxu0 %v4766_v21 }
 0x102   : > { %v5113_v13 = vpop.f32.mrb[0].mxu0  ;;  %v5670_v25 = vpop.f32.mrb[0].mxu1 }
 0x103   : > { %v933_v14 = vpop.f32.mrb[1].mxu0  ;;  %v5672_v27 = vpop.f32.mrb[1].mxu1 }
 0x104   : > { %v5114_v16 = vpop.f32.mrb[2].mxu0  ;;  %v5675_v30 = vpop.f32.mrb[2].mxu1 }
 0x105   : > { %v1445_v18 = vpack.c.bf16 %v5114_v16, %v5113_v13  ;;  %v936_v19 = vpop.f32.mrb[3].mxu0  ;;  %v1477_v32 = vpack.c.bf16 %v5675_v30, %v5670_v25  ;;  %v5679_v33 = vpop.f32.mrb[3].mxu1  ;;  %v1596_v25 = vld [vmem:[%s5647_s9 + $0xc0] sm:$0xff] }
 0x106   : > { %v1444_v22 = vpack.c.bf16 %v936_v19, %v933_v14  ;;  %v1476_v34 = vpack.c.bf16 %v5679_v33, %v5672_v27  ;;  %v1600_v30 = vld [vmem:[%s5647_s9 + $0xe0] sm:$0xff] }
 0x108   : > { %3109 = vmatpush1.bf16.msra.mxu1 %v1444_v22 }
 0x109   : > { %3110 = vmatprep.subr.bf16.mxu1 %v5376_v53 }
 0x10a   : > { %v5117_v23 = vpop.f32.mrb[4].mxu0  ;;  %v5684_v37 = vpop.f32.mrb[4].mxu1 }
 0x10b   : > { %v949_v24 = vpop.f32.mrb[5].mxu0  ;;  %v5686_v39 = vpop.f32.mrb[5].mxu1 }
 0x10c   : > { %v5118_v26 = vpop.f32.mrb[6].mxu0  ;;  %3111 = vmatpush1.bf16.msra.mxu1 %v1445_v18  ;;  %v5689_v42 = vpop.f32.mrb[6].mxu1 }
 0x10d   : > { %v1447_v28 = vpack.c.bf16 %v5118_v26, %v5117_v23  ;;  %v952_v29 = vpop.f32.mrb[7].mxu0  ;;  %3112 = vmatprep.subr.bf16.mxu1 %v5376_v53  ;;  %v1479_v44 = vpack.c.bf16 %v5689_v42, %v5684_v37  ;;  %v5693_v45 = vpop.f32.mrb[7].mxu1  ;;  %v4787_v37 = vcombine.low %v1596_v25, %v1600_v30 }
 0x10e   : > { %v1446_v31 = vpack.c.bf16 %v952_v29, %v949_v24  ;;  %v1478_v46 = vpack.c.bf16 %v5693_v45, %v5686_v39  ;;  %v1604_v45 = vld [vmem:[%s5647_s9 + $0x100] sm:$0xff] }
 0x110   : > { %3113 = vmatpush1.bf16.msra.mxu1 %v1446_v31 }
 0x111   : > { %3114 = vmatprep.subr.bf16.mxu1 %v5376_v53 }
 0x112   : > { %v5121_v35 = vpop.f32.mrb[8].mxu0  ;;  %v5698_v49 = vpop.f32.mrb[8].mxu1 }
 0x113   : > { %v965_v36 = vpop.f32.mrb[9].mxu0  ;;  %v5700_v51 = vpop.f32.mrb[9].mxu1 }
 0x114   : > { %v5122_v38 = vpop.f32.mrb[10].mxu0  ;;  %3115 = vmatpush1.bf16.msra.mxu1 %v1447_v28  ;;  %v5703_v55 = vpop.f32.mrb[10].mxu1 }
 0x115   : > { %v1449_v40 = vpack.c.bf16 %v5122_v38, %v5121_v35  ;;  %v968_v41 = vpop.f32.mrb[11].mxu0  ;;  %3116 = vmatprep.subr.bf16.mxu1 %v5376_v53  ;;  %v1481_v57 = vpack.c.bf16 %v5703_v55, %v5698_v49  ;;  %v5707_v58 = vpop.f32.mrb[11].mxu1  ;;  %v1612_v49 = vld [vmem:[%s5647_s9 + $0x140] sm:$0xff] }
 0x116   : > { %v1448_v43 = vpack.c.bf16 %v968_v41, %v965_v36  ;;  %v1480_v59 = vpack.c.bf16 %v5707_v58, %v5700_v51  ;;  %v1616_v55 = vld [vmem:[%s5647_s9 + $0x160] sm:$0xff] }
 0x118   : > { %3117 = vmatpush1.bf16.msra.mxu1 %v1448_v43 }
 0x119   : > { %3118 = vmatprep.subr.bf16.mxu1 %v5376_v53 }
 0x11a   : > { %v5125_v47 = vpop.f32.mrb[12].mxu0  ;;  %v5712_v62 = vpop.f32.mrb[12].mxu1 }
 0x11b   : > { %v981_v48 = vpop.f32.mrb[13].mxu0  ;;  %v5714_v0 = vpop.f32.mrb[13].mxu1 }
 0x11c   : > { %v5126_v50 = vpop.f32.mrb[14].mxu0  ;;  %3119 = vmatpush1.bf16.msra.mxu1 %v1449_v40  ;;  %v5717_v3 = vpop.f32.mrb[14].mxu1 }
 0x11d   : > { %v1451_v52 = vpack.c.bf16 %v5126_v50, %v5125_v47  ;;  %v984_v54 = vpop.f32.mrb[15].mxu0  ;;  %3120 = vmatprep.subr.bf16.mxu1 %v5376_v53  ;;  %v1483_v5 = vpack.c.bf16 %v5717_v3, %v5712_v62  ;;  %v5721_v6 = vpop.f32.mrb[15].mxu1  ;;  %v4803_v3 = vcombine.low %v1612_v49, %v1616_v55 }
 0x11e   : > { %v1450_v56 = vpack.c.bf16 %v984_v54, %v981_v48  ;;  %v1482_v7 = vpack.c.bf16 %v5721_v6, %v5714_v0  ;;  %v1620_v6 = vld [vmem:[%s5647_s9 + $0x180] sm:$0xff] }
 0x120   : > { %3121 = vmatpush1.bf16.msra.mxu1 %v1450_v56 }
 0x121   : > { %3122 = vmatprep.subr.bf16.mxu1 %v5376_v53 }
 0x122   : > { %v5129_v60 = vpop.f32.mrb[16].mxu0  ;;  %v5726_v13 = vpop.f32.mrb[16].mxu1 }
 0x123   : > { %v997_v61 = vpop.f32.mrb[17].mxu0  ;;  %v5728_v16 = vpop.f32.mrb[17].mxu1 }
 0x124   : > { %v5130_v63 = vpop.f32.mrb[18].mxu0  ;;  %3123 = vmatpush1.bf16.msra.mxu1 %v1451_v52  ;;  %v5731_v21 = vpop.f32.mrb[18].mxu1 }
 0x125   : > { %v1453_v1 = vpack.c.bf16 %v5130_v63, %v5129_v60  ;;  %v1000_v2 = vpop.f32.mrb[19].mxu0  ;;  %3124 = vmatprep.subr.bf16.mxu1 %v5376_v53  ;;  %v1485_v23 = vpack.c.bf16 %v5731_v21, %v5726_v13  ;;  %v5735_v24 = vpop.f32.mrb[19].mxu1 }
 0x126   : > { %v1452_v4 = vpack.c.bf16 %v1000_v2, %v997_v61  ;;  %v1484_v26 = vpack.c.bf16 %v5735_v24, %v5728_v16  ;;  %v1628_v24 = vld [vmem:[%s5647_s9 + $0x1c0] sm:$0xff] }
 0x128   : > { %3125 = vmatpush1.bf16.msra.mxu1 %v1452_v4 }
 0x129   : > { %3126 = vmatprep.subr.bf16.mxu1 %v5376_v53 }
 0x12a   : > { %v5133_v8 = vpop.f32.mrb[20].mxu0  ;;  %v5740_v31 = vpop.f32.mrb[20].mxu1 }
 0x12b   : > { %v1013_v11 = vpop.f32.mrb[21].mxu0  ;;  %v5742_v36 = vpop.f32.mrb[21].mxu1 }
 0x12c   : > { %v5134_v14 = vpop.f32.mrb[22].mxu0  ;;  %3127 = vmatpush1.bf16.msra.mxu1 %v1453_v1  ;;  %v5745_v41 = vpop.f32.mrb[22].mxu1 }
 0x12d   : > { %v1455_v18 = vpack.c.bf16 %v5134_v14, %v5133_v8  ;;  %v1016_v19 = vpop.f32.mrb[23].mxu0  ;;  %3128 = vmatprep.subr.bf16.mxu1 %v5376_v53  ;;  %v1487_v47 = vpack.c.bf16 %v5745_v41, %v5740_v31  ;;  %v5749_v48 = vpop.f32.mrb[23].mxu1 }
 0x12e   : > { %v1454_v22 = vpack.c.bf16 %v1016_v19, %v1013_v11  ;;  %v1486_v50 = vpack.c.bf16 %v5749_v48, %v5742_v36  ;;  %v1584_v19 = vld [vmem:[%s5647_s9 + $0x60] sm:$0xff] }
 0x130   : > { %3129 = vmatpush1.bf16.msra.mxu1 %v1454_v22 }
 0x131   : > { %3130 = vmatprep.subr.bf16.mxu1 %v5376_v53 }
 0x132   : > { %v5137_v28 = vpop.f32.mrb[24].mxu0  ;;  %v5754_v56 = vpop.f32.mrb[24].mxu1 }
 0x133   : > { %v1029_v29 = vpop.f32.mrb[25].mxu0  ;;  %v5756_v61 = vpop.f32.mrb[25].mxu1 }
 0x134   : > { %v5138_v35 = vpop.f32.mrb[26].mxu0  ;;  %3131 = vmatpush1.bf16.msra.mxu1 %v1455_v18  ;;  %v5759_v2 = vpop.f32.mrb[26].mxu1  ;;  %v1580_v18 = vld [vmem:[%s5647_s9 + $0x40] sm:$0xff] }
 0x135   : > { %v1457_v38 = vpack.c.bf16 %v5138_v35, %v5137_v28  ;;  %v1032_v40 = vpop.f32.mrb[27].mxu0  ;;  %3132 = vmatprep.subr.bf16.mxu1 %v5376_v53  ;;  %v1489_v8 = vpack.c.bf16 %v5759_v2, %v5754_v56  ;;  %v5763_v11 = vpop.f32.mrb[27].mxu1  ;;  %v4771_v20 = vcombine.low %v1580_v18, %v1584_v19 }
 0x136   : > { %v1456_v43 = vpack.c.bf16 %v1032_v40, %v1029_v29  ;;  %v1488_v14 = vpack.c.bf16 %v5763_v11, %v5756_v61 }
 0x138   : > { %3133 = vmatpush1.bf16.msra.mxu1 %v1456_v43 }
 0x139   : > { %3134 = vmatprep.subr.bf16.mxu1 %v5376_v53 }
 0x13a   : > { %v5141_v52 = vpop.f32.mrb[28].mxu0  ;;  %v5770_v29 = vpop.f32.mrb[28].mxu1 }
 0x13b   : > { %v1045_v54 = vpop.f32.mrb[29].mxu0  ;;  %v5772_v40 = vpop.f32.mrb[29].mxu1 }
 0x13c   : > { %v5142_v60 = vpop.f32.mrb[30].mxu0  ;;  %3135 = vmatpush1.bf16.msra.mxu1 %v1457_v38  ;;  %v4772_v38 = vcombine.high %v1580_v18, %v1584_v19 }
 0x13d   : > { %v1459_v63 = vpack.c.bf16 %v5142_v60, %v5141_v52  ;;  %v1048_v1 = vpop.f32.mrb[31].mxu0  ;;  %3136 = vmatprep.subr.bf16.mxu1 %v5376_v53 }
 0x13e   : > { %v1458_v4 = vpack.c.bf16 %v1048_v1, %v1045_v54  ;;  %v5775_v54 = vpop.f32.mrb[30].mxu1 }
 0x140   : > { %3137 = vmatpush1.bf16.msra.mxu1 %v1458_v4  ;;  %v5779_v4 = vpop.f32.mrb[31].mxu1 }
 0x141   : > { %3138 = vmatprep.subr.bf16.mxu1 %v5376_v53 }
 0x142   : > { %v5145_v22 = vpop.f32.mrb[32].mxu0  ;;  %v5793_v9 = vpop.f32.mrb[32].mxu1 }
 0x143   : > { %v1061_v28 = vpop.f32.mrb[33].mxu0 }
 0x144   : > { %v5146_v35 = vpop.f32.mrb[34].mxu0  ;;  %3139 = vmatpush1.bf16.msra.mxu1 %v1459_v63  ;;  %v1490_v63 = vpack.c.bf16 %v5779_v4, %v5772_v40  ;;  %v1652_v40 = vld [vmem:[%s5647_s9 + $0x280] sm:$0xff] }
 0x145   : > { %v1461_v43 = vpack.c.bf16 %v5146_v35, %v5145_v22  ;;  %v1064_v52 = vpop.f32.mrb[35].mxu0  ;;  %3686 = vmatprep.subr.bf16.mxu1 %v5376_v53  ;;  %v1588_v22 = vld [vmem:[%s5647_s9 + $0x80] sm:$0xff] }
 0x146   : > { %v1460_v60 = vpack.c.bf16 %v1064_v52, %v1061_v28  ;;  %v1592_v35 = vld [vmem:[%s5647_s9 + $0xa0] sm:$0xff] }
 0x147   : > { %3141 = vmatmul.mubr.bf16.vlgmr.msra.gmra.mrb[64].mxu1 %v4763_v12  ;;  %v4780_v12 = vcombine.high %v1588_v22, %v1592_v35  ;;  %v1656_v4 = vld [vmem:[%s5647_s9 + $0x2a0] sm:$0xff] }
 0x148   : > { %3398 = vmatpush1.bf16.msra.mxu0 %v1460_v60  ;;  %3148 = vmatprep.mubr.bf16.mxu1 %v4772_v38  ;;  %v5795_v38 = vpop.f32.mrb[33].mxu1 }
 0x149   : > { %3399 = vmatprep.subr.bf16.mxu0 %v5376_v53  ;;  %3687 = vmatpush1.bf16.msra.mxu1 %v1476_v34  ;;  %v5801_v27 = vpop.f32.mrb[34].mxu1 }
 0x14a   : > { %v5149_v28 = vpop.f32.mrb[36].mxu0  ;;  %3688 = vmatprep.subr.bf16.mxu1 %v5376_v53  ;;  %v1493_v34 = vpack.c.bf16 %v5801_v27, %v5793_v9  ;;  %v5806_v18 = vpop.f32.mrb[35].mxu1  ;;  %v4843_v9 = vcombine.low %v1652_v40, %v1656_v4 }
 0x14b   : > { %v1077_v52 = vpop.f32.mrb[37].mxu0  ;;  %v1492_v19 = vpack.c.bf16 %v5806_v18, %v5795_v38  ;;  %v1664_v38 = vld [vmem:[%s5647_s9 + $0x2e0] sm:$0xff]  ;;  %v1597_v18 = vld [vmem:[%s5647_s9 + $0xc8] sm:$0xff] }
 0x14c   : > { %v5150_v10 = vpop.f32.mrb[38].mxu0  ;;  %3400 = vmatpush1.bf16.msra.mxu0 %v1461_v43 }
 0x14d   : > { %v1463_v60 = vpack.c.bf16 %v5150_v10, %v5149_v28  ;;  %v1080_v1 = vpop.f32.mrb[39].mxu0  ;;  %3401 = vmatprep.subr.bf16.mxu0 %v5376_v53  ;;  %3689 = vmatpush1.bf16.msra.mxu1 %v1477_v32  ;;  %v4788_v28 = vcombine.high %v1596_v25, %v1600_v30 }
 0x14e   : > { %v1462_v33 = vpack.c.bf16 %v1080_v1, %v1077_v52  ;;  %3690 = vmatprep.subr.bf16.mxu1 %v5376_v53 }
 0x14f   : > { %3149 = vmatmul.mubr.bf16.gmra.mrb[68].mxu1 %v4771_v20  ;;  %v4779_v20 = vcombine.low %v1588_v22, %v1592_v35 }
 0x150   : > { %3402 = vmatpush1.bf16.msra.mxu0 %v1462_v33  ;;  %3156 = vmatprep.mubr.bf16.mxu1 %v4780_v12  ;;  %v5829_v12 = vpop.f32.mrb[36].mxu1 }
 0x151   : > { %3403 = vmatprep.subr.bf16.mxu0 %v5376_v53  ;;  %3691 = vmatpush1.bf16.msra.mxu1 %v1478_v46  ;;  %v1608_v46 = vld [vmem:[%s5647_s9 + $0x120] sm:$0xff]  ;;  %v5835_v51 = vpop.f32.mrb[37].mxu1 }
 0x152   : > { %v5153_v32 = vpop.f32.mrb[40].mxu0  ;;  %3692 = vmatprep.subr.bf16.mxu1 %v5376_v53 }
 0x153   : > { %v1093_v43 = vpop.f32.mrb[41].mxu0 }
 0x154   : > { %v5154_v1 = vpop.f32.mrb[42].mxu0  ;;  %3404 = vmatpush1.bf16.msra.mxu0 %v1463_v60 }
 0x155   : > { %v1465_v52 = vpack.c.bf16 %v5154_v1, %v5153_v32  ;;  %v1096_v10 = vpop.f32.mrb[43].mxu0  ;;  %3405 = vmatprep.subr.bf16.mxu0 %v5376_v53  ;;  %3693 = vmatpush1.bf16.msra.mxu1 %v1479_v44  ;;  %v4796_v44 = vcombine.high %v1604_v45, %v1608_v46 }
 0x156   : > { %v1464_v39 = vpack.c.bf16 %v1096_v10, %v1093_v43  ;;  %3694 = vmatprep.subr.bf16.mxu1 %v5376_v53 }
 0x157   : > { %3157 = vmatmul.mubr.bf16.gmra.mrb[72].mxu1 %v4779_v20  ;;  %v4795_v20 = vcombine.low %v1604_v45, %v1608_v46 }
 0x158   : > { %3406 = vmatpush1.bf16.msra.mxu0 %v1464_v39  ;;  %3164 = vmatprep.mubr.bf16.mxu1 %v4788_v28  ;;  %v4804_v28 = vcombine.high %v1612_v49, %v1616_v55 }
 0x159   : > { %3407 = vmatprep.subr.bf16.mxu0 %v5376_v53  ;;  %3695 = vmatpush1.bf16.msra.mxu1 %v1480_v59  ;;  %v5838_v59 = vpop.f32.mrb[38].mxu1 }
 0x15a   : > { %v5157_v22 = vpop.f32.mrb[44].mxu0  ;;  %3696 = vmatprep.subr.bf16.mxu1 %v5376_v53  ;;  %v1495_v25 = vpack.c.bf16 %v5838_v59, %v5829_v12  ;;  %v5842_v30 = vpop.f32.mrb[39].mxu1 }
 0x15b   : > { %v1109_v35 = vpop.f32.mrb[45].mxu0  ;;  %v1494_v32 = vpack.c.bf16 %v5842_v30, %v5835_v51  ;;  %v5882_v48 = vpop.f32.mrb[40].mxu1  ;;  %v1668_v51 = vld [vmem:[%s5647_s9 + $0x300] sm:$0xff] }
 0x15c   : > { %v5158_v42 = vpop.f32.mrb[46].mxu0  ;;  %3408 = vmatpush1.bf16.msra.mxu0 %v1465_v52 }
 0x15d   : > { %v1467_v60 = vpack.c.bf16 %v5158_v42, %v5157_v22  ;;  %v1112_v33 = vpop.f32.mrb[47].mxu0  ;;  %3409 = vmatprep.subr.bf16.mxu0 %v5376_v53  ;;  %3697 = vmatpush1.bf16.msra.mxu1 %v1481_v57 }
 0x15e   : > { %v1466_v58 = vpack.c.bf16 %v1112_v33, %v1109_v35  ;;  %3698 = vmatprep.subr.bf16.mxu1 %v5376_v53  ;;  %v1640_v33 = vld [vmem:[%s5647_s9 + $0x220] sm:$0xff] }
 0x15f   : > { %3165 = vmatmul.mubr.bf16.gmra.mrb[76].mxu1 %v4787_v37 }
 0x160   : > { %3410 = vmatpush1.bf16.msra.mxu0 %v1466_v58  ;;  %3172 = vmatprep.mubr.bf16.mxu1 %v4796_v44 }
 0x161   : > { %3411 = vmatprep.subr.bf16.mxu0 %v5376_v53  ;;  %3699 = vmatpush1.bf16.msra.mxu1 %v1482_v7  ;;  %v1624_v7 = vld [vmem:[%s5647_s9 + $0x1a0] sm:$0xff] }
 0x162   : > { %v5161_v57 = vpop.f32.mrb[48].mxu0  ;;  %3700 = vmatprep.subr.bf16.mxu1 %v5376_v53  ;;  %v4812_v45 = vcombine.high %v1620_v6, %v1624_v7  ;;  %v4811_v13 = vcombine.low %v1620_v6, %v1624_v7  ;;  %v6917_v6 = vcombine.low %v5660_v15, %v5663_v17  ;;  %v1593_v7 = vld [vmem:[%s5647_s9 + $0xa8] sm:$0xff]  ;;  %v4844_v15 = vcombine.high %v1652_v40, %v1656_v4 }
 0x163   : > { %v1125_v43 = vpop.f32.mrb[49].mxu0  ;;  %v1641_v40 = vld [vmem:[%s5647_s9 + $0x228] sm:$0xff] }
 0x164   : > { %v5162_v1 = vpop.f32.mrb[50].mxu0  ;;  %3412 = vmatpush1.bf16.msra.mxu0 %v1467_v60  ;;  %v1636_v60 = vld [vmem:[%s5647_s9 + $0x200] sm:$0xff] }
 0x165   : > { %v1469_v52 = vpack.c.bf16 %v5162_v1, %v5161_v57  ;;  %v1128_v10 = vpop.f32.mrb[51].mxu0  ;;  %3413 = vmatprep.subr.bf16.mxu0 %v5376_v53  ;;  %3701 = vmatpush1.bf16.msra.mxu1 %v1483_v5  ;;  %v4828_v11 = vcombine.high %v1636_v60, %v1640_v33  ;;  %v1644_v1 = vld [vmem:[%s5647_s9 + $0x240] sm:$0xff]  ;;  %v4827_v56 = vcombine.low %v1636_v60, %v1640_v33  ;;  %v1621_v60 = vld [vmem:[%s5647_s9 + $0x188] sm:$0xff] }
 0x166   : > { %v1468_v0 = vpack.c.bf16 %v1128_v10, %v1125_v43  ;;  %3702 = vmatprep.subr.bf16.mxu1 %v5376_v53  ;;  %v1585_v10 = vld [vmem:[%s5647_s9 + $0x68] sm:$0xff] }
 0x167   : > { %3173 = vmatmul.mubr.bf16.gmra.mrb[80].mxu1 %v4795_v20  ;;  %v1625_v33 = vld [vmem:[%s5647_s9 + $0x1a8] sm:$0xff] }
 0x168   : > { %3414 = vmatpush1.bf16.msra.mxu0 %v1468_v0  ;;  %3180 = vmatprep.mubr.bf16.mxu1 %v4804_v28  ;;  %v1648_v28 = vld [vmem:[%s5647_s9 + $0x260] sm:$0xff]  ;;  %v6916_v0 = vpack.c.bf16 %v5775_v54, %v5770_v29 }
 0x169   : > { %3415 = vmatprep.subr.bf16.mxu0 %v5376_v53  ;;  %3703 = vmatpush1.bf16.msra.mxu1 %v1484_v26  ;;  %v1632_v26 = vld [vmem:[%s5647_s9 + $0x1e0] sm:$0xff]  ;;  %v4836_v2 = vcombine.high %v1644_v1, %v1648_v28  ;;  %v4835_v29 = vcombine.low %v1644_v1, %v1648_v28 }
 0x16a   : > { %v5165_v39 = vpop.f32.mrb[52].mxu0  ;;  %3704 = vmatprep.subr.bf16.mxu1 %v5376_v53  ;;  %v4819_v55 = vcombine.low %v1628_v24, %v1632_v26 }
 0x16b   : > { %v1141_v62 = vpop.f32.mrb[53].mxu0 }
 0x16c   : > { %v5166_v5 = vpop.f32.mrb[54].mxu0  ;;  %3416 = vmatpush1.bf16.msra.mxu0 %v1469_v52  ;;  %v1581_v52 = vld [vmem:[%s5647_s9 + $0x48] sm:$0xff] }
 0x16d   : > { %v1471_v46 = vpack.c.bf16 %v5166_v5, %v5165_v39  ;;  %v1144_v22 = vpop.f32.mrb[55].mxu0  ;;  %3417 = vmatprep.subr.bf16.mxu0 %v5376_v53  ;;  %3705 = vmatpush1.bf16.msra.mxu1 %v1485_v23  ;;  %v4820_v23 = vcombine.high %v1628_v24, %v1632_v26  ;;  %v4773_v54 = vcombine.low %v1581_v52, %v1585_v10  ;;  %v1660_v39 = vld [vmem:[%s5647_s9 + $0x2c0] sm:$0xff]  ;;  %v1605_v5 = vld [vmem:[%s5647_s9 + $0x108] sm:$0xff] }
 0x16e   : > { %v1470_v16 = vpack.c.bf16 %v1144_v22, %v1141_v62  ;;  %3706 = vmatprep.subr.bf16.mxu1 %v5376_v53 }
 0x16f   : > { %3181 = vmatmul.mubr.bf16.gmra.mrb[84].mxu1 %v4803_v3 }
 0x170   : > { %3418 = vmatpush1.bf16.msra.mxu0 %v1470_v16  ;;  %3188 = vmatprep.mubr.bf16.mxu1 %v4812_v45  ;;  %v1609_v45 = vld [vmem:[%s5647_s9 + $0x128] sm:$0xff] }
 0x171   : > { %3419 = vmatprep.subr.bf16.mxu0 %v5376_v53  ;;  %3707 = vmatpush1.bf16.msra.mxu1 %v1486_v50  ;;  %v5884_v50 = vpop.f32.mrb[41].mxu1  ;;  %v4798_v26 = vcombine.high %v1605_v5, %v1609_v45 }
 0x172   : > { %v5169_v35 = vpop.f32.mrb[56].mxu0  ;;  %3708 = vmatprep.subr.bf16.mxu1 %v5376_v53  ;;  %v5892_v31 = vpop.f32.mrb[42].mxu1 }
 0x173   : > { %v1157_v37 = vpop.f32.mrb[57].mxu0  ;;  %v5897_v58 = vpop.f32.mrb[43].mxu1 }
 0x174   : > { %v5170_v21 = vpop.f32.mrb[58].mxu0  ;;  %3420 = vmatpush1.bf16.msra.mxu0 %v1471_v46  ;;  %v1496_v57 = vpack.c.bf16 %v5897_v58, %v5884_v50  ;;  %v5221_v3 = vpop.f32.mrb[44].mxu1  ;;  %v1688_v50 = vld [vmem:[%s5647_s9 + $0x3a0] sm:$0xff]  ;;  %v4814_v58 = vcombine.high %v1621_v60, %v1625_v33 }
 0x175   : > { %v1473_v42 = vpack.c.bf16 %v5170_v21, %v5169_v35  ;;  %v1160_v44 = vpop.f32.mrb[59].mxu0  ;;  %3421 = vmatprep.subr.bf16.mxu0 %v5376_v53  ;;  %3709 = vmatpush1.bf16.msra.mxu1 %v1487_v47  ;;  %v1497_v47 = vpack.c.bf16 %v5892_v31, %v5882_v48  ;;  %v1365_v30 = vpop.f32.mrb[45].mxu1  ;;  %v1676_v35 = vld [vmem:[%s5647_s9 + $0x340] sm:$0xff]  ;;  %v1617_v21 = vld [vmem:[%s5647_s9 + $0x168] sm:$0xff] }
 0x176   : > { %v1472_v36 = vpack.c.bf16 %v1160_v44, %v1157_v37  ;;  %3710 = vmatprep.subr.bf16.mxu1 %v5376_v53  ;;  %v5222_v46 = vpop.f32.mrb[46].mxu1  ;;  %v1680_v37 = vld [vmem:[%s5647_s9 + $0x360] sm:$0xff] }
 0x177   : > { %3189 = vmatmul.mubr.bf16.gmra.mrb[88].mxu1 %v4811_v13  ;;  %v1499_v12 = vpack.c.bf16 %v5222_v46, %v5221_v3  ;;  %v1368_v59 = vpop.f32.mrb[47].mxu1  ;;  %v1613_v13 = vld [vmem:[%s5647_s9 + $0x148] sm:$0xff]  ;;  %v4868_v44 = vcombine.high %v1676_v35, %v1680_v37  ;;  %v1684_v48 = vld [vmem:[%s5647_s9 + $0x380] sm:$0xff]  ;;  %v4867_v31 = vcombine.low %v1676_v35, %v1680_v37 }
 0x178   : > { %3422 = vmatpush1.bf16.msra.mxu0 %v1472_v36  ;;  %3196 = vmatprep.mubr.bf16.mxu1 %v4820_v23  ;;  %v1498_v16 = vpack.c.bf16 %v1368_v59, %v1365_v30  ;;  %v4806_v36 = vcombine.high %v1613_v13, %v1617_v21  ;;  %v1716_v59 = vld [vmem:[%s5647_s9 + $0x480] sm:$0xff] }
 0x179   : > { %3423 = vmatprep.subr.bf16.mxu0 %v5376_v53  ;;  %3711 = vmatpush1.bf16.msra.mxu1 %v1488_v14 }
 0x17a   : > { %v5173_v41 = vpop.f32.mrb[60].mxu0  ;;  %3712 = vmatprep.subr.bf16.mxu1 %v5376_v53 }
 0x17b   : > { %v1173_v49 = vpop.f32.mrb[61].mxu0 }
 0x17c   : > { %v5174_v61 = vpop.f32.mrb[62].mxu0  ;;  %3424 = vmatpush1.bf16.msra.mxu0 %v1473_v42  ;;  %v4797_v42 = vcombine.low %v1605_v5, %v1609_v45 }
 0x17d   : > { %v1475_v14 = vpack.c.bf16 %v5174_v61, %v5173_v41  ;;  %v1176_v43 = vpop.f32.mrb[63].mxu0  ;;  %3425 = vmatprep.subr.bf16.mxu0 %v5376_v53  ;;  %3713 = vmatpush1.bf16.msra.mxu1 %v1489_v8  ;;  %v4774_v8 = vcombine.high %v1581_v52, %v1585_v10  ;;  %v4805_v41 = vcombine.low %v1613_v13, %v1617_v21  ;;  %v1633_v61 = vld [vmem:[%s5647_s9 + $0x1e8] sm:$0xff] }
 0x17e   : > { %v1474_v20 = vpack.c.bf16 %v1176_v43, %v1173_v49  ;;  %3714 = vmatprep.subr.bf16.mxu1 %v5376_v53  ;;  %v1692_v49 = vld [vmem:[%s5647_s9 + $0x3c0] sm:$0xff]  ;;  %v4875_v43 = vcombine.low %v1684_v48, %v1688_v50 }
 0x17f   : > { %3197 = vmatmul.mubr.bf16.gmra.mrb[92].mxu1 %v4819_v55  ;;  %v1696_v55 = vld [vmem:[%s5647_s9 + $0x3e0] sm:$0xff] }
 0x180   : > { %3426 = vmatpush1.bf16.msra.mxu0 %v1474_v20  ;;  %3204 = vmatprep.mubr.bf16.mxu1 %v4828_v11  ;;  %v5225_v11 = vpop.f32.mrb[48].mxu1  ;;  %v4813_v20 = vcombine.low %v1621_v60, %v1625_v33  ;;  %v4884_v28 = vcombine.high %v1692_v49, %v1696_v55  ;;  %v1661_v60 = vld [vmem:[%s5647_s9 + $0x2c8] sm:$0xff] }
 0x181   : > { %3427 = vmatprep.subr.bf16.mxu0 %v5376_v53  ;;  %3715 = vmatpush1.bf16.msra.mxu1 %v1490_v63  ;;  %v1589_v63 = vld [vmem:[%s5647_s9 + $0x88] sm:$0xff] }
 0x182   : > { %3716 = vmatprep.subr.bf16.mxu1 %v5376_v53  ;;  %v4782_v17 = vcombine.high %v1589_v63, %v1593_v7  ;;  %v4781_v27 = vcombine.low %v1589_v63, %v1593_v7  ;;  %v4883_v7 = vcombine.low %v1692_v49, %v1696_v55  ;;  %v1665_v33 = vld [vmem:[%s5647_s9 + $0x2e8] sm:$0xff]  ;;  %v1732_v55 = vld [vmem:[%s5647_s9 + $0x500] sm:$0xff] }
 0x183   : > { %v4854_v49 = vcombine.high %v1661_v60, %v1665_v33 }
 0x184   : > { %3428 = vmatpush1.bf16.msra.mxu0 %v1475_v14  ;;  %v1381_v14 = vpop.f32.mrb[49].mxu1 }
 0x185   : > { %3717 = vmatpush1.bf16.msra.mxu1 %v6916_v0  ;;  %3975 = vmatprep.subr.bf16.mxu0 %v5376_v53  ;;  %v5226_v1 = vpop.f32.mrb[50].mxu1  ;;  %v1704_v0 = vld [vmem:[%s5647_s9 + $0x420] sm:$0xff] }
 0x186   : > { %v1384_v10 = vpop.f32.mrb[51].mxu1 }
 0x187   : > { %3205 = vmatmul.mubr.bf16.gmra.mrb[96].mxu1 %v4827_v56  ;;  %3430 = vmatmul.mubr.bf16.vlgmr.msra.gmra.mrb[64].mxu0 %v6917_v6  ;;  %v1500_v56 = vpack.c.bf16 %v1384_v10, %v1381_v14  ;;  %v1637_v6 = vld [vmem:[%s5647_s9 + $0x208] sm:$0xff]  ;;  %v5229_v4 = vpop.f32.mrb[52].mxu1 }
 0x188   : > { %3212 = vmatprep.mubr.bf16.mxu1 %v4836_v2  ;;  %3437 = vmatprep.mubr.bf16.mxu0 %v4774_v8  ;;  %v1501_v2 = vpack.c.bf16 %v5226_v1, %v5225_v11  ;;  %v1700_v8 = vld [vmem:[%s5647_s9 + $0x400] sm:$0xff]  ;;  %v1397_v63 = vpop.f32.mrb[53].mxu1  ;;  %v4829_v30 = vcombine.low %v1637_v6, %v1641_v40  ;;  %v1673_v11 = vld [vmem:[%s5647_s9 + $0x328] sm:$0xff] }
 0x189   : > { %3976 = vmatpush1.bf16.msra.mxu0 %v1492_v19  ;;  %v1601_v19 = vld [vmem:[%s5647_s9 + $0xe8] sm:$0xff]  ;;  %v1740_v1 = vld [vmem:[%s5647_s9 + $0x540] sm:$0xff] }
 0x18a   : > { %3977 = vmatprep.subr.bf16.mxu0 %v5376_v53  ;;  %v4790_v62 = vcombine.high %v1597_v18, %v1601_v19  ;;  %v4789_v22 = vcombine.low %v1597_v18, %v1601_v19  ;;  %v1708_v18 = vld [vmem:[%s5647_s9 + $0x440] sm:$0xff]  ;;  %v1681_v10 = vld [vmem:[%s5647_s9 + $0x368] sm:$0xff] }
 0x18b   : > { %v1712_v19 = vld [vmem:[%s5647_s9 + $0x460] sm:$0xff] }
 0x18c   : > { %v4900_v5 = vcombine.high %v1708_v18, %v1712_v19  ;;  %v4899_v37 = vcombine.low %v1708_v18, %v1712_v19  ;;  %v1697_v18 = vld [vmem:[%s5647_s9 + $0x3e8] sm:$0xff] }
 0x18d   : > { %3978 = vmatpush1.bf16.msra.mxu0 %v1493_v34  ;;  %v4852_v34 = vcombine.high %v1660_v39, %v1664_v38 }
 0x18e   : > { %3979 = vmatprep.subr.bf16.mxu0 %v5376_v53 }
 0x18f   : > { %3213 = vmatmul.mubr.bf16.gmra.mrb[100].mxu1 %v4835_v29  ;;  %3438 = vmatmul.mubr.bf16.gmra.mrb[68].mxu0 %v4773_v54  ;;  %v5230_v54 = vpop.f32.mrb[54].mxu1 }
 0x190   : > { %3220 = vmatprep.mubr.bf16.mxu1 %v4844_v15  ;;  %3445 = vmatprep.mubr.bf16.mxu0 %v4782_v17  ;;  %v4892_v15 = vcombine.high %v1700_v8, %v1704_v0  ;;  %v4830_v17 = vcombine.high %v1637_v6, %v1641_v40  ;;  %v1748_v6 = vld [vmem:[%s5647_s9 + $0x580] sm:$0xff] }
 0x191   : > { %3980 = vmatpush1.bf16.msra.mxu0 %v1494_v32  ;;  %v1672_v32 = vld [vmem:[%s5647_s9 + $0x320] sm:$0xff] }
 0x192   : > { %3981 = vmatprep.subr.bf16.mxu0 %v5376_v53  ;;  %v4860_v24 = vcombine.high %v1668_v51, %v1672_v32  ;;  %v4859_v23 = vcombine.low %v1668_v51, %v1672_v32  ;;  %v4891_v51 = vcombine.low %v1700_v8, %v1704_v0  ;;  %v1752_v40 = vld [vmem:[%s5647_s9 + $0x5a0] sm:$0xff] }
 0x193   : > { %v4939_v19 = vcombine.low %v1748_v6, %v1752_v40 }
 0x195   : > { %3982 = vmatpush1.bf16.msra.mxu0 %v1495_v25  ;;  %v4851_v25 = vcombine.low %v1660_v39, %v1664_v38  ;;  %v1400_v39 = vpop.f32.mrb[55].mxu1 }
 0x196   : > { %3983 = vmatprep.subr.bf16.mxu0 %v5376_v53  ;;  %v1502_v38 = vpack.c.bf16 %v1400_v39, %v1397_v63  ;;  %v1689_v63 = vld [vmem:[%s5647_s9 + $0x3a8] sm:$0xff]  ;;  %v1760_v39 = vld [vmem:[%s5647_s9 + $0x5e0] sm:$0xff] }
 0x197   : > { %3221 = vmatmul.mubr.bf16.gmra.mrb[104].mxu1 %v4843_v9  ;;  %3446 = vmatmul.mubr.bf16.gmra.mrb[72].mxu0 %v4781_v27  ;;  %v1645_v9 = vld [vmem:[%s5647_s9 + $0x248] sm:$0xff] }
 0x198   : > { %3228 = vmatprep.mubr.bf16.mxu1 %v4852_v34  ;;  %3453 = vmatprep.mubr.bf16.mxu0 %v4790_v62  ;;  %v1649_v27 = vld [vmem:[%s5647_s9 + $0x268] sm:$0xff]  ;;  %v1503_v34 = vpack.c.bf16 %v5230_v54, %v5229_v4  ;;  %v5233_v62 = vpop.f32.mrb[56].mxu1  ;;  %v4940_v54 = vcombine.high %v1748_v6, %v1752_v40 }
 0x199   : > { %3984 = vmatpush1.bf16.msra.mxu0 %v1496_v57  ;;  %v1629_v57 = vld [vmem:[%s5647_s9 + $0x1c8] sm:$0xff]  ;;  %v1413_v3 = vpop.f32.mrb[57].mxu1  ;;  %v4838_v45 = vcombine.high %v1645_v9, %v1649_v27  ;;  %v4837_v13 = vcombine.low %v1645_v9, %v1649_v27 }
 0x19a   : > { %3985 = vmatprep.subr.bf16.mxu0 %v5376_v53  ;;  %v4822_v52 = vcombine.high %v1629_v57, %v1633_v61  ;;  %v4821_v29 = vcombine.low %v1629_v57, %v1633_v61  ;;  %v5234_v32 = vpop.f32.mrb[58].mxu1  ;;  %v1736_v57 = vld [vmem:[%s5647_s9 + $0x520] sm:$0xff]  ;;  %v1669_v61 = vld [vmem:[%s5647_s9 + $0x308] sm:$0xff] }
 0x19b   : > { %v1416_v46 = vpop.f32.mrb[59].mxu1  ;;  %v1685_v4 = vld [vmem:[%s5647_s9 + $0x388] sm:$0xff] }
 0x19c   : > { %v4877_v9 = vcombine.low %v1685_v4, %v1689_v63 }
 0x19d   : > { %3986 = vmatpush1.bf16.msra.mxu0 %v1497_v47  ;;  %v4876_v47 = vcombine.high %v1684_v48, %v1688_v50  ;;  %v1724_v48 = vld [vmem:[%s5647_s9 + $0x4c0] sm:$0xff] }
 0x19e   : > { %3987 = vmatprep.subr.bf16.mxu0 %v5376_v53  ;;  %v1728_v50 = vld [vmem:[%s5647_s9 + $0x4e0] sm:$0xff] }
 0x19f   : > { %3229 = vmatmul.mubr.bf16.gmra.mrb[108].mxu1 %v4851_v25  ;;  %3454 = vmatmul.mubr.bf16.gmra.mrb[76].mxu0 %v4789_v22  ;;  %v1720_v25 = vld [vmem:[%s5647_s9 + $0x4a0] sm:$0xff]  ;;  %v1653_v22 = vld [vmem:[%s5647_s9 + $0x288] sm:$0xff]  ;;  %v4915_v14 = vcombine.low %v1724_v48, %v1728_v50 }
 0x1a0   : > { %3236 = vmatprep.mubr.bf16.mxu1 %v4860_v24  ;;  %3461 = vmatprep.mubr.bf16.mxu0 %v4798_v26  ;;  %v1505_v24 = vpack.c.bf16 %v5234_v32, %v5233_v62  ;;  %v5237_v26 = vpop.f32.mrb[60].mxu1  ;;  %v1764_v62 = vld [vmem:[%s5647_s9 + $0x600] sm:$0xff] }
 0x1a1   : > { %3988 = vmatpush1.bf16.msra.mxu0 %v1498_v16  ;;  %v1657_v16 = vld [vmem:[%s5647_s9 + $0x2a8] sm:$0xff]  ;;  %v1429_v35 = vpop.f32.mrb[61].mxu1 }
 0x1a2   : > { %3989 = vmatprep.subr.bf16.mxu0 %v5376_v53  ;;  %v5238_v21 = vpop.f32.mrb[62].mxu1 }
 0x1a5   : > { %3990 = vmatpush1.bf16.msra.mxu0 %v1499_v12  ;;  %v1504_v12 = vpack.c.bf16 %v1416_v46, %v1413_v3  ;;  %v1768_v3 = vld [vmem:[%s5647_s9 + $0x620] sm:$0xff] }
 0x1a6   : > { %3991 = vmatprep.subr.bf16.mxu0 %v5376_v53 }
 0x1a7   : > { %3237 = vmatmul.mubr.bf16.gmra.mrb[112].mxu1 %v4859_v23  ;;  %3462 = vmatmul.mubr.bf16.gmra.mrb[80].mxu0 %v4797_v42  ;;  %v4908_v23 = vcombine.high %v1716_v59, %v1720_v25  ;;  %v4846_v42 = vcombine.high %v1653_v22, %v1657_v16 }
 0x1a8   : > { %3244 = vmatprep.mubr.bf16.mxu1 %v4868_v44  ;;  %3469 = vmatprep.mubr.bf16.mxu0 %v4806_v36  ;;  %v1432_v44 = vpop.f32.mrb[63].mxu1 }
 0x1a9   : > { %3992 = vmatpush1.bf16.msra.mxu0 %v1500_v56  ;;  %v1506_v36 = vpack.c.bf16 %v1432_v44, %v1429_v35  ;;  %v4923_v56 = vcombine.low %v1732_v55, %v1736_v57 }
 0x1aa   : > { %3993 = vmatprep.subr.bf16.mxu0 %v5376_v53 }
 0x1ad   : > { %3994 = vmatpush1.bf16.msra.mxu0 %v1501_v2  ;;  %v4861_v2 = vcombine.low %v1669_v61, %v1673_v11 }
 0x1ae   : > { %3995 = vmatprep.subr.bf16.mxu0 %v5376_v53 }
 0x1af   : > { %3245 = vmatmul.mubr.bf16.gmra.mrb[116].mxu1 %v4867_v31  ;;  %3470 = vmatmul.mubr.bf16.gmra.mrb[84].mxu0 %v4805_v41  ;;  %v1507_v31 = vpack.c.bf16 %v5238_v21, %v5237_v26  ;;  %v4907_v41 = vcombine.low %v1716_v59, %v1720_v25  ;;  %v1776_v59 = vld [vmem:[%s5647_s9 + $0x660] sm:$0xff]  ;;  %v1709_v25 = vld [vmem:[%s5647_s9 + $0x448] sm:$0xff] }
 0x1b0   : > { %3252 = vmatprep.mubr.bf16.mxu1 %v4876_v47  ;;  %3477 = vmatprep.mubr.bf16.mxu0 %v4814_v58  ;;  %v4845_v47 = vcombine.low %v1653_v22, %v1657_v16  ;;  %v4916_v58 = vcombine.high %v1724_v48, %v1728_v50  ;;  %v1713_v22 = vld [vmem:[%s5647_s9 + $0x468] sm:$0xff]  ;;  %v4955_v16 = vcombine.low %v1764_v62, %v1768_v3  ;;  %v1788_v50 = vld [vmem:[%s5647_s9 + $0x6c0] sm:$0xff] }
 0x1b1   : > { %3996 = vmatpush1.bf16.msra.mxu0 %v1502_v38  ;;  %v1693_v38 = vld [vmem:[%s5647_s9 + $0x3c8] sm:$0xff]  ;;  %v4902_v35 = vcombine.high %v1709_v25, %v1713_v22  ;;  %v4901_v44 = vcombine.low %v1709_v25, %v1713_v22 }
 0x1b2   : > { %3997 = vmatprep.subr.bf16.mxu0 %v5376_v53  ;;  %v1717_v21 = vld [vmem:[%s5647_s9 + $0x488] sm:$0xff] }
 0x1b5   : > { %3998 = vmatpush1.bf16.msra.mxu0 %v1503_v34  ;;  %v4886_v34 = vcombine.high %v1693_v38, %v1697_v18 }
 0x1b6   : > { %3999 = vmatprep.subr.bf16.mxu0 %v5376_v53 }
 0x1b7   : > { %3253 = vmatmul.mubr.bf16.gmra.mrb[120].mxu1 %v4875_v43  ;;  %3478 = vmatmul.mubr.bf16.gmra.mrb[88].mxu0 %v4813_v20  ;;  %v4853_v43 = vcombine.low %v1661_v60, %v1665_v33  ;;  %v4862_v20 = vcombine.high %v1669_v61, %v1673_v11  ;;  %v1792_v60 = vld [vmem:[%s5647_s9 + $0x6e0] sm:$0xff]  ;;  %v1725_v33 = vld [vmem:[%s5647_s9 + $0x4c8] sm:$0xff] }
 0x1b8   : > { %3260 = vmatprep.mubr.bf16.mxu1 %v4884_v28  ;;  %3485 = vmatprep.mubr.bf16.mxu0 %v4822_v52  ;;  %v1744_v28 = vld [vmem:[%s5647_s9 + $0x560] sm:$0xff]  ;;  %v1677_v52 = vld [vmem:[%s5647_s9 + $0x348] sm:$0xff] }
 0x1b9   : > { %4000 = vmatpush1.bf16.msra.mxu0 %v1504_v12  ;;  %v4932_v8 = vcombine.high %v1740_v1, %v1744_v28  ;;  %v4870_v0 = vcombine.high %v1677_v52, %v1681_v10  ;;  %v1772_v12 = vld [vmem:[%s5647_s9 + $0x640] sm:$0xff]  ;;  %v1733_v61 = vld [vmem:[%s5647_s9 + $0x508] sm:$0xff] }
 0x1ba   : > { %4001 = vmatprep.subr.bf16.mxu0 %v5376_v53  ;;  %v4964_v26 = vcombine.high %v1772_v12, %v1776_v59  ;;  %v1737_v11 = vld [vmem:[%s5647_s9 + $0x528] sm:$0xff] }
 0x1bd   : > { %4002 = vmatpush1.bf16.msra.mxu0 %v1505_v24 }
 0x1be   : > { %4003 = vmatprep.subr.bf16.mxu0 %v5376_v53 }
 0x1bf   : > { %3261 = vmatmul.mubr.bf16.gmra.mrb[124].mxu1 %v4883_v7  ;;  %3486 = vmatmul.mubr.bf16.gmra.mrb[92].mxu0 %v4821_v29  ;;  %v4931_v7 = vcombine.low %v1740_v1, %v1744_v28  ;;  %v4869_v29 = vcombine.low %v1677_v52, %v1681_v10  ;;  %v4926_v28 = vcombine.high %v1733_v61, %v1737_v11 }
 0x1c0   : > { %3268 = vmatprep.mubr.bf16.mxu1 %v4892_v15  ;;  %3493 = vmatprep.mubr.bf16.mxu0 %v4830_v17  ;;  %v4878_v15 = vcombine.high %v1685_v4, %v1689_v63  ;;  %v1756_v17 = vld [vmem:[%s5647_s9 + $0x5c0] sm:$0xff]  ;;  %v4925_v4 = vcombine.low %v1733_v61, %v1737_v11 }
 0x1c1   : > { %4004 = vmatpush1.bf16.msra.mxu0 %v1506_v36  ;;  %v4948_v27 = vcombine.high %v1756_v17, %v1760_v39  ;;  %v4947_v32 = vcombine.low %v1756_v17, %v1760_v39  ;;  %v1812_v17 = vld [vmem:[%s5647_s9 + $0x780] sm:$0xff] }
 0x1c2   : > { %4005 = vmatprep.subr.bf16.mxu0 %v5376_v53  ;;  %v4924_v53 = vcombine.high %v1732_v55, %v1736_v57  ;;  %v1796_v55 = vld [vmem:[%s5647_s9 + $0x700] sm:$0xff] }
 0x1c3   : > { %v1800_v57 = vld [vmem:[%s5647_s9 + $0x720] sm:$0xff] }
 0x1c4   : > { %v4988_v1 = vcombine.high %v1796_v55, %v1800_v57  ;;  %v4987_v40 = vcombine.low %v1796_v55, %v1800_v57  ;;  %v1816_v39 = vld [vmem:[%s5647_s9 + $0x7a0] sm:$0xff] }
 0x1c5   : > { %4006 = vmatpush1.bf16.msra.mxu0 %v1507_v31  ;;  %v1729_v31 = vld [vmem:[%s5647_s9 + $0x4e8] sm:$0xff] }
 0x1c7   : > { %3269 = vmatmul.mubr.bf16.gmra.mrb[128].mxu1 %v4891_v51  ;;  %3494 = vmatmul.mubr.bf16.gmra.mrb[96].mxu0 %v4829_v30  ;;  %v1701_v51 = vld [vmem:[%s5647_s9 + $0x408] sm:$0xff] }
 0x1c8   : > { %3276 = vmatprep.mubr.bf16.mxu1 %v4900_v5  ;;  %3501 = vmatprep.mubr.bf16.mxu0 %v4838_v45  ;;  %v1705_v30 = vld [vmem:[%s5647_s9 + $0x428] sm:$0xff]  ;;  %v4885_v5 = vcombine.low %v1693_v38, %v1697_v18  ;;  %v4956_v45 = vcombine.high %v1764_v62, %v1768_v3  ;;  %v5004_v62 = vcombine.high %v1812_v17, %v1816_v39 }
 0x1c9   : > { %v4894_v46 = vcombine.high %v1701_v51, %v1705_v30  ;;  %v4893_v24 = vcombine.low %v1701_v51, %v1705_v30  ;;  %v1749_v38 = vld [vmem:[%s5647_s9 + $0x588] sm:$0xff] }
 0x1ca   : > { %v1753_v18 = vld [vmem:[%s5647_s9 + $0x5a8] sm:$0xff] }
 0x1cb   : > { %v4942_v3 = vcombine.high %v1749_v38, %v1753_v18  ;;  %v4941_v25 = vcombine.low %v1749_v38, %v1753_v18  ;;  %v1598_v38 = vld [vmem:[%s5647_s9 + $0xd0] sm:$0xff] }
 0x1cc   : > { %v1602_v18 = vld [vmem:[%s5647_s9 + $0xf0] sm:$0xff] }
 0x1cf   : > { %3277 = vmatmul.mubr.bf16.gmra.mrb[132].mxu1 %v4899_v37  ;;  %3502 = vmatmul.mubr.bf16.gmra.mrb[100].mxu0 %v4837_v13  ;;  %v1780_v37 = vld [vmem:[%s5647_s9 + $0x680] sm:$0xff] }
 0x1d0   : > { %3284 = vmatprep.mubr.bf16.mxu1 %v4908_v23  ;;  %3509 = vmatprep.mubr.bf16.mxu0 %v4846_v42  ;;  %v1784_v13 = vld [vmem:[%s5647_s9 + $0x6a0] sm:$0xff]  ;;  %v1721_v23 = vld [vmem:[%s5647_s9 + $0x4a8] sm:$0xff]  ;;  %v4963_v42 = vcombine.low %v1772_v12, %v1776_v59  ;;  %v5003_v59 = vcombine.low %v1812_v17, %v1816_v39 }
 0x1d1   : > { %v4972_v36 = vcombine.high %v1780_v37, %v1784_v13  ;;  %v4910_v48 = vcombine.high %v1717_v21, %v1721_v23  ;;  %v1789_v17 = vld [vmem:[%s5647_s9 + $0x6c8] sm:$0xff] }
 0x1d2   : > { %v1793_v39 = vld [vmem:[%s5647_s9 + $0x6e8] sm:$0xff] }
 0x1d7   : > { %3285 = vmatmul.mubr.bf16.gmra.mrb[136].mxu1 %v4907_v41  ;;  %3510 = vmatmul.mubr.bf16.gmra.mrb[104].mxu0 %v4845_v47  ;;  %v4971_v41 = vcombine.low %v1780_v37, %v1784_v13  ;;  %v4909_v47 = vcombine.low %v1717_v21, %v1721_v23  ;;  %v1765_v37 = vld [vmem:[%s5647_s9 + $0x608] sm:$0xff]  ;;  %v1574_v21 = vld [vmem:[%s5647_s9 + $0x10] sm:$0xff] }
 0x1d8   : > { %3292 = vmatprep.mubr.bf16.mxu1 %v4916_v58  ;;  %3517 = vmatprep.mubr.bf16.mxu0 %v4854_v49  ;;  %v4980_v58 = vcombine.high %v1788_v50, %v1792_v60  ;;  %v4918_v49 = vcombine.high %v1725_v33, %v1729_v31  ;;  %v1769_v13 = vld [vmem:[%s5647_s9 + $0x628] sm:$0xff]  ;;  %v1578_v23 = vld [vmem:[%s5647_s9 + $0x30] sm:$0xff] }
 0x1d9   : > { %v4767_v57 = vcombine.low %v1574_v21, %v1578_v23  ;;  %v4957_v61 = vcombine.low %v1765_v37, %v1769_v13 }
 0x1df   : > { %3293 = vmatmul.mubr.bf16.gmra.mrb[140].mxu1 %v4915_v14  ;;  %3518 = vmatmul.mubr.bf16.gmra.mrb[108].mxu0 %v4853_v43  ;;  %v4979_v43 = vcombine.low %v1788_v50, %v1792_v60  ;;  %v4958_v50 = vcombine.high %v1765_v37, %v1769_v13  ;;  %v4768_v60 = vcombine.high %v1574_v21, %v1578_v23 }
 0x1e0   : > { %3300 = vmatprep.mubr.bf16.mxu1 %v4924_v53  ;;  %3525 = vmatprep.mubr.bf16.mxu0 %v4862_v20  ;;  %v4917_v53 = vcombine.low %v1725_v33, %v1729_v31 }
 0x1e7   : > { %3301 = vmatmul.mubr.bf16.gmra.mrb[144].mxu1 %v4923_v56  ;;  %3526 = vmatmul.mubr.bf16.gmra.mrb[112].mxu0 %v4861_v2  ;;  %v1804_v56 = vld [vmem:[%s5647_s9 + $0x740] sm:$0xff] }
 0x1e8   : > { %3308 = vmatprep.mubr.bf16.mxu1 %v4932_v8  ;;  %3533 = vmatprep.mubr.bf16.mxu0 %v4870_v0  ;;  %v1808_v2 = vld [vmem:[%s5647_s9 + $0x760] sm:$0xff]  ;;  %v1741_v8 = vld [vmem:[%s5647_s9 + $0x548] sm:$0xff] }
 0x1e9   : > { %v1745_v0 = vld [vmem:[%s5647_s9 + $0x568] sm:$0xff] }
 0x1ef   : > { %3309 = vmatmul.mubr.bf16.gmra.mrb[148].mxu1 %v4931_v7  ;;  %3534 = vmatmul.mubr.bf16.gmra.mrb[116].mxu0 %v4869_v29  ;;  %v4996_v7 = vcombine.high %v1804_v56, %v1808_v2  ;;  %v4934_v29 = vcombine.high %v1741_v8, %v1745_v0 }
 0x1f0   : > { %3316 = vmatprep.mubr.bf16.mxu1 %v4940_v54  ;;  %3541 = vmatprep.mubr.bf16.mxu0 %v4878_v15 }
 0x1f7   : > { %3317 = vmatmul.mubr.bf16.gmra.mrb[152].mxu1 %v4939_v19  ;;  %3542 = vmatmul.mubr.bf16.gmra.mrb[120].mxu0 %v4877_v9  ;;  %v4995_v9 = vcombine.low %v1804_v56, %v1808_v2  ;;  %v1590_v56 = vld [vmem:[%s5647_s9 + $0x90] sm:$0xff] }
 0x1f8   : > { %3324 = vmatprep.mubr.bf16.mxu1 %v4948_v27  ;;  %3549 = vmatprep.mubr.bf16.mxu0 %v4886_v34  ;;  %v4933_v27 = vcombine.low %v1741_v8, %v1745_v0  ;;  %v1594_v2 = vld [vmem:[%s5647_s9 + $0xb0] sm:$0xff] }
 0x1ff   : > { %3325 = vmatmul.mubr.bf16.gmra.mrb[156].mxu1 %v4947_v32  ;;  %3550 = vmatmul.mubr.bf16.gmra.mrb[124].mxu0 %v4885_v5  ;;  %v1820_v32 = vld [vmem:[%s5647_s9 + $0x7c0] sm:$0xff] }
 0x200   : > { %3332 = vmatprep.mubr.bf16.mxu1 %v4956_v45  ;;  %3557 = vmatprep.mubr.bf16.mxu0 %v4894_v46  ;;  %v1824_v5 = vld [vmem:[%s5647_s9 + $0x7e0] sm:$0xff]  ;;  %v1757_v45 = vld [vmem:[%s5647_s9 + $0x5c8] sm:$0xff] }
 0x201   : > { %v1761_v46 = vld [vmem:[%s5647_s9 + $0x5e8] sm:$0xff] }
 0x207   : > { %3333 = vmatmul.mubr.bf16.gmra.mrb[160].mxu1 %v4955_v16  ;;  %3558 = vmatmul.mubr.bf16.gmra.mrb[128].mxu0 %v4893_v24  ;;  %v5012_v16 = vcombine.high %v1820_v32, %v1824_v5  ;;  %v4950_v24 = vcombine.high %v1757_v45, %v1761_v46 }
 0x208   : > { %3340 = vmatprep.mubr.bf16.mxu1 %v4964_v26  ;;  %3565 = vmatprep.mubr.bf16.mxu0 %v4902_v35 }
 0x20f   : > { %3341 = vmatmul.mubr.bf16.gmra.mrb[164].mxu1 %v4963_v42  ;;  %3566 = vmatmul.mubr.bf16.gmra.mrb[132].mxu0 %v4901_v44  ;;  %v5011_v44 = vcombine.low %v1820_v32, %v1824_v5 }
 0x210   : > { %3348 = vmatprep.mubr.bf16.mxu1 %v4972_v36  ;;  %3573 = vmatprep.mubr.bf16.mxu0 %v4910_v48  ;;  %v4949_v36 = vcombine.low %v1757_v45, %v1761_v46  ;;  %v1797_v45 = vld [vmem:[%s5647_s9 + $0x708] sm:$0xff] }
 0x211   : > { %v1801_v46 = vld [vmem:[%s5647_s9 + $0x728] sm:$0xff] }
 0x212   : > { %v4990_v23 = vcombine.high %v1797_v45, %v1801_v46 }
 0x217   : > { %3349 = vmatmul.mubr.bf16.gmra.mrb[168].mxu1 %v4971_v41  ;;  %3574 = vmatmul.mubr.bf16.gmra.mrb[136].mxu0 %v4909_v47  ;;  %v1773_v41 = vld [vmem:[%s5647_s9 + $0x648] sm:$0xff] }
 0x218   : > { %3356 = vmatprep.mubr.bf16.mxu1 %v4980_v58  ;;  %3581 = vmatprep.mubr.bf16.mxu0 %v4918_v49  ;;  %v1777_v47 = vld [vmem:[%s5647_s9 + $0x668] sm:$0xff]  ;;  %v1582_v58 = vld [vmem:[%s5647_s9 + $0x50] sm:$0xff] }
 0x219   : > { %v1586_v49 = vld [vmem:[%s5647_s9 + $0x70] sm:$0xff]  ;;  %v4965_v0 = vcombine.low %v1773_v41, %v1777_v47 }
 0x21a   : > { %v6031_v14 = vpop.f32.mrb[64].mxu1 }
 0x21b   : > { %v3144_v20 = vpop.f32.mrb[65].mxu1 }
 0x21c   : > { %v6033_v52 = vpop.f32.mrb[66].mxu1 }
 0x21d   : > { %v3147_v10 = vpop.f32.mrb[67].mxu1 }
 0x21e   : > { %v1785_v10 = vld [vmem:[%s5647_s9 + $0x6a8] sm:$0xff] }
 0x21f   : > { %3357 = vmatmul.mubr.bf16.gmra.mrb[172].mxu1 %v4979_v43  ;;  %3582 = vmatmul.mubr.bf16.gmra.mrb[140].mxu0 %v4917_v53  ;;  %v4966_v43 = vcombine.high %v1773_v41, %v1777_v47  ;;  %v4776_v53 = vcombine.high %v1582_v58, %v1586_v49  ;;  %v1809_v41 = vld [vmem:[%s5647_s9 + $0x768] sm:$0xff]  ;;  %v1614_v47 = vld [vmem:[%s5647_s9 + $0x150] sm:$0xff] }
 0x220   : > { %3364 = vmatprep.mubr.bf16.mxu1 %v4988_v1  ;;  %3589 = vmatprep.mubr.bf16.mxu0 %v4926_v28  ;;  %v1781_v28 = vld [vmem:[%s5647_s9 + $0x688] sm:$0xff] }
 0x222   : > { %v6039_v6 = vpop.f32.mrb[68].mxu1 }
 0x223   : > { %v3152_v63 = vpop.f32.mrb[69].mxu1 }
 0x224   : > { %v6041_v54 = vpop.f32.mrb[70].mxu1  ;;  %v4974_v63 = vcombine.high %v1781_v28, %v1785_v10 }
 0x225   : > { %v3155_v15 = vpop.f32.mrb[71].mxu1 }
 0x227   : > { %3365 = vmatmul.mubr.bf16.gmra.mrb[176].mxu1 %v4987_v40  ;;  %3590 = vmatmul.mubr.bf16.gmra.mrb[144].mxu0 %v4925_v4  ;;  %v4775_v40 = vcombine.low %v1582_v58, %v1586_v49  ;;  %v1618_v58 = vld [vmem:[%s5647_s9 + $0x170] sm:$0xff] }
 0x228   : > { %3372 = vmatprep.mubr.bf16.mxu1 %v4996_v7  ;;  %3597 = vmatprep.mubr.bf16.mxu0 %v4934_v29  ;;  %v4784_v7 = vcombine.high %v1590_v56, %v1594_v2 }
 0x22a   : > { %v6047_v19 = vpop.f32.mrb[72].mxu1 }
 0x22b   : > { %v3160_v34 = vpop.f32.mrb[73].mxu1 }
 0x22c   : > { %v6049_v51 = vpop.f32.mrb[74].mxu1  ;;  %v4783_v34 = vcombine.low %v1590_v56, %v1594_v2 }
 0x22d   : > { %v3163_v30 = vpop.f32.mrb[75].mxu1 }
 0x22e   : > { %v4792_v30 = vcombine.high %v1598_v38, %v1602_v18 }
 0x22f   : > { %3373 = vmatmul.mubr.bf16.gmra.mrb[180].mxu1 %v4995_v9  ;;  %3598 = vmatmul.mubr.bf16.gmra.mrb[148].mxu0 %v4933_v27  ;;  %v4973_v27 = vcombine.low %v1781_v28, %v1785_v10  ;;  %v4808_v28 = vcombine.high %v1614_v47, %v1618_v58 }
 0x230   : > { %3380 = vmatprep.mubr.bf16.mxu1 %v5004_v62  ;;  %3605 = vmatprep.mubr.bf16.mxu0 %v4942_v3  ;;  %v4982_v3 = vcombine.high %v1789_v17, %v1793_v39 }
 0x232   : > { %v6055_v12 = vpop.f32.mrb[76].mxu1 }
 0x233   : > { %v3168_v22 = vpop.f32.mrb[77].mxu1 }
 0x234   : > { %v6057_v26 = vpop.f32.mrb[78].mxu1 }
 0x235   : > { %v3171_v35 = vpop.f32.mrb[79].mxu1 }
 0x236   : > { %v4791_v35 = vcombine.low %v1598_v38, %v1602_v18  ;;  %v4807_v38 = vcombine.low %v1614_v47, %v1618_v58 }
 0x237   : > { %3381 = vmatmul.mubr.bf16.gmra.mrb[184].mxu1 %v5003_v59  ;;  %3606 = vmatmul.mubr.bf16.gmra.mrb[152].mxu0 %v4941_v25  ;;  %v1606_v59 = vld [vmem:[%s5647_s9 + $0x110] sm:$0xff] }
 0x238   : > { %3388 = vmatprep.mubr.bf16.mxu1 %v5012_v16  ;;  %3613 = vmatprep.mubr.bf16.mxu0 %v4950_v24  ;;  %v1610_v25 = vld [vmem:[%s5647_s9 + $0x130] sm:$0xff]  ;;  %v4981_v24 = vcombine.low %v1789_v17, %v1793_v39 }
 0x23a   : > { %v6063_v42 = vpop.f32.mrb[80].mxu1 }
 0x23b   : > { %v3176_v48 = vpop.f32.mrb[81].mxu1 }
 0x23c   : > { %v6065_v33 = vpop.f32.mrb[82].mxu1 }
 0x23d   : > { %v3179_v31 = vpop.f32.mrb[83].mxu1 }
 0x23f   : > { %3389 = vmatmul.mubr.bf16.gmra.mrb[188].mxu1 %v5011_v44  ;;  %3614 = vmatmul.mubr.bf16.gmra.mrb[156].mxu0 %v4949_v36  ;;  %v4800_v44 = vcombine.high %v1606_v59, %v1610_v25 }
 0x240   : > { %3621 = vmatprep.mubr.bf16.mxu0 %v4958_v50  ;;  %3718 = vmatprep.mubr.bf16.mxu1 %v4768_v60 }
 0x242   : > { %v6071_v55 = vpop.f32.mrb[84].mxu1 }
 0x243   : > { %v3184_v11 = vpop.f32.mrb[85].mxu1 }
 0x244   : > { %v6073_v20 = vpop.f32.mrb[86].mxu1  ;;  %v4799_v11 = vcombine.low %v1606_v59, %v1610_v25  ;;  %v1825_v59 = vld [vmem:[%s5647_s9 + $0x7e8] sm:$0xff]  ;;  %v1630_v25 = vld [vmem:[%s5647_s9 + $0x1d0] sm:$0xff] }
 0x245   : > { %v3187_v1 = vpop.f32.mrb[87].mxu1 }
 0x247   : > { %3622 = vmatmul.mubr.bf16.gmra.mrb[160].mxu0 %v4957_v61  ;;  %3719 = vmatmul.mubr.bf16.vlgmr.msra.gmra.mrb[192].mxu1 %v4767_v57  ;;  %v4989_v61 = vcombine.low %v1797_v45, %v1801_v46 }
 0x248   : > { %3629 = vmatprep.mubr.bf16.mxu0 %v4966_v43  ;;  %3726 = vmatprep.mubr.bf16.mxu1 %v4776_v53 }
 0x24a   : > { %v6079_v8 = vpop.f32.mrb[88].mxu1 }
 0x24b   : > { %v3192_v4 = vpop.f32.mrb[89].mxu1 }
 0x24c   : > { %v6081_v29 = vpop.f32.mrb[90].mxu1  ;;  %v1817_v4 = vld [vmem:[%s5647_s9 + $0x7a8] sm:$0xff] }
 0x24d   : > { %v3195_v15 = vpop.f32.mrb[91].mxu1 }
 0x24f   : > { %3630 = vmatmul.mubr.bf16.gmra.mrb[164].mxu0 %v4965_v0  ;;  %3727 = vmatmul.mubr.bf16.gmra.mrb[196].mxu1 %v4775_v40 }
 0x250   : > { %3637 = vmatprep.mubr.bf16.mxu0 %v4974_v63  ;;  %3734 = vmatprep.mubr.bf16.mxu1 %v4784_v7  ;;  %v1622_v63 = vld [vmem:[%s5647_s9 + $0x190] sm:$0xff] }
 0x251   : > { %v1626_v7 = vld [vmem:[%s5647_s9 + $0x1b0] sm:$0xff] }
 0x252   : > { %v6087_v9 = vpop.f32.mrb[92].mxu1 }
 0x253   : > { %v3200_v62 = vpop.f32.mrb[93].mxu1 }
 0x254   : > { %v6089_v32 = vpop.f32.mrb[94].mxu1  ;;  %v4816_v62 = vcombine.high %v1622_v63, %v1626_v7 }
 0x255   : > { %v3203_v5 = vpop.f32.mrb[95].mxu1 }
 0x257   : > { %3638 = vmatmul.mubr.bf16.gmra.mrb[168].mxu0 %v4973_v27  ;;  %3735 = vmatmul.mubr.bf16.gmra.mrb[200].mxu1 %v4783_v34 }
 0x258   : > { %3645 = vmatprep.mubr.bf16.mxu0 %v4982_v3  ;;  %3742 = vmatprep.mubr.bf16.mxu1 %v4792_v30 }
 0x25a   : > { %v3431_v22 = vpop.f32.mrb[64].mxu0  ;;  %v6095_v16 = vpop.f32.mrb[96].mxu1 }
 0x25b   : > { %v6098_v37 = vadd.f32 %v3431_v22, %v6031_v14  ;;  %v3433_v13 = vpop.f32.mrb[65].mxu0  ;;  %v3208_v21 = vpop.f32.mrb[97].mxu1  ;;  %v1805_v14 = vld [vmem:[%s5647_s9 + $0x748] sm:$0xff]  ;;  %v1634_v22 = vld [vmem:[%s5647_s9 + $0x1f0] sm:$0xff] }
 0x25c   : > { %v3434_v36 = vpop.f32.mrb[66].mxu0  ;;  %v6100_v48 = vpop.f32.mrb[98].mxu1  ;;  %v4998_v1 = vcombine.high %v1805_v14, %v1809_v41  ;;  %v4997_v39 = vcombine.low %v1805_v14, %v1809_v41  ;;  %v4815_v21 = vcombine.low %v1622_v63, %v1626_v7 }
 0x25d   : > { %v6103_v50 = vadd.f32 %v3434_v36, %v6033_v52  ;;  %v3436_v60 = vpop.f32.mrb[67].mxu0  ;;  %v3211_v31 = vpop.f32.mrb[99].mxu1 }
 0x25e   : > { %v4824_v60 = vcombine.high %v1630_v25, %v1634_v22 }
 0x25f   : > { %3646 = vmatmul.mubr.bf16.gmra.mrb[172].mxu0 %v4981_v24  ;;  %3743 = vmatmul.mubr.bf16.gmra.mrb[204].mxu1 %v4791_v35 }
 0x260   : > { %3653 = vmatprep.mubr.bf16.mxu0 %v4990_v23  ;;  %3750 = vmatprep.mubr.bf16.mxu1 %v4800_v44 }
 0x262   : > { %v3439_v49 = vpop.f32.mrb[68].mxu0  ;;  %v6109_v57 = vpop.f32.mrb[100].mxu1 }
 0x263   : > { %v6112_v52 = vadd.f32 %v3439_v49, %v6039_v6  ;;  %v3441_v43 = vpop.f32.mrb[69].mxu0  ;;  %v3216_v53 = vpop.f32.mrb[101].mxu1  ;;  %v1813_v6 = vld [vmem:[%s5647_s9 + $0x788] sm:$0xff]  ;;  %v1642_v49 = vld [vmem:[%s5647_s9 + $0x230] sm:$0xff] }
 0x264   : > { %v3442_v10 = vpop.f32.mrb[70].mxu0  ;;  %v6114_v56 = vpop.f32.mrb[102].mxu1  ;;  %v5006_v34 = vcombine.high %v1813_v6, %v1817_v4  ;;  %v5005_v13 = vcombine.low %v1813_v6, %v1817_v4 }
 0x265   : > { %v6117_v2 = vadd.f32 %v3442_v10, %v6041_v54  ;;  %v3444_v0 = vpop.f32.mrb[71].mxu0  ;;  %v3219_v40 = vpop.f32.mrb[103].mxu1 }
 0x267   : > { %3654 = vmatmul.mubr.bf16.gmra.mrb[176].mxu0 %v4989_v61  ;;  %3751 = vmatmul.mubr.bf16.gmra.mrb[208].mxu1 %v4799_v11  ;;  %v1575_v61 = vld [vmem:[%s5647_s9 + $0x18] sm:$0xff] }
 0x268   : > { %3661 = vmatprep.mubr.bf16.mxu0 %v4998_v1  ;;  %3758 = vmatprep.mubr.bf16.mxu1 %v4808_v28  ;;  %v1579_v11 = vld [vmem:[%s5647_s9 + $0x38] sm:$0xff]  ;;  %v4823_v28 = vcombine.low %v1630_v25, %v1634_v22 }
 0x269   : > { %v4770_v6 = vcombine.high %v1575_v61, %v1579_v11 }
 0x26a   : > { %v3447_v15 = vpop.f32.mrb[72].mxu0  ;;  %v6123_v17 = vpop.f32.mrb[104].mxu1 }
 0x26b   : > { %v6126_v54 = vadd.f32 %v3447_v15, %v6047_v19  ;;  %v3449_v18 = vpop.f32.mrb[73].mxu0  ;;  %v3224_v27 = vpop.f32.mrb[105].mxu1  ;;  %v1821_v19 = vld [vmem:[%s5647_s9 + $0x7c8] sm:$0xff] }
 0x26c   : > { %v3450_v3 = vpop.f32.mrb[74].mxu0  ;;  %v6128_v30 = vpop.f32.mrb[106].mxu1  ;;  %v5014_v36 = vcombine.high %v1821_v19, %v1825_v59  ;;  %v5013_v1 = vcombine.low %v1821_v19, %v1825_v59  ;;  %v1583_v18 = vld [vmem:[%s5647_s9 + $0x58] sm:$0xff] }
 0x26d   : > { %v6131_v5 = vadd.f32 %v3450_v3, %v6049_v51  ;;  %v3452_v45 = vpop.f32.mrb[75].mxu0  ;;  %v3227_v46 = vpop.f32.mrb[107].mxu1  ;;  %v1587_v27 = vld [vmem:[%s5647_s9 + $0x78] sm:$0xff]  ;;  %v4769_v3 = vcombine.low %v1575_v61, %v1579_v11 }
 0x26e   : > { %v4778_v25 = vcombine.high %v1583_v18, %v1587_v27 }
 0x26f   : > { %3662 = vmatmul.mubr.bf16.gmra.mrb[180].mxu0 %v4997_v39  ;;  %3759 = vmatmul.mubr.bf16.gmra.mrb[212].mxu1 %v4807_v38  ;;  %v1650_v38 = vld [vmem:[%s5647_s9 + $0x270] sm:$0xff] }
 0x270   : > { %3669 = vmatprep.mubr.bf16.mxu0 %v5006_v34  ;;  %3766 = vmatprep.mubr.bf16.mxu1 %v4816_v62 }
 0x272   : > { %v3455_v24 = vpop.f32.mrb[76].mxu0  ;;  %v6137_v35 = vpop.f32.mrb[108].mxu1 }
 0x273   : > { %v6140_v51 = vadd.f32 %v3455_v24, %v6055_v12  ;;  %v3457_v23 = vpop.f32.mrb[77].mxu0  ;;  %v3232_v44 = vpop.f32.mrb[109].mxu1  ;;  %v1638_v12 = vld [vmem:[%s5647_s9 + $0x210] sm:$0xff] }
 0x274   : > { %v3458_v31 = vpop.f32.mrb[78].mxu0  ;;  %v6142_v14 = vpop.f32.mrb[110].mxu1  ;;  %v4832_v40 = vcombine.high %v1638_v12, %v1642_v49  ;;  %v4831_v45 = vcombine.low %v1638_v12, %v1642_v49  ;;  %v1658_v44 = vld [vmem:[%s5647_s9 + $0x2b0] sm:$0xff]  ;;  %v4777_v12 = vcombine.low %v1583_v18, %v1587_v27 }
 0x275   : > { %v6145_v41 = vadd.f32 %v3458_v31, %v6057_v26  ;;  %v3460_v47 = vpop.f32.mrb[79].mxu0  ;;  %v3235_v58 = vpop.f32.mrb[111].mxu1 }
 0x277   : > { %3670 = vmatmul.mubr.bf16.gmra.mrb[184].mxu0 %v5005_v13  ;;  %3767 = vmatmul.mubr.bf16.gmra.mrb[216].mxu1 %v4815_v21 }
 0x278   : > { %3677 = vmatprep.mubr.bf16.mxu0 %v5014_v36  ;;  %3774 = vmatprep.mubr.bf16.mxu1 %v4824_v60  ;;  %v1591_v36 = vld [vmem:[%s5647_s9 + $0x98] sm:$0xff] }
 0x279   : > { %v1595_v60 = vld [vmem:[%s5647_s9 + $0xb8] sm:$0xff] }
 0x27a   : > { %v3463_v43 = vpop.f32.mrb[80].mxu0  ;;  %v6151_v53 = vpop.f32.mrb[112].mxu1  ;;  %v4785_v18 = vcombine.low %v1591_v36, %v1595_v60 }
 0x27b   : > { %v6154_v26 = vadd.f32 %v3463_v43, %v6063_v42  ;;  %v3465_v10 = vpop.f32.mrb[81].mxu0  ;;  %v3240_v0 = vpop.f32.mrb[113].mxu1  ;;  %v1646_v42 = vld [vmem:[%s5647_s9 + $0x250] sm:$0xff]  ;;  %v4786_v43 = vcombine.high %v1591_v36, %v1595_v60 }
 0x27c   : > { %v3466_v4 = vpop.f32.mrb[82].mxu0  ;;  %v6156_v63 = vpop.f32.mrb[114].mxu1  ;;  %v4840_v59 = vcombine.high %v1646_v42, %v1650_v38  ;;  %v4839_v58 = vcombine.low %v1646_v42, %v1650_v38 }
 0x27d   : > { %v6159_v7 = vadd.f32 %v3466_v4, %v6065_v33  ;;  %v3468_v15 = vpop.f32.mrb[83].mxu0  ;;  %v3243_v39 = vpop.f32.mrb[115].mxu1  ;;  %v1599_v4 = vld [vmem:[%s5647_s9 + $0xd8] sm:$0xff] }
 0x27e   : > { %v1603_v15 = vld [vmem:[%s5647_s9 + $0xf8] sm:$0xff] }
 0x27f   : > { %3678 = vmatmul.mubr.bf16.gmra.mrb[188].mxu0 %v5013_v1  ;;  %3775 = vmatmul.mubr.bf16.gmra.mrb[220].mxu1 %v4823_v28 }
 0x280   : > { %3782 = vmatprep.mubr.bf16.mxu1 %v4832_v40  ;;  %4007 = vmatprep.mubr.bf16.mxu0 %v4770_v6  ;;  %v1666_v6 = vld [vmem:[%s5647_s9 + $0x2f0] sm:$0xff] }
 0x282   : > { %v3471_v34 = vpop.f32.mrb[84].mxu0  ;;  %v6165_v62 = vpop.f32.mrb[116].mxu1 }
 0x283   : > { %v6168_v33 = vadd.f32 %v3471_v34, %v6071_v55  ;;  %v3473_v46 = vpop.f32.mrb[85].mxu0  ;;  %v3248_v19 = vpop.f32.mrb[117].mxu1  ;;  %v1654_v55 = vld [vmem:[%s5647_s9 + $0x290] sm:$0xff] }
 0x284   : > { %v3474_v22 = vpop.f32.mrb[86].mxu0  ;;  %v6170_v24 = vpop.f32.mrb[118].mxu1  ;;  %v4848_v11 = vcombine.high %v1654_v55, %v1658_v44  ;;  %v4847_v38 = vcombine.low %v1654_v55, %v1658_v44  ;;  %v1611_v55 = vld [vmem:[%s5647_s9 + $0x138] sm:$0xff] }
 0x285   : > { %v6173_v13 = vadd.f32 %v3474_v22, %v6073_v20  ;;  %v3476_v21 = vpop.f32.mrb[87].mxu0  ;;  %v3251_v23 = vpop.f32.mrb[119].mxu1 }
 0x286   : > { %v1674_v21 = vld [vmem:[%s5647_s9 + $0x330] sm:$0xff]  ;;  %v1607_v23 = vld [vmem:[%s5647_s9 + $0x118] sm:$0xff] }
 0x287   : > { %3783 = vmatmul.mubr.bf16.gmra.mrb[224].mxu1 %v4831_v45  ;;  %4008 = vmatmul.mubr.bf16.vlgmr.msra.gmra.mrb[192].mxu0 %v4769_v3  ;;  %v4794_v45 = vcombine.high %v1599_v4, %v1603_v15 }
 0x288   : > { %3790 = vmatprep.mubr.bf16.mxu1 %v4840_v59  ;;  %4015 = vmatprep.mubr.bf16.mxu0 %v4778_v25 }
 0x28a   : > { %v3479_v31 = vpop.f32.mrb[88].mxu0  ;;  %v6179_v47 = vpop.f32.mrb[120].mxu1 }
 0x28b   : > { %v6182_v20 = vadd.f32 %v3479_v31, %v6079_v8  ;;  %v3481_v49 = vpop.f32.mrb[89].mxu0  ;;  %v3256_v61 = vpop.f32.mrb[121].mxu1  ;;  %v1662_v8 = vld [vmem:[%s5647_s9 + $0x2d0] sm:$0xff]  ;;  %v4793_v31 = vcombine.low %v1599_v4, %v1603_v15  ;;  %v1619_v4 = vld [vmem:[%s5647_s9 + $0x178] sm:$0xff] }
 0x28c   : > { %v3482_v1 = vpop.f32.mrb[90].mxu0  ;;  %v6184_v28 = vpop.f32.mrb[122].mxu1  ;;  %v4856_v3 = vcombine.high %v1662_v8, %v1666_v6  ;;  %v4855_v60 = vcombine.low %v1662_v8, %v1666_v6  ;;  %v4802_v61 = vcombine.high %v1607_v23, %v1611_v55  ;;  %v1682_v8 = vld [vmem:[%s5647_s9 + $0x370] sm:$0xff]  ;;  %v1615_v6 = vld [vmem:[%s5647_s9 + $0x158] sm:$0xff] }
 0x28d   : > { %v6187_v10 = vadd.f32 %v3482_v1, %v6081_v29  ;;  %v3484_v0 = vpop.f32.mrb[91].mxu0  ;;  %v3259_v40 = vpop.f32.mrb[123].mxu1 }
 0x28f   : > { %3791 = vmatmul.mubr.bf16.gmra.mrb[228].mxu1 %v4839_v58  ;;  %4016 = vmatmul.mubr.bf16.gmra.mrb[196].mxu0 %v4777_v12 }
 0x290   : > { %3798 = vmatprep.mubr.bf16.mxu1 %v4848_v11  ;;  %4023 = vmatprep.mubr.bf16.mxu0 %v4786_v43 }
 0x292   : > { %v3487_v39 = vpop.f32.mrb[92].mxu0  ;;  %v6193_v42 = vpop.f32.mrb[124].mxu1 }
 0x293   : > { %v6196_v29 = vadd.f32 %v3487_v39, %v6087_v9  ;;  %v3489_v27 = vpop.f32.mrb[93].mxu0  ;;  %v3264_v34 = vpop.f32.mrb[125].mxu1  ;;  %v1670_v9 = vld [vmem:[%s5647_s9 + $0x310] sm:$0xff] }
 0x294   : > { %v3490_v46 = vpop.f32.mrb[94].mxu0  ;;  %v6198_v19 = vpop.f32.mrb[126].mxu1  ;;  %v4864_v49 = vcombine.high %v1670_v9, %v1674_v21 }
 0x295   : > { %v6201_v59 = vadd.f32 %v3490_v46, %v6089_v32  ;;  %v3492_v25 = vpop.f32.mrb[95].mxu0  ;;  %v3267_v22 = vpop.f32.mrb[127].mxu1 }
 0x297   : > { %3799 = vmatmul.mubr.bf16.gmra.mrb[232].mxu1 %v4847_v38  ;;  %4024 = vmatmul.mubr.bf16.gmra.mrb[200].mxu0 %v4785_v18  ;;  %v4863_v38 = vcombine.low %v1670_v9, %v1674_v21  ;;  %v4801_v18 = vcombine.low %v1607_v23, %v1611_v55  ;;  %v1686_v21 = vld [vmem:[%s5647_s9 + $0x390] sm:$0xff]  ;;  %v1627_v55 = vld [vmem:[%s5647_s9 + $0x1b8] sm:$0xff] }
 0x298   : > { %3806 = vmatprep.mubr.bf16.mxu1 %v4856_v3  ;;  %4031 = vmatprep.mubr.bf16.mxu0 %v4794_v45  ;;  %v4810_v45 = vcombine.high %v1615_v6, %v1619_v4  ;;  %v1690_v23 = vld [vmem:[%s5647_s9 + $0x3b0] sm:$0xff] }
 0x29a   : > { %v3495_v44 = vpop.f32.mrb[96].mxu0  ;;  %v6207_v36 = vpop.f32.mrb[128].mxu1 }
 0x29b   : > { %v6210_v32 = vadd.f32 %v3495_v44, %v6095_v16  ;;  %v3497_v58 = vpop.f32.mrb[97].mxu0  ;;  %v3272_v12 = vpop.f32.mrb[129].mxu1  ;;  %v1678_v16 = vld [vmem:[%s5647_s9 + $0x350] sm:$0xff] }
 0x29c   : > { %v3498_v11 = vpop.f32.mrb[98].mxu0  ;;  %v6212_v43 = vpop.f32.mrb[130].mxu1  ;;  %v4872_v3 = vcombine.high %v1678_v16, %v1682_v8  ;;  %v4871_v58 = vcombine.low %v1678_v16, %v1682_v8  ;;  %v4809_v12 = vcombine.low %v1615_v6, %v1619_v4  ;;  %v1694_v8 = vld [vmem:[%s5647_s9 + $0x3d0] sm:$0xff]  ;;  %v1635_v4 = vld [vmem:[%s5647_s9 + $0x1f8] sm:$0xff] }
 0x29d   : > { %v6215_v1 = vadd.f32 %v3498_v11, %v6100_v48  ;;  %v3500_v0 = vpop.f32.mrb[99].mxu0  ;;  %v3275_v40 = vpop.f32.mrb[131].mxu1  ;;  %v4880_v11 = vcombine.high %v1686_v21, %v1690_v23  ;;  %v1698_v6 = vld [vmem:[%s5647_s9 + $0x3f0] sm:$0xff] }
 0x29f   : > { %3807 = vmatmul.mubr.bf16.gmra.mrb[236].mxu1 %v4855_v60  ;;  %4032 = vmatmul.mubr.bf16.gmra.mrb[204].mxu0 %v4793_v31 }
 0x2a0   : > { %3814 = vmatprep.mubr.bf16.mxu1 %v4864_v49  ;;  %4039 = vmatprep.mubr.bf16.mxu0 %v4802_v61 }
 0x2a2   : > { %v6221_v15 = vpop.f32.mrb[132].mxu1  ;;  %v3503_v39 = vpop.f32.mrb[100].mxu0 }
 0x2a3   : > { %v3280_v27 = vpop.f32.mrb[133].mxu1  ;;  %v6224_v48 = vadd.f32 %v3503_v39, %v6109_v57  ;;  %v3505_v34 = vpop.f32.mrb[101].mxu0  ;;  %v1623_v57 = vld [vmem:[%s5647_s9 + $0x198] sm:$0xff] }
 0x2a4   : > { %v6226_v46 = vpop.f32.mrb[134].mxu1  ;;  %v3506_v25 = vpop.f32.mrb[102].mxu0  ;;  %v4818_v0 = vcombine.high %v1623_v57, %v1627_v55 }
 0x2a5   : > { %v3283_v22 = vpop.f32.mrb[135].mxu1  ;;  %v6229_v44 = vadd.f32 %v3506_v25, %v6114_v56  ;;  %v3508_v9 = vpop.f32.mrb[103].mxu0 }
 0x2a6   : > { %v4888_v9 = vcombine.high %v1694_v8, %v1698_v6 }
 0x2a7   : > { %3815 = vmatmul.mubr.bf16.gmra.mrb[240].mxu1 %v4863_v38  ;;  %4040 = vmatmul.mubr.bf16.gmra.mrb[208].mxu0 %v4801_v18 }
 0x2a8   : > { %3822 = vmatprep.mubr.bf16.mxu1 %v4872_v3  ;;  %4047 = vmatprep.mubr.bf16.mxu0 %v4810_v45  ;;  %v4879_v3 = vcombine.low %v1686_v21, %v1690_v23  ;;  %v4817_v45 = vcombine.low %v1623_v57, %v1627_v55  ;;  %v1702_v23 = vld [vmem:[%s5647_s9 + $0x410] sm:$0xff]  ;;  %v1643_v55 = vld [vmem:[%s5647_s9 + $0x238] sm:$0xff] }
 0x2a9   : > { %v1706_v57 = vld [vmem:[%s5647_s9 + $0x430] sm:$0xff] }
 0x2aa   : > { %v6235_v60 = vpop.f32.mrb[136].mxu1  ;;  %v3511_v31 = vpop.f32.mrb[104].mxu0 }
 0x2ab   : > { %v3288_v49 = vpop.f32.mrb[137].mxu1  ;;  %v6238_v56 = vadd.f32 %v3511_v31, %v6123_v17  ;;  %v3513_v61 = vpop.f32.mrb[105].mxu0  ;;  %v1631_v17 = vld [vmem:[%s5647_s9 + $0x1d8] sm:$0xff] }
 0x2ac   : > { %v6240_v40 = vpop.f32.mrb[138].mxu1  ;;  %v3514_v39 = vpop.f32.mrb[106].mxu0  ;;  %v4826_v31 = vcombine.high %v1631_v17, %v1635_v4 }
 0x2ad   : > { %v3291_v38 = vpop.f32.mrb[139].mxu1  ;;  %v6243_v18 = vadd.f32 %v3514_v39, %v6128_v30  ;;  %v3516_v16 = vpop.f32.mrb[107].mxu0  ;;  %v4887_v39 = vcombine.low %v1694_v8, %v1698_v6  ;;  %v1710_v6 = vld [vmem:[%s5647_s9 + $0x450] sm:$0xff] }
 0x2ae   : > { %v4825_v38 = vcombine.low %v1631_v17, %v1635_v4  ;;  %v1714_v17 = vld [vmem:[%s5647_s9 + $0x470] sm:$0xff]  ;;  %v1651_v4 = vld [vmem:[%s5647_s9 + $0x278] sm:$0xff] }
 0x2af   : > { %3823 = vmatmul.mubr.bf16.gmra.mrb[244].mxu1 %v4871_v58  ;;  %4048 = vmatmul.mubr.bf16.gmra.mrb[212].mxu0 %v4809_v12 }
 0x2b0   : > { %3830 = vmatprep.mubr.bf16.mxu1 %v4880_v11  ;;  %4055 = vmatprep.mubr.bf16.mxu0 %v4818_v0 }
 0x2b2   : > { %v6249_v27 = vpop.f32.mrb[140].mxu1  ;;  %v3519_v34 = vpop.f32.mrb[108].mxu0 }
 0x2b3   : > { %v3296_v25 = vpop.f32.mrb[141].mxu1  ;;  %v6252_v30 = vadd.f32 %v3519_v34, %v6137_v35  ;;  %v3521_v22 = vpop.f32.mrb[109].mxu0  ;;  %v1639_v35 = vld [vmem:[%s5647_s9 + $0x218] sm:$0xff] }
 0x2b4   : > { %v6254_v58 = vpop.f32.mrb[142].mxu1  ;;  %v3522_v12 = vpop.f32.mrb[110].mxu0 }
 0x2b5   : > { %v3299_v49 = vpop.f32.mrb[143].mxu1  ;;  %v6257_v61 = vadd.f32 %v3522_v12, %v6142_v14  ;;  %v3524_v21 = vpop.f32.mrb[111].mxu0 }
 0x2b6   : > { %v4895_v21 = vcombine.low %v1702_v23, %v1706_v57 }
 0x2b7   : > { %3831 = vmatmul.mubr.bf16.gmra.mrb[248].mxu1 %v4879_v3  ;;  %4056 = vmatmul.mubr.bf16.gmra.mrb[216].mxu0 %v4817_v45  ;;  %v4896_v3 = vcombine.high %v1702_v23, %v1706_v57  ;;  %v4834_v45 = vcombine.high %v1639_v35, %v1643_v55  ;;  %v1718_v57 = vld [vmem:[%s5647_s9 + $0x490] sm:$0xff] }
 0x2b8   : > { %3838 = vmatprep.mubr.bf16.mxu1 %v4888_v9  ;;  %4063 = vmatprep.mubr.bf16.mxu0 %v4826_v31 }
 0x2ba   : > { %v6263_v11 = vpop.f32.mrb[144].mxu1  ;;  %v3527_v0 = vpop.f32.mrb[112].mxu0 }
 0x2bb   : > { %v3304_v16 = vpop.f32.mrb[145].mxu1  ;;  %v6266_v14 = vadd.f32 %v3527_v0, %v6151_v53  ;;  %v3529_v34 = vpop.f32.mrb[113].mxu0  ;;  %v1647_v53 = vld [vmem:[%s5647_s9 + $0x258] sm:$0xff]  ;;  %v4833_v0 = vcombine.low %v1639_v35, %v1643_v55  ;;  %v1722_v35 = vld [vmem:[%s5647_s9 + $0x4b0] sm:$0xff] }
 0x2bc   : > { %v6268_v25 = vpop.f32.mrb[146].mxu1  ;;  %v3530_v22 = vpop.f32.mrb[114].mxu0  ;;  %v4842_v34 = vcombine.high %v1647_v53, %v1651_v4  ;;  %v1659_v55 = vld [vmem:[%s5647_s9 + $0x2b8] sm:$0xff] }
 0x2bd   : > { %v3307_v9 = vpop.f32.mrb[147].mxu1  ;;  %v6271_v31 = vadd.f32 %v3530_v22, %v6156_v63  ;;  %v3532_v8 = vpop.f32.mrb[115].mxu0 }
 0x2bf   : > { %3839 = vmatmul.mubr.bf16.gmra.mrb[252].mxu1 %v4887_v39  ;;  %4064 = vmatmul.mubr.bf16.gmra.mrb[220].mxu0 %v4825_v38  ;;  %v4904_v38 = vcombine.high %v1710_v6, %v1714_v17 }
 0x2c0   : > { %3846 = vmatprep.mubr.bf16.mxu1 %v4896_v3  ;;  %4071 = vmatprep.mubr.bf16.mxu0 %v4834_v45 }
 0x2c2   : > { %v6277_v12 = vpop.f32.mrb[148].mxu1  ;;  %v3535_v49 = vpop.f32.mrb[116].mxu0 }
 0x2c3   : > { %v3312_v16 = vpop.f32.mrb[149].mxu1  ;;  %v6280_v63 = vadd.f32 %v3535_v49, %v6165_v62  ;;  %v3537_v39 = vpop.f32.mrb[117].mxu0  ;;  %v1655_v62 = vld [vmem:[%s5647_s9 + $0x298] sm:$0xff] }
 0x2c4   : > { %v6282_v3 = vpop.f32.mrb[150].mxu1  ;;  %v3538_v45 = vpop.f32.mrb[118].mxu0  ;;  %v4903_v16 = vcombine.low %v1710_v6, %v1714_v17  ;;  %v4841_v39 = vcombine.low %v1647_v53, %v1651_v4  ;;  %v1726_v17 = vld [vmem:[%s5647_s9 + $0x4d0] sm:$0xff]  ;;  %v1667_v4 = vld [vmem:[%s5647_s9 + $0x2f8] sm:$0xff] }
 0x2c5   : > { %6918 = vst [vmem:[#allocation3_spill] sm:$0xff] %v6280_v63  ;;  %v3315_v22 = vpop.f32.mrb[151].mxu1  ;;  %v6285_v9 = vadd.f32 %v3538_v45, %v6170_v24  ;;  %v3540_v23 = vpop.f32.mrb[119].mxu0  ;;  %v1730_v53 = vld [vmem:[%s5647_s9 + $0x4f0] sm:$0xff] }
 0x2c7   : > { %6919 = vst [vmem:[#allocation4_spill] sm:$0xff] %v6285_v9  ;;  %3847 = vmatmul.mubr.bf16.gmra.mrb[0].mxu1 %v4895_v21  ;;  %4072 = vmatmul.mubr.bf16.gmra.mrb[224].mxu0 %v4833_v0  ;;  %v4912_v0 = vcombine.high %v1718_v57, %v1722_v35 }
 0x2c8   : > { %3854 = vmatprep.mubr.bf16.mxu1 %v4904_v38  ;;  %4079 = vmatprep.mubr.bf16.mxu0 %v4842_v34  ;;  %v4850_v38 = vcombine.high %v1655_v62, %v1659_v55 }
 0x2ca   : > { %v6291_v8 = vpop.f32.mrb[152].mxu1  ;;  %v3543_v49 = vpop.f32.mrb[120].mxu0 }
 0x2cb   : > { %v3320_v22 = vpop.f32.mrb[153].mxu1  ;;  %v6294_v24 = vadd.f32 %v3543_v49, %v6179_v47  ;;  %v3545_v21 = vpop.f32.mrb[121].mxu0  ;;  %v1663_v47 = vld [vmem:[%s5647_s9 + $0x2d8] sm:$0xff] }
 0x2cc   : > { %v6296_v34 = vpop.f32.mrb[154].mxu1  ;;  %v3546_v45 = vpop.f32.mrb[122].mxu0  ;;  %v4911_v21 = vcombine.low %v1718_v57, %v1722_v35  ;;  %v1734_v35 = vld [vmem:[%s5647_s9 + $0x510] sm:$0xff] }
 0x2cd   : > { %6920 = vst [vmem:[#allocation5_spill] sm:$0xff] %v6294_v24  ;;  %v3323_v23 = vpop.f32.mrb[155].mxu1  ;;  %v6299_v9 = vadd.f32 %v3546_v45, %v6184_v28  ;;  %v3548_v6 = vpop.f32.mrb[123].mxu0  ;;  %v4849_v24 = vcombine.low %v1655_v62, %v1659_v55  ;;  %v1738_v62 = vld [vmem:[%s5647_s9 + $0x530] sm:$0xff]  ;;  %v1675_v55 = vld [vmem:[%s5647_s9 + $0x338] sm:$0xff] }
 0x2cf   : > { %6921 = vst [vmem:[#allocation6_spill] sm:$0xff] %v6299_v9  ;;  %3855 = vmatmul.mubr.bf16.gmra.mrb[4].mxu1 %v4903_v16  ;;  %4080 = vmatmul.mubr.bf16.gmra.mrb[228].mxu0 %v4841_v39  ;;  %v4920_v39 = vcombine.high %v1726_v17, %v1730_v53 }
 0x2d0   : > { %3862 = vmatprep.mubr.bf16.mxu1 %v4912_v0  ;;  %4087 = vmatprep.mubr.bf16.mxu0 %v4850_v38  ;;  %v4858_v0 = vcombine.high %v1663_v47, %v1667_v4 }
 0x2d2   : > { %v6305_v49 = vpop.f32.mrb[156].mxu1  ;;  %v3551_v22 = vpop.f32.mrb[124].mxu0 }
 0x2d3   : > { %v3328_v23 = vpop.f32.mrb[157].mxu1  ;;  %v6308_v28 = vadd.f32 %v3551_v22, %v6193_v42  ;;  %v3553_v16 = vpop.f32.mrb[125].mxu0  ;;  %v1671_v42 = vld [vmem:[%s5647_s9 + $0x318] sm:$0xff] }
 0x2d4   : > { %v6310_v38 = vpop.f32.mrb[158].mxu1  ;;  %v3554_v45 = vpop.f32.mrb[126].mxu0  ;;  %v4919_v16 = vcombine.low %v1726_v17, %v1730_v53  ;;  %v1742_v53 = vld [vmem:[%s5647_s9 + $0x550] sm:$0xff] }
 0x2d5   : > { %6922 = vst [vmem:[#allocation7_spill] sm:$0xff] %v6308_v28  ;;  %v3331_v6 = vpop.f32.mrb[159].mxu1  ;;  %v6313_v9 = vadd.f32 %v3554_v45, %v6198_v19  ;;  %v3556_v57 = vpop.f32.mrb[127].mxu0  ;;  %v4857_v28 = vcombine.low %v1663_v47, %v1667_v4  ;;  %v1746_v47 = vld [vmem:[%s5647_s9 + $0x570] sm:$0xff]  ;;  %v1683_v4 = vld [vmem:[%s5647_s9 + $0x378] sm:$0xff] }
 0x2d7   : > { %6923 = vst [vmem:[#allocation8_spill] sm:$0xff] %v6313_v9  ;;  %3863 = vmatmul.mubr.bf16.gmra.mrb[8].mxu1 %v4911_v21  ;;  %4088 = vmatmul.mubr.bf16.gmra.mrb[232].mxu0 %v4849_v24  ;;  %v4928_v21 = vcombine.high %v1734_v35, %v1738_v62 }
 0x2d8   : > { %3870 = vmatprep.mubr.bf16.mxu1 %v4920_v39  ;;  %4095 = vmatprep.mubr.bf16.mxu0 %v4858_v0  ;;  %v4866_v39 = vcombine.high %v1671_v42, %v1675_v55 }
 0x2da   : > { %v6319_v22 = vpop.f32.mrb[160].mxu1  ;;  %v3559_v23 = vpop.f32.mrb[128].mxu0 }
 0x2db   : > { %v3336_v6 = vpop.f32.mrb[161].mxu1  ;;  %v6322_v19 = vadd.f32 %v3559_v23, %v6207_v36  ;;  %v3561_v24 = vpop.f32.mrb[129].mxu0  ;;  %v1679_v36 = vld [vmem:[%s5647_s9 + $0x358] sm:$0xff] }
 0x2dc   : > { %v6324_v0 = vpop.f32.mrb[162].mxu1  ;;  %v3562_v45 = vpop.f32.mrb[130].mxu0  ;;  %v4927_v24 = vcombine.low %v1734_v35, %v1738_v62  ;;  %v1750_v62 = vld [vmem:[%s5647_s9 + $0x590] sm:$0xff] }
 0x2dd   : > { %6924 = vst [vmem:[#allocation9_spill] sm:$0xff] %v6322_v19  ;;  %v3339_v57 = vpop.f32.mrb[163].mxu1  ;;  %v6327_v9 = vadd.f32 %v3562_v45, %v6212_v43  ;;  %v3564_v17 = vpop.f32.mrb[131].mxu0  ;;  %v4865_v19 = vcombine.low %v1671_v42, %v1675_v55  ;;  %v1754_v42 = vld [vmem:[%s5647_s9 + $0x5b0] sm:$0xff]  ;;  %v1691_v55 = vld [vmem:[%s5647_s9 + $0x3b8] sm:$0xff] }
 0x2df   : > { %6925 = vst [vmem:[#allocation10_spill] sm:$0xff] %v6327_v9  ;;  %3871 = vmatmul.mubr.bf16.gmra.mrb[12].mxu1 %v4919_v16  ;;  %4096 = vmatmul.mubr.bf16.gmra.mrb[236].mxu0 %v4857_v28  ;;  %v4936_v16 = vcombine.high %v1742_v53, %v1746_v47 }
 0x2e0   : > { %3878 = vmatprep.mubr.bf16.mxu1 %v4928_v21  ;;  %4103 = vmatprep.mubr.bf16.mxu0 %v4866_v39  ;;  %v4874_v21 = vcombine.high %v1679_v36, %v1683_v4 }
 0x2e2   : > { %v6333_v23 = vpop.f32.mrb[164].mxu1  ;;  %v3567_v6 = vpop.f32.mrb[132].mxu0 }
 0x2e3   : > { %v3344_v57 = vpop.f32.mrb[165].mxu1  ;;  %v6336_v43 = vadd.f32 %v3567_v6, %v6221_v15  ;;  %v3569_v28 = vpop.f32.mrb[133].mxu0  ;;  %v1687_v15 = vld [vmem:[%s5647_s9 + $0x398] sm:$0xff] }
 0x2e4   : > { %v6338_v39 = vpop.f32.mrb[166].mxu1  ;;  %v3570_v45 = vpop.f32.mrb[134].mxu0  ;;  %v4935_v28 = vcombine.low %v1742_v53, %v1746_v47  ;;  %v1758_v47 = vld [vmem:[%s5647_s9 + $0x5d0] sm:$0xff] }
 0x2e5   : > { %6926 = vst [vmem:[#allocation11_spill] sm:$0xff] %v6336_v43  ;;  %v3347_v17 = vpop.f32.mrb[167].mxu1  ;;  %v6341_v9 = vadd.f32 %v3570_v45, %v6226_v46  ;;  %v3572_v35 = vpop.f32.mrb[135].mxu0  ;;  %v4873_v43 = vcombine.low %v1679_v36, %v1683_v4  ;;  %v1762_v36 = vld [vmem:[%s5647_s9 + $0x5f0] sm:$0xff]  ;;  %v1699_v4 = vld [vmem:[%s5647_s9 + $0x3f8] sm:$0xff] }
 0x2e7   : > { %6927 = vst [vmem:[#allocation12_spill] sm:$0xff] %v6341_v9  ;;  %3879 = vmatmul.mubr.bf16.gmra.mrb[16].mxu1 %v4927_v24  ;;  %4104 = vmatmul.mubr.bf16.gmra.mrb[240].mxu0 %v4865_v19  ;;  %v4944_v24 = vcombine.high %v1750_v62, %v1754_v42 }
 0x2e8   : > { %3886 = vmatprep.mubr.bf16.mxu1 %v4936_v16  ;;  %4111 = vmatprep.mubr.bf16.mxu0 %v4874_v21  ;;  %v4882_v16 = vcombine.high %v1687_v15, %v1691_v55 }
 0x2ea   : > { %v6347_v6 = vpop.f32.mrb[168].mxu1  ;;  %v3575_v57 = vpop.f32.mrb[136].mxu0 }
 0x2eb   : > { %v3352_v17 = vpop.f32.mrb[169].mxu1  ;;  %v6350_v46 = vadd.f32 %v3575_v57, %v6235_v60  ;;  %v3577_v19 = vpop.f32.mrb[137].mxu0  ;;  %v1695_v60 = vld [vmem:[%s5647_s9 + $0x3d8] sm:$0xff] }
 0x2ec   : > { %v6352_v21 = vpop.f32.mrb[170].mxu1  ;;  %v3578_v45 = vpop.f32.mrb[138].mxu0  ;;  %v4943_v19 = vcombine.low %v1750_v62, %v1754_v42  ;;  %v1766_v42 = vld [vmem:[%s5647_s9 + $0x610] sm:$0xff] }
 0x2ed   : > { %6928 = vst [vmem:[#allocation13_spill] sm:$0xff] %v6350_v46  ;;  %v3355_v35 = vpop.f32.mrb[171].mxu1  ;;  %v6355_v9 = vadd.f32 %v3578_v45, %v6240_v40  ;;  %v3580_v53 = vpop.f32.mrb[139].mxu0  ;;  %v4881_v46 = vcombine.low %v1687_v15, %v1691_v55  ;;  %v1770_v15 = vld [vmem:[%s5647_s9 + $0x630] sm:$0xff]  ;;  %v1707_v55 = vld [vmem:[%s5647_s9 + $0x438] sm:$0xff] }
 0x2ef   : > { %6929 = vst [vmem:[#allocation14_spill] sm:$0xff] %v6355_v9  ;;  %3887 = vmatmul.mubr.bf16.gmra.mrb[20].mxu1 %v4935_v28  ;;  %4112 = vmatmul.mubr.bf16.gmra.mrb[244].mxu0 %v4873_v43  ;;  %v4952_v28 = vcombine.high %v1758_v47, %v1762_v36 }
 0x2f0   : > { %3894 = vmatprep.mubr.bf16.mxu1 %v4944_v24  ;;  %4119 = vmatprep.mubr.bf16.mxu0 %v4882_v16  ;;  %v4890_v24 = vcombine.high %v1695_v60, %v1699_v4 }
 0x2f2   : > { %v6361_v57 = vpop.f32.mrb[172].mxu1  ;;  %v3583_v17 = vpop.f32.mrb[140].mxu0 }
 0x2f3   : > { %v3360_v35 = vpop.f32.mrb[173].mxu1  ;;  %v6364_v40 = vadd.f32 %v3583_v17, %v6249_v27  ;;  %v3585_v43 = vpop.f32.mrb[141].mxu0  ;;  %v1703_v27 = vld [vmem:[%s5647_s9 + $0x418] sm:$0xff] }
 0x2f4   : > { %v6366_v16 = vpop.f32.mrb[174].mxu1  ;;  %v3586_v45 = vpop.f32.mrb[142].mxu0  ;;  %v4951_v43 = vcombine.low %v1758_v47, %v1762_v36  ;;  %v1774_v36 = vld [vmem:[%s5647_s9 + $0x650] sm:$0xff] }
 0x2f5   : > { %6930 = vst [vmem:[#allocation15_spill] sm:$0xff] %v6364_v40  ;;  %v3363_v53 = vpop.f32.mrb[175].mxu1  ;;  %v6369_v9 = vadd.f32 %v3586_v45, %v6254_v58  ;;  %v3588_v62 = vpop.f32.mrb[143].mxu0  ;;  %v4889_v40 = vcombine.low %v1695_v60, %v1699_v4  ;;  %v1778_v60 = vld [vmem:[%s5647_s9 + $0x670] sm:$0xff]  ;;  %v1715_v4 = vld [vmem:[%s5647_s9 + $0x478] sm:$0xff] }
 0x2f7   : > { %6931 = vst [vmem:[#allocation16_spill] sm:$0xff] %v6369_v9  ;;  %3895 = vmatmul.mubr.bf16.gmra.mrb[24].mxu1 %v4943_v19  ;;  %4120 = vmatmul.mubr.bf16.gmra.mrb[248].mxu0 %v4881_v46  ;;  %v4960_v19 = vcombine.high %v1766_v42, %v1770_v15 }
 0x2f8   : > { %3902 = vmatprep.mubr.bf16.mxu1 %v4952_v28  ;;  %4127 = vmatprep.mubr.bf16.mxu0 %v4890_v24  ;;  %v4898_v28 = vcombine.high %v1703_v27, %v1707_v55 }
 0x2fa   : > { %v6375_v17 = vpop.f32.mrb[176].mxu1  ;;  %v3591_v35 = vpop.f32.mrb[144].mxu0 }
 0x2fb   : > { %v3368_v53 = vpop.f32.mrb[177].mxu1  ;;  %v6378_v58 = vadd.f32 %v3591_v35, %v6263_v11  ;;  %v3593_v46 = vpop.f32.mrb[145].mxu0  ;;  %v1711_v11 = vld [vmem:[%s5647_s9 + $0x458] sm:$0xff] }
 0x2fc   : > { %v6380_v24 = vpop.f32.mrb[178].mxu1  ;;  %v3594_v45 = vpop.f32.mrb[146].mxu0  ;;  %v4959_v46 = vcombine.low %v1766_v42, %v1770_v15  ;;  %v1782_v15 = vld [vmem:[%s5647_s9 + $0x690] sm:$0xff] }
 0x2fd   : > { %6932 = vst [vmem:[#allocation17_spill] sm:$0xff] %v6378_v58  ;;  %v3371_v62 = vpop.f32.mrb[179].mxu1  ;;  %v6383_v9 = vadd.f32 %v3594_v45, %v6268_v25  ;;  %v3596_v47 = vpop.f32.mrb[147].mxu0  ;;  %v4897_v58 = vcombine.low %v1703_v27, %v1707_v55  ;;  %v1786_v27 = vld [vmem:[%s5647_s9 + $0x6b0] sm:$0xff]  ;;  %v1723_v55 = vld [vmem:[%s5647_s9 + $0x4b8] sm:$0xff] }
 0x2ff   : > { %6933 = vst [vmem:[#allocation18_spill] sm:$0xff] %v6383_v9  ;;  %3903 = vmatmul.mubr.bf16.gmra.mrb[28].mxu1 %v4951_v43  ;;  %4128 = vmatmul.mubr.bf16.gmra.mrb[252].mxu0 %v4889_v40  ;;  %v4968_v43 = vcombine.high %v1774_v36, %v1778_v60 }
 0x300   : > { %3910 = vmatprep.mubr.bf16.mxu1 %v4960_v19  ;;  %4135 = vmatprep.mubr.bf16.mxu0 %v4898_v28  ;;  %v4906_v19 = vcombine.high %v1711_v11, %v1715_v4 }
 0x302   : > { %v6389_v35 = vpop.f32.mrb[180].mxu1  ;;  %v3599_v53 = vpop.f32.mrb[148].mxu0 }
 0x303   : > { %v3376_v62 = vpop.f32.mrb[181].mxu1  ;;  %v6392_v25 = vadd.f32 %v3599_v53, %v6277_v12  ;;  %v3601_v40 = vpop.f32.mrb[149].mxu0  ;;  %v1719_v12 = vld [vmem:[%s5647_s9 + $0x498] sm:$0xff] }
 0x304   : > { %v6394_v28 = vpop.f32.mrb[182].mxu1  ;;  %v3602_v45 = vpop.f32.mrb[150].mxu0  ;;  %v4967_v40 = vcombine.low %v1774_v36, %v1778_v60  ;;  %v1790_v60 = vld [vmem:[%s5647_s9 + $0x6d0] sm:$0xff] }
 0x305   : > { %6934 = vst [vmem:[#allocation19_spill] sm:$0xff] %v6392_v25  ;;  %v3379_v47 = vpop.f32.mrb[183].mxu1  ;;  %v6397_v9 = vadd.f32 %v3602_v45, %v6282_v3  ;;  %v3604_v42 = vpop.f32.mrb[151].mxu0  ;;  %v4905_v25 = vcombine.low %v1711_v11, %v1715_v4  ;;  %v1794_v11 = vld [vmem:[%s5647_s9 + $0x6f0] sm:$0xff]  ;;  %v1731_v4 = vld [vmem:[%s5647_s9 + $0x4f8] sm:$0xff] }
 0x306   : > { %v4983_v63 = vcombine.low %v1790_v60, %v1794_v11 }
 0x307   : > { %6935 = vst [vmem:[#allocation20_spill] sm:$0xff] %v6397_v9  ;;  %3911 = vmatmul.mubr.bf16.gmra.mrb[32].mxu1 %v4959_v46  ;;  %4136 = vmatmul.mubr.bf16.gmra.mrb[0].mxu0 %v4897_v58 }
 0x308   : > { %3918 = vmatprep.mubr.bf16.mxu1 %v4968_v43  ;;  %4143 = vmatprep.mubr.bf16.mxu0 %v4906_v19  ;;  %v4976_v43 = vcombine.high %v1782_v15, %v1786_v27  ;;  %v4914_v19 = vcombine.high %v1719_v12, %v1723_v55 }
 0x30a   : > { %v6403_v53 = vpop.f32.mrb[184].mxu1  ;;  %v3607_v62 = vpop.f32.mrb[152].mxu0 }
 0x30b   : > { %v3384_v47 = vpop.f32.mrb[185].mxu1  ;;  %v6406_v3 = vadd.f32 %v3607_v62, %v6291_v8  ;;  %v3609_v58 = vpop.f32.mrb[153].mxu0  ;;  %v1727_v8 = vld [vmem:[%s5647_s9 + $0x4d8] sm:$0xff] }
 0x30c   : > { %v6408_v46 = vpop.f32.mrb[186].mxu1  ;;  %v3610_v45 = vpop.f32.mrb[154].mxu0  ;;  %v4975_v58 = vcombine.low %v1782_v15, %v1786_v27  ;;  %v1798_v27 = vld [vmem:[%s5647_s9 + $0x710] sm:$0xff] }
 0x30d   : > { %6936 = vst [vmem:[#allocation21_spill] sm:$0xff] %v6406_v3  ;;  %v3387_v42 = vpop.f32.mrb[187].mxu1  ;;  %v6411_v9 = vadd.f32 %v3610_v45, %v6296_v34  ;;  %v3612_v36 = vpop.f32.mrb[155].mxu0  ;;  %v4913_v3 = vcombine.low %v1719_v12, %v1723_v55  ;;  %v1802_v12 = vld [vmem:[%s5647_s9 + $0x730] sm:$0xff]  ;;  %v1739_v55 = vld [vmem:[%s5647_s9 + $0x538] sm:$0xff] }
 0x30f   : > { %6937 = vst [vmem:[#allocation22_spill] sm:$0xff] %v6411_v9  ;;  %3919 = vmatmul.mubr.bf16.gmra.mrb[36].mxu1 %v4967_v40  ;;  %4144 = vmatmul.mubr.bf16.gmra.mrb[4].mxu0 %v4905_v25 }
 0x310   : > { %3926 = vmatprep.mubr.bf16.mxu1 %v4976_v43  ;;  %4151 = vmatprep.mubr.bf16.mxu0 %v4914_v19  ;;  %v4984_v43 = vcombine.high %v1790_v60, %v1794_v11  ;;  %v4922_v19 = vcombine.high %v1727_v8, %v1731_v4  ;;  %v1810_v11 = vld [vmem:[%s5647_s9 + $0x770] sm:$0xff] }
 0x312   : > { %v6417_v62 = vpop.f32.mrb[188].mxu1  ;;  %v3615_v47 = vpop.f32.mrb[156].mxu0 }
 0x313   : > { %v3392_v42 = vpop.f32.mrb[189].mxu1  ;;  %v6420_v34 = vadd.f32 %v3615_v47, %v6305_v49  ;;  %v3617_v25 = vpop.f32.mrb[157].mxu0  ;;  %v1735_v49 = vld [vmem:[%s5647_s9 + $0x518] sm:$0xff] }
 0x314   : > { %v6422_v40 = vpop.f32.mrb[190].mxu1  ;;  %v3618_v45 = vpop.f32.mrb[158].mxu0 }
 0x315   : > { %6938 = vst [vmem:[#allocation23_spill] sm:$0xff] %v6420_v34  ;;  %v3395_v36 = vpop.f32.mrb[191].mxu1  ;;  %v6425_v9 = vadd.f32 %v3618_v45, %v6310_v38  ;;  %v3620_v15 = vpop.f32.mrb[159].mxu0 }
 0x316   : > { %v4921_v36 = vcombine.low %v1727_v8, %v1731_v4  ;;  %v1743_v8 = vld [vmem:[%s5647_s9 + $0x558] sm:$0xff] }
 0x317   : > { %3927 = vmatmul.mubr.bf16.gmra.mrb[40].mxu1 %v4975_v58  ;;  %4152 = vmatmul.mubr.bf16.gmra.mrb[8].mxu0 %v4913_v3  ;;  %v1747_v4 = vld [vmem:[%s5647_s9 + $0x578] sm:$0xff] }
 0x318   : > { %3934 = vmatprep.mubr.bf16.mxu1 %v4984_v43  ;;  %4159 = vmatprep.mubr.bf16.mxu0 %v4922_v19  ;;  %v4992_v43 = vcombine.high %v1798_v27, %v1802_v12  ;;  %v4930_v19 = vcombine.high %v1735_v49, %v1739_v55 }
 0x31a   : > { %v3720_v47 = vpop.f32.mrb[192].mxu1  ;;  %v3623_v42 = vpop.f32.mrb[160].mxu0 }
 0x31b   : > { %v6432_v25 = vadd.f32 %v3720_v47, %v6098_v37  ;;  %v3722_v34 = vpop.f32.mrb[193].mxu1  ;;  %v6435_v38 = vadd.f32 %v3623_v42, %v6319_v22  ;;  %v3625_v3 = vpop.f32.mrb[161].mxu0  ;;  %v1806_v22 = vld [vmem:[%s5647_s9 + $0x750] sm:$0xff] }
 0x31c   : > { %v3723_v58 = vpop.f32.mrb[194].mxu1  ;;  %v3626_v45 = vpop.f32.mrb[162].mxu0 }
 0x31d   : > { %v6438_v15 = vadd.f32 %v3723_v58, %v6103_v50  ;;  %v3725_v37 = vpop.f32.mrb[195].mxu1  ;;  %v6441_v34 = vadd.f32 %v3626_v45, %v6324_v0  ;;  %v3628_v60 = vpop.f32.mrb[163].mxu0  ;;  %v4991_v58 = vcombine.low %v1798_v27, %v1802_v12  ;;  %v1818_v12 = vld [vmem:[%s5647_s9 + $0x7b0] sm:$0xff] }
 0x31e   : > { %v4929_v37 = vcombine.low %v1735_v49, %v1739_v55  ;;  %v1751_v49 = vld [vmem:[%s5647_s9 + $0x598] sm:$0xff] }
 0x31f   : > { %3935 = vmatmul.mubr.bf16.gmra.mrb[44].mxu1 %v4983_v63  ;;  %4160 = vmatmul.mubr.bf16.gmra.mrb[12].mxu0 %v4921_v36  ;;  %v1755_v55 = vld [vmem:[%s5647_s9 + $0x5b8] sm:$0xff] }
 0x320   : > { %3942 = vmatprep.mubr.bf16.mxu1 %v4992_v43  ;;  %4167 = vmatprep.mubr.bf16.mxu0 %v4930_v19  ;;  %v5000_v43 = vcombine.high %v1806_v22, %v1810_v11  ;;  %v4938_v19 = vcombine.high %v1743_v8, %v1747_v4 }
 0x322   : > { %v3728_v47 = vpop.f32.mrb[196].mxu1  ;;  %v3631_v42 = vpop.f32.mrb[164].mxu0 }
 0x323   : > { %v6448_v3 = vadd.f32 %v3728_v47, %v6112_v52  ;;  %v3730_v50 = vpop.f32.mrb[197].mxu1  ;;  %v6451_v0 = vadd.f32 %v3631_v42, %v6333_v23  ;;  %v3633_v63 = vpop.f32.mrb[165].mxu0  ;;  %v1814_v23 = vld [vmem:[%s5647_s9 + $0x790] sm:$0xff] }
 0x324   : > { %v3731_v36 = vpop.f32.mrb[198].mxu1  ;;  %v3634_v45 = vpop.f32.mrb[166].mxu0 }
 0x325   : > { %v6454_v60 = vadd.f32 %v3731_v36, %v6117_v2  ;;  %v3733_v52 = vpop.f32.mrb[199].mxu1  ;;  %v6457_v47 = vadd.f32 %v3634_v45, %v6338_v39  ;;  %v3636_v27 = vpop.f32.mrb[167].mxu0  ;;  %v4999_v36 = vcombine.low %v1806_v22, %v1810_v11  ;;  %v1826_v11 = vld [vmem:[%s5647_s9 + $0x7f0] sm:$0xff] }
 0x326   : > { %v4937_v52 = vcombine.low %v1743_v8, %v1747_v4  ;;  %v1759_v8 = vld [vmem:[%s5647_s9 + $0x5d8] sm:$0xff] }
 0x327   : > { %3943 = vmatmul.mubr.bf16.gmra.mrb[48].mxu1 %v4991_v58  ;;  %4168 = vmatmul.mubr.bf16.gmra.mrb[16].mxu0 %v4929_v37  ;;  %v1763_v4 = vld [vmem:[%s5647_s9 + $0x5f8] sm:$0xff] }
 0x328   : > { %3950 = vmatprep.mubr.bf16.mxu1 %v5000_v43  ;;  %4175 = vmatprep.mubr.bf16.mxu0 %v4938_v19  ;;  %v5008_v43 = vcombine.high %v1814_v23, %v1818_v12  ;;  %v4946_v19 = vcombine.high %v1751_v49, %v1755_v55 }
 0x32a   : > { %v3736_v42 = vpop.f32.mrb[200].mxu1  ;;  %v3639_v50 = vpop.f32.mrb[168].mxu0 }
 0x32b   : > { %v6464_v63 = vadd.f32 %v3736_v42, %v6126_v54  ;;  %v3738_v2 = vpop.f32.mrb[201].mxu1  ;;  %v6467_v39 = vadd.f32 %v3639_v50, %v6347_v6  ;;  %v3641_v58 = vpop.f32.mrb[169].mxu0  ;;  %v1822_v6 = vld [vmem:[%s5647_s9 + $0x7d0] sm:$0xff] }
 0x32c   : > { %v3739_v37 = vpop.f32.mrb[202].mxu1  ;;  %v3642_v45 = vpop.f32.mrb[170].mxu0 }
 0x32d   : > { %v6470_v27 = vadd.f32 %v3739_v37, %v6131_v5  ;;  %v3741_v54 = vpop.f32.mrb[203].mxu1  ;;  %v6473_v42 = vadd.f32 %v3642_v45, %v6352_v21  ;;  %v3644_v22 = vpop.f32.mrb[171].mxu0  ;;  %v5007_v37 = vcombine.low %v1814_v23, %v1818_v12  ;;  %v1767_v23 = vld [vmem:[%s5647_s9 + $0x618] sm:$0xff] }
 0x32e   : > { %v4945_v54 = vcombine.low %v1751_v49, %v1755_v55 }
 0x32f   : > { %6939 = vst [vmem:[#allocation24_spill] sm:$0xff] %v6473_v42  ;;  %3951 = vmatmul.mubr.bf16.gmra.mrb[52].mxu1 %v4999_v36  ;;  %4176 = vmatmul.mubr.bf16.gmra.mrb[20].mxu0 %v4937_v52 }
 0x330   : > { %3958 = vmatprep.mubr.bf16.mxu1 %v5008_v43  ;;  %4183 = vmatprep.mubr.bf16.mxu0 %v4946_v19  ;;  %v5016_v43 = vcombine.high %v1822_v6, %v1826_v11  ;;  %v4954_v19 = vcombine.high %v1759_v8, %v1763_v4 }
 0x332   : > { %v3744_v50 = vpop.f32.mrb[204].mxu1  ;;  %v3647_v2 = vpop.f32.mrb[172].mxu0 }
 0x333   : > { %v6480_v58 = vadd.f32 %v3744_v50, %v6140_v51  ;;  %v3746_v5 = vpop.f32.mrb[205].mxu1  ;;  %v6483_v21 = vadd.f32 %v3647_v2, %v6361_v57  ;;  %v3649_v36 = vpop.f32.mrb[173].mxu0  ;;  %v1771_v57 = vld [vmem:[%s5647_s9 + $0x638] sm:$0xff] }
 0x334   : > { %v3747_v52 = vpop.f32.mrb[206].mxu1  ;;  %v3650_v45 = vpop.f32.mrb[174].mxu0 }
 0x335   : > { %v6486_v22 = vadd.f32 %v3747_v52, %v6145_v41  ;;  %v3749_v42 = vpop.f32.mrb[207].mxu1  ;;  %v6489_v51 = vadd.f32 %v3650_v45, %v6366_v16  ;;  %v3652_v50 = vpop.f32.mrb[175].mxu0  ;;  %v5015_v41 = vcombine.low %v1822_v6, %v1826_v11  ;;  %v1775_v6 = vld [vmem:[%s5647_s9 + $0x658] sm:$0xff] }
 0x336   : > { %v4953_v42 = vcombine.low %v1759_v8, %v1763_v4  ;;  %v1779_v11 = vld [vmem:[%s5647_s9 + $0x678] sm:$0xff] }
 0x337   : > { %3959 = vmatmul.mubr.bf16.gmra.mrb[56].mxu1 %v5007_v37  ;;  %4184 = vmatmul.mubr.bf16.gmra.mrb[24].mxu0 %v4945_v54  ;;  %v4962_v54 = vcombine.high %v1767_v23, %v1771_v57 }
 0x338   : > { %3966 = vmatprep.mubr.bf16.mxu1 %v5016_v43  ;;  %4191 = vmatprep.mubr.bf16.mxu0 %v4954_v19 }
 0x33a   : > { %v3752_v12 = vpop.f32.mrb[208].mxu1  ;;  %v3655_v49 = vpop.f32.mrb[176].mxu0 }
 0x33b   : > { %v6494_v55 = vadd.f32 %v3752_v12, %v6154_v26  ;;  %v3754_v2 = vpop.f32.mrb[209].mxu1  ;;  %v6497_v16 = vadd.f32 %v3655_v49, %v6375_v17  ;;  %v3657_v5 = vpop.f32.mrb[177].mxu0  ;;  %v4970_v49 = vcombine.high %v1775_v6, %v1779_v11 }
 0x33c   : > { %v3755_v37 = vpop.f32.mrb[210].mxu1  ;;  %v3658_v36 = vpop.f32.mrb[178].mxu0 }
 0x33d   : > { %v6500_v52 = vadd.f32 %v3755_v37, %v6159_v7  ;;  %v3757_v43 = vpop.f32.mrb[211].mxu1  ;;  %v6503_v19 = vadd.f32 %v3658_v36, %v6380_v24  ;;  %v3660_v26 = vpop.f32.mrb[179].mxu0  ;;  %v4961_v7 = vcombine.low %v1767_v23, %v1771_v57 }
 0x33e   : > { %v4969_v43 = vcombine.low %v1775_v6, %v1779_v11 }
 0x33f   : > { %3967 = vmatmul.mubr.bf16.gmra.mrb[60].mxu1 %v5015_v41  ;;  %4192 = vmatmul.mubr.bf16.gmra.mrb[28].mxu0 %v4953_v42 }
 0x340   : > { %4199 = vmatprep.mubr.bf16.mxu0 %v4962_v54  ;;  %v1787_v54 = vld [vmem:[%s5647_s9 + $0x6b8] sm:$0xff] }
 0x342   : > { %v3760_v8 = vpop.f32.mrb[212].mxu1  ;;  %v3663_v17 = vpop.f32.mrb[180].mxu0 }
 0x343   : > { %v6508_v4 = vadd.f32 %v3760_v8, %v6168_v33  ;;  %v3762_v45 = vpop.f32.mrb[213].mxu1  ;;  %v6511_v50 = vadd.f32 %v3663_v17, %v6389_v35  ;;  %v3665_v24 = vpop.f32.mrb[181].mxu0  ;;  %v1783_v33 = vld [vmem:[%s5647_s9 + $0x698] sm:$0xff] }
 0x344   : > { %v3763_v12 = vpop.f32.mrb[214].mxu1  ;;  %v3666_v2 = vpop.f32.mrb[182].mxu0  ;;  %v4978_v17 = vcombine.high %v1783_v33, %v1787_v54 }
 0x345   : > { %v6514_v41 = vadd.f32 %v3763_v12, %v6173_v13  ;;  %v3765_v42 = vpop.f32.mrb[215].mxu1  ;;  %v6517_v5 = vadd.f32 %v3666_v2, %v6394_v28  ;;  %v3668_v37 = vpop.f32.mrb[183].mxu0 }
 0x346   : > { %v4977_v42 = vcombine.low %v1783_v33, %v1787_v54  ;;  %v6553_v33 = vld [vmem:[%s6914_s3] ss:$0 sm:$0xff] }
 0x347   : > { %4200 = vmatmul.mubr.bf16.gmra.mrb[32].mxu0 %v4961_v7 }
 0x348   : > { %4207 = vmatprep.mubr.bf16.mxu0 %v4970_v49  ;;  %v1795_v49 = vld [vmem:[%s5647_s9 + $0x6f8] sm:$0xff] }
 0x34a   : > { %v3768_v23 = vpop.f32.mrb[216].mxu1  ;;  %v3671_v35 = vpop.f32.mrb[184].mxu0 }
 0x34b   : > { %v6522_v57 = vadd.f32 %v3768_v23, %v6182_v20  ;;  %v3770_v36 = vpop.f32.mrb[217].mxu1  ;;  %v6525_v13 = vadd.f32 %v3671_v35, %v6403_v53  ;;  %v3673_v26 = vpop.f32.mrb[185].mxu0  ;;  %v1791_v20 = vld [vmem:[%s5647_s9 + $0x6d8] sm:$0xff] }
 0x34c   : > { %v3771_v28 = vpop.f32.mrb[218].mxu1  ;;  %v3674_v8 = vpop.f32.mrb[186].mxu0  ;;  %v4986_v35 = vcombine.high %v1791_v20, %v1795_v49 }
 0x34d   : > { %v6528_v45 = vadd.f32 %v3771_v28, %v6187_v10  ;;  %v3773_v7 = vpop.f32.mrb[219].mxu1  ;;  %v6531_v24 = vadd.f32 %v3674_v8, %v6408_v46  ;;  %v3676_v12 = vpop.f32.mrb[187].mxu0  ;;  %v1803_v8 = vld [vmem:[%s5647_s9 + $0x738] sm:$0xff] }
 0x34e   : > { %v4985_v12 = vcombine.low %v1791_v20, %v1795_v49 }
 0x34f   : > { %4208 = vmatmul.mubr.bf16.gmra.mrb[36].mxu0 %v4969_v43 }
 0x350   : > { %4215 = vmatprep.mubr.bf16.mxu0 %v4978_v17 }
 0x352   : > { %v3776_v6 = vpop.f32.mrb[220].mxu1  ;;  %v3679_v53 = vpop.f32.mrb[188].mxu0 }
 0x353   : > { %v6536_v11 = vadd.f32 %v3776_v6, %v6196_v29  ;;  %v3778_v2 = vpop.f32.mrb[221].mxu1  ;;  %v6539_v10 = vadd.f32 %v3679_v53, %v6417_v62  ;;  %v3681_v46 = vpop.f32.mrb[189].mxu0  ;;  %v1799_v29 = vld [vmem:[%s5647_s9 + $0x718] sm:$0xff] }
 0x354   : > { %v3779_v37 = vpop.f32.mrb[222].mxu1  ;;  %v3682_v23 = vpop.f32.mrb[190].mxu0  ;;  %v4994_v2 = vcombine.high %v1799_v29, %v1803_v8 }
 0x355   : > { %v6542_v36 = vadd.f32 %v3779_v37, %v6201_v59  ;;  %v6545_v43 = vadd.f32 %v3682_v23, %v6422_v40  ;;  %v3684_v26 = vpop.f32.mrb[191].mxu0  ;;  %v3781_v28 = vpop.f32.mrb[223].mxu1  ;;  %v1807_v37 = vld [vmem:[%s5647_s9 + $0x758] sm:$0xff] }
 0x356   : > { %v1811_v23 = vld [vmem:[%s5647_s9 + $0x778] sm:$0xff] }
 0x357   : > { %4216 = vmatmul.mubr.bf16.gmra.mrb[40].mxu0 %v4977_v42 }
 0x358   : > { %4223 = vmatprep.mubr.bf16.mxu0 %v4986_v35 }
 0x35a   : > { %v3784_v62 = vpop.f32.mrb[224].mxu1  ;;  %v4009_v17 = vpop.f32.mrb[192].mxu0 }
 0x35b   : > { %v6556_v59 = vadd.f32 %v3784_v62, %v6210_v32  ;;  %v4010_v40 = vadd.f32 %v4009_v17, %v6432_v25  ;;  %v3786_v54 = vpop.f32.mrb[225].mxu1  ;;  %v4011_v7 = vpop.f32.mrb[193].mxu0  ;;  %v4993_v17 = vcombine.low %v1799_v29, %v1803_v8  ;;  %v1819_v29 = vld [vmem:[%s5647_s9 + $0x7b8] sm:$0xff] }
 0x35c   : > { %v3787_v6 = vpop.f32.mrb[226].mxu1  ;;  %v4012_v53 = vpop.f32.mrb[194].mxu0  ;;  %v5002_v7 = vcombine.high %v1807_v37, %v1811_v23 }
 0x35d   : > { %v4466_v32 = vadd.f32 %v6553_v33, %v4010_v40  ;;  %v6566_v42 = vadd.f32 %v3787_v6, %v6215_v1  ;;  %v4013_v25 = vadd.f32 %v4012_v53, %v6438_v15  ;;  %v3789_v46 = vpop.f32.mrb[227].mxu1  ;;  %v4014_v20 = vpop.f32.mrb[195].mxu0 }
 0x35f   : > { %4530 = vst [vmem:[%s6562_s14] sm:$0xff] %v4466_v32  ;;  %v4467_v49 = vadd.f32 %v6553_v33, %v4013_v25  ;;  %4224 = vmatmul.mubr.bf16.gmra.mrb[44].mxu0 %v4985_v12  ;;  %v1815_v32 = vld [vmem:[%s5647_s9 + $0x798] sm:$0xff] }
 0x360   : > { %4231 = vmatprep.mubr.bf16.mxu0 %v4994_v2 }
 0x361   : > { %4531 = vst [vmem:[%s6562_s14 + $0x8] sm:$0xff] %v4467_v49  ;;  %v5001_v49 = vcombine.low %v1807_v37, %v1811_v23  ;;  %v1827_v37 = vld [vmem:[%s5647_s9 + $0x7f8] sm:$0xff] }
 0x362   : > { %v3792_v35 = vpop.f32.mrb[228].mxu1  ;;  %v4017_v26 = vpop.f32.mrb[196].mxu0 }
 0x363   : > { %v6575_v28 = vadd.f32 %v3792_v35, %v6224_v48  ;;  %v4018_v1 = vadd.f32 %v4017_v26, %v6448_v3  ;;  %v3794_v15 = vpop.f32.mrb[229].mxu1  ;;  %v4019_v62 = vpop.f32.mrb[197].mxu0 }
 0x364   : > { %v3795_v40 = vpop.f32.mrb[230].mxu1  ;;  %v4020_v54 = vpop.f32.mrb[198].mxu0 }
 0x365   : > { %v4468_v12 = vadd.f32 %v6553_v33, %v4018_v1  ;;  %v6580_v6 = vadd.f32 %v3795_v40, %v6229_v44  ;;  %v4021_v53 = vadd.f32 %v4020_v54, %v6454_v60  ;;  %v3797_v48 = vpop.f32.mrb[231].mxu1  ;;  %v4022_v2 = vpop.f32.mrb[199].mxu0  ;;  %v5010_v1 = vcombine.high %v1815_v32, %v1819_v29  ;;  %v1823_v54 = vld [vmem:[%s5647_s9 + $0x7d8] sm:$0xff] }
 0x366   : > { %v5009_v48 = vcombine.low %v1815_v32, %v1819_v29 }
 0x367   : > { %4532 = vst [vmem:[%s6562_s14 + $0x10] sm:$0xff] %v4468_v12  ;;  %v4469_v3 = vadd.f32 %v6553_v33, %v4021_v53  ;;  %4232 = vmatmul.mubr.bf16.gmra.mrb[48].mxu0 %v4993_v17 }
 0x368   : > { %4239 = vmatprep.mubr.bf16.mxu0 %v5002_v7 }
 0x369   : > { %4533 = vst [vmem:[%s6562_s14 + $0x18] sm:$0xff] %v4469_v3 }
 0x36a   : > { %v3800_v8 = vpop.f32.mrb[232].mxu1  ;;  %v4025_v25 = vpop.f32.mrb[200].mxu0 }
 0x36b   : > { %v6589_v46 = vadd.f32 %v3800_v8, %v6238_v56  ;;  %v4026_v44 = vadd.f32 %v4025_v25, %v6464_v63  ;;  %v3802_v60 = vpop.f32.mrb[233].mxu1  ;;  %v4027_v20 = vpop.f32.mrb[201].mxu0  ;;  %v5018_v8 = vcombine.high %v1823_v54, %v1827_v37 }
 0x36c   : > { %v3803_v35 = vpop.f32.mrb[234].mxu1  ;;  %v4028_v26 = vpop.f32.mrb[202].mxu0 }
 0x36d   : > { %v4470_v15 = vadd.f32 %v6553_v33, %v4026_v44  ;;  %v6594_v62 = vadd.f32 %v3803_v35, %v6243_v18  ;;  %v4029_v17 = vadd.f32 %v4028_v26, %v6470_v27  ;;  %v3805_v56 = vpop.f32.mrb[235].mxu1  ;;  %v4030_v40 = vpop.f32.mrb[203].mxu0 }
 0x36f   : > { %4534 = vst [vmem:[%s6562_s14 + $0x20] sm:$0xff] %v4470_v15  ;;  %v4471_v63 = vadd.f32 %v6553_v33, %v4029_v17  ;;  %4240 = vmatmul.mubr.bf16.gmra.mrb[52].mxu0 %v5001_v49 }
 0x370   : > { %4247 = vmatprep.mubr.bf16.mxu0 %v5010_v1 }
 0x371   : > { %4535 = vst [vmem:[%s6562_s14 + $0x28] sm:$0xff] %v4471_v63 }
 0x372   : > { %v3808_v23 = vpop.f32.mrb[236].mxu1  ;;  %v4033_v7 = vpop.f32.mrb[204].mxu0 }
 0x373   : > { %v6603_v12 = vadd.f32 %v3808_v23, %v6252_v30  ;;  %v4034_v18 = vadd.f32 %v4033_v7, %v6480_v58  ;;  %v3810_v27 = vpop.f32.mrb[237].mxu1  ;;  %v4035_v53 = vpop.f32.mrb[205].mxu0 }
 0x374   : > { %v3811_v2 = vpop.f32.mrb[238].mxu1  ;;  %v4036_v3 = vpop.f32.mrb[206].mxu0 }
 0x375   : > { %v4472_v25 = vadd.f32 %v6553_v33, %v4034_v18  ;;  %v6608_v44 = vadd.f32 %v3811_v2, %v6257_v61  ;;  %v4037_v60 = vadd.f32 %v4036_v3, %v6486_v22  ;;  %v3813_v20 = vpop.f32.mrb[239].mxu1  ;;  %v4038_v49 = vpop.f32.mrb[207].mxu0  ;;  %v5017_v22 = vcombine.low %v1823_v54, %v1827_v37  ;;  %v6940_v37 = vld [vmem:[#allocation3_spill] sm:$0xff]  ;;  %v6941_v2 = vld [vmem:[#allocation4_spill] sm:$0xff] }
 0x377   : > { %4536 = vst [vmem:[%s6562_s14 + $0x30] sm:$0xff] %v4472_v25  ;;  %v4473_v30 = vadd.f32 %v6553_v33, %v4037_v60  ;;  %4248 = vmatmul.mubr.bf16.gmra.mrb[56].mxu0 %v5009_v48 }
 0x378   : > { %4255 = vmatprep.mubr.bf16.mxu0 %v5018_v8 }
 0x379   : > { %4537 = vst [vmem:[%s6562_s14 + $0x38] sm:$0xff] %v4473_v30  ;;  %v6942_v30 = vld [vmem:[#allocation5_spill] sm:$0xff] }
 0x37a   : > { %v3816_v58 = vpop.f32.mrb[240].mxu1  ;;  %v4041_v32 = vpop.f32.mrb[208].mxu0 }
 0x37b   : > { %v6615_v29 = vadd.f32 %v3816_v58, %v6266_v14  ;;  %v4042_v61 = vadd.f32 %v4041_v32, %v6494_v55  ;;  %v3818_v35 = vpop.f32.mrb[241].mxu1  ;;  %v4043_v26 = vpop.f32.mrb[209].mxu0 }
 0x37c   : > { %v3819_v1 = vpop.f32.mrb[242].mxu1  ;;  %v4044_v15 = vpop.f32.mrb[210].mxu0 }
 0x37d   : > { %v4474_v17 = vadd.f32 %v6553_v33, %v4042_v61  ;;  %v6620_v56 = vadd.f32 %v3819_v1, %v6271_v31  ;;  %v4045_v40 = vadd.f32 %v4044_v15, %v6500_v52  ;;  %v3821_v63 = vpop.f32.mrb[243].mxu1  ;;  %v4046_v23 = vpop.f32.mrb[211].mxu0  ;;  %v6943_v1 = vld [vmem:[#allocation6_spill] sm:$0xff] }
 0x37f   : > { %4538 = vst [vmem:[%s6562_s14 + $0x40] sm:$0xff] %v4474_v17  ;;  %v4475_v14 = vadd.f32 %v6553_v33, %v4045_v40  ;;  %4256 = vmatmul.mubr.bf16.gmra.mrb[60].mxu0 %v5017_v22 }
 0x381   : > { %4539 = vst [vmem:[%s6562_s14 + $0x48] sm:$0xff] %v4475_v14 }
 0x382   : > { %v3824_v55 = vpop.f32.mrb[244].mxu1  ;;  %v4049_v54 = vpop.f32.mrb[212].mxu0 }
 0x383   : > { %v6627_v7 = vadd.f32 %v3824_v55, %v6940_v37  ;;  %v4050_v18 = vadd.f32 %v4049_v54, %v6508_v4  ;;  %v3826_v31 = vpop.f32.mrb[245].mxu1  ;;  %v4051_v27 = vpop.f32.mrb[213].mxu0  ;;  %v6944_v55 = vld [vmem:[#allocation7_spill] sm:$0xff] }
 0x384   : > { %v3827_v53 = vpop.f32.mrb[246].mxu1  ;;  %v4052_v52 = vpop.f32.mrb[214].mxu0 }
 0x385   : > { %v4476_v48 = vadd.f32 %v6553_v33, %v4050_v18  ;;  %v6632_v3 = vadd.f32 %v3827_v53, %v6941_v2  ;;  %v4053_v8 = vadd.f32 %v4052_v52, %v6514_v41  ;;  %v3829_v25 = vpop.f32.mrb[247].mxu1  ;;  %v4054_v60 = vpop.f32.mrb[215].mxu0  ;;  %v6945_v52 = vld [vmem:[#allocation8_spill] sm:$0xff] }
 0x387   : > { %4540 = vst [vmem:[%s6562_s14 + $0x50] sm:$0xff] %v4476_v48  ;;  %v4477_v20 = vadd.f32 %v6553_v33, %v4053_v8 }
 0x389   : > { %4541 = vst [vmem:[%s6562_s14 + $0x58] sm:$0xff] %v4477_v20 }
 0x38a   : > { %v3832_v4 = vpop.f32.mrb[248].mxu1  ;;  %v4057_v49 = vpop.f32.mrb[216].mxu0 }
 0x38b   : > { %v6639_v58 = vadd.f32 %v3832_v4, %v6942_v30  ;;  %v4058_v32 = vadd.f32 %v4057_v49, %v6522_v57  ;;  %v3834_v61 = vpop.f32.mrb[249].mxu1  ;;  %v4059_v35 = vpop.f32.mrb[217].mxu0  ;;  %v6946_v4 = vld [vmem:[#allocation9_spill] sm:$0xff] }
 0x38c   : > { %v3835_v26 = vpop.f32.mrb[250].mxu1  ;;  %v4060_v22 = vpop.f32.mrb[218].mxu0 }
 0x38d   : > { %v4478_v41 = vadd.f32 %v6553_v33, %v4058_v32  ;;  %v6644_v15 = vadd.f32 %v3835_v26, %v6943_v1  ;;  %v4061_v17 = vadd.f32 %v4060_v22, %v6528_v45  ;;  %v3837_v40 = vpop.f32.mrb[251].mxu1  ;;  %v4062_v63 = vpop.f32.mrb[219].mxu0  ;;  %v6947_v22 = vld [vmem:[#allocation10_spill] sm:$0xff] }
 0x38f   : > { %4542 = vst [vmem:[%s6562_s14 + $0x60] sm:$0xff] %v4478_v41  ;;  %v4479_v23 = vadd.f32 %v6553_v33, %v4061_v17 }
 0x391   : > { %4543 = vst [vmem:[%s6562_s14 + $0x68] sm:$0xff] %v4479_v23 }
 0x392   : > { %v3840_v57 = vpop.f32.mrb[252].mxu1  ;;  %v4065_v14 = vpop.f32.mrb[220].mxu0 }
 0x393   : > { %v6651_v54 = vadd.f32 %v3840_v57, %v6944_v55  ;;  %v4066_v37 = vadd.f32 %v4065_v14, %v6536_v11  ;;  %v3842_v18 = vpop.f32.mrb[253].mxu1  ;;  %v4067_v31 = vpop.f32.mrb[221].mxu0  ;;  %v6948_v57 = vld [vmem:[#allocation11_spill] sm:$0xff] }
 0x394   : > { %v3843_v27 = vpop.f32.mrb[254].mxu1  ;;  %v4068_v53 = vpop.f32.mrb[222].mxu0 }
 0x395   : > { %v4480_v45 = vadd.f32 %v6553_v33, %v4066_v37  ;;  %v6656_v48 = vadd.f32 %v3843_v27, %v6945_v52  ;;  %v4069_v2 = vadd.f32 %v4068_v53, %v6542_v36  ;;  %v3845_v8 = vpop.f32.mrb[255].mxu1  ;;  %v4070_v25 = vpop.f32.mrb[223].mxu0  ;;  %v6949_v53 = vld [vmem:[#allocation12_spill] sm:$0xff] }
 0x397   : > { %4544 = vst [vmem:[%s6562_s14 + $0x70] sm:$0xff] %v4480_v45  ;;  %v4481_v60 = vadd.f32 %v6553_v33, %v4069_v2 }
 0x399   : > { %4545 = vst [vmem:[%s6562_s14 + $0x78] sm:$0xff] %v4481_v60 }
 0x39a   : > { %v3848_v11 = vpop.f32.mrb[0].mxu1  ;;  %v4073_v20 = vpop.f32.mrb[224].mxu0 }
 0x39b   : > { %v6663_v49 = vadd.f32 %v3848_v11, %v6946_v4  ;;  %v4074_v30 = vadd.f32 %v4073_v20, %v6556_v59  ;;  %v3850_v32 = vpop.f32.mrb[1].mxu1  ;;  %v4075_v61 = vpop.f32.mrb[225].mxu0  ;;  %v6950_v11 = vld [vmem:[#allocation13_spill] sm:$0xff] }
 0x39c   : > { %v3851_v35 = vpop.f32.mrb[2].mxu1  ;;  %v4076_v26 = vpop.f32.mrb[226].mxu0 }
 0x39d   : > { %v4482_v36 = vadd.f32 %v6553_v33, %v4074_v30  ;;  %v6668_v41 = vadd.f32 %v3851_v35, %v6947_v22  ;;  %v4077_v1 = vadd.f32 %v4076_v26, %v6566_v42  ;;  %v3853_v17 = vpop.f32.mrb[3].mxu1  ;;  %v4078_v40 = vpop.f32.mrb[227].mxu0  ;;  %v6951_v26 = vld [vmem:[#allocation14_spill] sm:$0xff] }
 0x39f   : > { %4546 = vst [vmem:[%s6562_s14 + $0x80] sm:$0xff] %v4482_v36  ;;  %v4483_v63 = vadd.f32 %v6553_v33, %v4077_v1 }
 0x3a1   : > { %4547 = vst [vmem:[%s6562_s14 + $0x88] sm:$0xff] %v4483_v63 }
 0x3a2   : > { %v3856_v59 = vpop.f32.mrb[4].mxu1  ;;  %v4081_v23 = vpop.f32.mrb[228].mxu0 }
 0x3a3   : > { %v6675_v14 = vadd.f32 %v3856_v59, %v6948_v57  ;;  %v4082_v55 = vadd.f32 %v4081_v23, %v6575_v28  ;;  %v3858_v37 = vpop.f32.mrb[5].mxu1  ;;  %v4083_v18 = vpop.f32.mrb[229].mxu0  ;;  %v6952_v59 = vld [vmem:[#allocation15_spill] sm:$0xff] }
 0x3a4   : > { %v3859_v31 = vpop.f32.mrb[6].mxu1  ;;  %v4084_v27 = vpop.f32.mrb[230].mxu0 }
 0x3a5   : > { %v4484_v42 = vadd.f32 %v6553_v33, %v4082_v55  ;;  %v6680_v45 = vadd.f32 %v3859_v31, %v6949_v53  ;;  %v4085_v52 = vadd.f32 %v4084_v27, %v6580_v6  ;;  %v3861_v2 = vpop.f32.mrb[7].mxu1  ;;  %v4086_v8 = vpop.f32.mrb[231].mxu0  ;;  %v6953_v27 = vld [vmem:[#allocation16_spill] sm:$0xff] }
 0x3a7   : > { %4548 = vst [vmem:[%s6562_s14 + $0x90] sm:$0xff] %v4484_v42  ;;  %v4485_v25 = vadd.f32 %v6553_v33, %v4085_v52 }
 0x3a9   : > { %4549 = vst [vmem:[%s6562_s14 + $0x98] sm:$0xff] %v4485_v25 }
 0x3aa   : > { %v3864_v28 = vpop.f32.mrb[8].mxu1  ;;  %v4089_v60 = vpop.f32.mrb[232].mxu0 }
 0x3ab   : > { %v6687_v20 = vadd.f32 %v3864_v28, %v6950_v11  ;;  %v4090_v4 = vadd.f32 %v4089_v60, %v6589_v46  ;;  %v3866_v30 = vpop.f32.mrb[9].mxu1  ;;  %v4091_v32 = vpop.f32.mrb[233].mxu0  ;;  %v6954_v28 = vld [vmem:[#allocation17_spill] sm:$0xff] }
 0x3ac   : > { %v3867_v61 = vpop.f32.mrb[10].mxu1  ;;  %v4092_v35 = vpop.f32.mrb[234].mxu0 }
 0x3ad   : > { %v4486_v6 = vadd.f32 %v6553_v33, %v4090_v4  ;;  %v6692_v36 = vadd.f32 %v3867_v61, %v6951_v26  ;;  %v4093_v22 = vadd.f32 %v4092_v35, %v6594_v62  ;;  %v3869_v1 = vpop.f32.mrb[11].mxu1  ;;  %v4094_v17 = vpop.f32.mrb[235].mxu0  ;;  %v6955_v35 = vld [vmem:[#allocation18_spill] sm:$0xff] }
 0x3af   : > { %4550 = vst [vmem:[%s6562_s14 + $0xa0] sm:$0xff] %v4486_v6  ;;  %v4487_v40 = vadd.f32 %v6553_v33, %v4093_v22 }
 0x3b1   : > { %4551 = vst [vmem:[%s6562_s14 + $0xa8] sm:$0xff] %v4487_v40 }
 0x3b2   : > { %v3872_v46 = vpop.f32.mrb[12].mxu1  ;;  %v4097_v63 = vpop.f32.mrb[236].mxu0 }
 0x3b3   : > { %v6699_v23 = vadd.f32 %v3872_v46, %v6952_v59  ;;  %v4098_v57 = vadd.f32 %v4097_v63, %v6603_v12  ;;  %v3874_v55 = vpop.f32.mrb[13].mxu1  ;;  %v4099_v37 = vpop.f32.mrb[237].mxu0  ;;  %v6956_v46 = vld [vmem:[#allocation19_spill] sm:$0xff] }
 0x3b4   : > { %v3875_v18 = vpop.f32.mrb[14].mxu1  ;;  %v4100_v31 = vpop.f32.mrb[238].mxu0 }
 0x3b5   : > { %v4488_v62 = vadd.f32 %v6553_v33, %v4098_v57  ;;  %v6704_v42 = vadd.f32 %v3875_v18, %v6953_v27  ;;  %v4101_v53 = vadd.f32 %v4100_v31, %v6608_v44  ;;  %v3877_v52 = vpop.f32.mrb[15].mxu1  ;;  %v4102_v2 = vpop.f32.mrb[239].mxu0  ;;  %v6957_v31 = vld [vmem:[#allocation20_spill] sm:$0xff] }
 0x3b7   : > { %4552 = vst [vmem:[%s6562_s14 + $0xb0] sm:$0xff] %v4488_v62  ;;  %v4489_v8 = vadd.f32 %v6553_v33, %v4101_v53 }
 0x3b9   : > { %4553 = vst [vmem:[%s6562_s14 + $0xb8] sm:$0xff] %v4489_v8 }
 0x3ba   : > { %v3880_v12 = vpop.f32.mrb[16].mxu1  ;;  %v4105_v25 = vpop.f32.mrb[240].mxu0 }
 0x3bb   : > { %v6711_v60 = vadd.f32 %v3880_v12, %v6954_v28  ;;  %v4106_v11 = vadd.f32 %v4105_v25, %v6615_v29  ;;  %v3882_v4 = vpop.f32.mrb[17].mxu1  ;;  %v4107_v30 = vpop.f32.mrb[241].mxu0  ;;  %v6958_v12 = vld [vmem:[#allocation21_spill] sm:$0xff] }
 0x3bc   : > { %v3883_v32 = vpop.f32.mrb[18].mxu1  ;;  %v4108_v61 = vpop.f32.mrb[242].mxu0 }
 0x3bd   : > { %v4490_v44 = vadd.f32 %v6553_v33, %v4106_v11  ;;  %v6716_v6 = vadd.f32 %v3883_v32, %v6955_v35  ;;  %v4109_v26 = vadd.f32 %v4108_v61, %v6620_v56  ;;  %v3885_v22 = vpop.f32.mrb[19].mxu1  ;;  %v4110_v1 = vpop.f32.mrb[243].mxu0  ;;  %v6959_v61 = vld [vmem:[#allocation22_spill] sm:$0xff] }
 0x3bf   : > { %4554 = vst [vmem:[%s6562_s14 + $0xc0] sm:$0xff] %v4490_v44  ;;  %v4491_v17 = vadd.f32 %v6553_v33, %v4109_v26 }
 0x3c1   : > { %4555 = vst [vmem:[%s6562_s14 + $0xc8] sm:$0xff] %v4491_v17 }
 0x3c2   : > { %v3888_v29 = vpop.f32.mrb[20].mxu1  ;;  %v4113_v40 = vpop.f32.mrb[244].mxu0 }
 0x3c3   : > { %v6723_v63 = vadd.f32 %v3888_v29, %v6956_v46  ;;  %v4114_v59 = vadd.f32 %v4113_v40, %v6627_v7  ;;  %v3890_v57 = vpop.f32.mrb[21].mxu1  ;;  %v4115_v55 = vpop.f32.mrb[245].mxu0  ;;  %v6960_v29 = vld [vmem:[#allocation23_spill] sm:$0xff] }
 0x3c4   : > { %v3891_v37 = vpop.f32.mrb[22].mxu1  ;;  %v4116_v18 = vpop.f32.mrb[246].mxu0 }
 0x3c5   : > { %v4492_v56 = vadd.f32 %v6553_v33, %v4114_v59  ;;  %v6728_v62 = vadd.f32 %v3891_v37, %v6957_v31  ;;  %v4117_v27 = vadd.f32 %v4116_v18, %v6632_v3  ;;  %v3893_v53 = vpop.f32.mrb[23].mxu1  ;;  %v4118_v52 = vpop.f32.mrb[247].mxu0 }
 0x3c7   : > { %4556 = vst [vmem:[%s6562_s14 + $0xd0] sm:$0xff] %v4492_v56  ;;  %v4493_v2 = vadd.f32 %v6553_v33, %v4117_v27 }
 0x3c9   : > { %4557 = vst [vmem:[%s6562_s14 + $0xd8] sm:$0xff] %v4493_v2 }
 0x3ca   : > { %v3896_v7 = vpop.f32.mrb[24].mxu1  ;;  %v4121_v8 = vpop.f32.mrb[248].mxu0 }
 0x3cb   : > { %v6735_v25 = vadd.f32 %v3896_v7, %v6958_v12  ;;  %v4122_v28 = vadd.f32 %v4121_v8, %v6639_v58  ;;  %v3898_v11 = vpop.f32.mrb[25].mxu1  ;;  %v4123_v4 = vpop.f32.mrb[249].mxu0 }
 0x3cc   : > { %v3899_v30 = vpop.f32.mrb[26].mxu1  ;;  %v4124_v32 = vpop.f32.mrb[250].mxu0 }
 0x3cd   : > { %v4494_v3 = vadd.f32 %v6553_v33, %v4122_v28  ;;  %v6740_v44 = vadd.f32 %v3899_v30, %v6959_v61  ;;  %v4125_v35 = vadd.f32 %v4124_v32, %v6644_v15  ;;  %v3901_v26 = vpop.f32.mrb[27].mxu1  ;;  %v4126_v22 = vpop.f32.mrb[251].mxu0 }
 0x3cf   : > { %4558 = vst [vmem:[%s6562_s14 + $0xe0] sm:$0xff] %v4494_v3  ;;  %v4495_v1 = vadd.f32 %v6553_v33, %v4125_v35 }
 0x3d1   : > { %4559 = vst [vmem:[%s6562_s14 + $0xe8] sm:$0xff] %v4495_v1 }
 0x3d2   : > { %v3904_v58 = vpop.f32.mrb[28].mxu1  ;;  %v4129_v17 = vpop.f32.mrb[252].mxu0 }
 0x3d3   : > { %v6747_v40 = vadd.f32 %v3904_v58, %v6960_v29  ;;  %v4130_v46 = vadd.f32 %v4129_v17, %v6651_v54  ;;  %v3906_v59 = vpop.f32.mrb[29].mxu1  ;;  %v4131_v57 = vpop.f32.mrb[253].mxu0 }
 0x3d4   : > { %v3907_v55 = vpop.f32.mrb[30].mxu1  ;;  %v4132_v37 = vpop.f32.mrb[254].mxu0 }
 0x3d5   : > { %v4496_v15 = vadd.f32 %v6553_v33, %v4130_v46  ;;  %v6752_v18 = vadd.f32 %v3907_v55, %v6425_v9  ;;  %v4133_v56 = vadd.f32 %v4132_v37, %v6656_v48  ;;  %v3909_v31 = vpop.f32.mrb[31].mxu1  ;;  %v4134_v27 = vpop.f32.mrb[255].mxu0 }
 0x3d6   : > { %v6961_v31 = vld [vmem:[#allocation24_spill] sm:$0xff] }
 0x3d7   : > { %4560 = vst [vmem:[%s6562_s14 + $0xf0] sm:$0xff] %v4496_v15  ;;  %v4497_v53 = vadd.f32 %v6553_v33, %v4133_v56 }
 0x3d9   : > { %4561 = vst [vmem:[%s6562_s14 + $0xf8] sm:$0xff] %v4497_v53 }
 0x3da   : > { %v3912_v54 = vpop.f32.mrb[32].mxu1  ;;  %v4137_v52 = vpop.f32.mrb[0].mxu0 }
 0x3db   : > { %v6759_v2 = vadd.f32 %v3912_v54, %v6435_v38  ;;  %v4138_v7 = vadd.f32 %v4137_v52, %v6663_v49  ;;  %v3914_v8 = vpop.f32.mrb[33].mxu1  ;;  %v4139_v9 = vpop.f32.mrb[1].mxu0 }
 0x3dc   : > { %v3915_v12 = vpop.f32.mrb[34].mxu1  ;;  %v4140_v28 = vpop.f32.mrb[2].mxu0 }
 0x3dd   : > { %v4498_v48 = vadd.f32 %v6553_v33, %v4138_v7  ;;  %v6764_v11 = vadd.f32 %v3915_v12, %v6441_v34  ;;  %v4141_v4 = vadd.f32 %v4140_v28, %v6668_v41  ;;  %v3917_v30 = vpop.f32.mrb[35].mxu1  ;;  %v4142_v32 = vpop.f32.mrb[3].mxu0 }
 0x3df   : > { %4562 = vst [vmem:[%s6562_s14 + $0x100] sm:$0xff] %v4498_v48  ;;  %v4499_v38 = vadd.f32 %v6553_v33, %v4141_v4 }
 0x3e1   : > { %4563 = vst [vmem:[%s6562_s14 + $0x108] sm:$0xff] %v4499_v38 }
 0x3e2   : > { %v3920_v49 = vpop.f32.mrb[36].mxu1  ;;  %v4145_v3 = vpop.f32.mrb[4].mxu0 }
 0x3e3   : > { %v6771_v61 = vadd.f32 %v3920_v49, %v6451_v0  ;;  %v4146_v35 = vadd.f32 %v4145_v3, %v6675_v14  ;;  %v3922_v26 = vpop.f32.mrb[37].mxu1  ;;  %v4147_v34 = vpop.f32.mrb[5].mxu0 }
 0x3e4   : > { %v3923_v22 = vpop.f32.mrb[38].mxu1  ;;  %v4148_v1 = vpop.f32.mrb[6].mxu0 }
 0x3e5   : > { %v4500_v41 = vadd.f32 %v6553_v33, %v4146_v35  ;;  %v6776_v58 = vadd.f32 %v3923_v22, %v6457_v47  ;;  %v4149_v17 = vadd.f32 %v4148_v1, %v6680_v45  ;;  %v3925_v29 = vpop.f32.mrb[39].mxu1  ;;  %v4150_v46 = vpop.f32.mrb[7].mxu0 }
 0x3e7   : > { %4564 = vst [vmem:[%s6562_s14 + $0x110] sm:$0xff] %v4500_v41  ;;  %v4501_v0 = vadd.f32 %v6553_v33, %v4149_v17 }
 0x3e9   : > { %4565 = vst [vmem:[%s6562_s14 + $0x118] sm:$0xff] %v4501_v0 }
 0x3ea   : > { %v3928_v14 = vpop.f32.mrb[40].mxu1  ;;  %v4153_v59 = vpop.f32.mrb[8].mxu0 }
 0x3eb   : > { %v6783_v57 = vadd.f32 %v3928_v14, %v6467_v39  ;;  %v4154_v55 = vadd.f32 %v4153_v59, %v6687_v20  ;;  %v3930_v37 = vpop.f32.mrb[41].mxu1  ;;  %v4155_v47 = vpop.f32.mrb[9].mxu0 }
 0x3ec   : > { %v3931_v15 = vpop.f32.mrb[42].mxu1  ;;  %v4156_v56 = vpop.f32.mrb[10].mxu0 }
 0x3ed   : > { %v4502_v45 = vadd.f32 %v6553_v33, %v4154_v55  ;;  %v6788_v27 = vadd.f32 %v3931_v15, %v6961_v31  ;;  %v4157_v53 = vadd.f32 %v4156_v56, %v6692_v36  ;;  %v3933_v54 = vpop.f32.mrb[43].mxu1  ;;  %v4158_v52 = vpop.f32.mrb[11].mxu0 }
 0x3ef   : > { %4566 = vst [vmem:[%s6562_s14 + $0x120] sm:$0xff] %v4502_v45  ;;  %v4503_v39 = vadd.f32 %v6553_v33, %v4157_v53 }
 0x3f1   : > { %4567 = vst [vmem:[%s6562_s14 + $0x128] sm:$0xff] %v4503_v39 }
 0x3f2   : > { %v3936_v20 = vpop.f32.mrb[44].mxu1  ;;  %v4161_v7 = vpop.f32.mrb[12].mxu0 }
 0x3f3   : > { %v6795_v8 = vadd.f32 %v3936_v20, %v6483_v21  ;;  %v4162_v9 = vadd.f32 %v4161_v7, %v6699_v23  ;;  %v3938_v12 = vpop.f32.mrb[45].mxu1  ;;  %v4163_v28 = vpop.f32.mrb[13].mxu0 }
 0x3f4   : > { %v3939_v48 = vpop.f32.mrb[46].mxu1  ;;  %v4164_v4 = vpop.f32.mrb[14].mxu0 }
 0x3f5   : > { %v4504_v36 = vadd.f32 %v6553_v33, %v4162_v9  ;;  %v6800_v30 = vadd.f32 %v3939_v48, %v6489_v51  ;;  %v4165_v32 = vadd.f32 %v4164_v4, %v6704_v42  ;;  %v3941_v38 = vpop.f32.mrb[47].mxu1  ;;  %v4166_v49 = vpop.f32.mrb[15].mxu0 }
 0x3f7   : > { %4568 = vst [vmem:[%s6562_s14 + $0x130] sm:$0xff] %v4504_v36  ;;  %v4505_v21 = vadd.f32 %v6553_v33, %v4165_v32 }
 0x3f9   : > { %4569 = vst [vmem:[%s6562_s14 + $0x138] sm:$0xff] %v4505_v21 }
 0x3fa   : > { %v3944_v23 = vpop.f32.mrb[48].mxu1  ;;  %v4169_v3 = vpop.f32.mrb[16].mxu0 }
 0x3fb   : > { %v6807_v35 = vadd.f32 %v3944_v23, %v6497_v16  ;;  %v4170_v26 = vadd.f32 %v4169_v3, %v6711_v60  ;;  %v3946_v34 = vpop.f32.mrb[49].mxu1  ;;  %v4171_v51 = vpop.f32.mrb[17].mxu0 }
 0x3fc   : > { %v3947_v22 = vpop.f32.mrb[50].mxu1  ;;  %v4172_v1 = vpop.f32.mrb[18].mxu0 }
 0x3fd   : > { %v4506_v42 = vadd.f32 %v6553_v33, %v4170_v26  ;;  %v6812_v41 = vadd.f32 %v3947_v22, %v6503_v19  ;;  %v4173_v17 = vadd.f32 %v4172_v1, %v6716_v6  ;;  %v3949_v29 = vpop.f32.mrb[51].mxu1  ;;  %v4174_v46 = vpop.f32.mrb[19].mxu0 }
 0x3ff   : > { %4570 = vst [vmem:[%s6562_s14 + $0x140] sm:$0xff] %v4506_v42  ;;  %v4507_v16 = vadd.f32 %v6553_v33, %v4173_v17 }
 0x401   : > { %4571 = vst [vmem:[%s6562_s14 + $0x148] sm:$0xff] %v4507_v16 }
 0x402   : > { %v3952_v60 = vpop.f32.mrb[52].mxu1  ;;  %v4177_v0 = vpop.f32.mrb[20].mxu0 }
 0x403   : > { %v6819_v14 = vadd.f32 %v3952_v60, %v6511_v50  ;;  %v4178_v59 = vadd.f32 %v4177_v0, %v6723_v63  ;;  %v3954_v55 = vpop.f32.mrb[53].mxu1  ;;  %v4179_v19 = vpop.f32.mrb[21].mxu0 }
 0x404   : > { %v3955_v37 = vpop.f32.mrb[54].mxu1  ;;  %v4180_v47 = vpop.f32.mrb[22].mxu0 }
 0x405   : > { %v4508_v6 = vadd.f32 %v6553_v33, %v4178_v59  ;;  %v6824_v15 = vadd.f32 %v3955_v37, %v6517_v5  ;;  %v4181_v56 = vadd.f32 %v4180_v47, %v6728_v62  ;;  %v3957_v45 = vpop.f32.mrb[55].mxu1  ;;  %v4182_v31 = vpop.f32.mrb[23].mxu0 }
 0x407   : > { %4572 = vst [vmem:[%s6562_s14 + $0x150] sm:$0xff] %v4508_v6  ;;  %v4509_v50 = vadd.f32 %v6553_v33, %v4181_v56 }
 0x409   : > { %4573 = vst [vmem:[%s6562_s14 + $0x158] sm:$0xff] %v4509_v50 }
 0x40a   : > { %v3960_v63 = vpop.f32.mrb[56].mxu1  ;;  %v4185_v53 = vpop.f32.mrb[24].mxu0 }
 0x40b   : > { %v6831_v54 = vadd.f32 %v3960_v63, %v6525_v13  ;;  %v4186_v52 = vadd.f32 %v4185_v53, %v6735_v25  ;;  %v3962_v39 = vpop.f32.mrb[57].mxu1  ;;  %v4187_v5 = vpop.f32.mrb[25].mxu0 }
 0x40c   : > { %v3963_v20 = vpop.f32.mrb[58].mxu1  ;;  %v4188_v7 = vpop.f32.mrb[26].mxu0 }
 0x40d   : > { %v4510_v62 = vadd.f32 %v6553_v33, %v4186_v52  ;;  %v6836_v9 = vadd.f32 %v3963_v20, %v6531_v24  ;;  %v4189_v12 = vadd.f32 %v4188_v7, %v6740_v44  ;;  %v3965_v28 = vpop.f32.mrb[59].mxu1  ;;  %v4190_v48 = vpop.f32.mrb[27].mxu0 }
 0x40f   : > { %4574 = vst [vmem:[%s6562_s14 + $0x160] sm:$0xff] %v4510_v62  ;;  %v4511_v13 = vadd.f32 %v6553_v33, %v4189_v12 }
 0x411   : > { %4575 = vst [vmem:[%s6562_s14 + $0x168] sm:$0xff] %v4511_v13 }
 0x412   : > { %v3968_v25 = vpop.f32.mrb[60].mxu1  ;;  %v4193_v4 = vpop.f32.mrb[28].mxu0 }
 0x413   : > { %v6843_v36 = vadd.f32 %v3968_v25, %v6539_v10  ;;  %v4194_v32 = vadd.f32 %v4193_v4, %v6747_v40  ;;  %v3970_v38 = vpop.f32.mrb[61].mxu1  ;;  %v4195_v24 = vpop.f32.mrb[29].mxu0 }
 0x414   : > { %v3971_v49 = vpop.f32.mrb[62].mxu1  ;;  %v4196_v21 = vpop.f32.mrb[30].mxu0 }
 0x415   : > { %v4512_v44 = vadd.f32 %v6553_v33, %v4194_v32  ;;  %v6848_v23 = vadd.f32 %v3971_v49, %v6545_v43  ;;  %v4197_v3 = vadd.f32 %v4196_v21, %v6752_v18  ;;  %v4198_v26 = vpop.f32.mrb[31].mxu0  ;;  %v3973_v34 = vpop.f32.mrb[63].mxu1 }
 0x417   : > { %4576 = vst [vmem:[%s6562_s14 + $0x170] sm:$0xff] %v4512_v44  ;;  %v4513_v10 = vadd.f32 %v6553_v33, %v4197_v3 }
 0x419   : > { %4577 = vst [vmem:[%s6562_s14 + $0x178] sm:$0xff] %v4513_v10 }
 0x41a   : > { %v4201_v40 = vpop.f32.mrb[32].mxu0 }
 0x41b   : > { %v4202_v51 = vadd.f32 %v4201_v40, %v6759_v2  ;;  %v4203_v22 = vpop.f32.mrb[33].mxu0 }
 0x41c   : > { %v4204_v1 = vpop.f32.mrb[34].mxu0 }
 0x41d   : > { %v4514_v42 = vadd.f32 %v6553_v33, %v4202_v51  ;;  %v4205_v43 = vadd.f32 %v4204_v1, %v6764_v11  ;;  %v4206_v17 = vpop.f32.mrb[35].mxu0 }
 0x41f   : > { %4578 = vst [vmem:[%s6562_s14 + $0x180] sm:$0xff] %v4514_v42  ;;  %v4515_v18 = vadd.f32 %v6553_v33, %v4205_v43 }
 0x421   : > { %4579 = vst [vmem:[%s6562_s14 + $0x188] sm:$0xff] %v4515_v18 }
 0x422   : > { %v4209_v29 = vpop.f32.mrb[36].mxu0 }
 0x423   : > { %v4210_v46 = vadd.f32 %v4209_v29, %v6771_v61  ;;  %v4211_v16 = vpop.f32.mrb[37].mxu0 }
 0x424   : > { %v4212_v60 = vpop.f32.mrb[38].mxu0 }
 0x425   : > { %v4516_v2 = vadd.f32 %v6553_v33, %v4210_v46  ;;  %v4213_v0 = vadd.f32 %v4212_v60, %v6776_v58  ;;  %v4214_v59 = vpop.f32.mrb[39].mxu0 }
 0x427   : > { %4580 = vst [vmem:[%s6562_s14 + $0x190] sm:$0xff] %v4516_v2  ;;  %v4517_v11 = vadd.f32 %v6553_v33, %v4213_v0 }
 0x429   : > { %4581 = vst [vmem:[%s6562_s14 + $0x198] sm:$0xff] %v4517_v11 }
 0x42a   : > { %v4217_v55 = vpop.f32.mrb[40].mxu0 }
 0x42b   : > { %v4218_v19 = vadd.f32 %v4217_v55, %v6783_v57  ;;  %v4219_v37 = vpop.f32.mrb[41].mxu0 }
 0x42c   : > { %v4220_v47 = vpop.f32.mrb[42].mxu0 }
 0x42d   : > { %v4518_v61 = vadd.f32 %v6553_v33, %v4218_v19  ;;  %v4221_v6 = vadd.f32 %v4220_v47, %v6788_v27  ;;  %v4222_v56 = vpop.f32.mrb[43].mxu0 }
 0x42f   : > { %4582 = vst [vmem:[%s6562_s14 + $0x1a0] sm:$0xff] %v4518_v61  ;;  %v4519_v58 = vadd.f32 %v6553_v33, %v4221_v6 }
 0x431   : > { %4583 = vst [vmem:[%s6562_s14 + $0x1a8] sm:$0xff] %v4519_v58 }
 0x432   : > { %v4225_v45 = vpop.f32.mrb[44].mxu0 }
 0x433   : > { %v4226_v31 = vadd.f32 %v4225_v45, %v6795_v8  ;;  %v4227_v50 = vpop.f32.mrb[45].mxu0 }
 0x434   : > { %v4228_v63 = vpop.f32.mrb[46].mxu0 }
 0x435   : > { %v4520_v57 = vadd.f32 %v6553_v33, %v4226_v31  ;;  %v4229_v53 = vadd.f32 %v4228_v63, %v6800_v30  ;;  %v4230_v52 = vpop.f32.mrb[47].mxu0 }
 0x437   : > { %4584 = vst [vmem:[%s6562_s14 + $0x1b0] sm:$0xff] %v4520_v57  ;;  %v4521_v27 = vadd.f32 %v6553_v33, %v4229_v53 }
 0x439   : > { %4585 = vst [vmem:[%s6562_s14 + $0x1b8] sm:$0xff] %v4521_v27 }
 0x43a   : > { %v4233_v39 = vpop.f32.mrb[48].mxu0 }
 0x43b   : > { %v4234_v5 = vadd.f32 %v4233_v39, %v6807_v35  ;;  %v4235_v20 = vpop.f32.mrb[49].mxu0 }
 0x43c   : > { %v4236_v7 = vpop.f32.mrb[50].mxu0 }
 0x43d   : > { %v4522_v8 = vadd.f32 %v6553_v33, %v4234_v5  ;;  %v4237_v62 = vadd.f32 %v4236_v7, %v6812_v41  ;;  %v4238_v12 = vpop.f32.mrb[51].mxu0 }
 0x43f   : > { %4586 = vst [vmem:[%s6562_s14 + $0x1c0] sm:$0xff] %v4522_v8  ;;  %v4523_v30 = vadd.f32 %v6553_v33, %v4237_v62 }
 0x441   : > { %4587 = vst [vmem:[%s6562_s14 + $0x1c8] sm:$0xff] %v4523_v30 }
 0x442   : > { %v4241_v28 = vpop.f32.mrb[52].mxu0 }
 0x443   : > { %v4242_v48 = vadd.f32 %v4241_v28, %v6819_v14  ;;  %v4243_v13 = vpop.f32.mrb[53].mxu0 }
 0x444   : > { %v4244_v25 = vpop.f32.mrb[54].mxu0 }
 0x445   : > { %v4524_v35 = vadd.f32 %v6553_v33, %v4242_v48  ;;  %v4245_v4 = vadd.f32 %v4244_v25, %v6824_v15  ;;  %v4246_v32 = vpop.f32.mrb[55].mxu0 }
 0x447   : > { %4588 = vst [vmem:[%s6562_s14 + $0x1d0] sm:$0xff] %v4524_v35  ;;  %v4525_v41 = vadd.f32 %v6553_v33, %v4245_v4 }
 0x449   : > { %4589 = vst [vmem:[%s6562_s14 + $0x1d8] sm:$0xff] %v4525_v41 }
 0x44a   : > { %v4249_v38 = vpop.f32.mrb[56].mxu0 }
 0x44b   : > { %v4250_v24 = vadd.f32 %v4249_v38, %v6831_v54  ;;  %v4251_v49 = vpop.f32.mrb[57].mxu0 }
 0x44c   : > { %v4252_v21 = vpop.f32.mrb[58].mxu0 }
 0x44d   : > { %v4526_v14 = vadd.f32 %v6553_v33, %v4250_v24  ;;  %v4253_v44 = vadd.f32 %v4252_v21, %v6836_v9  ;;  %v4254_v3 = vpop.f32.mrb[59].mxu0 }
 0x44f   : > { %4590 = vst [vmem:[%s6562_s14 + $0x1e0] sm:$0xff] %v4526_v14  ;;  %v4527_v15 = vadd.f32 %v6553_v33, %v4253_v44 }
 0x451   : > { %4591 = vst [vmem:[%s6562_s14 + $0x1e8] sm:$0xff] %v4527_v15 }
 0x452   : > { %v4257_v26 = vpop.f32.mrb[60].mxu0 }
 0x453   : > { %v4258_v34 = vadd.f32 %v4257_v26, %v6843_v36  ;;  %v4259_v10 = vpop.f32.mrb[61].mxu0 }
 0x454   : > { %v4260_v40 = vpop.f32.mrb[62].mxu0 }
 0x455   : > { %v4528_v54 = vadd.f32 %v6553_v33, %v4258_v34  ;;  %v4261_v51 = vadd.f32 %v4260_v40, %v6848_v23  ;;  %v4262_v22 = vpop.f32.mrb[63].mxu0 }
 0x457   : > { %4592 = vst [vmem:[%s6562_s14 + $0x1f0] sm:$0xff] %v4528_v54  ;;  %v4529_v1 = vadd.f32 %v6553_v33, %v4261_v51 }
 0x459   : > { %4593 = vst [vmem:[%s6562_s14 + $0x1f8] sm:$0xff] %v4529_v1 }
 0x45a PF: > { %s14_s17 = sadd.s32 1, %s5374_s17   ;;  %s6962_s15 = smov %s5370_s16 }
 0x45b   : > { %p11_p5 = scmp.ge.s32.totalorder %s14_s17, 4   ;;  %s6963_s16 = smov %s6965_s18 }
 0x45d   :  { %13 = sbr.rel (!%p11_p5) target bundleno = 2 (0x2), region = 77 }

// kernel: gcn_forward.2
= control target key start
LH: loop header
LB: loop body
LE: loop exit
PB: predicated region body
PF: predicated region fallthrough
CT: control target
= control target key end

     0   :  { %s6042_s15 = smov 0   ;;  %s6044_s16 = smov 0   ;;  %s7515_s0 = inlined_call_operand.vmem [shape: bf16[1024,1024], index: 0, kind: input, shape index: {}]   ;;  %s7516_s1 = inlined_call_operand.vmem [shape: bf16[1024,128], index: 1, kind: input, shape index: {}]   ;;  %s7517_s2 = inlined_call_operand.vmem [shape: bf16[128,128], index: 2, kind: input, shape index: {}]   ;;  %s7518_s3 = inlined_call_operand.vmem [shape: f32[1,128], index: 3, kind: input, shape index: {}]   ;;  %s7519_s4 = inlined_call_operand.vmem [shape: bf16[1024,128], index: 4, kind: output, shape index: {}]  }
   0x1   :  { %s6046_s17 = smov 0  }
   0x2 LB: > { %s26_s18 = sadd.s32 1, %s6010_s16  ;;  %p5005_p0 = scmp.ge.s32.totalorder %s6014_s17, 1  ;;  %s6014_s17 = sphi %s6046_s17, %s14_s17   ;;  %s6010_s16 = sphi %s6044_s16, %s7567_s16   ;;  %s6006_s15 = sphi %s6042_s15, %s7566_s15  }
   0x3   : > { %p28_p1 = scmp.ge.s32.totalorder %s26_s18, 2  ;;  %p194_p2 = scmp.lt.s32.totalorder %s6014_s17, 3 }
   0x5   : > { %s7569_s18 = smov (%p28_p1, %s26_s18), 0  ;;  %p195_p3 = pnand %p5005_p0, %p194_p2 }
   0x7   : > { %198 = sbr.rel (%p195_p3) target bundleno = 1118 (0x45e), region = 36 }
   0xe   : > { %v5919_v0 = vld [vmem:[%s7517_s2] sm:$0xff]   ;;  %v5920_v1 = vld [vmem:[%s7517_s2 + $0x8] sm:$0xff]   ;;  %v5921_v2 = vld [vmem:[%s7517_s2 + $0x10] sm:$0xff]   ;;  %v6016_v53 = vmov 0   ;;  %s5006_s29 = sshll.u32 %s6006_s15, 6 }
   0xf   : > { %5734 = vmatprep.subr.bf16.mxu0 %v5919_v0  ;;  %5878 = vmatprep.subr.bf16.mxu1 %v5919_v0  ;;  %v5922_v3 = vld [vmem:[%s7517_s2 + $0x18] sm:$0xff]   ;;  %v5927_v4 = vld [vmem:[%s7516_s1] sm:$0xff]   ;;  %v5924_v6 = vld [vmem:[%s7517_s2 + $0x28] sm:$0xff]   ;;  %p232_p4 = scmp.lt.s32.totalorder %s5006_s29, 127 }
  0x10   : > { %5735 = vmatpush3.bf16.msra.mxu0 %v5919_v0  ;;  %5886 = vmatpush3.bf16.msra.mxu1 %v5919_v0  ;;  %v5923_v5 = vld [vmem:[%s7517_s2 + $0x20] sm:$0xff]   ;;  %v5925_v7 = vld [vmem:[%s7517_s2 + $0x30] sm:$0xff]   ;;  %v5926_v8 = vld [vmem:[%s7517_s2 + $0x38] sm:$0xff]  }
  0x11   : > { %5736 = vmatprep.subr.bf16.mxu0 %v5920_v1  ;;  %5879 = vmatprep.subr.bf16.mxu1 %v5920_v1  ;;  %v5928_v9 = vld [vmem:[%s7516_s1 + $0x8] sm:$0xff]   ;;  %v5929_v10 = vld [vmem:[%s7516_s1 + $0x10] sm:$0xff]   ;;  %v5930_v11 = vld [vmem:[%s7516_s1 + $0x18] sm:$0xff]   ;;  %s7571_s29 = smov (!%p232_p4, %s5006_s29), 127 }
  0x12   : > { %5750 = vmatprep.mubr.bf16.mxu0 %v5927_v4  ;;  %v5931_v12 = vld [vmem:[%s7516_s1 + $0x20] sm:$0xff]   ;;  %v5960_v14 = vld [vmem:[%s7516_s1 + $0x108] sm:$0xff]   ;;  %v5961_v15 = vld [vmem:[%s7516_s1 + $0x110] sm:$0xff]   ;;  %s5406_s6 = sshll.u32 %s7571_s29, 5  ;;  %s5010_s11 = sshll.u32 %s7571_s29, 2 }
  0x13   : > { %v5959_v13 = vld [vmem:[%s7516_s1 + $0x100] sm:$0xff]   ;;  %v5932_v16 = vld [vmem:[%s7516_s1 + $0x28] sm:$0xff]   ;;  %v5933_v17 = vld [vmem:[%s7516_s1 + $0x30] sm:$0xff]   ;;  %s6287_s9 = scalar_lea.vmem %s7515_s0, %s5406_s6  ;;  %s7210_s14 = scalar_lea.vmem %s7519_s4, %s5010_s11 }
  0x14   : > { %5737 = vmatpush3.bf16.msra.mxu0 %v5920_v1  ;;  %5887 = vmatpush3.bf16.msra.mxu1 %v5920_v1  ;;  %v5962_v18 = vld [vmem:[%s7516_s1 + $0x118] sm:$0xff]   ;;  %v5963_v19 = vld [vmem:[%s7516_s1 + $0x120] sm:$0xff]   ;;  %v5964_v22 = vld [vmem:[%s7516_s1 + $0x128] sm:$0xff]  }
  0x15   : > { %5738 = vmatprep.subr.bf16.mxu0 %v5921_v2  ;;  %5880 = vmatprep.subr.bf16.mxu1 %v5921_v2  ;;  %v5934_v20 = vld [vmem:[%s7516_s1 + $0x38] sm:$0xff]   ;;  %v5935_v21 = vld [vmem:[%s7516_s1 + $0x40] sm:$0xff]   ;;  %v5965_v23 = vld [vmem:[%s7516_s1 + $0x130] sm:$0xff]  }
  0x16   : > { %5814 = vmatprep.mubr.bf16.mxu1 %v5959_v13  ;;  %v5936_v24 = vld [vmem:[%s7516_s1 + $0x48] sm:$0xff]   ;;  %v5937_v25 = vld [vmem:[%s7516_s1 + $0x50] sm:$0xff]   ;;  %v5966_v26 = vld [vmem:[%s7516_s1 + $0x138] sm:$0xff]  }
  0x17   : > { %v5967_v27 = vld [vmem:[%s7516_s1 + $0x140] sm:$0xff]   ;;  %v5938_v28 = vld [vmem:[%s7516_s1 + $0x58] sm:$0xff]   ;;  %v5968_v30 = vld [vmem:[%s7516_s1 + $0x148] sm:$0xff]  }
  0x18   : > { %5739 = vmatpush3.bf16.msra.mxu0 %v5921_v2  ;;  %5888 = vmatpush3.bf16.msra.mxu1 %v5921_v2  ;;  %v5939_v29 = vld [vmem:[%s7516_s1 + $0x60] sm:$0xff]   ;;  %v5969_v31 = vld [vmem:[%s7516_s1 + $0x150] sm:$0xff]   ;;  %v5940_v32 = vld [vmem:[%s7516_s1 + $0x68] sm:$0xff]  }
  0x19   : > { %5740 = vmatprep.subr.bf16.mxu0 %v5922_v3  ;;  %5881 = vmatprep.subr.bf16.mxu1 %v5922_v3  ;;  %v5941_v33 = vld [vmem:[%s7516_s1 + $0x70] sm:$0xff]   ;;  %v5970_v34 = vld [vmem:[%s7516_s1 + $0x158] sm:$0xff]   ;;  %v5971_v35 = vld [vmem:[%s7516_s1 + $0x160] sm:$0xff]  }
  0x1a   : > { %v5942_v36 = vld [vmem:[%s7516_s1 + $0x78] sm:$0xff]   ;;  %v5943_v37 = vld [vmem:[%s7516_s1 + $0x80] sm:$0xff]   ;;  %v5972_v38 = vld [vmem:[%s7516_s1 + $0x168] sm:$0xff]  }
  0x1b   : > { %v5973_v39 = vld [vmem:[%s7516_s1 + $0x170] sm:$0xff]   ;;  %v5944_v40 = vld [vmem:[%s7516_s1 + $0x88] sm:$0xff]   ;;  %v5974_v42 = vld [vmem:[%s7516_s1 + $0x178] sm:$0xff]  }
  0x1c   : > { %5741 = vmatpush3.bf16.msra.mxu0 %v5922_v3  ;;  %5889 = vmatpush3.bf16.msra.mxu1 %v5922_v3  ;;  %v5945_v41 = vld [vmem:[%s7516_s1 + $0x90] sm:$0xff]   ;;  %v5975_v43 = vld [vmem:[%s7516_s1 + $0x180] sm:$0xff]   ;;  %v5946_v44 = vld [vmem:[%s7516_s1 + $0x98] sm:$0xff]  }
  0x1d   : > { %5742 = vmatprep.subr.bf16.mxu0 %v5923_v5  ;;  %5882 = vmatprep.subr.bf16.mxu1 %v5923_v5  ;;  %v5947_v45 = vld [vmem:[%s7516_s1 + $0xa0] sm:$0xff]   ;;  %v5976_v46 = vld [vmem:[%s7516_s1 + $0x188] sm:$0xff]   ;;  %v5949_v48 = vld [vmem:[%s7516_s1 + $0xb0] sm:$0xff]  }
  0x1e   : > { %v5948_v47 = vld [vmem:[%s7516_s1 + $0xa8] sm:$0xff]   ;;  %v5950_v49 = vld [vmem:[%s7516_s1 + $0xb8] sm:$0xff]   ;;  %v5951_v50 = vld [vmem:[%s7516_s1 + $0xc0] sm:$0xff]  }
  0x1f   : > { %v5977_v51 = vld [vmem:[%s7516_s1 + $0x190] sm:$0xff]   ;;  %v5978_v52 = vld [vmem:[%s7516_s1 + $0x198] sm:$0xff]   ;;  %v5952_v54 = vld [vmem:[%s7516_s1 + $0xc8] sm:$0xff]  }
  0x20   : > { %5743 = vmatpush3.bf16.msra.mxu0 %v5923_v5  ;;  %5890 = vmatpush3.bf16.msra.mxu1 %v5923_v5  ;;  %v5953_v55 = vld [vmem:[%s7516_s1 + $0xd0] sm:$0xff]   ;;  %v5954_v56 = vld [vmem:[%s7516_s1 + $0xd8] sm:$0xff]   ;;  %v5955_v57 = vld [vmem:[%s7516_s1 + $0xe0] sm:$0xff]  }
  0x21   : > { %5744 = vmatprep.subr.bf16.mxu0 %v5924_v6  ;;  %5883 = vmatprep.subr.bf16.mxu1 %v5924_v6  ;;  %v5979_v58 = vld [vmem:[%s7516_s1 + $0x1a0] sm:$0xff]   ;;  %v5980_v59 = vld [vmem:[%s7516_s1 + $0x1a8] sm:$0xff]   ;;  %v5957_v61 = vld [vmem:[%s7516_s1 + $0xf0] sm:$0xff]  }
  0x22   : > { %v5956_v60 = vld [vmem:[%s7516_s1 + $0xe8] sm:$0xff]   ;;  %v5981_v62 = vld [vmem:[%s7516_s1 + $0x1b0] sm:$0xff]   ;;  %v5982_v63 = vld [vmem:[%s7516_s1 + $0x1b8] sm:$0xff]  }
  0x23   : > { %v5958_v0 = vld [vmem:[%s7516_s1 + $0xf8] sm:$0xff]   ;;  %v5983_v1 = vld [vmem:[%s7516_s1 + $0x1c0] sm:$0xff]   ;;  %v5984_v2 = vld [vmem:[%s7516_s1 + $0x1c8] sm:$0xff]  }
  0x24   : > { %5745 = vmatpush3.bf16.msra.mxu0 %v5924_v6  ;;  %5891 = vmatpush3.bf16.msra.mxu1 %v5924_v6  ;;  %v5985_v3 = vld [vmem:[%s7516_s1 + $0x1d0] sm:$0xff]   ;;  %v5986_v4 = vld [vmem:[%s7516_s1 + $0x1d8] sm:$0xff]   ;;  %v5987_v5 = vld [vmem:[%s7516_s1 + $0x1e0] sm:$0xff]  }
  0x25   : > { %5746 = vmatprep.subr.bf16.mxu0 %v5925_v7  ;;  %5884 = vmatprep.subr.bf16.mxu1 %v5925_v7  ;;  %v5988_v6 = vld [vmem:[%s7516_s1 + $0x1e8] sm:$0xff]  }
  0x28   : > { %5747 = vmatpush3.bf16.msra.mxu0 %v5925_v7  ;;  %5892 = vmatpush3.bf16.msra.mxu1 %v5925_v7  ;;  %v5989_v7 = vld [vmem:[%s7516_s1 + $0x1f0] sm:$0xff]  }
  0x29   : > { %5748 = vmatprep.subr.bf16.mxu0 %v5926_v8  ;;  %5885 = vmatprep.subr.bf16.mxu1 %v5926_v8 }
  0x2c   : > { %5749 = vmatpush3.bf16.msra.mxu0 %v5926_v8  ;;  %5893 = vmatpush3.bf16.msra.mxu1 %v5926_v8  ;;  %v5990_v8 = vld [vmem:[%s7516_s1 + $0x1f8] sm:$0xff]  }
  0x2d   : > { %3108 = vmatprep.subr.bf16.mxu1 %v6016_v53  ;;  %3397 = vmatprep.subr.bf16.mxu0 %v6016_v53 }
  0x2f   : > { %5751 = vmatmul.mubr.bf16.vlgmr.msra.gmra.mrb[0].mxu0 %v5928_v9  ;;  %5815 = vmatmul.mubr.bf16.vlgmr.msra.gmra.mrb[0].mxu1 %v5960_v14  ;;  %v6290_v9 = vld [vmem:[%s6287_s9] sm:$0xff] }
  0x30   : > { %5754 = vmatprep.mubr.bf16.mxu0 %v5929_v10  ;;  %5818 = vmatprep.mubr.bf16.mxu1 %v5961_v15  ;;  %v6293_v10 = vld [vmem:[%s6287_s9 + $0x20] sm:$0xff]  ;;  %v6300_v15 = vld [vmem:[%s6287_s9 + $0x8] sm:$0xff] }
  0x37   : > { %5755 = vmatmul.mubr.bf16.gmra.mrb[4].mxu0 %v5930_v11  ;;  %5819 = vmatmul.mubr.bf16.gmra.mrb[4].mxu1 %v5962_v18  ;;  %v5084_v11 = vcombine.high %v6290_v9, %v6293_v10 }
  0x38   : > { %5758 = vmatprep.mubr.bf16.mxu0 %v5931_v12  ;;  %5822 = vmatprep.mubr.bf16.mxu1 %v5963_v19  ;;  %v5083_v12 = vcombine.low %v6290_v9, %v6293_v10 }
  0x3f   : > { %5759 = vmatmul.mubr.bf16.gmra.mrb[8].mxu0 %v5932_v16  ;;  %5823 = vmatmul.mubr.bf16.gmra.mrb[8].mxu1 %v5964_v22 }
  0x40   : > { %5762 = vmatprep.mubr.bf16.mxu0 %v5933_v17  ;;  %5826 = vmatprep.mubr.bf16.mxu1 %v5965_v23  ;;  %v6303_v17 = vld [vmem:[%s6287_s9 + $0x28] sm:$0xff] }
  0x47   : > { %5763 = vmatmul.mubr.bf16.gmra.mrb[12].mxu0 %v5934_v20  ;;  %5827 = vmatmul.mubr.bf16.gmra.mrb[12].mxu1 %v5966_v26 }
  0x48   : > { %5766 = vmatprep.mubr.bf16.mxu0 %v5935_v21  ;;  %5830 = vmatprep.mubr.bf16.mxu1 %v5967_v27  ;;  %v5086_v21 = vcombine.high %v6300_v15, %v6303_v17 }
  0x4f   : > { %5767 = vmatmul.mubr.bf16.gmra.mrb[16].mxu0 %v5936_v24  ;;  %5831 = vmatmul.mubr.bf16.gmra.mrb[16].mxu1 %v5968_v30 }
  0x50   : > { %5770 = vmatprep.mubr.bf16.mxu0 %v5937_v25  ;;  %5834 = vmatprep.mubr.bf16.mxu1 %v5969_v31 }
  0x57   : > { %5771 = vmatmul.mubr.bf16.gmra.mrb[20].mxu0 %v5938_v28  ;;  %5835 = vmatmul.mubr.bf16.gmra.mrb[20].mxu1 %v5970_v34 }
  0x58   : > { %5774 = vmatprep.mubr.bf16.mxu0 %v5939_v29  ;;  %5838 = vmatprep.mubr.bf16.mxu1 %v5971_v35 }
  0x5f   : > { %5775 = vmatmul.mubr.bf16.gmra.mrb[24].mxu0 %v5940_v32  ;;  %5839 = vmatmul.mubr.bf16.gmra.mrb[24].mxu1 %v5972_v38 }
  0x60   : > { %5778 = vmatprep.mubr.bf16.mxu0 %v5941_v33  ;;  %5842 = vmatprep.mubr.bf16.mxu1 %v5973_v39 }
  0x67   : > { %5779 = vmatmul.mubr.bf16.gmra.mrb[28].mxu0 %v5942_v36  ;;  %5843 = vmatmul.mubr.bf16.gmra.mrb[28].mxu1 %v5974_v42 }
  0x68   : > { %5782 = vmatprep.mubr.bf16.mxu0 %v5943_v37  ;;  %5846 = vmatprep.mubr.bf16.mxu1 %v5975_v43 }
  0x6f   : > { %5783 = vmatmul.mubr.bf16.gmra.mrb[32].mxu0 %v5944_v40  ;;  %5847 = vmatmul.mubr.bf16.gmra.mrb[32].mxu1 %v5976_v46 }
  0x70   : > { %5786 = vmatprep.mubr.bf16.mxu0 %v5945_v41  ;;  %5850 = vmatprep.mubr.bf16.mxu1 %v5977_v51 }
  0x77   : > { %5787 = vmatmul.mubr.bf16.gmra.mrb[36].mxu0 %v5946_v44  ;;  %5851 = vmatmul.mubr.bf16.gmra.mrb[36].mxu1 %v5978_v52 }
  0x78   : > { %5790 = vmatprep.mubr.bf16.mxu0 %v5947_v45  ;;  %5854 = vmatprep.mubr.bf16.mxu1 %v5979_v58 }
  0x7f   : > { %5791 = vmatmul.mubr.bf16.gmra.mrb[40].mxu0 %v5948_v47  ;;  %5855 = vmatmul.mubr.bf16.gmra.mrb[40].mxu1 %v5980_v59 }
  0x80   : > { %5794 = vmatprep.mubr.bf16.mxu0 %v5949_v48  ;;  %5858 = vmatprep.mubr.bf16.mxu1 %v5981_v62 }
  0x87   : > { %5795 = vmatmul.mubr.bf16.gmra.mrb[44].mxu0 %v5950_v49  ;;  %5859 = vmatmul.mubr.bf16.gmra.mrb[44].mxu1 %v5982_v63 }
  0x88   : > { %5798 = vmatprep.mubr.bf16.mxu0 %v5951_v50  ;;  %5862 = vmatprep.mubr.bf16.mxu1 %v5983_v1 }
  0x8f   : > { %5799 = vmatmul.mubr.bf16.gmra.mrb[48].mxu0 %v5952_v54  ;;  %5863 = vmatmul.mubr.bf16.gmra.mrb[48].mxu1 %v5984_v2 }
  0x90   : > { %5802 = vmatprep.mubr.bf16.mxu0 %v5953_v55  ;;  %5866 = vmatprep.mubr.bf16.mxu1 %v5985_v3 }
  0x97   : > { %5803 = vmatmul.mubr.bf16.gmra.mrb[52].mxu0 %v5954_v56  ;;  %5867 = vmatmul.mubr.bf16.gmra.mrb[52].mxu1 %v5986_v4 }
  0x98   : > { %5806 = vmatprep.mubr.bf16.mxu0 %v5955_v57  ;;  %5870 = vmatprep.mubr.bf16.mxu1 %v5987_v5 }
  0x9f   : > { %5807 = vmatmul.mubr.bf16.gmra.mrb[56].mxu0 %v5956_v60  ;;  %5871 = vmatmul.mubr.bf16.gmra.mrb[56].mxu1 %v5988_v6 }
  0xa0   : > { %5810 = vmatprep.mubr.bf16.mxu0 %v5957_v61  ;;  %5874 = vmatprep.mubr.bf16.mxu1 %v5989_v7 }
  0xa7   : > { %5811 = vmatmul.mubr.bf16.gmra.mrb[60].mxu0 %v5958_v0  ;;  %5875 = vmatmul.mubr.bf16.gmra.mrb[60].mxu1 %v5990_v8 }
  0xa8   : > { %3140 = vmatprep.mubr.bf16.mxu1 %v5084_v11  ;;  %3429 = vmatprep.mubr.bf16.mxu0 %v5086_v21 }
 0x102   : > { %v5752_v13 = vpop.f32.mrb[0].mxu0  ;;  %v6310_v25 = vpop.f32.mrb[0].mxu1 }
 0x103   : > { %v933_v14 = vpop.f32.mrb[1].mxu0  ;;  %v6312_v27 = vpop.f32.mrb[1].mxu1 }
 0x104   : > { %v5753_v16 = vpop.f32.mrb[2].mxu0  ;;  %v6315_v30 = vpop.f32.mrb[2].mxu1 }
 0x105   : > { %v1445_v18 = vpack.c.bf16 %v5753_v16, %v5752_v13  ;;  %v936_v19 = vpop.f32.mrb[3].mxu0  ;;  %v1477_v32 = vpack.c.bf16 %v6315_v30, %v6310_v25  ;;  %v6319_v33 = vpop.f32.mrb[3].mxu1  ;;  %v1596_v25 = vld [vmem:[%s6287_s9 + $0xc0] sm:$0xff] }
 0x106   : > { %v1444_v22 = vpack.c.bf16 %v936_v19, %v933_v14  ;;  %v1476_v34 = vpack.c.bf16 %v6319_v33, %v6312_v27  ;;  %v1600_v30 = vld [vmem:[%s6287_s9 + $0xe0] sm:$0xff] }
 0x108   : > { %3109 = vmatpush1.bf16.msra.mxu1 %v1444_v22 }
 0x109   : > { %3110 = vmatprep.subr.bf16.mxu1 %v6016_v53 }
 0x10a   : > { %v5756_v23 = vpop.f32.mrb[4].mxu0  ;;  %v6324_v37 = vpop.f32.mrb[4].mxu1 }
 0x10b   : > { %v949_v24 = vpop.f32.mrb[5].mxu0  ;;  %v6326_v39 = vpop.f32.mrb[5].mxu1 }
 0x10c   : > { %v5757_v26 = vpop.f32.mrb[6].mxu0  ;;  %3111 = vmatpush1.bf16.msra.mxu1 %v1445_v18  ;;  %v6329_v42 = vpop.f32.mrb[6].mxu1 }
 0x10d   : > { %v1447_v28 = vpack.c.bf16 %v5757_v26, %v5756_v23  ;;  %v952_v29 = vpop.f32.mrb[7].mxu0  ;;  %3112 = vmatprep.subr.bf16.mxu1 %v6016_v53  ;;  %v1479_v44 = vpack.c.bf16 %v6329_v42, %v6324_v37  ;;  %v6333_v45 = vpop.f32.mrb[7].mxu1  ;;  %v5107_v37 = vcombine.low %v1596_v25, %v1600_v30 }
 0x10e   : > { %v1446_v31 = vpack.c.bf16 %v952_v29, %v949_v24  ;;  %v1478_v46 = vpack.c.bf16 %v6333_v45, %v6326_v39  ;;  %v1604_v45 = vld [vmem:[%s6287_s9 + $0x100] sm:$0xff] }
 0x110   : > { %3113 = vmatpush1.bf16.msra.mxu1 %v1446_v31 }
 0x111   : > { %3114 = vmatprep.subr.bf16.mxu1 %v6016_v53 }
 0x112   : > { %v5760_v35 = vpop.f32.mrb[8].mxu0  ;;  %v6338_v49 = vpop.f32.mrb[8].mxu1 }
 0x113   : > { %v965_v36 = vpop.f32.mrb[9].mxu0  ;;  %v6340_v51 = vpop.f32.mrb[9].mxu1 }
 0x114   : > { %v5761_v38 = vpop.f32.mrb[10].mxu0  ;;  %3115 = vmatpush1.bf16.msra.mxu1 %v1447_v28  ;;  %v6343_v55 = vpop.f32.mrb[10].mxu1 }
 0x115   : > { %v1449_v40 = vpack.c.bf16 %v5761_v38, %v5760_v35  ;;  %v968_v41 = vpop.f32.mrb[11].mxu0  ;;  %3116 = vmatprep.subr.bf16.mxu1 %v6016_v53  ;;  %v1481_v57 = vpack.c.bf16 %v6343_v55, %v6338_v49  ;;  %v6347_v58 = vpop.f32.mrb[11].mxu1  ;;  %v1612_v49 = vld [vmem:[%s6287_s9 + $0x140] sm:$0xff] }
 0x116   : > { %v1448_v43 = vpack.c.bf16 %v968_v41, %v965_v36  ;;  %v1480_v59 = vpack.c.bf16 %v6347_v58, %v6340_v51  ;;  %v1616_v55 = vld [vmem:[%s6287_s9 + $0x160] sm:$0xff] }
 0x118   : > { %3117 = vmatpush1.bf16.msra.mxu1 %v1448_v43 }
 0x119   : > { %3118 = vmatprep.subr.bf16.mxu1 %v6016_v53 }
 0x11a   : > { %v5764_v47 = vpop.f32.mrb[12].mxu0  ;;  %v6352_v62 = vpop.f32.mrb[12].mxu1 }
 0x11b   : > { %v981_v48 = vpop.f32.mrb[13].mxu0  ;;  %v6354_v0 = vpop.f32.mrb[13].mxu1 }
 0x11c   : > { %v5765_v50 = vpop.f32.mrb[14].mxu0  ;;  %3119 = vmatpush1.bf16.msra.mxu1 %v1449_v40  ;;  %v6357_v3 = vpop.f32.mrb[14].mxu1 }
 0x11d   : > { %v1451_v52 = vpack.c.bf16 %v5765_v50, %v5764_v47  ;;  %v984_v54 = vpop.f32.mrb[15].mxu0  ;;  %3120 = vmatprep.subr.bf16.mxu1 %v6016_v53  ;;  %v1483_v5 = vpack.c.bf16 %v6357_v3, %v6352_v62  ;;  %v6361_v6 = vpop.f32.mrb[15].mxu1  ;;  %v5123_v3 = vcombine.low %v1612_v49, %v1616_v55 }
 0x11e   : > { %v1450_v56 = vpack.c.bf16 %v984_v54, %v981_v48  ;;  %v1482_v7 = vpack.c.bf16 %v6361_v6, %v6354_v0  ;;  %v1620_v6 = vld [vmem:[%s6287_s9 + $0x180] sm:$0xff] }
 0x120   : > { %3121 = vmatpush1.bf16.msra.mxu1 %v1450_v56 }
 0x121   : > { %3122 = vmatprep.subr.bf16.mxu1 %v6016_v53 }
 0x122   : > { %v5768_v60 = vpop.f32.mrb[16].mxu0  ;;  %v6366_v13 = vpop.f32.mrb[16].mxu1 }
 0x123   : > { %v997_v61 = vpop.f32.mrb[17].mxu0  ;;  %v6368_v16 = vpop.f32.mrb[17].mxu1 }
 0x124   : > { %v5769_v63 = vpop.f32.mrb[18].mxu0  ;;  %3123 = vmatpush1.bf16.msra.mxu1 %v1451_v52  ;;  %v6371_v21 = vpop.f32.mrb[18].mxu1 }
 0x125   : > { %v1453_v1 = vpack.c.bf16 %v5769_v63, %v5768_v60  ;;  %v1000_v2 = vpop.f32.mrb[19].mxu0  ;;  %3124 = vmatprep.subr.bf16.mxu1 %v6016_v53  ;;  %v1485_v23 = vpack.c.bf16 %v6371_v21, %v6366_v13  ;;  %v6375_v24 = vpop.f32.mrb[19].mxu1 }
 0x126   : > { %v1452_v4 = vpack.c.bf16 %v1000_v2, %v997_v61  ;;  %v1484_v26 = vpack.c.bf16 %v6375_v24, %v6368_v16  ;;  %v1628_v24 = vld [vmem:[%s6287_s9 + $0x1c0] sm:$0xff] }
 0x128   : > { %3125 = vmatpush1.bf16.msra.mxu1 %v1452_v4 }
 0x129   : > { %3126 = vmatprep.subr.bf16.mxu1 %v6016_v53 }
 0x12a   : > { %v5772_v8 = vpop.f32.mrb[20].mxu0  ;;  %v6380_v31 = vpop.f32.mrb[20].mxu1 }
 0x12b   : > { %v1013_v11 = vpop.f32.mrb[21].mxu0  ;;  %v6382_v36 = vpop.f32.mrb[21].mxu1 }
 0x12c   : > { %v5773_v14 = vpop.f32.mrb[22].mxu0  ;;  %3127 = vmatpush1.bf16.msra.mxu1 %v1453_v1  ;;  %v6385_v41 = vpop.f32.mrb[22].mxu1 }
 0x12d   : > { %v1455_v18 = vpack.c.bf16 %v5773_v14, %v5772_v8  ;;  %v1016_v19 = vpop.f32.mrb[23].mxu0  ;;  %3128 = vmatprep.subr.bf16.mxu1 %v6016_v53  ;;  %v1487_v47 = vpack.c.bf16 %v6385_v41, %v6380_v31  ;;  %v6389_v48 = vpop.f32.mrb[23].mxu1 }
 0x12e   : > { %v1454_v22 = vpack.c.bf16 %v1016_v19, %v1013_v11  ;;  %v1486_v50 = vpack.c.bf16 %v6389_v48, %v6382_v36  ;;  %v1584_v19 = vld [vmem:[%s6287_s9 + $0x60] sm:$0xff] }
 0x130   : > { %3129 = vmatpush1.bf16.msra.mxu1 %v1454_v22 }
 0x131   : > { %3130 = vmatprep.subr.bf16.mxu1 %v6016_v53 }
 0x132   : > { %v5776_v28 = vpop.f32.mrb[24].mxu0  ;;  %v6394_v56 = vpop.f32.mrb[24].mxu1 }
 0x133   : > { %v1029_v29 = vpop.f32.mrb[25].mxu0  ;;  %v6396_v61 = vpop.f32.mrb[25].mxu1 }
 0x134   : > { %v5777_v35 = vpop.f32.mrb[26].mxu0  ;;  %3131 = vmatpush1.bf16.msra.mxu1 %v1455_v18  ;;  %v6399_v2 = vpop.f32.mrb[26].mxu1  ;;  %v1580_v18 = vld [vmem:[%s6287_s9 + $0x40] sm:$0xff] }
 0x135   : > { %v1457_v38 = vpack.c.bf16 %v5777_v35, %v5776_v28  ;;  %v1032_v40 = vpop.f32.mrb[27].mxu0  ;;  %3132 = vmatprep.subr.bf16.mxu1 %v6016_v53  ;;  %v1489_v8 = vpack.c.bf16 %v6399_v2, %v6394_v56  ;;  %v6403_v11 = vpop.f32.mrb[27].mxu1  ;;  %v5091_v20 = vcombine.low %v1580_v18, %v1584_v19 }
 0x136   : > { %v1456_v43 = vpack.c.bf16 %v1032_v40, %v1029_v29  ;;  %v1488_v14 = vpack.c.bf16 %v6403_v11, %v6396_v61 }
 0x138   : > { %3133 = vmatpush1.bf16.msra.mxu1 %v1456_v43 }
 0x139   : > { %3134 = vmatprep.subr.bf16.mxu1 %v6016_v53 }
 0x13a   : > { %v5780_v52 = vpop.f32.mrb[28].mxu0  ;;  %v6410_v29 = vpop.f32.mrb[28].mxu1 }
 0x13b   : > { %v1045_v54 = vpop.f32.mrb[29].mxu0  ;;  %v6412_v40 = vpop.f32.mrb[29].mxu1 }
 0x13c   : > { %v5781_v60 = vpop.f32.mrb[30].mxu0  ;;  %3135 = vmatpush1.bf16.msra.mxu1 %v1457_v38  ;;  %v5092_v38 = vcombine.high %v1580_v18, %v1584_v19 }
 0x13d   : > { %v1459_v63 = vpack.c.bf16 %v5781_v60, %v5780_v52  ;;  %v1048_v1 = vpop.f32.mrb[31].mxu0  ;;  %3136 = vmatprep.subr.bf16.mxu1 %v6016_v53 }
 0x13e   : > { %v1458_v4 = vpack.c.bf16 %v1048_v1, %v1045_v54  ;;  %v6415_v54 = vpop.f32.mrb[30].mxu1 }
 0x140   : > { %3137 = vmatpush1.bf16.msra.mxu1 %v1458_v4  ;;  %v6419_v4 = vpop.f32.mrb[31].mxu1 }
 0x141   : > { %3138 = vmatprep.subr.bf16.mxu1 %v6016_v53 }
 0x142   : > { %v5784_v22 = vpop.f32.mrb[32].mxu0  ;;  %v6433_v9 = vpop.f32.mrb[32].mxu1 }
 0x143   : > { %v1061_v28 = vpop.f32.mrb[33].mxu0 }
 0x144   : > { %v5785_v35 = vpop.f32.mrb[34].mxu0  ;;  %3139 = vmatpush1.bf16.msra.mxu1 %v1459_v63  ;;  %v1490_v63 = vpack.c.bf16 %v6419_v4, %v6412_v40  ;;  %v1652_v40 = vld [vmem:[%s6287_s9 + $0x280] sm:$0xff] }
 0x145   : > { %v1461_v43 = vpack.c.bf16 %v5785_v35, %v5784_v22  ;;  %v1064_v52 = vpop.f32.mrb[35].mxu0  ;;  %3686 = vmatprep.subr.bf16.mxu1 %v6016_v53  ;;  %v1588_v22 = vld [vmem:[%s6287_s9 + $0x80] sm:$0xff] }
 0x146   : > { %v1460_v60 = vpack.c.bf16 %v1064_v52, %v1061_v28  ;;  %v1592_v35 = vld [vmem:[%s6287_s9 + $0xa0] sm:$0xff] }
 0x147   : > { %3141 = vmatmul.mubr.bf16.vlgmr.msra.gmra.mrb[64].mxu1 %v5083_v12  ;;  %v5100_v12 = vcombine.high %v1588_v22, %v1592_v35  ;;  %v1656_v4 = vld [vmem:[%s6287_s9 + $0x2a0] sm:$0xff] }
 0x148   : > { %3398 = vmatpush1.bf16.msra.mxu0 %v1460_v60  ;;  %3148 = vmatprep.mubr.bf16.mxu1 %v5092_v38  ;;  %v6435_v38 = vpop.f32.mrb[33].mxu1 }
 0x149   : > { %3399 = vmatprep.subr.bf16.mxu0 %v6016_v53  ;;  %3687 = vmatpush1.bf16.msra.mxu1 %v1476_v34  ;;  %v6441_v27 = vpop.f32.mrb[34].mxu1 }
 0x14a   : > { %v5788_v28 = vpop.f32.mrb[36].mxu0  ;;  %3688 = vmatprep.subr.bf16.mxu1 %v6016_v53  ;;  %v1493_v34 = vpack.c.bf16 %v6441_v27, %v6433_v9  ;;  %v6446_v18 = vpop.f32.mrb[35].mxu1  ;;  %v5163_v9 = vcombine.low %v1652_v40, %v1656_v4 }
 0x14b   : > { %v1077_v52 = vpop.f32.mrb[37].mxu0  ;;  %v1492_v19 = vpack.c.bf16 %v6446_v18, %v6435_v38  ;;  %v1664_v38 = vld [vmem:[%s6287_s9 + $0x2e0] sm:$0xff]  ;;  %v1597_v18 = vld [vmem:[%s6287_s9 + $0xc8] sm:$0xff] }
 0x14c   : > { %v5789_v10 = vpop.f32.mrb[38].mxu0  ;;  %3400 = vmatpush1.bf16.msra.mxu0 %v1461_v43 }
 0x14d   : > { %v1463_v60 = vpack.c.bf16 %v5789_v10, %v5788_v28  ;;  %v1080_v1 = vpop.f32.mrb[39].mxu0  ;;  %3401 = vmatprep.subr.bf16.mxu0 %v6016_v53  ;;  %3689 = vmatpush1.bf16.msra.mxu1 %v1477_v32  ;;  %v5108_v28 = vcombine.high %v1596_v25, %v1600_v30 }
 0x14e   : > { %v1462_v33 = vpack.c.bf16 %v1080_v1, %v1077_v52  ;;  %3690 = vmatprep.subr.bf16.mxu1 %v6016_v53 }
 0x14f   : > { %3149 = vmatmul.mubr.bf16.gmra.mrb[68].mxu1 %v5091_v20  ;;  %v5099_v20 = vcombine.low %v1588_v22, %v1592_v35 }
 0x150   : > { %3402 = vmatpush1.bf16.msra.mxu0 %v1462_v33  ;;  %3156 = vmatprep.mubr.bf16.mxu1 %v5100_v12  ;;  %v6469_v12 = vpop.f32.mrb[36].mxu1 }
 0x151   : > { %3403 = vmatprep.subr.bf16.mxu0 %v6016_v53  ;;  %3691 = vmatpush1.bf16.msra.mxu1 %v1478_v46  ;;  %v1608_v46 = vld [vmem:[%s6287_s9 + $0x120] sm:$0xff]  ;;  %v6475_v51 = vpop.f32.mrb[37].mxu1 }
 0x152   : > { %v5792_v32 = vpop.f32.mrb[40].mxu0  ;;  %3692 = vmatprep.subr.bf16.mxu1 %v6016_v53 }
 0x153   : > { %v1093_v43 = vpop.f32.mrb[41].mxu0 }
 0x154   : > { %v5793_v1 = vpop.f32.mrb[42].mxu0  ;;  %3404 = vmatpush1.bf16.msra.mxu0 %v1463_v60 }
 0x155   : > { %v1465_v52 = vpack.c.bf16 %v5793_v1, %v5792_v32  ;;  %v1096_v10 = vpop.f32.mrb[43].mxu0  ;;  %3405 = vmatprep.subr.bf16.mxu0 %v6016_v53  ;;  %3693 = vmatpush1.bf16.msra.mxu1 %v1479_v44  ;;  %v5116_v44 = vcombine.high %v1604_v45, %v1608_v46 }
 0x156   : > { %v1464_v39 = vpack.c.bf16 %v1096_v10, %v1093_v43  ;;  %3694 = vmatprep.subr.bf16.mxu1 %v6016_v53 }
 0x157   : > { %3157 = vmatmul.mubr.bf16.gmra.mrb[72].mxu1 %v5099_v20  ;;  %v5115_v20 = vcombine.low %v1604_v45, %v1608_v46 }
 0x158   : > { %3406 = vmatpush1.bf16.msra.mxu0 %v1464_v39  ;;  %3164 = vmatprep.mubr.bf16.mxu1 %v5108_v28  ;;  %v5124_v28 = vcombine.high %v1612_v49, %v1616_v55 }
 0x159   : > { %3407 = vmatprep.subr.bf16.mxu0 %v6016_v53  ;;  %3695 = vmatpush1.bf16.msra.mxu1 %v1480_v59  ;;  %v6478_v59 = vpop.f32.mrb[38].mxu1 }
 0x15a   : > { %v5796_v22 = vpop.f32.mrb[44].mxu0  ;;  %3696 = vmatprep.subr.bf16.mxu1 %v6016_v53  ;;  %v1495_v25 = vpack.c.bf16 %v6478_v59, %v6469_v12  ;;  %v6482_v30 = vpop.f32.mrb[39].mxu1 }
 0x15b   : > { %v1109_v35 = vpop.f32.mrb[45].mxu0  ;;  %v1494_v32 = vpack.c.bf16 %v6482_v30, %v6475_v51  ;;  %v6522_v48 = vpop.f32.mrb[40].mxu1  ;;  %v1668_v51 = vld [vmem:[%s6287_s9 + $0x300] sm:$0xff] }
 0x15c   : > { %v5797_v42 = vpop.f32.mrb[46].mxu0  ;;  %3408 = vmatpush1.bf16.msra.mxu0 %v1465_v52 }
 0x15d   : > { %v1467_v60 = vpack.c.bf16 %v5797_v42, %v5796_v22  ;;  %v1112_v33 = vpop.f32.mrb[47].mxu0  ;;  %3409 = vmatprep.subr.bf16.mxu0 %v6016_v53  ;;  %3697 = vmatpush1.bf16.msra.mxu1 %v1481_v57 }
 0x15e   : > { %v1466_v58 = vpack.c.bf16 %v1112_v33, %v1109_v35  ;;  %3698 = vmatprep.subr.bf16.mxu1 %v6016_v53  ;;  %v1640_v33 = vld [vmem:[%s6287_s9 + $0x220] sm:$0xff] }
 0x15f   : > { %3165 = vmatmul.mubr.bf16.gmra.mrb[76].mxu1 %v5107_v37 }
 0x160   : > { %3410 = vmatpush1.bf16.msra.mxu0 %v1466_v58  ;;  %3172 = vmatprep.mubr.bf16.mxu1 %v5116_v44 }
 0x161   : > { %3411 = vmatprep.subr.bf16.mxu0 %v6016_v53  ;;  %3699 = vmatpush1.bf16.msra.mxu1 %v1482_v7  ;;  %v1624_v7 = vld [vmem:[%s6287_s9 + $0x1a0] sm:$0xff] }
 0x162   : > { %v5800_v57 = vpop.f32.mrb[48].mxu0  ;;  %3700 = vmatprep.subr.bf16.mxu1 %v6016_v53  ;;  %v5132_v45 = vcombine.high %v1620_v6, %v1624_v7  ;;  %v5131_v13 = vcombine.low %v1620_v6, %v1624_v7  ;;  %v7521_v6 = vcombine.low %v6300_v15, %v6303_v17  ;;  %v1593_v7 = vld [vmem:[%s6287_s9 + $0xa8] sm:$0xff]  ;;  %v5164_v15 = vcombine.high %v1652_v40, %v1656_v4 }
 0x163   : > { %v1125_v43 = vpop.f32.mrb[49].mxu0  ;;  %v1641_v40 = vld [vmem:[%s6287_s9 + $0x228] sm:$0xff] }
 0x164   : > { %v5801_v1 = vpop.f32.mrb[50].mxu0  ;;  %3412 = vmatpush1.bf16.msra.mxu0 %v1467_v60  ;;  %v1636_v60 = vld [vmem:[%s6287_s9 + $0x200] sm:$0xff] }
 0x165   : > { %v1469_v52 = vpack.c.bf16 %v5801_v1, %v5800_v57  ;;  %v1128_v10 = vpop.f32.mrb[51].mxu0  ;;  %3413 = vmatprep.subr.bf16.mxu0 %v6016_v53  ;;  %3701 = vmatpush1.bf16.msra.mxu1 %v1483_v5  ;;  %v5148_v11 = vcombine.high %v1636_v60, %v1640_v33  ;;  %v1644_v1 = vld [vmem:[%s6287_s9 + $0x240] sm:$0xff]  ;;  %v5147_v56 = vcombine.low %v1636_v60, %v1640_v33  ;;  %v1621_v60 = vld [vmem:[%s6287_s9 + $0x188] sm:$0xff] }
 0x166   : > { %v1468_v0 = vpack.c.bf16 %v1128_v10, %v1125_v43  ;;  %3702 = vmatprep.subr.bf16.mxu1 %v6016_v53  ;;  %v1585_v10 = vld [vmem:[%s6287_s9 + $0x68] sm:$0xff] }
 0x167   : > { %3173 = vmatmul.mubr.bf16.gmra.mrb[80].mxu1 %v5115_v20  ;;  %v1625_v33 = vld [vmem:[%s6287_s9 + $0x1a8] sm:$0xff] }
 0x168   : > { %3414 = vmatpush1.bf16.msra.mxu0 %v1468_v0  ;;  %3180 = vmatprep.mubr.bf16.mxu1 %v5124_v28  ;;  %v1648_v28 = vld [vmem:[%s6287_s9 + $0x260] sm:$0xff]  ;;  %v7520_v0 = vpack.c.bf16 %v6415_v54, %v6410_v29 }
 0x169   : > { %3415 = vmatprep.subr.bf16.mxu0 %v6016_v53  ;;  %3703 = vmatpush1.bf16.msra.mxu1 %v1484_v26  ;;  %v1632_v26 = vld [vmem:[%s6287_s9 + $0x1e0] sm:$0xff]  ;;  %v5156_v2 = vcombine.high %v1644_v1, %v1648_v28  ;;  %v5155_v29 = vcombine.low %v1644_v1, %v1648_v28 }
 0x16a   : > { %v5804_v39 = vpop.f32.mrb[52].mxu0  ;;  %3704 = vmatprep.subr.bf16.mxu1 %v6016_v53  ;;  %v5139_v55 = vcombine.low %v1628_v24, %v1632_v26 }
 0x16b   : > { %v1141_v62 = vpop.f32.mrb[53].mxu0 }
 0x16c   : > { %v5805_v5 = vpop.f32.mrb[54].mxu0  ;;  %3416 = vmatpush1.bf16.msra.mxu0 %v1469_v52  ;;  %v1581_v52 = vld [vmem:[%s6287_s9 + $0x48] sm:$0xff] }
 0x16d   : > { %v1471_v46 = vpack.c.bf16 %v5805_v5, %v5804_v39  ;;  %v1144_v22 = vpop.f32.mrb[55].mxu0  ;;  %3417 = vmatprep.subr.bf16.mxu0 %v6016_v53  ;;  %3705 = vmatpush1.bf16.msra.mxu1 %v1485_v23  ;;  %v5140_v23 = vcombine.high %v1628_v24, %v1632_v26  ;;  %v5093_v54 = vcombine.low %v1581_v52, %v1585_v10  ;;  %v1660_v39 = vld [vmem:[%s6287_s9 + $0x2c0] sm:$0xff]  ;;  %v1605_v5 = vld [vmem:[%s6287_s9 + $0x108] sm:$0xff] }
 0x16e   : > { %v1470_v16 = vpack.c.bf16 %v1144_v22, %v1141_v62  ;;  %3706 = vmatprep.subr.bf16.mxu1 %v6016_v53 }
 0x16f   : > { %3181 = vmatmul.mubr.bf16.gmra.mrb[84].mxu1 %v5123_v3 }
 0x170   : > { %3418 = vmatpush1.bf16.msra.mxu0 %v1470_v16  ;;  %3188 = vmatprep.mubr.bf16.mxu1 %v5132_v45  ;;  %v1609_v45 = vld [vmem:[%s6287_s9 + $0x128] sm:$0xff] }
 0x171   : > { %3419 = vmatprep.subr.bf16.mxu0 %v6016_v53  ;;  %3707 = vmatpush1.bf16.msra.mxu1 %v1486_v50  ;;  %v6524_v50 = vpop.f32.mrb[41].mxu1  ;;  %v5118_v26 = vcombine.high %v1605_v5, %v1609_v45 }
 0x172   : > { %v5808_v35 = vpop.f32.mrb[56].mxu0  ;;  %3708 = vmatprep.subr.bf16.mxu1 %v6016_v53  ;;  %v6532_v31 = vpop.f32.mrb[42].mxu1 }
 0x173   : > { %v1157_v37 = vpop.f32.mrb[57].mxu0  ;;  %v6537_v58 = vpop.f32.mrb[43].mxu1 }
 0x174   : > { %v5809_v21 = vpop.f32.mrb[58].mxu0  ;;  %3420 = vmatpush1.bf16.msra.mxu0 %v1471_v46  ;;  %v1496_v57 = vpack.c.bf16 %v6537_v58, %v6524_v50  ;;  %v5860_v3 = vpop.f32.mrb[44].mxu1  ;;  %v1688_v50 = vld [vmem:[%s6287_s9 + $0x3a0] sm:$0xff]  ;;  %v5134_v58 = vcombine.high %v1621_v60, %v1625_v33 }
 0x175   : > { %v1473_v42 = vpack.c.bf16 %v5809_v21, %v5808_v35  ;;  %v1160_v44 = vpop.f32.mrb[59].mxu0  ;;  %3421 = vmatprep.subr.bf16.mxu0 %v6016_v53  ;;  %3709 = vmatpush1.bf16.msra.mxu1 %v1487_v47  ;;  %v1497_v47 = vpack.c.bf16 %v6532_v31, %v6522_v48  ;;  %v1365_v30 = vpop.f32.mrb[45].mxu1  ;;  %v1676_v35 = vld [vmem:[%s6287_s9 + $0x340] sm:$0xff]  ;;  %v1617_v21 = vld [vmem:[%s6287_s9 + $0x168] sm:$0xff] }
 0x176   : > { %v1472_v36 = vpack.c.bf16 %v1160_v44, %v1157_v37  ;;  %3710 = vmatprep.subr.bf16.mxu1 %v6016_v53  ;;  %v5861_v46 = vpop.f32.mrb[46].mxu1  ;;  %v1680_v37 = vld [vmem:[%s6287_s9 + $0x360] sm:$0xff] }
 0x177   : > { %3189 = vmatmul.mubr.bf16.gmra.mrb[88].mxu1 %v5131_v13  ;;  %v1499_v12 = vpack.c.bf16 %v5861_v46, %v5860_v3  ;;  %v1368_v59 = vpop.f32.mrb[47].mxu1  ;;  %v1613_v13 = vld [vmem:[%s6287_s9 + $0x148] sm:$0xff]  ;;  %v5188_v44 = vcombine.high %v1676_v35, %v1680_v37  ;;  %v1684_v48 = vld [vmem:[%s6287_s9 + $0x380] sm:$0xff]  ;;  %v5187_v31 = vcombine.low %v1676_v35, %v1680_v37 }
 0x178   : > { %3422 = vmatpush1.bf16.msra.mxu0 %v1472_v36  ;;  %3196 = vmatprep.mubr.bf16.mxu1 %v5140_v23  ;;  %v1498_v16 = vpack.c.bf16 %v1368_v59, %v1365_v30  ;;  %v5126_v36 = vcombine.high %v1613_v13, %v1617_v21  ;;  %v1716_v59 = vld [vmem:[%s6287_s9 + $0x480] sm:$0xff] }
 0x179   : > { %3423 = vmatprep.subr.bf16.mxu0 %v6016_v53  ;;  %3711 = vmatpush1.bf16.msra.mxu1 %v1488_v14 }
 0x17a   : > { %v5812_v41 = vpop.f32.mrb[60].mxu0  ;;  %3712 = vmatprep.subr.bf16.mxu1 %v6016_v53 }
 0x17b   : > { %v1173_v49 = vpop.f32.mrb[61].mxu0 }
 0x17c   : > { %v5813_v61 = vpop.f32.mrb[62].mxu0  ;;  %3424 = vmatpush1.bf16.msra.mxu0 %v1473_v42  ;;  %v5117_v42 = vcombine.low %v1605_v5, %v1609_v45 }
 0x17d   : > { %v1475_v14 = vpack.c.bf16 %v5813_v61, %v5812_v41  ;;  %v1176_v43 = vpop.f32.mrb[63].mxu0  ;;  %3425 = vmatprep.subr.bf16.mxu0 %v6016_v53  ;;  %3713 = vmatpush1.bf16.msra.mxu1 %v1489_v8  ;;  %v5094_v8 = vcombine.high %v1581_v52, %v1585_v10  ;;  %v5125_v41 = vcombine.low %v1613_v13, %v1617_v21  ;;  %v1633_v61 = vld [vmem:[%s6287_s9 + $0x1e8] sm:$0xff] }
 0x17e   : > { %v1474_v20 = vpack.c.bf16 %v1176_v43, %v1173_v49  ;;  %3714 = vmatprep.subr.bf16.mxu1 %v6016_v53  ;;  %v1692_v49 = vld [vmem:[%s6287_s9 + $0x3c0] sm:$0xff]  ;;  %v5195_v43 = vcombine.low %v1684_v48, %v1688_v50 }
 0x17f   : > { %3197 = vmatmul.mubr.bf16.gmra.mrb[92].mxu1 %v5139_v55  ;;  %v1696_v55 = vld [vmem:[%s6287_s9 + $0x3e0] sm:$0xff] }
 0x180   : > { %3426 = vmatpush1.bf16.msra.mxu0 %v1474_v20  ;;  %3204 = vmatprep.mubr.bf16.mxu1 %v5148_v11  ;;  %v5864_v11 = vpop.f32.mrb[48].mxu1  ;;  %v5133_v20 = vcombine.low %v1621_v60, %v1625_v33  ;;  %v5204_v28 = vcombine.high %v1692_v49, %v1696_v55  ;;  %v1661_v60 = vld [vmem:[%s6287_s9 + $0x2c8] sm:$0xff] }
 0x181   : > { %3427 = vmatprep.subr.bf16.mxu0 %v6016_v53  ;;  %3715 = vmatpush1.bf16.msra.mxu1 %v1490_v63  ;;  %v1589_v63 = vld [vmem:[%s6287_s9 + $0x88] sm:$0xff] }
 0x182   : > { %3716 = vmatprep.subr.bf16.mxu1 %v6016_v53  ;;  %v5102_v17 = vcombine.high %v1589_v63, %v1593_v7  ;;  %v5101_v27 = vcombine.low %v1589_v63, %v1593_v7  ;;  %v5203_v7 = vcombine.low %v1692_v49, %v1696_v55  ;;  %v1665_v33 = vld [vmem:[%s6287_s9 + $0x2e8] sm:$0xff]  ;;  %v1732_v55 = vld [vmem:[%s6287_s9 + $0x500] sm:$0xff] }
 0x183   : > { %v5174_v49 = vcombine.high %v1661_v60, %v1665_v33 }
 0x184   : > { %3428 = vmatpush1.bf16.msra.mxu0 %v1475_v14  ;;  %v1381_v14 = vpop.f32.mrb[49].mxu1 }
 0x185   : > { %3717 = vmatpush1.bf16.msra.mxu1 %v7520_v0  ;;  %3975 = vmatprep.subr.bf16.mxu0 %v6016_v53  ;;  %v5865_v1 = vpop.f32.mrb[50].mxu1  ;;  %v1704_v0 = vld [vmem:[%s6287_s9 + $0x420] sm:$0xff] }
 0x186   : > { %v1384_v10 = vpop.f32.mrb[51].mxu1 }
 0x187   : > { %3205 = vmatmul.mubr.bf16.gmra.mrb[96].mxu1 %v5147_v56  ;;  %3430 = vmatmul.mubr.bf16.vlgmr.msra.gmra.mrb[64].mxu0 %v7521_v6  ;;  %v1500_v56 = vpack.c.bf16 %v1384_v10, %v1381_v14  ;;  %v1637_v6 = vld [vmem:[%s6287_s9 + $0x208] sm:$0xff]  ;;  %v5868_v4 = vpop.f32.mrb[52].mxu1 }
 0x188   : > { %3212 = vmatprep.mubr.bf16.mxu1 %v5156_v2  ;;  %3437 = vmatprep.mubr.bf16.mxu0 %v5094_v8  ;;  %v1501_v2 = vpack.c.bf16 %v5865_v1, %v5864_v11  ;;  %v1700_v8 = vld [vmem:[%s6287_s9 + $0x400] sm:$0xff]  ;;  %v1397_v63 = vpop.f32.mrb[53].mxu1  ;;  %v5149_v30 = vcombine.low %v1637_v6, %v1641_v40  ;;  %v1673_v11 = vld [vmem:[%s6287_s9 + $0x328] sm:$0xff] }
 0x189   : > { %3976 = vmatpush1.bf16.msra.mxu0 %v1492_v19  ;;  %v1601_v19 = vld [vmem:[%s6287_s9 + $0xe8] sm:$0xff]  ;;  %v1740_v1 = vld [vmem:[%s6287_s9 + $0x540] sm:$0xff] }
 0x18a   : > { %3977 = vmatprep.subr.bf16.mxu0 %v6016_v53  ;;  %v5110_v62 = vcombine.high %v1597_v18, %v1601_v19  ;;  %v5109_v22 = vcombine.low %v1597_v18, %v1601_v19  ;;  %v1708_v18 = vld [vmem:[%s6287_s9 + $0x440] sm:$0xff]  ;;  %v1681_v10 = vld [vmem:[%s6287_s9 + $0x368] sm:$0xff] }
 0x18b   : > { %v1712_v19 = vld [vmem:[%s6287_s9 + $0x460] sm:$0xff] }
 0x18c   : > { %v5220_v5 = vcombine.high %v1708_v18, %v1712_v19  ;;  %v5219_v37 = vcombine.low %v1708_v18, %v1712_v19  ;;  %v1697_v18 = vld [vmem:[%s6287_s9 + $0x3e8] sm:$0xff] }
 0x18d   : > { %3978 = vmatpush1.bf16.msra.mxu0 %v1493_v34  ;;  %v5172_v34 = vcombine.high %v1660_v39, %v1664_v38 }
 0x18e   : > { %3979 = vmatprep.subr.bf16.mxu0 %v6016_v53 }
 0x18f   : > { %3213 = vmatmul.mubr.bf16.gmra.mrb[100].mxu1 %v5155_v29  ;;  %3438 = vmatmul.mubr.bf16.gmra.mrb[68].mxu0 %v5093_v54  ;;  %v5869_v54 = vpop.f32.mrb[54].mxu1 }
 0x190   : > { %3220 = vmatprep.mubr.bf16.mxu1 %v5164_v15  ;;  %3445 = vmatprep.mubr.bf16.mxu0 %v5102_v17  ;;  %v5212_v15 = vcombine.high %v1700_v8, %v1704_v0  ;;  %v5150_v17 = vcombine.high %v1637_v6, %v1641_v40  ;;  %v1748_v6 = vld [vmem:[%s6287_s9 + $0x580] sm:$0xff] }
 0x191   : > { %3980 = vmatpush1.bf16.msra.mxu0 %v1494_v32  ;;  %v1672_v32 = vld [vmem:[%s6287_s9 + $0x320] sm:$0xff] }
 0x192   : > { %3981 = vmatprep.subr.bf16.mxu0 %v6016_v53  ;;  %v5180_v24 = vcombine.high %v1668_v51, %v1672_v32  ;;  %v5179_v23 = vcombine.low %v1668_v51, %v1672_v32  ;;  %v5211_v51 = vcombine.low %v1700_v8, %v1704_v0  ;;  %v1752_v40 = vld [vmem:[%s6287_s9 + $0x5a0] sm:$0xff] }
 0x193   : > { %v5259_v19 = vcombine.low %v1748_v6, %v1752_v40 }
 0x195   : > { %3982 = vmatpush1.bf16.msra.mxu0 %v1495_v25  ;;  %v5171_v25 = vcombine.low %v1660_v39, %v1664_v38  ;;  %v1400_v39 = vpop.f32.mrb[55].mxu1 }
 0x196   : > { %3983 = vmatprep.subr.bf16.mxu0 %v6016_v53  ;;  %v1502_v38 = vpack.c.bf16 %v1400_v39, %v1397_v63  ;;  %v1689_v63 = vld [vmem:[%s6287_s9 + $0x3a8] sm:$0xff]  ;;  %v1760_v39 = vld [vmem:[%s6287_s9 + $0x5e0] sm:$0xff] }
 0x197   : > { %3221 = vmatmul.mubr.bf16.gmra.mrb[104].mxu1 %v5163_v9  ;;  %3446 = vmatmul.mubr.bf16.gmra.mrb[72].mxu0 %v5101_v27  ;;  %v1645_v9 = vld [vmem:[%s6287_s9 + $0x248] sm:$0xff] }
 0x198   : > { %3228 = vmatprep.mubr.bf16.mxu1 %v5172_v34  ;;  %3453 = vmatprep.mubr.bf16.mxu0 %v5110_v62  ;;  %v1649_v27 = vld [vmem:[%s6287_s9 + $0x268] sm:$0xff]  ;;  %v1503_v34 = vpack.c.bf16 %v5869_v54, %v5868_v4  ;;  %v5872_v62 = vpop.f32.mrb[56].mxu1  ;;  %v5260_v54 = vcombine.high %v1748_v6, %v1752_v40 }
 0x199   : > { %3984 = vmatpush1.bf16.msra.mxu0 %v1496_v57  ;;  %v1629_v57 = vld [vmem:[%s6287_s9 + $0x1c8] sm:$0xff]  ;;  %v1413_v3 = vpop.f32.mrb[57].mxu1  ;;  %v5158_v45 = vcombine.high %v1645_v9, %v1649_v27  ;;  %v5157_v13 = vcombine.low %v1645_v9, %v1649_v27 }
 0x19a   : > { %3985 = vmatprep.subr.bf16.mxu0 %v6016_v53  ;;  %v5142_v52 = vcombine.high %v1629_v57, %v1633_v61  ;;  %v5141_v29 = vcombine.low %v1629_v57, %v1633_v61  ;;  %v5873_v32 = vpop.f32.mrb[58].mxu1  ;;  %v1736_v57 = vld [vmem:[%s6287_s9 + $0x520] sm:$0xff]  ;;  %v1669_v61 = vld [vmem:[%s6287_s9 + $0x308] sm:$0xff] }
 0x19b   : > { %v1416_v46 = vpop.f32.mrb[59].mxu1  ;;  %v1685_v4 = vld [vmem:[%s6287_s9 + $0x388] sm:$0xff] }
 0x19c   : > { %v5197_v9 = vcombine.low %v1685_v4, %v1689_v63 }
 0x19d   : > { %3986 = vmatpush1.bf16.msra.mxu0 %v1497_v47  ;;  %v5196_v47 = vcombine.high %v1684_v48, %v1688_v50  ;;  %v1724_v48 = vld [vmem:[%s6287_s9 + $0x4c0] sm:$0xff] }
 0x19e   : > { %3987 = vmatprep.subr.bf16.mxu0 %v6016_v53  ;;  %v1728_v50 = vld [vmem:[%s6287_s9 + $0x4e0] sm:$0xff] }
 0x19f   : > { %3229 = vmatmul.mubr.bf16.gmra.mrb[108].mxu1 %v5171_v25  ;;  %3454 = vmatmul.mubr.bf16.gmra.mrb[76].mxu0 %v5109_v22  ;;  %v1720_v25 = vld [vmem:[%s6287_s9 + $0x4a0] sm:$0xff]  ;;  %v1653_v22 = vld [vmem:[%s6287_s9 + $0x288] sm:$0xff]  ;;  %v5235_v14 = vcombine.low %v1724_v48, %v1728_v50 }
 0x1a0   : > { %3236 = vmatprep.mubr.bf16.mxu1 %v5180_v24  ;;  %3461 = vmatprep.mubr.bf16.mxu0 %v5118_v26  ;;  %v1505_v24 = vpack.c.bf16 %v5873_v32, %v5872_v62  ;;  %v5876_v26 = vpop.f32.mrb[60].mxu1  ;;  %v1764_v62 = vld [vmem:[%s6287_s9 + $0x600] sm:$0xff] }
 0x1a1   : > { %3988 = vmatpush1.bf16.msra.mxu0 %v1498_v16  ;;  %v1657_v16 = vld [vmem:[%s6287_s9 + $0x2a8] sm:$0xff]  ;;  %v1429_v35 = vpop.f32.mrb[61].mxu1 }
 0x1a2   : > { %3989 = vmatprep.subr.bf16.mxu0 %v6016_v53  ;;  %v5877_v21 = vpop.f32.mrb[62].mxu1 }
 0x1a5   : > { %3990 = vmatpush1.bf16.msra.mxu0 %v1499_v12  ;;  %v1504_v12 = vpack.c.bf16 %v1416_v46, %v1413_v3  ;;  %v1768_v3 = vld [vmem:[%s6287_s9 + $0x620] sm:$0xff] }
 0x1a6   : > { %3991 = vmatprep.subr.bf16.mxu0 %v6016_v53 }
 0x1a7   : > { %3237 = vmatmul.mubr.bf16.gmra.mrb[112].mxu1 %v5179_v23  ;;  %3462 = vmatmul.mubr.bf16.gmra.mrb[80].mxu0 %v5117_v42  ;;  %v5228_v23 = vcombine.high %v1716_v59, %v1720_v25  ;;  %v5166_v42 = vcombine.high %v1653_v22, %v1657_v16 }
 0x1a8   : > { %3244 = vmatprep.mubr.bf16.mxu1 %v5188_v44  ;;  %3469 = vmatprep.mubr.bf16.mxu0 %v5126_v36  ;;  %v1432_v44 = vpop.f32.mrb[63].mxu1 }
 0x1a9   : > { %3992 = vmatpush1.bf16.msra.mxu0 %v1500_v56  ;;  %v1506_v36 = vpack.c.bf16 %v1432_v44, %v1429_v35  ;;  %v5243_v56 = vcombine.low %v1732_v55, %v1736_v57 }
 0x1aa   : > { %3993 = vmatprep.subr.bf16.mxu0 %v6016_v53 }
 0x1ad   : > { %3994 = vmatpush1.bf16.msra.mxu0 %v1501_v2  ;;  %v5181_v2 = vcombine.low %v1669_v61, %v1673_v11 }
 0x1ae   : > { %3995 = vmatprep.subr.bf16.mxu0 %v6016_v53 }
 0x1af   : > { %3245 = vmatmul.mubr.bf16.gmra.mrb[116].mxu1 %v5187_v31  ;;  %3470 = vmatmul.mubr.bf16.gmra.mrb[84].mxu0 %v5125_v41  ;;  %v1507_v31 = vpack.c.bf16 %v5877_v21, %v5876_v26  ;;  %v5227_v41 = vcombine.low %v1716_v59, %v1720_v25  ;;  %v1776_v59 = vld [vmem:[%s6287_s9 + $0x660] sm:$0xff]  ;;  %v1709_v25 = vld [vmem:[%s6287_s9 + $0x448] sm:$0xff] }
 0x1b0   : > { %3252 = vmatprep.mubr.bf16.mxu1 %v5196_v47  ;;  %3477 = vmatprep.mubr.bf16.mxu0 %v5134_v58  ;;  %v5165_v47 = vcombine.low %v1653_v22, %v1657_v16  ;;  %v5236_v58 = vcombine.high %v1724_v48, %v1728_v50  ;;  %v1713_v22 = vld [vmem:[%s6287_s9 + $0x468] sm:$0xff]  ;;  %v5275_v16 = vcombine.low %v1764_v62, %v1768_v3  ;;  %v1788_v50 = vld [vmem:[%s6287_s9 + $0x6c0] sm:$0xff] }
 0x1b1   : > { %3996 = vmatpush1.bf16.msra.mxu0 %v1502_v38  ;;  %v1693_v38 = vld [vmem:[%s6287_s9 + $0x3c8] sm:$0xff]  ;;  %v5222_v35 = vcombine.high %v1709_v25, %v1713_v22  ;;  %v5221_v44 = vcombine.low %v1709_v25, %v1713_v22 }
 0x1b2   : > { %3997 = vmatprep.subr.bf16.mxu0 %v6016_v53  ;;  %v1717_v21 = vld [vmem:[%s6287_s9 + $0x488] sm:$0xff] }
 0x1b5   : > { %3998 = vmatpush1.bf16.msra.mxu0 %v1503_v34  ;;  %v5206_v34 = vcombine.high %v1693_v38, %v1697_v18 }
 0x1b6   : > { %3999 = vmatprep.subr.bf16.mxu0 %v6016_v53 }
 0x1b7   : > { %3253 = vmatmul.mubr.bf16.gmra.mrb[120].mxu1 %v5195_v43  ;;  %3478 = vmatmul.mubr.bf16.gmra.mrb[88].mxu0 %v5133_v20  ;;  %v5173_v43 = vcombine.low %v1661_v60, %v1665_v33  ;;  %v5182_v20 = vcombine.high %v1669_v61, %v1673_v11  ;;  %v1792_v60 = vld [vmem:[%s6287_s9 + $0x6e0] sm:$0xff]  ;;  %v1725_v33 = vld [vmem:[%s6287_s9 + $0x4c8] sm:$0xff] }
 0x1b8   : > { %3260 = vmatprep.mubr.bf16.mxu1 %v5204_v28  ;;  %3485 = vmatprep.mubr.bf16.mxu0 %v5142_v52  ;;  %v1744_v28 = vld [vmem:[%s6287_s9 + $0x560] sm:$0xff]  ;;  %v1677_v52 = vld [vmem:[%s6287_s9 + $0x348] sm:$0xff] }
 0x1b9   : > { %4000 = vmatpush1.bf16.msra.mxu0 %v1504_v12  ;;  %v5252_v8 = vcombine.high %v1740_v1, %v1744_v28  ;;  %v5190_v0 = vcombine.high %v1677_v52, %v1681_v10  ;;  %v1772_v12 = vld [vmem:[%s6287_s9 + $0x640] sm:$0xff]  ;;  %v1733_v61 = vld [vmem:[%s6287_s9 + $0x508] sm:$0xff] }
 0x1ba   : > { %4001 = vmatprep.subr.bf16.mxu0 %v6016_v53  ;;  %v5284_v26 = vcombine.high %v1772_v12, %v1776_v59  ;;  %v1737_v11 = vld [vmem:[%s6287_s9 + $0x528] sm:$0xff] }
 0x1bd   : > { %4002 = vmatpush1.bf16.msra.mxu0 %v1505_v24 }
 0x1be   : > { %4003 = vmatprep.subr.bf16.mxu0 %v6016_v53 }
 0x1bf   : > { %3261 = vmatmul.mubr.bf16.gmra.mrb[124].mxu1 %v5203_v7  ;;  %3486 = vmatmul.mubr.bf16.gmra.mrb[92].mxu0 %v5141_v29  ;;  %v5251_v7 = vcombine.low %v1740_v1, %v1744_v28  ;;  %v5189_v29 = vcombine.low %v1677_v52, %v1681_v10  ;;  %v5246_v28 = vcombine.high %v1733_v61, %v1737_v11 }
 0x1c0   : > { %3268 = vmatprep.mubr.bf16.mxu1 %v5212_v15  ;;  %3493 = vmatprep.mubr.bf16.mxu0 %v5150_v17  ;;  %v5198_v15 = vcombine.high %v1685_v4, %v1689_v63  ;;  %v1756_v17 = vld [vmem:[%s6287_s9 + $0x5c0] sm:$0xff]  ;;  %v5245_v4 = vcombine.low %v1733_v61, %v1737_v11 }
 0x1c1   : > { %4004 = vmatpush1.bf16.msra.mxu0 %v1506_v36  ;;  %v5268_v27 = vcombine.high %v1756_v17, %v1760_v39  ;;  %v5267_v32 = vcombine.low %v1756_v17, %v1760_v39  ;;  %v1812_v17 = vld [vmem:[%s6287_s9 + $0x780] sm:$0xff] }
 0x1c2   : > { %4005 = vmatprep.subr.bf16.mxu0 %v6016_v53  ;;  %v5244_v53 = vcombine.high %v1732_v55, %v1736_v57  ;;  %v1796_v55 = vld [vmem:[%s6287_s9 + $0x700] sm:$0xff] }
 0x1c3   : > { %v1800_v57 = vld [vmem:[%s6287_s9 + $0x720] sm:$0xff] }
 0x1c4   : > { %v5308_v1 = vcombine.high %v1796_v55, %v1800_v57  ;;  %v5307_v40 = vcombine.low %v1796_v55, %v1800_v57  ;;  %v1816_v39 = vld [vmem:[%s6287_s9 + $0x7a0] sm:$0xff] }
 0x1c5   : > { %4006 = vmatpush1.bf16.msra.mxu0 %v1507_v31  ;;  %v1729_v31 = vld [vmem:[%s6287_s9 + $0x4e8] sm:$0xff] }
 0x1c7   : > { %3269 = vmatmul.mubr.bf16.gmra.mrb[128].mxu1 %v5211_v51  ;;  %3494 = vmatmul.mubr.bf16.gmra.mrb[96].mxu0 %v5149_v30  ;;  %v1701_v51 = vld [vmem:[%s6287_s9 + $0x408] sm:$0xff] }
 0x1c8   : > { %3276 = vmatprep.mubr.bf16.mxu1 %v5220_v5  ;;  %3501 = vmatprep.mubr.bf16.mxu0 %v5158_v45  ;;  %v1705_v30 = vld [vmem:[%s6287_s9 + $0x428] sm:$0xff]  ;;  %v5205_v5 = vcombine.low %v1693_v38, %v1697_v18  ;;  %v5276_v45 = vcombine.high %v1764_v62, %v1768_v3  ;;  %v5324_v62 = vcombine.high %v1812_v17, %v1816_v39 }
 0x1c9   : > { %v5214_v46 = vcombine.high %v1701_v51, %v1705_v30  ;;  %v5213_v24 = vcombine.low %v1701_v51, %v1705_v30  ;;  %v1749_v38 = vld [vmem:[%s6287_s9 + $0x588] sm:$0xff] }
 0x1ca   : > { %v1753_v18 = vld [vmem:[%s6287_s9 + $0x5a8] sm:$0xff] }
 0x1cb   : > { %v5262_v3 = vcombine.high %v1749_v38, %v1753_v18  ;;  %v5261_v25 = vcombine.low %v1749_v38, %v1753_v18  ;;  %v1598_v38 = vld [vmem:[%s6287_s9 + $0xd0] sm:$0xff] }
 0x1cc   : > { %v1602_v18 = vld [vmem:[%s6287_s9 + $0xf0] sm:$0xff] }
 0x1cf   : > { %3277 = vmatmul.mubr.bf16.gmra.mrb[132].mxu1 %v5219_v37  ;;  %3502 = vmatmul.mubr.bf16.gmra.mrb[100].mxu0 %v5157_v13  ;;  %v1780_v37 = vld [vmem:[%s6287_s9 + $0x680] sm:$0xff] }
 0x1d0   : > { %3284 = vmatprep.mubr.bf16.mxu1 %v5228_v23  ;;  %3509 = vmatprep.mubr.bf16.mxu0 %v5166_v42  ;;  %v1784_v13 = vld [vmem:[%s6287_s9 + $0x6a0] sm:$0xff]  ;;  %v1721_v23 = vld [vmem:[%s6287_s9 + $0x4a8] sm:$0xff]  ;;  %v5283_v42 = vcombine.low %v1772_v12, %v1776_v59  ;;  %v5323_v59 = vcombine.low %v1812_v17, %v1816_v39 }
 0x1d1   : > { %v5292_v36 = vcombine.high %v1780_v37, %v1784_v13  ;;  %v5230_v48 = vcombine.high %v1717_v21, %v1721_v23  ;;  %v1789_v17 = vld [vmem:[%s6287_s9 + $0x6c8] sm:$0xff] }
 0x1d2   : > { %v1793_v39 = vld [vmem:[%s6287_s9 + $0x6e8] sm:$0xff] }
 0x1d7   : > { %3285 = vmatmul.mubr.bf16.gmra.mrb[136].mxu1 %v5227_v41  ;;  %3510 = vmatmul.mubr.bf16.gmra.mrb[104].mxu0 %v5165_v47  ;;  %v5291_v41 = vcombine.low %v1780_v37, %v1784_v13  ;;  %v5229_v47 = vcombine.low %v1717_v21, %v1721_v23  ;;  %v1765_v37 = vld [vmem:[%s6287_s9 + $0x608] sm:$0xff]  ;;  %v1574_v21 = vld [vmem:[%s6287_s9 + $0x10] sm:$0xff] }
 0x1d8   : > { %3292 = vmatprep.mubr.bf16.mxu1 %v5236_v58  ;;  %3517 = vmatprep.mubr.bf16.mxu0 %v5174_v49  ;;  %v5300_v58 = vcombine.high %v1788_v50, %v1792_v60  ;;  %v5238_v49 = vcombine.high %v1725_v33, %v1729_v31  ;;  %v1769_v13 = vld [vmem:[%s6287_s9 + $0x628] sm:$0xff]  ;;  %v1578_v23 = vld [vmem:[%s6287_s9 + $0x30] sm:$0xff] }
 0x1d9   : > { %v5087_v57 = vcombine.low %v1574_v21, %v1578_v23  ;;  %v5277_v61 = vcombine.low %v1765_v37, %v1769_v13 }
 0x1df   : > { %3293 = vmatmul.mubr.bf16.gmra.mrb[140].mxu1 %v5235_v14  ;;  %3518 = vmatmul.mubr.bf16.gmra.mrb[108].mxu0 %v5173_v43  ;;  %v5299_v43 = vcombine.low %v1788_v50, %v1792_v60  ;;  %v5278_v50 = vcombine.high %v1765_v37, %v1769_v13  ;;  %v5088_v60 = vcombine.high %v1574_v21, %v1578_v23 }
 0x1e0   : > { %3300 = vmatprep.mubr.bf16.mxu1 %v5244_v53  ;;  %3525 = vmatprep.mubr.bf16.mxu0 %v5182_v20  ;;  %v5237_v53 = vcombine.low %v1725_v33, %v1729_v31 }
 0x1e7   : > { %3301 = vmatmul.mubr.bf16.gmra.mrb[144].mxu1 %v5243_v56  ;;  %3526 = vmatmul.mubr.bf16.gmra.mrb[112].mxu0 %v5181_v2  ;;  %v1804_v56 = vld [vmem:[%s6287_s9 + $0x740] sm:$0xff] }
 0x1e8   : > { %3308 = vmatprep.mubr.bf16.mxu1 %v5252_v8  ;;  %3533 = vmatprep.mubr.bf16.mxu0 %v5190_v0  ;;  %v1808_v2 = vld [vmem:[%s6287_s9 + $0x760] sm:$0xff]  ;;  %v1741_v8 = vld [vmem:[%s6287_s9 + $0x548] sm:$0xff] }
 0x1e9   : > { %v1745_v0 = vld [vmem:[%s6287_s9 + $0x568] sm:$0xff] }
 0x1ef   : > { %3309 = vmatmul.mubr.bf16.gmra.mrb[148].mxu1 %v5251_v7  ;;  %3534 = vmatmul.mubr.bf16.gmra.mrb[116].mxu0 %v5189_v29  ;;  %v5316_v7 = vcombine.high %v1804_v56, %v1808_v2  ;;  %v5254_v29 = vcombine.high %v1741_v8, %v1745_v0 }
 0x1f0   : > { %3316 = vmatprep.mubr.bf16.mxu1 %v5260_v54  ;;  %3541 = vmatprep.mubr.bf16.mxu0 %v5198_v15 }
 0x1f7   : > { %3317 = vmatmul.mubr.bf16.gmra.mrb[152].mxu1 %v5259_v19  ;;  %3542 = vmatmul.mubr.bf16.gmra.mrb[120].mxu0 %v5197_v9  ;;  %v5315_v9 = vcombine.low %v1804_v56, %v1808_v2  ;;  %v1590_v56 = vld [vmem:[%s6287_s9 + $0x90] sm:$0xff] }
 0x1f8   : > { %3324 = vmatprep.mubr.bf16.mxu1 %v5268_v27  ;;  %3549 = vmatprep.mubr.bf16.mxu0 %v5206_v34  ;;  %v5253_v27 = vcombine.low %v1741_v8, %v1745_v0  ;;  %v1594_v2 = vld [vmem:[%s6287_s9 + $0xb0] sm:$0xff] }
 0x1ff   : > { %3325 = vmatmul.mubr.bf16.gmra.mrb[156].mxu1 %v5267_v32  ;;  %3550 = vmatmul.mubr.bf16.gmra.mrb[124].mxu0 %v5205_v5  ;;  %v1820_v32 = vld [vmem:[%s6287_s9 + $0x7c0] sm:$0xff] }
 0x200   : > { %3332 = vmatprep.mubr.bf16.mxu1 %v5276_v45  ;;  %3557 = vmatprep.mubr.bf16.mxu0 %v5214_v46  ;;  %v1824_v5 = vld [vmem:[%s6287_s9 + $0x7e0] sm:$0xff]  ;;  %v1757_v45 = vld [vmem:[%s6287_s9 + $0x5c8] sm:$0xff] }
 0x201   : > { %v1761_v46 = vld [vmem:[%s6287_s9 + $0x5e8] sm:$0xff] }
 0x207   : > { %3333 = vmatmul.mubr.bf16.gmra.mrb[160].mxu1 %v5275_v16  ;;  %3558 = vmatmul.mubr.bf16.gmra.mrb[128].mxu0 %v5213_v24  ;;  %v5332_v16 = vcombine.high %v1820_v32, %v1824_v5  ;;  %v5270_v24 = vcombine.high %v1757_v45, %v1761_v46 }
 0x208   : > { %3340 = vmatprep.mubr.bf16.mxu1 %v5284_v26  ;;  %3565 = vmatprep.mubr.bf16.mxu0 %v5222_v35 }
 0x20f   : > { %3341 = vmatmul.mubr.bf16.gmra.mrb[164].mxu1 %v5283_v42  ;;  %3566 = vmatmul.mubr.bf16.gmra.mrb[132].mxu0 %v5221_v44  ;;  %v5331_v44 = vcombine.low %v1820_v32, %v1824_v5 }
 0x210   : > { %3348 = vmatprep.mubr.bf16.mxu1 %v5292_v36  ;;  %3573 = vmatprep.mubr.bf16.mxu0 %v5230_v48  ;;  %v5269_v36 = vcombine.low %v1757_v45, %v1761_v46  ;;  %v1797_v45 = vld [vmem:[%s6287_s9 + $0x708] sm:$0xff] }
 0x211   : > { %v1801_v46 = vld [vmem:[%s6287_s9 + $0x728] sm:$0xff] }
 0x212   : > { %v5310_v23 = vcombine.high %v1797_v45, %v1801_v46 }
 0x217   : > { %3349 = vmatmul.mubr.bf16.gmra.mrb[168].mxu1 %v5291_v41  ;;  %3574 = vmatmul.mubr.bf16.gmra.mrb[136].mxu0 %v5229_v47  ;;  %v1773_v41 = vld [vmem:[%s6287_s9 + $0x648] sm:$0xff] }
 0x218   : > { %3356 = vmatprep.mubr.bf16.mxu1 %v5300_v58  ;;  %3581 = vmatprep.mubr.bf16.mxu0 %v5238_v49  ;;  %v1777_v47 = vld [vmem:[%s6287_s9 + $0x668] sm:$0xff]  ;;  %v1582_v58 = vld [vmem:[%s6287_s9 + $0x50] sm:$0xff] }
 0x219   : > { %v1586_v49 = vld [vmem:[%s6287_s9 + $0x70] sm:$0xff]  ;;  %v5285_v0 = vcombine.low %v1773_v41, %v1777_v47 }
 0x21a   : > { %v6671_v14 = vpop.f32.mrb[64].mxu1 }
 0x21b   : > { %v3144_v20 = vpop.f32.mrb[65].mxu1 }
 0x21c   : > { %v6673_v52 = vpop.f32.mrb[66].mxu1 }
 0x21d   : > { %v3147_v10 = vpop.f32.mrb[67].mxu1 }
 0x21e   : > { %v1785_v10 = vld [vmem:[%s6287_s9 + $0x6a8] sm:$0xff] }
 0x21f   : > { %3357 = vmatmul.mubr.bf16.gmra.mrb[172].mxu1 %v5299_v43  ;;  %3582 = vmatmul.mubr.bf16.gmra.mrb[140].mxu0 %v5237_v53  ;;  %v5286_v43 = vcombine.high %v1773_v41, %v1777_v47  ;;  %v5096_v53 = vcombine.high %v1582_v58, %v1586_v49  ;;  %v1809_v41 = vld [vmem:[%s6287_s9 + $0x768] sm:$0xff]  ;;  %v1614_v47 = vld [vmem:[%s6287_s9 + $0x150] sm:$0xff] }
 0x220   : > { %3364 = vmatprep.mubr.bf16.mxu1 %v5308_v1  ;;  %3589 = vmatprep.mubr.bf16.mxu0 %v5246_v28  ;;  %v1781_v28 = vld [vmem:[%s6287_s9 + $0x688] sm:$0xff] }
 0x222   : > { %v6679_v6 = vpop.f32.mrb[68].mxu1 }
 0x223   : > { %v3152_v63 = vpop.f32.mrb[69].mxu1 }
 0x224   : > { %v6681_v54 = vpop.f32.mrb[70].mxu1  ;;  %v5294_v63 = vcombine.high %v1781_v28, %v1785_v10 }
 0x225   : > { %v3155_v15 = vpop.f32.mrb[71].mxu1 }
 0x227   : > { %3365 = vmatmul.mubr.bf16.gmra.mrb[176].mxu1 %v5307_v40  ;;  %3590 = vmatmul.mubr.bf16.gmra.mrb[144].mxu0 %v5245_v4  ;;  %v5095_v40 = vcombine.low %v1582_v58, %v1586_v49  ;;  %v1618_v58 = vld [vmem:[%s6287_s9 + $0x170] sm:$0xff] }
 0x228   : > { %3372 = vmatprep.mubr.bf16.mxu1 %v5316_v7  ;;  %3597 = vmatprep.mubr.bf16.mxu0 %v5254_v29  ;;  %v5104_v7 = vcombine.high %v1590_v56, %v1594_v2 }
 0x22a   : > { %v6687_v19 = vpop.f32.mrb[72].mxu1 }
 0x22b   : > { %v3160_v34 = vpop.f32.mrb[73].mxu1 }
 0x22c   : > { %v6689_v51 = vpop.f32.mrb[74].mxu1  ;;  %v5103_v34 = vcombine.low %v1590_v56, %v1594_v2 }
 0x22d   : > { %v3163_v30 = vpop.f32.mrb[75].mxu1 }
 0x22e   : > { %v5112_v30 = vcombine.high %v1598_v38, %v1602_v18 }
 0x22f   : > { %3373 = vmatmul.mubr.bf16.gmra.mrb[180].mxu1 %v5315_v9  ;;  %3598 = vmatmul.mubr.bf16.gmra.mrb[148].mxu0 %v5253_v27  ;;  %v5293_v27 = vcombine.low %v1781_v28, %v1785_v10  ;;  %v5128_v28 = vcombine.high %v1614_v47, %v1618_v58 }
 0x230   : > { %3380 = vmatprep.mubr.bf16.mxu1 %v5324_v62  ;;  %3605 = vmatprep.mubr.bf16.mxu0 %v5262_v3  ;;  %v5302_v3 = vcombine.high %v1789_v17, %v1793_v39 }
 0x232   : > { %v6695_v12 = vpop.f32.mrb[76].mxu1 }
 0x233   : > { %v3168_v22 = vpop.f32.mrb[77].mxu1 }
 0x234   : > { %v6697_v26 = vpop.f32.mrb[78].mxu1 }
 0x235   : > { %v3171_v35 = vpop.f32.mrb[79].mxu1 }
 0x236   : > { %v5111_v35 = vcombine.low %v1598_v38, %v1602_v18  ;;  %v5127_v38 = vcombine.low %v1614_v47, %v1618_v58 }
 0x237   : > { %3381 = vmatmul.mubr.bf16.gmra.mrb[184].mxu1 %v5323_v59  ;;  %3606 = vmatmul.mubr.bf16.gmra.mrb[152].mxu0 %v5261_v25  ;;  %v1606_v59 = vld [vmem:[%s6287_s9 + $0x110] sm:$0xff] }
 0x238   : > { %3388 = vmatprep.mubr.bf16.mxu1 %v5332_v16  ;;  %3613 = vmatprep.mubr.bf16.mxu0 %v5270_v24  ;;  %v1610_v25 = vld [vmem:[%s6287_s9 + $0x130] sm:$0xff]  ;;  %v5301_v24 = vcombine.low %v1789_v17, %v1793_v39 }
 0x23a   : > { %v6703_v42 = vpop.f32.mrb[80].mxu1 }
 0x23b   : > { %v3176_v48 = vpop.f32.mrb[81].mxu1 }
 0x23c   : > { %v6705_v33 = vpop.f32.mrb[82].mxu1 }
 0x23d   : > { %v3179_v31 = vpop.f32.mrb[83].mxu1 }
 0x23f   : > { %3389 = vmatmul.mubr.bf16.gmra.mrb[188].mxu1 %v5331_v44  ;;  %3614 = vmatmul.mubr.bf16.gmra.mrb[156].mxu0 %v5269_v36  ;;  %v5120_v44 = vcombine.high %v1606_v59, %v1610_v25 }
 0x240   : > { %3621 = vmatprep.mubr.bf16.mxu0 %v5278_v50  ;;  %3718 = vmatprep.mubr.bf16.mxu1 %v5088_v60 }
 0x242   : > { %v6711_v55 = vpop.f32.mrb[84].mxu1 }
 0x243   : > { %v3184_v11 = vpop.f32.mrb[85].mxu1 }
 0x244   : > { %v6713_v20 = vpop.f32.mrb[86].mxu1  ;;  %v5119_v11 = vcombine.low %v1606_v59, %v1610_v25  ;;  %v1825_v59 = vld [vmem:[%s6287_s9 + $0x7e8] sm:$0xff]  ;;  %v1630_v25 = vld [vmem:[%s6287_s9 + $0x1d0] sm:$0xff] }
 0x245   : > { %v3187_v1 = vpop.f32.mrb[87].mxu1 }
 0x247   : > { %3622 = vmatmul.mubr.bf16.gmra.mrb[160].mxu0 %v5277_v61  ;;  %3719 = vmatmul.mubr.bf16.vlgmr.msra.gmra.mrb[192].mxu1 %v5087_v57  ;;  %v5309_v61 = vcombine.low %v1797_v45, %v1801_v46 }
 0x248   : > { %3629 = vmatprep.mubr.bf16.mxu0 %v5286_v43  ;;  %3726 = vmatprep.mubr.bf16.mxu1 %v5096_v53 }
 0x24a   : > { %v6719_v8 = vpop.f32.mrb[88].mxu1 }
 0x24b   : > { %v3192_v4 = vpop.f32.mrb[89].mxu1 }
 0x24c   : > { %v6721_v29 = vpop.f32.mrb[90].mxu1  ;;  %v1817_v4 = vld [vmem:[%s6287_s9 + $0x7a8] sm:$0xff] }
 0x24d   : > { %v3195_v15 = vpop.f32.mrb[91].mxu1 }
 0x24f   : > { %3630 = vmatmul.mubr.bf16.gmra.mrb[164].mxu0 %v5285_v0  ;;  %3727 = vmatmul.mubr.bf16.gmra.mrb[196].mxu1 %v5095_v40 }
 0x250   : > { %3637 = vmatprep.mubr.bf16.mxu0 %v5294_v63  ;;  %3734 = vmatprep.mubr.bf16.mxu1 %v5104_v7  ;;  %v1622_v63 = vld [vmem:[%s6287_s9 + $0x190] sm:$0xff] }
 0x251   : > { %v1626_v7 = vld [vmem:[%s6287_s9 + $0x1b0] sm:$0xff] }
 0x252   : > { %v6727_v9 = vpop.f32.mrb[92].mxu1 }
 0x253   : > { %v3200_v62 = vpop.f32.mrb[93].mxu1 }
 0x254   : > { %v6729_v32 = vpop.f32.mrb[94].mxu1  ;;  %v5136_v62 = vcombine.high %v1622_v63, %v1626_v7 }
 0x255   : > { %v3203_v5 = vpop.f32.mrb[95].mxu1 }
 0x257   : > { %3638 = vmatmul.mubr.bf16.gmra.mrb[168].mxu0 %v5293_v27  ;;  %3735 = vmatmul.mubr.bf16.gmra.mrb[200].mxu1 %v5103_v34 }
 0x258   : > { %3645 = vmatprep.mubr.bf16.mxu0 %v5302_v3  ;;  %3742 = vmatprep.mubr.bf16.mxu1 %v5112_v30 }
 0x25a   : > { %v3431_v22 = vpop.f32.mrb[64].mxu0  ;;  %v6735_v16 = vpop.f32.mrb[96].mxu1 }
 0x25b   : > { %v6738_v37 = vadd.f32 %v3431_v22, %v6671_v14  ;;  %v3433_v13 = vpop.f32.mrb[65].mxu0  ;;  %v3208_v21 = vpop.f32.mrb[97].mxu1  ;;  %v1805_v14 = vld [vmem:[%s6287_s9 + $0x748] sm:$0xff]  ;;  %v1634_v22 = vld [vmem:[%s6287_s9 + $0x1f0] sm:$0xff] }
 0x25c   : > { %v3434_v36 = vpop.f32.mrb[66].mxu0  ;;  %v6740_v48 = vpop.f32.mrb[98].mxu1  ;;  %v5318_v1 = vcombine.high %v1805_v14, %v1809_v41  ;;  %v5317_v39 = vcombine.low %v1805_v14, %v1809_v41  ;;  %v5135_v21 = vcombine.low %v1622_v63, %v1626_v7 }
 0x25d   : > { %v6743_v50 = vadd.f32 %v3434_v36, %v6673_v52  ;;  %v3436_v60 = vpop.f32.mrb[67].mxu0  ;;  %v3211_v31 = vpop.f32.mrb[99].mxu1 }
 0x25e   : > { %v5144_v60 = vcombine.high %v1630_v25, %v1634_v22 }
 0x25f   : > { %3646 = vmatmul.mubr.bf16.gmra.mrb[172].mxu0 %v5301_v24  ;;  %3743 = vmatmul.mubr.bf16.gmra.mrb[204].mxu1 %v5111_v35 }
 0x260   : > { %3653 = vmatprep.mubr.bf16.mxu0 %v5310_v23  ;;  %3750 = vmatprep.mubr.bf16.mxu1 %v5120_v44 }
 0x262   : > { %v3439_v49 = vpop.f32.mrb[68].mxu0  ;;  %v6749_v57 = vpop.f32.mrb[100].mxu1 }
 0x263   : > { %v6752_v52 = vadd.f32 %v3439_v49, %v6679_v6  ;;  %v3441_v43 = vpop.f32.mrb[69].mxu0  ;;  %v3216_v53 = vpop.f32.mrb[101].mxu1  ;;  %v1813_v6 = vld [vmem:[%s6287_s9 + $0x788] sm:$0xff]  ;;  %v1642_v49 = vld [vmem:[%s6287_s9 + $0x230] sm:$0xff] }
 0x264   : > { %v3442_v10 = vpop.f32.mrb[70].mxu0  ;;  %v6754_v56 = vpop.f32.mrb[102].mxu1  ;;  %v5326_v34 = vcombine.high %v1813_v6, %v1817_v4  ;;  %v5325_v13 = vcombine.low %v1813_v6, %v1817_v4 }
 0x265   : > { %v6757_v2 = vadd.f32 %v3442_v10, %v6681_v54  ;;  %v3444_v0 = vpop.f32.mrb[71].mxu0  ;;  %v3219_v40 = vpop.f32.mrb[103].mxu1 }
 0x267   : > { %3654 = vmatmul.mubr.bf16.gmra.mrb[176].mxu0 %v5309_v61  ;;  %3751 = vmatmul.mubr.bf16.gmra.mrb[208].mxu1 %v5119_v11  ;;  %v1575_v61 = vld [vmem:[%s6287_s9 + $0x18] sm:$0xff] }
 0x268   : > { %3661 = vmatprep.mubr.bf16.mxu0 %v5318_v1  ;;  %3758 = vmatprep.mubr.bf16.mxu1 %v5128_v28  ;;  %v1579_v11 = vld [vmem:[%s6287_s9 + $0x38] sm:$0xff]  ;;  %v5143_v28 = vcombine.low %v1630_v25, %v1634_v22 }
 0x269   : > { %v5090_v6 = vcombine.high %v1575_v61, %v1579_v11 }
 0x26a   : > { %v3447_v15 = vpop.f32.mrb[72].mxu0  ;;  %v6763_v17 = vpop.f32.mrb[104].mxu1 }
 0x26b   : > { %v6766_v54 = vadd.f32 %v3447_v15, %v6687_v19  ;;  %v3449_v18 = vpop.f32.mrb[73].mxu0  ;;  %v3224_v27 = vpop.f32.mrb[105].mxu1  ;;  %v1821_v19 = vld [vmem:[%s6287_s9 + $0x7c8] sm:$0xff] }
 0x26c   : > { %v3450_v3 = vpop.f32.mrb[74].mxu0  ;;  %v6768_v30 = vpop.f32.mrb[106].mxu1  ;;  %v5334_v36 = vcombine.high %v1821_v19, %v1825_v59  ;;  %v5333_v1 = vcombine.low %v1821_v19, %v1825_v59  ;;  %v1583_v18 = vld [vmem:[%s6287_s9 + $0x58] sm:$0xff] }
 0x26d   : > { %v6771_v5 = vadd.f32 %v3450_v3, %v6689_v51  ;;  %v3452_v45 = vpop.f32.mrb[75].mxu0  ;;  %v3227_v46 = vpop.f32.mrb[107].mxu1  ;;  %v1587_v27 = vld [vmem:[%s6287_s9 + $0x78] sm:$0xff]  ;;  %v5089_v3 = vcombine.low %v1575_v61, %v1579_v11 }
 0x26e   : > { %v5098_v25 = vcombine.high %v1583_v18, %v1587_v27 }
 0x26f   : > { %3662 = vmatmul.mubr.bf16.gmra.mrb[180].mxu0 %v5317_v39  ;;  %3759 = vmatmul.mubr.bf16.gmra.mrb[212].mxu1 %v5127_v38  ;;  %v1650_v38 = vld [vmem:[%s6287_s9 + $0x270] sm:$0xff] }
 0x270   : > { %3669 = vmatprep.mubr.bf16.mxu0 %v5326_v34  ;;  %3766 = vmatprep.mubr.bf16.mxu1 %v5136_v62 }
 0x272   : > { %v3455_v24 = vpop.f32.mrb[76].mxu0  ;;  %v6777_v35 = vpop.f32.mrb[108].mxu1 }
 0x273   : > { %v6780_v51 = vadd.f32 %v3455_v24, %v6695_v12  ;;  %v3457_v23 = vpop.f32.mrb[77].mxu0  ;;  %v3232_v44 = vpop.f32.mrb[109].mxu1  ;;  %v1638_v12 = vld [vmem:[%s6287_s9 + $0x210] sm:$0xff] }
 0x274   : > { %v3458_v31 = vpop.f32.mrb[78].mxu0  ;;  %v6782_v14 = vpop.f32.mrb[110].mxu1  ;;  %v5152_v40 = vcombine.high %v1638_v12, %v1642_v49  ;;  %v5151_v45 = vcombine.low %v1638_v12, %v1642_v49  ;;  %v1658_v44 = vld [vmem:[%s6287_s9 + $0x2b0] sm:$0xff]  ;;  %v5097_v12 = vcombine.low %v1583_v18, %v1587_v27 }
 0x275   : > { %v6785_v41 = vadd.f32 %v3458_v31, %v6697_v26  ;;  %v3460_v47 = vpop.f32.mrb[79].mxu0  ;;  %v3235_v58 = vpop.f32.mrb[111].mxu1 }
 0x277   : > { %3670 = vmatmul.mubr.bf16.gmra.mrb[184].mxu0 %v5325_v13  ;;  %3767 = vmatmul.mubr.bf16.gmra.mrb[216].mxu1 %v5135_v21 }
 0x278   : > { %3677 = vmatprep.mubr.bf16.mxu0 %v5334_v36  ;;  %3774 = vmatprep.mubr.bf16.mxu1 %v5144_v60  ;;  %v1591_v36 = vld [vmem:[%s6287_s9 + $0x98] sm:$0xff] }
 0x279   : > { %v1595_v60 = vld [vmem:[%s6287_s9 + $0xb8] sm:$0xff] }
 0x27a   : > { %v3463_v43 = vpop.f32.mrb[80].mxu0  ;;  %v6791_v53 = vpop.f32.mrb[112].mxu1  ;;  %v5105_v18 = vcombine.low %v1591_v36, %v1595_v60 }
 0x27b   : > { %v6794_v26 = vadd.f32 %v3463_v43, %v6703_v42  ;;  %v3465_v10 = vpop.f32.mrb[81].mxu0  ;;  %v3240_v0 = vpop.f32.mrb[113].mxu1  ;;  %v1646_v42 = vld [vmem:[%s6287_s9 + $0x250] sm:$0xff]  ;;  %v5106_v43 = vcombine.high %v1591_v36, %v1595_v60 }
 0x27c   : > { %v3466_v4 = vpop.f32.mrb[82].mxu0  ;;  %v6796_v63 = vpop.f32.mrb[114].mxu1  ;;  %v5160_v59 = vcombine.high %v1646_v42, %v1650_v38  ;;  %v5159_v58 = vcombine.low %v1646_v42, %v1650_v38 }
 0x27d   : > { %v6799_v7 = vadd.f32 %v3466_v4, %v6705_v33  ;;  %v3468_v15 = vpop.f32.mrb[83].mxu0  ;;  %v3243_v39 = vpop.f32.mrb[115].mxu1  ;;  %v1599_v4 = vld [vmem:[%s6287_s9 + $0xd8] sm:$0xff] }
 0x27e   : > { %v1603_v15 = vld [vmem:[%s6287_s9 + $0xf8] sm:$0xff] }
 0x27f   : > { %3678 = vmatmul.mubr.bf16.gmra.mrb[188].mxu0 %v5333_v1  ;;  %3775 = vmatmul.mubr.bf16.gmra.mrb[220].mxu1 %v5143_v28 }
 0x280   : > { %3782 = vmatprep.mubr.bf16.mxu1 %v5152_v40  ;;  %4007 = vmatprep.mubr.bf16.mxu0 %v5090_v6  ;;  %v1666_v6 = vld [vmem:[%s6287_s9 + $0x2f0] sm:$0xff] }
 0x282   : > { %v3471_v34 = vpop.f32.mrb[84].mxu0  ;;  %v6805_v62 = vpop.f32.mrb[116].mxu1 }
 0x283   : > { %v6808_v33 = vadd.f32 %v3471_v34, %v6711_v55  ;;  %v3473_v46 = vpop.f32.mrb[85].mxu0  ;;  %v3248_v19 = vpop.f32.mrb[117].mxu1  ;;  %v1654_v55 = vld [vmem:[%s6287_s9 + $0x290] sm:$0xff] }
 0x284   : > { %v3474_v22 = vpop.f32.mrb[86].mxu0  ;;  %v6810_v24 = vpop.f32.mrb[118].mxu1  ;;  %v5168_v11 = vcombine.high %v1654_v55, %v1658_v44  ;;  %v5167_v38 = vcombine.low %v1654_v55, %v1658_v44  ;;  %v1611_v55 = vld [vmem:[%s6287_s9 + $0x138] sm:$0xff] }
 0x285   : > { %v6813_v13 = vadd.f32 %v3474_v22, %v6713_v20  ;;  %v3476_v21 = vpop.f32.mrb[87].mxu0  ;;  %v3251_v23 = vpop.f32.mrb[119].mxu1 }
 0x286   : > { %v1674_v21 = vld [vmem:[%s6287_s9 + $0x330] sm:$0xff]  ;;  %v1607_v23 = vld [vmem:[%s6287_s9 + $0x118] sm:$0xff] }
 0x287   : > { %3783 = vmatmul.mubr.bf16.gmra.mrb[224].mxu1 %v5151_v45  ;;  %4008 = vmatmul.mubr.bf16.vlgmr.msra.gmra.mrb[192].mxu0 %v5089_v3  ;;  %v5114_v45 = vcombine.high %v1599_v4, %v1603_v15 }
 0x288   : > { %3790 = vmatprep.mubr.bf16.mxu1 %v5160_v59  ;;  %4015 = vmatprep.mubr.bf16.mxu0 %v5098_v25 }
 0x28a   : > { %v3479_v31 = vpop.f32.mrb[88].mxu0  ;;  %v6819_v47 = vpop.f32.mrb[120].mxu1 }
 0x28b   : > { %v6822_v20 = vadd.f32 %v3479_v31, %v6719_v8  ;;  %v3481_v49 = vpop.f32.mrb[89].mxu0  ;;  %v3256_v61 = vpop.f32.mrb[121].mxu1  ;;  %v1662_v8 = vld [vmem:[%s6287_s9 + $0x2d0] sm:$0xff]  ;;  %v5113_v31 = vcombine.low %v1599_v4, %v1603_v15  ;;  %v1619_v4 = vld [vmem:[%s6287_s9 + $0x178] sm:$0xff] }
 0x28c   : > { %v3482_v1 = vpop.f32.mrb[90].mxu0  ;;  %v6824_v28 = vpop.f32.mrb[122].mxu1  ;;  %v5176_v3 = vcombine.high %v1662_v8, %v1666_v6  ;;  %v5175_v60 = vcombine.low %v1662_v8, %v1666_v6  ;;  %v5122_v61 = vcombine.high %v1607_v23, %v1611_v55  ;;  %v1682_v8 = vld [vmem:[%s6287_s9 + $0x370] sm:$0xff]  ;;  %v1615_v6 = vld [vmem:[%s6287_s9 + $0x158] sm:$0xff] }
 0x28d   : > { %v6827_v10 = vadd.f32 %v3482_v1, %v6721_v29  ;;  %v3484_v0 = vpop.f32.mrb[91].mxu0  ;;  %v3259_v40 = vpop.f32.mrb[123].mxu1 }
 0x28f   : > { %3791 = vmatmul.mubr.bf16.gmra.mrb[228].mxu1 %v5159_v58  ;;  %4016 = vmatmul.mubr.bf16.gmra.mrb[196].mxu0 %v5097_v12 }
 0x290   : > { %3798 = vmatprep.mubr.bf16.mxu1 %v5168_v11  ;;  %4023 = vmatprep.mubr.bf16.mxu0 %v5106_v43 }
 0x292   : > { %v3487_v39 = vpop.f32.mrb[92].mxu0  ;;  %v6833_v42 = vpop.f32.mrb[124].mxu1 }
 0x293   : > { %v6836_v29 = vadd.f32 %v3487_v39, %v6727_v9  ;;  %v3489_v27 = vpop.f32.mrb[93].mxu0  ;;  %v3264_v34 = vpop.f32.mrb[125].mxu1  ;;  %v1670_v9 = vld [vmem:[%s6287_s9 + $0x310] sm:$0xff] }
 0x294   : > { %v3490_v46 = vpop.f32.mrb[94].mxu0  ;;  %v6838_v19 = vpop.f32.mrb[126].mxu1  ;;  %v5184_v49 = vcombine.high %v1670_v9, %v1674_v21 }
 0x295   : > { %v6841_v59 = vadd.f32 %v3490_v46, %v6729_v32  ;;  %v3492_v25 = vpop.f32.mrb[95].mxu0  ;;  %v3267_v22 = vpop.f32.mrb[127].mxu1 }
 0x297   : > { %3799 = vmatmul.mubr.bf16.gmra.mrb[232].mxu1 %v5167_v38  ;;  %4024 = vmatmul.mubr.bf16.gmra.mrb[200].mxu0 %v5105_v18  ;;  %v5183_v38 = vcombine.low %v1670_v9, %v1674_v21  ;;  %v5121_v18 = vcombine.low %v1607_v23, %v1611_v55  ;;  %v1686_v21 = vld [vmem:[%s6287_s9 + $0x390] sm:$0xff]  ;;  %v1627_v55 = vld [vmem:[%s6287_s9 + $0x1b8] sm:$0xff] }
 0x298   : > { %3806 = vmatprep.mubr.bf16.mxu1 %v5176_v3  ;;  %4031 = vmatprep.mubr.bf16.mxu0 %v5114_v45  ;;  %v5130_v45 = vcombine.high %v1615_v6, %v1619_v4  ;;  %v1690_v23 = vld [vmem:[%s6287_s9 + $0x3b0] sm:$0xff] }
 0x29a   : > { %v3495_v44 = vpop.f32.mrb[96].mxu0  ;;  %v6847_v36 = vpop.f32.mrb[128].mxu1 }
 0x29b   : > { %v6850_v32 = vadd.f32 %v3495_v44, %v6735_v16  ;;  %v3497_v58 = vpop.f32.mrb[97].mxu0  ;;  %v3272_v12 = vpop.f32.mrb[129].mxu1  ;;  %v1678_v16 = vld [vmem:[%s6287_s9 + $0x350] sm:$0xff] }
 0x29c   : > { %v3498_v11 = vpop.f32.mrb[98].mxu0  ;;  %v6852_v43 = vpop.f32.mrb[130].mxu1  ;;  %v5192_v3 = vcombine.high %v1678_v16, %v1682_v8  ;;  %v5191_v58 = vcombine.low %v1678_v16, %v1682_v8  ;;  %v5129_v12 = vcombine.low %v1615_v6, %v1619_v4  ;;  %v1694_v8 = vld [vmem:[%s6287_s9 + $0x3d0] sm:$0xff]  ;;  %v1635_v4 = vld [vmem:[%s6287_s9 + $0x1f8] sm:$0xff] }
 0x29d   : > { %v6855_v1 = vadd.f32 %v3498_v11, %v6740_v48  ;;  %v3500_v0 = vpop.f32.mrb[99].mxu0  ;;  %v3275_v40 = vpop.f32.mrb[131].mxu1  ;;  %v5200_v11 = vcombine.high %v1686_v21, %v1690_v23  ;;  %v1698_v6 = vld [vmem:[%s6287_s9 + $0x3f0] sm:$0xff] }
 0x29f   : > { %3807 = vmatmul.mubr.bf16.gmra.mrb[236].mxu1 %v5175_v60  ;;  %4032 = vmatmul.mubr.bf16.gmra.mrb[204].mxu0 %v5113_v31 }
 0x2a0   : > { %3814 = vmatprep.mubr.bf16.mxu1 %v5184_v49  ;;  %4039 = vmatprep.mubr.bf16.mxu0 %v5122_v61 }
 0x2a2   : > { %v6861_v15 = vpop.f32.mrb[132].mxu1  ;;  %v3503_v39 = vpop.f32.mrb[100].mxu0 }
 0x2a3   : > { %v3280_v27 = vpop.f32.mrb[133].mxu1  ;;  %v6864_v48 = vadd.f32 %v3503_v39, %v6749_v57  ;;  %v3505_v34 = vpop.f32.mrb[101].mxu0  ;;  %v1623_v57 = vld [vmem:[%s6287_s9 + $0x198] sm:$0xff] }
 0x2a4   : > { %v6866_v46 = vpop.f32.mrb[134].mxu1  ;;  %v3506_v25 = vpop.f32.mrb[102].mxu0  ;;  %v5138_v0 = vcombine.high %v1623_v57, %v1627_v55 }
 0x2a5   : > { %v3283_v22 = vpop.f32.mrb[135].mxu1  ;;  %v6869_v44 = vadd.f32 %v3506_v25, %v6754_v56  ;;  %v3508_v9 = vpop.f32.mrb[103].mxu0 }
 0x2a6   : > { %v5208_v9 = vcombine.high %v1694_v8, %v1698_v6 }
 0x2a7   : > { %3815 = vmatmul.mubr.bf16.gmra.mrb[240].mxu1 %v5183_v38  ;;  %4040 = vmatmul.mubr.bf16.gmra.mrb[208].mxu0 %v5121_v18 }
 0x2a8   : > { %3822 = vmatprep.mubr.bf16.mxu1 %v5192_v3  ;;  %4047 = vmatprep.mubr.bf16.mxu0 %v5130_v45  ;;  %v5199_v3 = vcombine.low %v1686_v21, %v1690_v23  ;;  %v5137_v45 = vcombine.low %v1623_v57, %v1627_v55  ;;  %v1702_v23 = vld [vmem:[%s6287_s9 + $0x410] sm:$0xff]  ;;  %v1643_v55 = vld [vmem:[%s6287_s9 + $0x238] sm:$0xff] }
 0x2a9   : > { %v1706_v57 = vld [vmem:[%s6287_s9 + $0x430] sm:$0xff] }
 0x2aa   : > { %v6875_v60 = vpop.f32.mrb[136].mxu1  ;;  %v3511_v31 = vpop.f32.mrb[104].mxu0 }
 0x2ab   : > { %v3288_v49 = vpop.f32.mrb[137].mxu1  ;;  %v6878_v56 = vadd.f32 %v3511_v31, %v6763_v17  ;;  %v3513_v61 = vpop.f32.mrb[105].mxu0  ;;  %v1631_v17 = vld [vmem:[%s6287_s9 + $0x1d8] sm:$0xff] }
 0x2ac   : > { %v6880_v40 = vpop.f32.mrb[138].mxu1  ;;  %v3514_v39 = vpop.f32.mrb[106].mxu0  ;;  %v5146_v31 = vcombine.high %v1631_v17, %v1635_v4 }
 0x2ad   : > { %v3291_v38 = vpop.f32.mrb[139].mxu1  ;;  %v6883_v18 = vadd.f32 %v3514_v39, %v6768_v30  ;;  %v3516_v16 = vpop.f32.mrb[107].mxu0  ;;  %v5207_v39 = vcombine.low %v1694_v8, %v1698_v6  ;;  %v1710_v6 = vld [vmem:[%s6287_s9 + $0x450] sm:$0xff] }
 0x2ae   : > { %v5145_v38 = vcombine.low %v1631_v17, %v1635_v4  ;;  %v1714_v17 = vld [vmem:[%s6287_s9 + $0x470] sm:$0xff]  ;;  %v1651_v4 = vld [vmem:[%s6287_s9 + $0x278] sm:$0xff] }
 0x2af   : > { %3823 = vmatmul.mubr.bf16.gmra.mrb[244].mxu1 %v5191_v58  ;;  %4048 = vmatmul.mubr.bf16.gmra.mrb[212].mxu0 %v5129_v12 }
 0x2b0   : > { %3830 = vmatprep.mubr.bf16.mxu1 %v5200_v11  ;;  %4055 = vmatprep.mubr.bf16.mxu0 %v5138_v0 }
 0x2b2   : > { %v6889_v27 = vpop.f32.mrb[140].mxu1  ;;  %v3519_v34 = vpop.f32.mrb[108].mxu0 }
 0x2b3   : > { %v3296_v25 = vpop.f32.mrb[141].mxu1  ;;  %v6892_v30 = vadd.f32 %v3519_v34, %v6777_v35  ;;  %v3521_v22 = vpop.f32.mrb[109].mxu0  ;;  %v1639_v35 = vld [vmem:[%s6287_s9 + $0x218] sm:$0xff] }
 0x2b4   : > { %v6894_v58 = vpop.f32.mrb[142].mxu1  ;;  %v3522_v12 = vpop.f32.mrb[110].mxu0 }
 0x2b5   : > { %v3299_v49 = vpop.f32.mrb[143].mxu1  ;;  %v6897_v61 = vadd.f32 %v3522_v12, %v6782_v14  ;;  %v3524_v21 = vpop.f32.mrb[111].mxu0 }
 0x2b6   : > { %v5215_v21 = vcombine.low %v1702_v23, %v1706_v57 }
 0x2b7   : > { %3831 = vmatmul.mubr.bf16.gmra.mrb[248].mxu1 %v5199_v3  ;;  %4056 = vmatmul.mubr.bf16.gmra.mrb[216].mxu0 %v5137_v45  ;;  %v5216_v3 = vcombine.high %v1702_v23, %v1706_v57  ;;  %v5154_v45 = vcombine.high %v1639_v35, %v1643_v55  ;;  %v1718_v57 = vld [vmem:[%s6287_s9 + $0x490] sm:$0xff] }
 0x2b8   : > { %3838 = vmatprep.mubr.bf16.mxu1 %v5208_v9  ;;  %4063 = vmatprep.mubr.bf16.mxu0 %v5146_v31 }
 0x2ba   : > { %v6903_v11 = vpop.f32.mrb[144].mxu1  ;;  %v3527_v0 = vpop.f32.mrb[112].mxu0 }
 0x2bb   : > { %v3304_v16 = vpop.f32.mrb[145].mxu1  ;;  %v6906_v14 = vadd.f32 %v3527_v0, %v6791_v53  ;;  %v3529_v34 = vpop.f32.mrb[113].mxu0  ;;  %v1647_v53 = vld [vmem:[%s6287_s9 + $0x258] sm:$0xff]  ;;  %v5153_v0 = vcombine.low %v1639_v35, %v1643_v55  ;;  %v1722_v35 = vld [vmem:[%s6287_s9 + $0x4b0] sm:$0xff] }
 0x2bc   : > { %v6908_v25 = vpop.f32.mrb[146].mxu1  ;;  %v3530_v22 = vpop.f32.mrb[114].mxu0  ;;  %v5162_v34 = vcombine.high %v1647_v53, %v1651_v4  ;;  %v1659_v55 = vld [vmem:[%s6287_s9 + $0x2b8] sm:$0xff] }
 0x2bd   : > { %v3307_v9 = vpop.f32.mrb[147].mxu1  ;;  %v6911_v31 = vadd.f32 %v3530_v22, %v6796_v63  ;;  %v3532_v8 = vpop.f32.mrb[115].mxu0 }
 0x2bf   : > { %3839 = vmatmul.mubr.bf16.gmra.mrb[252].mxu1 %v5207_v39  ;;  %4064 = vmatmul.mubr.bf16.gmra.mrb[220].mxu0 %v5145_v38  ;;  %v5224_v38 = vcombine.high %v1710_v6, %v1714_v17 }
 0x2c0   : > { %3846 = vmatprep.mubr.bf16.mxu1 %v5216_v3  ;;  %4071 = vmatprep.mubr.bf16.mxu0 %v5154_v45 }
 0x2c2   : > { %v6917_v12 = vpop.f32.mrb[148].mxu1  ;;  %v3535_v49 = vpop.f32.mrb[116].mxu0 }
 0x2c3   : > { %v3312_v16 = vpop.f32.mrb[149].mxu1  ;;  %v6920_v63 = vadd.f32 %v3535_v49, %v6805_v62  ;;  %v3537_v39 = vpop.f32.mrb[117].mxu0  ;;  %v1655_v62 = vld [vmem:[%s6287_s9 + $0x298] sm:$0xff] }
 0x2c4   : > { %v6922_v3 = vpop.f32.mrb[150].mxu1  ;;  %v3538_v45 = vpop.f32.mrb[118].mxu0  ;;  %v5223_v16 = vcombine.low %v1710_v6, %v1714_v17  ;;  %v5161_v39 = vcombine.low %v1647_v53, %v1651_v4  ;;  %v1726_v17 = vld [vmem:[%s6287_s9 + $0x4d0] sm:$0xff]  ;;  %v1667_v4 = vld [vmem:[%s6287_s9 + $0x2f8] sm:$0xff] }
 0x2c5   : > { %7522 = vst [vmem:[#allocation3_spill] sm:$0xff] %v6920_v63  ;;  %v3315_v22 = vpop.f32.mrb[151].mxu1  ;;  %v6925_v9 = vadd.f32 %v3538_v45, %v6810_v24  ;;  %v3540_v23 = vpop.f32.mrb[119].mxu0  ;;  %v1730_v53 = vld [vmem:[%s6287_s9 + $0x4f0] sm:$0xff] }
 0x2c7   : > { %7523 = vst [vmem:[#allocation4_spill] sm:$0xff] %v6925_v9  ;;  %3847 = vmatmul.mubr.bf16.gmra.mrb[0].mxu1 %v5215_v21  ;;  %4072 = vmatmul.mubr.bf16.gmra.mrb[224].mxu0 %v5153_v0  ;;  %v5232_v0 = vcombine.high %v1718_v57, %v1722_v35 }
 0x2c8   : > { %3854 = vmatprep.mubr.bf16.mxu1 %v5224_v38  ;;  %4079 = vmatprep.mubr.bf16.mxu0 %v5162_v34  ;;  %v5170_v38 = vcombine.high %v1655_v62, %v1659_v55 }
 0x2ca   : > { %v6931_v8 = vpop.f32.mrb[152].mxu1  ;;  %v3543_v49 = vpop.f32.mrb[120].mxu0 }
 0x2cb   : > { %v3320_v22 = vpop.f32.mrb[153].mxu1  ;;  %v6934_v24 = vadd.f32 %v3543_v49, %v6819_v47  ;;  %v3545_v21 = vpop.f32.mrb[121].mxu0  ;;  %v1663_v47 = vld [vmem:[%s6287_s9 + $0x2d8] sm:$0xff] }
 0x2cc   : > { %v6936_v34 = vpop.f32.mrb[154].mxu1  ;;  %v3546_v45 = vpop.f32.mrb[122].mxu0  ;;  %v5231_v21 = vcombine.low %v1718_v57, %v1722_v35  ;;  %v1734_v35 = vld [vmem:[%s6287_s9 + $0x510] sm:$0xff] }
 0x2cd   : > { %7524 = vst [vmem:[#allocation5_spill] sm:$0xff] %v6934_v24  ;;  %v3323_v23 = vpop.f32.mrb[155].mxu1  ;;  %v6939_v9 = vadd.f32 %v3546_v45, %v6824_v28  ;;  %v3548_v6 = vpop.f32.mrb[123].mxu0  ;;  %v5169_v24 = vcombine.low %v1655_v62, %v1659_v55  ;;  %v1738_v62 = vld [vmem:[%s6287_s9 + $0x530] sm:$0xff]  ;;  %v1675_v55 = vld [vmem:[%s6287_s9 + $0x338] sm:$0xff] }
 0x2cf   : > { %7525 = vst [vmem:[#allocation6_spill] sm:$0xff] %v6939_v9  ;;  %3855 = vmatmul.mubr.bf16.gmra.mrb[4].mxu1 %v5223_v16  ;;  %4080 = vmatmul.mubr.bf16.gmra.mrb[228].mxu0 %v5161_v39  ;;  %v5240_v39 = vcombine.high %v1726_v17, %v1730_v53 }
 0x2d0   : > { %3862 = vmatprep.mubr.bf16.mxu1 %v5232_v0  ;;  %4087 = vmatprep.mubr.bf16.mxu0 %v5170_v38  ;;  %v5178_v0 = vcombine.high %v1663_v47, %v1667_v4 }
 0x2d2   : > { %v6945_v49 = vpop.f32.mrb[156].mxu1  ;;  %v3551_v22 = vpop.f32.mrb[124].mxu0 }
 0x2d3   : > { %v3328_v23 = vpop.f32.mrb[157].mxu1  ;;  %v6948_v28 = vadd.f32 %v3551_v22, %v6833_v42  ;;  %v3553_v16 = vpop.f32.mrb[125].mxu0  ;;  %v1671_v42 = vld [vmem:[%s6287_s9 + $0x318] sm:$0xff] }
 0x2d4   : > { %v6950_v38 = vpop.f32.mrb[158].mxu1  ;;  %v3554_v45 = vpop.f32.mrb[126].mxu0  ;;  %v5239_v16 = vcombine.low %v1726_v17, %v1730_v53  ;;  %v1742_v53 = vld [vmem:[%s6287_s9 + $0x550] sm:$0xff] }
 0x2d5   : > { %7526 = vst [vmem:[#allocation7_spill] sm:$0xff] %v6948_v28  ;;  %v3331_v6 = vpop.f32.mrb[159].mxu1  ;;  %v6953_v9 = vadd.f32 %v3554_v45, %v6838_v19  ;;  %v3556_v57 = vpop.f32.mrb[127].mxu0  ;;  %v5177_v28 = vcombine.low %v1663_v47, %v1667_v4  ;;  %v1746_v47 = vld [vmem:[%s6287_s9 + $0x570] sm:$0xff]  ;;  %v1683_v4 = vld [vmem:[%s6287_s9 + $0x378] sm:$0xff] }
 0x2d7   : > { %7527 = vst [vmem:[#allocation8_spill] sm:$0xff] %v6953_v9  ;;  %3863 = vmatmul.mubr.bf16.gmra.mrb[8].mxu1 %v5231_v21  ;;  %4088 = vmatmul.mubr.bf16.gmra.mrb[232].mxu0 %v5169_v24  ;;  %v5248_v21 = vcombine.high %v1734_v35, %v1738_v62 }
 0x2d8   : > { %3870 = vmatprep.mubr.bf16.mxu1 %v5240_v39  ;;  %4095 = vmatprep.mubr.bf16.mxu0 %v5178_v0  ;;  %v5186_v39 = vcombine.high %v1671_v42, %v1675_v55 }
 0x2da   : > { %v6959_v22 = vpop.f32.mrb[160].mxu1  ;;  %v3559_v23 = vpop.f32.mrb[128].mxu0 }
 0x2db   : > { %v3336_v6 = vpop.f32.mrb[161].mxu1  ;;  %v6962_v19 = vadd.f32 %v3559_v23, %v6847_v36  ;;  %v3561_v24 = vpop.f32.mrb[129].mxu0  ;;  %v1679_v36 = vld [vmem:[%s6287_s9 + $0x358] sm:$0xff] }
 0x2dc   : > { %v6964_v0 = vpop.f32.mrb[162].mxu1  ;;  %v3562_v45 = vpop.f32.mrb[130].mxu0  ;;  %v5247_v24 = vcombine.low %v1734_v35, %v1738_v62  ;;  %v1750_v62 = vld [vmem:[%s6287_s9 + $0x590] sm:$0xff] }
 0x2dd   : > { %7528 = vst [vmem:[#allocation9_spill] sm:$0xff] %v6962_v19  ;;  %v3339_v57 = vpop.f32.mrb[163].mxu1  ;;  %v6967_v9 = vadd.f32 %v3562_v45, %v6852_v43  ;;  %v3564_v17 = vpop.f32.mrb[131].mxu0  ;;  %v5185_v19 = vcombine.low %v1671_v42, %v1675_v55  ;;  %v1754_v42 = vld [vmem:[%s6287_s9 + $0x5b0] sm:$0xff]  ;;  %v1691_v55 = vld [vmem:[%s6287_s9 + $0x3b8] sm:$0xff] }
 0x2df   : > { %7529 = vst [vmem:[#allocation10_spill] sm:$0xff] %v6967_v9  ;;  %3871 = vmatmul.mubr.bf16.gmra.mrb[12].mxu1 %v5239_v16  ;;  %4096 = vmatmul.mubr.bf16.gmra.mrb[236].mxu0 %v5177_v28  ;;  %v5256_v16 = vcombine.high %v1742_v53, %v1746_v47 }
 0x2e0   : > { %3878 = vmatprep.mubr.bf16.mxu1 %v5248_v21  ;;  %4103 = vmatprep.mubr.bf16.mxu0 %v5186_v39  ;;  %v5194_v21 = vcombine.high %v1679_v36, %v1683_v4 }
 0x2e2   : > { %v6973_v23 = vpop.f32.mrb[164].mxu1  ;;  %v3567_v6 = vpop.f32.mrb[132].mxu0 }
 0x2e3   : > { %v3344_v57 = vpop.f32.mrb[165].mxu1  ;;  %v6976_v43 = vadd.f32 %v3567_v6, %v6861_v15  ;;  %v3569_v28 = vpop.f32.mrb[133].mxu0  ;;  %v1687_v15 = vld [vmem:[%s6287_s9 + $0x398] sm:$0xff] }
 0x2e4   : > { %v6978_v39 = vpop.f32.mrb[166].mxu1  ;;  %v3570_v45 = vpop.f32.mrb[134].mxu0  ;;  %v5255_v28 = vcombine.low %v1742_v53, %v1746_v47  ;;  %v1758_v47 = vld [vmem:[%s6287_s9 + $0x5d0] sm:$0xff] }
 0x2e5   : > { %7530 = vst [vmem:[#allocation11_spill] sm:$0xff] %v6976_v43  ;;  %v3347_v17 = vpop.f32.mrb[167].mxu1  ;;  %v6981_v9 = vadd.f32 %v3570_v45, %v6866_v46  ;;  %v3572_v35 = vpop.f32.mrb[135].mxu0  ;;  %v5193_v43 = vcombine.low %v1679_v36, %v1683_v4  ;;  %v1762_v36 = vld [vmem:[%s6287_s9 + $0x5f0] sm:$0xff]  ;;  %v1699_v4 = vld [vmem:[%s6287_s9 + $0x3f8] sm:$0xff] }
 0x2e7   : > { %7531 = vst [vmem:[#allocation12_spill] sm:$0xff] %v6981_v9  ;;  %3879 = vmatmul.mubr.bf16.gmra.mrb[16].mxu1 %v5247_v24  ;;  %4104 = vmatmul.mubr.bf16.gmra.mrb[240].mxu0 %v5185_v19  ;;  %v5264_v24 = vcombine.high %v1750_v62, %v1754_v42 }
 0x2e8   : > { %3886 = vmatprep.mubr.bf16.mxu1 %v5256_v16  ;;  %4111 = vmatprep.mubr.bf16.mxu0 %v5194_v21  ;;  %v5202_v16 = vcombine.high %v1687_v15, %v1691_v55 }
 0x2ea   : > { %v6987_v6 = vpop.f32.mrb[168].mxu1  ;;  %v3575_v57 = vpop.f32.mrb[136].mxu0 }
 0x2eb   : > { %v3352_v17 = vpop.f32.mrb[169].mxu1  ;;  %v6990_v46 = vadd.f32 %v3575_v57, %v6875_v60  ;;  %v3577_v19 = vpop.f32.mrb[137].mxu0  ;;  %v1695_v60 = vld [vmem:[%s6287_s9 + $0x3d8] sm:$0xff] }
 0x2ec   : > { %v6992_v21 = vpop.f32.mrb[170].mxu1  ;;  %v3578_v45 = vpop.f32.mrb[138].mxu0  ;;  %v5263_v19 = vcombine.low %v1750_v62, %v1754_v42  ;;  %v1766_v42 = vld [vmem:[%s6287_s9 + $0x610] sm:$0xff] }
 0x2ed   : > { %7532 = vst [vmem:[#allocation13_spill] sm:$0xff] %v6990_v46  ;;  %v3355_v35 = vpop.f32.mrb[171].mxu1  ;;  %v6995_v9 = vadd.f32 %v3578_v45, %v6880_v40  ;;  %v3580_v53 = vpop.f32.mrb[139].mxu0  ;;  %v5201_v46 = vcombine.low %v1687_v15, %v1691_v55  ;;  %v1770_v15 = vld [vmem:[%s6287_s9 + $0x630] sm:$0xff]  ;;  %v1707_v55 = vld [vmem:[%s6287_s9 + $0x438] sm:$0xff] }
 0x2ef   : > { %7533 = vst [vmem:[#allocation14_spill] sm:$0xff] %v6995_v9  ;;  %3887 = vmatmul.mubr.bf16.gmra.mrb[20].mxu1 %v5255_v28  ;;  %4112 = vmatmul.mubr.bf16.gmra.mrb[244].mxu0 %v5193_v43  ;;  %v5272_v28 = vcombine.high %v1758_v47, %v1762_v36 }
 0x2f0   : > { %3894 = vmatprep.mubr.bf16.mxu1 %v5264_v24  ;;  %4119 = vmatprep.mubr.bf16.mxu0 %v5202_v16  ;;  %v5210_v24 = vcombine.high %v1695_v60, %v1699_v4 }
 0x2f2   : > { %v7001_v57 = vpop.f32.mrb[172].mxu1  ;;  %v3583_v17 = vpop.f32.mrb[140].mxu0 }
 0x2f3   : > { %v3360_v35 = vpop.f32.mrb[173].mxu1  ;;  %v7004_v40 = vadd.f32 %v3583_v17, %v6889_v27  ;;  %v3585_v43 = vpop.f32.mrb[141].mxu0  ;;  %v1703_v27 = vld [vmem:[%s6287_s9 + $0x418] sm:$0xff] }
 0x2f4   : > { %v7006_v16 = vpop.f32.mrb[174].mxu1  ;;  %v3586_v45 = vpop.f32.mrb[142].mxu0  ;;  %v5271_v43 = vcombine.low %v1758_v47, %v1762_v36  ;;  %v1774_v36 = vld [vmem:[%s6287_s9 + $0x650] sm:$0xff] }
 0x2f5   : > { %7534 = vst [vmem:[#allocation15_spill] sm:$0xff] %v7004_v40  ;;  %v3363_v53 = vpop.f32.mrb[175].mxu1  ;;  %v7009_v9 = vadd.f32 %v3586_v45, %v6894_v58  ;;  %v3588_v62 = vpop.f32.mrb[143].mxu0  ;;  %v5209_v40 = vcombine.low %v1695_v60, %v1699_v4  ;;  %v1778_v60 = vld [vmem:[%s6287_s9 + $0x670] sm:$0xff]  ;;  %v1715_v4 = vld [vmem:[%s6287_s9 + $0x478] sm:$0xff] }
 0x2f7   : > { %7535 = vst [vmem:[#allocation16_spill] sm:$0xff] %v7009_v9  ;;  %3895 = vmatmul.mubr.bf16.gmra.mrb[24].mxu1 %v5263_v19  ;;  %4120 = vmatmul.mubr.bf16.gmra.mrb[248].mxu0 %v5201_v46  ;;  %v5280_v19 = vcombine.high %v1766_v42, %v1770_v15 }
 0x2f8   : > { %3902 = vmatprep.mubr.bf16.mxu1 %v5272_v28  ;;  %4127 = vmatprep.mubr.bf16.mxu0 %v5210_v24  ;;  %v5218_v28 = vcombine.high %v1703_v27, %v1707_v55 }
 0x2fa   : > { %v7015_v17 = vpop.f32.mrb[176].mxu1  ;;  %v3591_v35 = vpop.f32.mrb[144].mxu0 }
 0x2fb   : > { %v3368_v53 = vpop.f32.mrb[177].mxu1  ;;  %v7018_v58 = vadd.f32 %v3591_v35, %v6903_v11  ;;  %v3593_v46 = vpop.f32.mrb[145].mxu0  ;;  %v1711_v11 = vld [vmem:[%s6287_s9 + $0x458] sm:$0xff] }
 0x2fc   : > { %v7020_v24 = vpop.f32.mrb[178].mxu1  ;;  %v3594_v45 = vpop.f32.mrb[146].mxu0  ;;  %v5279_v46 = vcombine.low %v1766_v42, %v1770_v15  ;;  %v1782_v15 = vld [vmem:[%s6287_s9 + $0x690] sm:$0xff] }
 0x2fd   : > { %7536 = vst [vmem:[#allocation17_spill] sm:$0xff] %v7018_v58  ;;  %v3371_v62 = vpop.f32.mrb[179].mxu1  ;;  %v7023_v9 = vadd.f32 %v3594_v45, %v6908_v25  ;;  %v3596_v47 = vpop.f32.mrb[147].mxu0  ;;  %v5217_v58 = vcombine.low %v1703_v27, %v1707_v55  ;;  %v1786_v27 = vld [vmem:[%s6287_s9 + $0x6b0] sm:$0xff]  ;;  %v1723_v55 = vld [vmem:[%s6287_s9 + $0x4b8] sm:$0xff] }
 0x2ff   : > { %7537 = vst [vmem:[#allocation18_spill] sm:$0xff] %v7023_v9  ;;  %3903 = vmatmul.mubr.bf16.gmra.mrb[28].mxu1 %v5271_v43  ;;  %4128 = vmatmul.mubr.bf16.gmra.mrb[252].mxu0 %v5209_v40  ;;  %v5288_v43 = vcombine.high %v1774_v36, %v1778_v60 }
 0x300   : > { %3910 = vmatprep.mubr.bf16.mxu1 %v5280_v19  ;;  %4135 = vmatprep.mubr.bf16.mxu0 %v5218_v28  ;;  %v5226_v19 = vcombine.high %v1711_v11, %v1715_v4 }
 0x302   : > { %v7029_v35 = vpop.f32.mrb[180].mxu1  ;;  %v3599_v53 = vpop.f32.mrb[148].mxu0 }
 0x303   : > { %v3376_v62 = vpop.f32.mrb[181].mxu1  ;;  %v7032_v25 = vadd.f32 %v3599_v53, %v6917_v12  ;;  %v3601_v40 = vpop.f32.mrb[149].mxu0  ;;  %v1719_v12 = vld [vmem:[%s6287_s9 + $0x498] sm:$0xff] }
 0x304   : > { %v7034_v28 = vpop.f32.mrb[182].mxu1  ;;  %v3602_v45 = vpop.f32.mrb[150].mxu0  ;;  %v5287_v40 = vcombine.low %v1774_v36, %v1778_v60  ;;  %v1790_v60 = vld [vmem:[%s6287_s9 + $0x6d0] sm:$0xff] }
 0x305   : > { %7538 = vst [vmem:[#allocation19_spill] sm:$0xff] %v7032_v25  ;;  %v3379_v47 = vpop.f32.mrb[183].mxu1  ;;  %v7037_v9 = vadd.f32 %v3602_v45, %v6922_v3  ;;  %v3604_v42 = vpop.f32.mrb[151].mxu0  ;;  %v5225_v25 = vcombine.low %v1711_v11, %v1715_v4  ;;  %v1794_v11 = vld [vmem:[%s6287_s9 + $0x6f0] sm:$0xff]  ;;  %v1731_v4 = vld [vmem:[%s6287_s9 + $0x4f8] sm:$0xff] }
 0x306   : > { %v5303_v63 = vcombine.low %v1790_v60, %v1794_v11 }
 0x307   : > { %7539 = vst [vmem:[#allocation20_spill] sm:$0xff] %v7037_v9  ;;  %3911 = vmatmul.mubr.bf16.gmra.mrb[32].mxu1 %v5279_v46  ;;  %4136 = vmatmul.mubr.bf16.gmra.mrb[0].mxu0 %v5217_v58 }
 0x308   : > { %3918 = vmatprep.mubr.bf16.mxu1 %v5288_v43  ;;  %4143 = vmatprep.mubr.bf16.mxu0 %v5226_v19  ;;  %v5296_v43 = vcombine.high %v1782_v15, %v1786_v27  ;;  %v5234_v19 = vcombine.high %v1719_v12, %v1723_v55 }
 0x30a   : > { %v7043_v53 = vpop.f32.mrb[184].mxu1  ;;  %v3607_v62 = vpop.f32.mrb[152].mxu0 }
 0x30b   : > { %v3384_v47 = vpop.f32.mrb[185].mxu1  ;;  %v7046_v3 = vadd.f32 %v3607_v62, %v6931_v8  ;;  %v3609_v58 = vpop.f32.mrb[153].mxu0  ;;  %v1727_v8 = vld [vmem:[%s6287_s9 + $0x4d8] sm:$0xff] }
 0x30c   : > { %v7048_v46 = vpop.f32.mrb[186].mxu1  ;;  %v3610_v45 = vpop.f32.mrb[154].mxu0  ;;  %v5295_v58 = vcombine.low %v1782_v15, %v1786_v27  ;;  %v1798_v27 = vld [vmem:[%s6287_s9 + $0x710] sm:$0xff] }
 0x30d   : > { %7540 = vst [vmem:[#allocation21_spill] sm:$0xff] %v7046_v3  ;;  %v3387_v42 = vpop.f32.mrb[187].mxu1  ;;  %v7051_v9 = vadd.f32 %v3610_v45, %v6936_v34  ;;  %v3612_v36 = vpop.f32.mrb[155].mxu0  ;;  %v5233_v3 = vcombine.low %v1719_v12, %v1723_v55  ;;  %v1802_v12 = vld [vmem:[%s6287_s9 + $0x730] sm:$0xff]  ;;  %v1739_v55 = vld [vmem:[%s6287_s9 + $0x538] sm:$0xff] }
 0x30f   : > { %7541 = vst [vmem:[#allocation22_spill] sm:$0xff] %v7051_v9  ;;  %3919 = vmatmul.mubr.bf16.gmra.mrb[36].mxu1 %v5287_v40  ;;  %4144 = vmatmul.mubr.bf16.gmra.mrb[4].mxu0 %v5225_v25 }
 0x310   : > { %3926 = vmatprep.mubr.bf16.mxu1 %v5296_v43  ;;  %4151 = vmatprep.mubr.bf16.mxu0 %v5234_v19  ;;  %v5304_v43 = vcombine.high %v1790_v60, %v1794_v11  ;;  %v5242_v19 = vcombine.high %v1727_v8, %v1731_v4  ;;  %v1810_v11 = vld [vmem:[%s6287_s9 + $0x770] sm:$0xff] }
 0x312   : > { %v7057_v62 = vpop.f32.mrb[188].mxu1  ;;  %v3615_v47 = vpop.f32.mrb[156].mxu0 }
 0x313   : > { %v3392_v42 = vpop.f32.mrb[189].mxu1  ;;  %v7060_v34 = vadd.f32 %v3615_v47, %v6945_v49  ;;  %v3617_v25 = vpop.f32.mrb[157].mxu0  ;;  %v1735_v49 = vld [vmem:[%s6287_s9 + $0x518] sm:$0xff] }
 0x314   : > { %v7062_v40 = vpop.f32.mrb[190].mxu1  ;;  %v3618_v45 = vpop.f32.mrb[158].mxu0 }
 0x315   : > { %7542 = vst [vmem:[#allocation23_spill] sm:$0xff] %v7060_v34  ;;  %v3395_v36 = vpop.f32.mrb[191].mxu1  ;;  %v7065_v9 = vadd.f32 %v3618_v45, %v6950_v38  ;;  %v3620_v15 = vpop.f32.mrb[159].mxu0 }
 0x316   : > { %v5241_v36 = vcombine.low %v1727_v8, %v1731_v4  ;;  %v1743_v8 = vld [vmem:[%s6287_s9 + $0x558] sm:$0xff] }
 0x317   : > { %3927 = vmatmul.mubr.bf16.gmra.mrb[40].mxu1 %v5295_v58  ;;  %4152 = vmatmul.mubr.bf16.gmra.mrb[8].mxu0 %v5233_v3  ;;  %v1747_v4 = vld [vmem:[%s6287_s9 + $0x578] sm:$0xff] }
 0x318   : > { %3934 = vmatprep.mubr.bf16.mxu1 %v5304_v43  ;;  %4159 = vmatprep.mubr.bf16.mxu0 %v5242_v19  ;;  %v5312_v43 = vcombine.high %v1798_v27, %v1802_v12  ;;  %v5250_v19 = vcombine.high %v1735_v49, %v1739_v55 }
 0x31a   : > { %v3720_v47 = vpop.f32.mrb[192].mxu1  ;;  %v3623_v42 = vpop.f32.mrb[160].mxu0 }
 0x31b   : > { %v7072_v25 = vadd.f32 %v3720_v47, %v6738_v37  ;;  %v3722_v34 = vpop.f32.mrb[193].mxu1  ;;  %v7075_v38 = vadd.f32 %v3623_v42, %v6959_v22  ;;  %v3625_v3 = vpop.f32.mrb[161].mxu0  ;;  %v1806_v22 = vld [vmem:[%s6287_s9 + $0x750] sm:$0xff] }
 0x31c   : > { %v3723_v58 = vpop.f32.mrb[194].mxu1  ;;  %v3626_v45 = vpop.f32.mrb[162].mxu0 }
 0x31d   : > { %v7078_v15 = vadd.f32 %v3723_v58, %v6743_v50  ;;  %v3725_v37 = vpop.f32.mrb[195].mxu1  ;;  %v7081_v34 = vadd.f32 %v3626_v45, %v6964_v0  ;;  %v3628_v60 = vpop.f32.mrb[163].mxu0  ;;  %v5311_v58 = vcombine.low %v1798_v27, %v1802_v12  ;;  %v1818_v12 = vld [vmem:[%s6287_s9 + $0x7b0] sm:$0xff] }
 0x31e   : > { %v5249_v37 = vcombine.low %v1735_v49, %v1739_v55  ;;  %v1751_v49 = vld [vmem:[%s6287_s9 + $0x598] sm:$0xff] }
 0x31f   : > { %3935 = vmatmul.mubr.bf16.gmra.mrb[44].mxu1 %v5303_v63  ;;  %4160 = vmatmul.mubr.bf16.gmra.mrb[12].mxu0 %v5241_v36  ;;  %v1755_v55 = vld [vmem:[%s6287_s9 + $0x5b8] sm:$0xff] }
 0x320   : > { %3942 = vmatprep.mubr.bf16.mxu1 %v5312_v43  ;;  %4167 = vmatprep.mubr.bf16.mxu0 %v5250_v19  ;;  %v5320_v43 = vcombine.high %v1806_v22, %v1810_v11  ;;  %v5258_v19 = vcombine.high %v1743_v8, %v1747_v4 }
 0x322   : > { %v3728_v47 = vpop.f32.mrb[196].mxu1  ;;  %v3631_v42 = vpop.f32.mrb[164].mxu0 }
 0x323   : > { %v7088_v3 = vadd.f32 %v3728_v47, %v6752_v52  ;;  %v3730_v50 = vpop.f32.mrb[197].mxu1  ;;  %v7091_v0 = vadd.f32 %v3631_v42, %v6973_v23  ;;  %v3633_v63 = vpop.f32.mrb[165].mxu0  ;;  %v1814_v23 = vld [vmem:[%s6287_s9 + $0x790] sm:$0xff] }
 0x324   : > { %v3731_v36 = vpop.f32.mrb[198].mxu1  ;;  %v3634_v45 = vpop.f32.mrb[166].mxu0 }
 0x325   : > { %v7094_v60 = vadd.f32 %v3731_v36, %v6757_v2  ;;  %v3733_v52 = vpop.f32.mrb[199].mxu1  ;;  %v7097_v47 = vadd.f32 %v3634_v45, %v6978_v39  ;;  %v3636_v27 = vpop.f32.mrb[167].mxu0  ;;  %v5319_v36 = vcombine.low %v1806_v22, %v1810_v11  ;;  %v1826_v11 = vld [vmem:[%s6287_s9 + $0x7f0] sm:$0xff] }
 0x326   : > { %v5257_v52 = vcombine.low %v1743_v8, %v1747_v4  ;;  %v1759_v8 = vld [vmem:[%s6287_s9 + $0x5d8] sm:$0xff] }
 0x327   : > { %3943 = vmatmul.mubr.bf16.gmra.mrb[48].mxu1 %v5311_v58  ;;  %4168 = vmatmul.mubr.bf16.gmra.mrb[16].mxu0 %v5249_v37  ;;  %v1763_v4 = vld [vmem:[%s6287_s9 + $0x5f8] sm:$0xff] }
 0x328   : > { %3950 = vmatprep.mubr.bf16.mxu1 %v5320_v43  ;;  %4175 = vmatprep.mubr.bf16.mxu0 %v5258_v19  ;;  %v5328_v43 = vcombine.high %v1814_v23, %v1818_v12  ;;  %v5266_v19 = vcombine.high %v1751_v49, %v1755_v55 }
 0x32a   : > { %v3736_v42 = vpop.f32.mrb[200].mxu1  ;;  %v3639_v50 = vpop.f32.mrb[168].mxu0 }
 0x32b   : > { %v7104_v63 = vadd.f32 %v3736_v42, %v6766_v54  ;;  %v3738_v2 = vpop.f32.mrb[201].mxu1  ;;  %v7107_v39 = vadd.f32 %v3639_v50, %v6987_v6  ;;  %v3641_v58 = vpop.f32.mrb[169].mxu0  ;;  %v1822_v6 = vld [vmem:[%s6287_s9 + $0x7d0] sm:$0xff] }
 0x32c   : > { %v3739_v37 = vpop.f32.mrb[202].mxu1  ;;  %v3642_v45 = vpop.f32.mrb[170].mxu0 }
 0x32d   : > { %v7110_v27 = vadd.f32 %v3739_v37, %v6771_v5  ;;  %v3741_v54 = vpop.f32.mrb[203].mxu1  ;;  %v7113_v42 = vadd.f32 %v3642_v45, %v6992_v21  ;;  %v3644_v22 = vpop.f32.mrb[171].mxu0  ;;  %v5327_v37 = vcombine.low %v1814_v23, %v1818_v12  ;;  %v1767_v23 = vld [vmem:[%s6287_s9 + $0x618] sm:$0xff] }
 0x32e   : > { %v5265_v54 = vcombine.low %v1751_v49, %v1755_v55 }
 0x32f   : > { %7543 = vst [vmem:[#allocation24_spill] sm:$0xff] %v7113_v42  ;;  %3951 = vmatmul.mubr.bf16.gmra.mrb[52].mxu1 %v5319_v36  ;;  %4176 = vmatmul.mubr.bf16.gmra.mrb[20].mxu0 %v5257_v52 }
 0x330   : > { %3958 = vmatprep.mubr.bf16.mxu1 %v5328_v43  ;;  %4183 = vmatprep.mubr.bf16.mxu0 %v5266_v19  ;;  %v5336_v43 = vcombine.high %v1822_v6, %v1826_v11  ;;  %v5274_v19 = vcombine.high %v1759_v8, %v1763_v4 }
 0x332   : > { %v3744_v50 = vpop.f32.mrb[204].mxu1  ;;  %v3647_v2 = vpop.f32.mrb[172].mxu0 }
 0x333   : > { %v7120_v58 = vadd.f32 %v3744_v50, %v6780_v51  ;;  %v3746_v5 = vpop.f32.mrb[205].mxu1  ;;  %v7123_v21 = vadd.f32 %v3647_v2, %v7001_v57  ;;  %v3649_v36 = vpop.f32.mrb[173].mxu0  ;;  %v1771_v57 = vld [vmem:[%s6287_s9 + $0x638] sm:$0xff] }
 0x334   : > { %v3747_v52 = vpop.f32.mrb[206].mxu1  ;;  %v3650_v45 = vpop.f32.mrb[174].mxu0 }
 0x335   : > { %v7126_v22 = vadd.f32 %v3747_v52, %v6785_v41  ;;  %v3749_v42 = vpop.f32.mrb[207].mxu1  ;;  %v7129_v51 = vadd.f32 %v3650_v45, %v7006_v16  ;;  %v3652_v50 = vpop.f32.mrb[175].mxu0  ;;  %v5335_v41 = vcombine.low %v1822_v6, %v1826_v11  ;;  %v1775_v6 = vld [vmem:[%s6287_s9 + $0x658] sm:$0xff] }
 0x336   : > { %v5273_v42 = vcombine.low %v1759_v8, %v1763_v4  ;;  %v1779_v11 = vld [vmem:[%s6287_s9 + $0x678] sm:$0xff] }
 0x337   : > { %3959 = vmatmul.mubr.bf16.gmra.mrb[56].mxu1 %v5327_v37  ;;  %4184 = vmatmul.mubr.bf16.gmra.mrb[24].mxu0 %v5265_v54  ;;  %v5282_v54 = vcombine.high %v1767_v23, %v1771_v57 }
 0x338   : > { %3966 = vmatprep.mubr.bf16.mxu1 %v5336_v43  ;;  %4191 = vmatprep.mubr.bf16.mxu0 %v5274_v19 }
 0x33a   : > { %v3752_v12 = vpop.f32.mrb[208].mxu1  ;;  %v3655_v49 = vpop.f32.mrb[176].mxu0 }
 0x33b   : > { %v7134_v55 = vadd.f32 %v3752_v12, %v6794_v26  ;;  %v3754_v2 = vpop.f32.mrb[209].mxu1  ;;  %v7137_v16 = vadd.f32 %v3655_v49, %v7015_v17  ;;  %v3657_v5 = vpop.f32.mrb[177].mxu0  ;;  %v5290_v49 = vcombine.high %v1775_v6, %v1779_v11 }
 0x33c   : > { %v3755_v37 = vpop.f32.mrb[210].mxu1  ;;  %v3658_v36 = vpop.f32.mrb[178].mxu0 }
 0x33d   : > { %v7140_v52 = vadd.f32 %v3755_v37, %v6799_v7  ;;  %v3757_v43 = vpop.f32.mrb[211].mxu1  ;;  %v7143_v19 = vadd.f32 %v3658_v36, %v7020_v24  ;;  %v3660_v26 = vpop.f32.mrb[179].mxu0  ;;  %v5281_v7 = vcombine.low %v1767_v23, %v1771_v57 }
 0x33e   : > { %v5289_v43 = vcombine.low %v1775_v6, %v1779_v11 }
 0x33f   : > { %3967 = vmatmul.mubr.bf16.gmra.mrb[60].mxu1 %v5335_v41  ;;  %4192 = vmatmul.mubr.bf16.gmra.mrb[28].mxu0 %v5273_v42 }
 0x340   : > { %4199 = vmatprep.mubr.bf16.mxu0 %v5282_v54  ;;  %v1787_v54 = vld [vmem:[%s6287_s9 + $0x6b8] sm:$0xff] }
 0x342   : > { %v3760_v8 = vpop.f32.mrb[212].mxu1  ;;  %v3663_v17 = vpop.f32.mrb[180].mxu0 }
 0x343   : > { %v7148_v4 = vadd.f32 %v3760_v8, %v6808_v33  ;;  %v3762_v45 = vpop.f32.mrb[213].mxu1  ;;  %v7151_v50 = vadd.f32 %v3663_v17, %v7029_v35  ;;  %v3665_v24 = vpop.f32.mrb[181].mxu0  ;;  %v1783_v33 = vld [vmem:[%s6287_s9 + $0x698] sm:$0xff] }
 0x344   : > { %v3763_v12 = vpop.f32.mrb[214].mxu1  ;;  %v3666_v2 = vpop.f32.mrb[182].mxu0  ;;  %v5298_v17 = vcombine.high %v1783_v33, %v1787_v54 }
 0x345   : > { %v7154_v41 = vadd.f32 %v3763_v12, %v6813_v13  ;;  %v3765_v42 = vpop.f32.mrb[215].mxu1  ;;  %v7157_v5 = vadd.f32 %v3666_v2, %v7034_v28  ;;  %v3668_v37 = vpop.f32.mrb[183].mxu0 }
 0x346   : > { %v5297_v42 = vcombine.low %v1783_v33, %v1787_v54  ;;  %v7192_v33 = vld [vmem:[%s7518_s3] ss:$0 sm:$0xff] }
 0x347   : > { %4200 = vmatmul.mubr.bf16.gmra.mrb[32].mxu0 %v5281_v7 }
 0x348   : > { %4207 = vmatprep.mubr.bf16.mxu0 %v5290_v49  ;;  %v1795_v49 = vld [vmem:[%s6287_s9 + $0x6f8] sm:$0xff] }
 0x34a   : > { %v3768_v23 = vpop.f32.mrb[216].mxu1  ;;  %v3671_v35 = vpop.f32.mrb[184].mxu0 }
 0x34b   : > { %v7162_v57 = vadd.f32 %v3768_v23, %v6822_v20  ;;  %v3770_v36 = vpop.f32.mrb[217].mxu1  ;;  %v7165_v13 = vadd.f32 %v3671_v35, %v7043_v53  ;;  %v3673_v26 = vpop.f32.mrb[185].mxu0  ;;  %v1791_v20 = vld [vmem:[%s6287_s9 + $0x6d8] sm:$0xff] }
 0x34c   : > { %v3771_v28 = vpop.f32.mrb[218].mxu1  ;;  %v3674_v8 = vpop.f32.mrb[186].mxu0  ;;  %v5306_v35 = vcombine.high %v1791_v20, %v1795_v49 }
 0x34d   : > { %v7168_v45 = vadd.f32 %v3771_v28, %v6827_v10  ;;  %v3773_v7 = vpop.f32.mrb[219].mxu1  ;;  %v7171_v24 = vadd.f32 %v3674_v8, %v7048_v46  ;;  %v3676_v12 = vpop.f32.mrb[187].mxu0  ;;  %v1803_v8 = vld [vmem:[%s6287_s9 + $0x738] sm:$0xff] }
 0x34e   : > { %v5305_v12 = vcombine.low %v1791_v20, %v1795_v49  ;;  %v1807_v49 = vld [vmem:[%s6287_s9 + $0x758] sm:$0xff] }
 0x34f   : > { %4208 = vmatmul.mubr.bf16.gmra.mrb[36].mxu0 %v5289_v43 }
 0x350   : > { %4215 = vmatprep.mubr.bf16.mxu0 %v5298_v17 }
 0x352   : > { %v3776_v6 = vpop.f32.mrb[220].mxu1  ;;  %v3679_v53 = vpop.f32.mrb[188].mxu0 }
 0x353   : > { %v7176_v11 = vadd.f32 %v3776_v6, %v6836_v29  ;;  %v3778_v2 = vpop.f32.mrb[221].mxu1  ;;  %v7179_v10 = vadd.f32 %v3679_v53, %v7057_v62  ;;  %v3681_v37 = vpop.f32.mrb[189].mxu0  ;;  %v1799_v29 = vld [vmem:[%s6287_s9 + $0x718] sm:$0xff] }
 0x354   : > { %v3779_v46 = vpop.f32.mrb[222].mxu1  ;;  %v3682_v23 = vpop.f32.mrb[190].mxu0  ;;  %v5314_v2 = vcombine.high %v1799_v29, %v1803_v8 }
 0x355   : > { %v7182_v36 = vadd.f32 %v3779_v46, %v6841_v59  ;;  %v7185_v43 = vadd.f32 %v3682_v23, %v7062_v40  ;;  %v3684_v26 = vpop.f32.mrb[191].mxu0  ;;  %v3781_v28 = vpop.f32.mrb[223].mxu1 }
 0x356   : > { %v1811_v26 = vld [vmem:[%s6287_s9 + $0x778] sm:$0xff] }
 0x357   : > { %4216 = vmatmul.mubr.bf16.gmra.mrb[40].mxu0 %v5297_v42 }
 0x358   : > { %4223 = vmatprep.mubr.bf16.mxu0 %v5306_v35 }
 0x35a   : > { %v3784_v17 = vpop.f32.mrb[224].mxu1  ;;  %v4009_v62 = vpop.f32.mrb[192].mxu0 }
 0x35b   : > { %v7195_v59 = vadd.f32 %v3784_v17, %v6850_v32  ;;  %v4010_v40 = vadd.f32 %v4009_v62, %v7072_v25  ;;  %v3786_v54 = vpop.f32.mrb[225].mxu1  ;;  %v4011_v7 = vpop.f32.mrb[193].mxu0 }
 0x35c   : > { %v3787_v6 = vpop.f32.mrb[226].mxu1  ;;  %v4012_v53 = vpop.f32.mrb[194].mxu0  ;;  %v5313_v7 = vcombine.low %v1799_v29, %v1803_v8 }
 0x35d   : > { %v4466_v42 = vadd.f32 %v7192_v33, %v4010_v40  ;;  %v7200_v37 = vadd.f32 %v3787_v6, %v6855_v1  ;;  %v4013_v46 = vadd.f32 %v4012_v53, %v7078_v15  ;;  %v3789_v23 = vpop.f32.mrb[227].mxu1  ;;  %v4014_v32 = vpop.f32.mrb[195].mxu0  ;;  %v5322_v53 = vcombine.high %v1807_v49, %v1811_v26 }
 0x35e   : > { %v1815_v32 = vld [vmem:[%s6287_s9 + $0x798] sm:$0xff] }
 0x35f   : > { %v4467_v25 = vadd.f32 %v7192_v33, %v4013_v46  ;;  %4224 = vmatmul.mubr.bf16.gmra.mrb[44].mxu0 %v5305_v12  ;;  %v4530_v35 = vmax.f32 %v4466_v42, 0.0 }
 0x360   : > { %4231 = vmatprep.mubr.bf16.mxu0 %v5314_v2 }
 0x361   : > { %v4531_v20 = vmax.f32 %v4467_v25, 0.0  ;;  %v1819_v25 = vld [vmem:[%s6287_s9 + $0x7b8] sm:$0xff] }
 0x362   : > { %v3792_v1 = vpop.f32.mrb[228].mxu1  ;;  %v4017_v28 = vpop.f32.mrb[196].mxu0 }
 0x363   : > { %v5474_v15 = vpack.c.bf16 %v4531_v20, %v4530_v35  ;;  %v7213_v17 = vadd.f32 %v3792_v1, %v6864_v48  ;;  %v4018_v62 = vadd.f32 %v4017_v28, %v7088_v3  ;;  %v3794_v40 = vpop.f32.mrb[229].mxu1  ;;  %v4019_v54 = vpop.f32.mrb[197].mxu0 }
 0x364   : > { %v3795_v12 = vpop.f32.mrb[230].mxu1  ;;  %v4020_v6 = vpop.f32.mrb[198].mxu0 }
 0x365   : > { %5475 = vst [vmem:[%s7210_s14] sm:$0xff] %v5474_v15   ;;  %v4468_v2 = vadd.f32 %v7192_v33, %v4018_v62  ;;  %v7219_v42 = vadd.f32 %v3795_v12, %v6869_v44  ;;  %v4021_v46 = vadd.f32 %v4020_v6, %v7094_v60  ;;  %v3797_v48 = vpop.f32.mrb[231].mxu1  ;;  %v4022_v23 = vpop.f32.mrb[199].mxu0  ;;  %v5321_v62 = vcombine.low %v1807_v49, %v1811_v26 }
 0x366   : > { %v1827_v48 = vld [vmem:[%s6287_s9 + $0x7f8] sm:$0xff] }
 0x367   : > { %v4469_v3 = vadd.f32 %v7192_v33, %v4021_v46  ;;  %4232 = vmatmul.mubr.bf16.gmra.mrb[48].mxu0 %v5313_v7  ;;  %v4532_v29 = vmax.f32 %v4468_v2, 0.0  ;;  %v5330_v7 = vcombine.high %v1815_v32, %v1819_v25  ;;  %v1823_v46 = vld [vmem:[%s6287_s9 + $0x7d8] sm:$0xff] }
 0x368   : > { %4239 = vmatprep.mubr.bf16.mxu0 %v5322_v53 }
 0x369   : > { %v4533_v8 = vmax.f32 %v4469_v3, 0.0 }
 0x36a   : > { %v3800_v35 = vpop.f32.mrb[232].mxu1  ;;  %v4025_v20 = vpop.f32.mrb[200].mxu0 }
 0x36b   : > { %v5479_v1 = vpack.c.bf16 %v4533_v8, %v4532_v29  ;;  %v7226_v28 = vadd.f32 %v3800_v35, %v6878_v56  ;;  %v4026_v44 = vadd.f32 %v4025_v20, %v7104_v63  ;;  %v3802_v60 = vpop.f32.mrb[233].mxu1  ;;  %v4027_v15 = vpop.f32.mrb[201].mxu0  ;;  %v5329_v20 = vcombine.low %v1815_v32, %v1819_v25 }
 0x36c   : > { %v3803_v40 = vpop.f32.mrb[234].mxu1  ;;  %v4028_v54 = vpop.f32.mrb[202].mxu0  ;;  %v5338_v60 = vcombine.high %v1823_v46, %v1827_v48 }
 0x36d   : > { %5631 = vst [vmem:[%s7210_s14 + $0x8] sm:$0xff] %v5479_v1   ;;  %v4470_v12 = vadd.f32 %v7192_v33, %v4026_v44  ;;  %v7232_v6 = vadd.f32 %v3803_v40, %v6883_v18  ;;  %v4029_v53 = vadd.f32 %v4028_v54, %v7110_v27  ;;  %v3805_v56 = vpop.f32.mrb[235].mxu1  ;;  %v4030_v2 = vpop.f32.mrb[203].mxu0 }
 0x36f   : > { %v4471_v63 = vadd.f32 %v7192_v33, %v4029_v53  ;;  %4240 = vmatmul.mubr.bf16.gmra.mrb[52].mxu0 %v5321_v62  ;;  %v4534_v49 = vmax.f32 %v4470_v12, 0.0 }
 0x370   : > { %4247 = vmatprep.mubr.bf16.mxu0 %v5330_v7 }
 0x371   : > { %v4535_v26 = vmax.f32 %v4471_v63, 0.0 }
 0x372   : > { %v3808_v23 = vpop.f32.mrb[236].mxu1  ;;  %v4033_v3 = vpop.f32.mrb[204].mxu0 }
 0x373   : > { %v5484_v29 = vpack.c.bf16 %v4535_v26, %v4534_v49  ;;  %v7239_v8 = vadd.f32 %v3808_v23, %v6892_v30  ;;  %v4034_v18 = vadd.f32 %v4033_v3, %v7120_v58  ;;  %v3810_v27 = vpop.f32.mrb[237].mxu1  ;;  %v4035_v35 = vpop.f32.mrb[205].mxu0 }
 0x374   : > { %v3811_v1 = vpop.f32.mrb[238].mxu1  ;;  %v4036_v44 = vpop.f32.mrb[206].mxu0 }
 0x375   : > { %5632 = vst [vmem:[%s7210_s14 + $0x10] sm:$0xff] %v5484_v29   ;;  %v4472_v15 = vadd.f32 %v7192_v33, %v4034_v18  ;;  %v7245_v62 = vadd.f32 %v3811_v1, %v6897_v61  ;;  %v4037_v40 = vadd.f32 %v4036_v44, %v7126_v22  ;;  %v3813_v54 = vpop.f32.mrb[239].mxu1  ;;  %v4038_v7 = vpop.f32.mrb[207].mxu0  ;;  %v5337_v22 = vcombine.low %v1823_v46, %v1827_v48  ;;  %v7544_v1 = vld [vmem:[#allocation3_spill] sm:$0xff] }
 0x376   : > { %v7545_v7 = vld [vmem:[#allocation4_spill] sm:$0xff] }
 0x377   : > { %v4473_v30 = vadd.f32 %v7192_v33, %v4037_v40  ;;  %4248 = vmatmul.mubr.bf16.gmra.mrb[56].mxu0 %v5329_v20  ;;  %v4536_v58 = vmax.f32 %v4472_v15, 0.0 }
 0x378   : > { %4255 = vmatprep.mubr.bf16.mxu0 %v5338_v60 }
 0x379   : > { %v4537_v32 = vmax.f32 %v4473_v30, 0.0 }
 0x37a   : > { %v3816_v25 = vpop.f32.mrb[240].mxu1  ;;  %v4041_v12 = vpop.f32.mrb[208].mxu0 }
 0x37b   : > { %v5489_v53 = vpack.c.bf16 %v4537_v32, %v4536_v58  ;;  %v7250_v56 = vadd.f32 %v3816_v25, %v6906_v14  ;;  %v4042_v61 = vadd.f32 %v4041_v12, %v7134_v55  ;;  %v3818_v2 = vpop.f32.mrb[241].mxu1  ;;  %v4043_v63 = vpop.f32.mrb[209].mxu0 }
 0x37c   : > { %v3819_v49 = vpop.f32.mrb[242].mxu1  ;;  %v4044_v26 = vpop.f32.mrb[210].mxu0 }
 0x37d   : > { %5633 = vst [vmem:[%s7210_s14 + $0x18] sm:$0xff] %v5489_v53   ;;  %v4474_v23 = vadd.f32 %v7192_v33, %v4042_v61  ;;  %v7256_v3 = vadd.f32 %v3819_v49, %v6911_v31  ;;  %v4045_v29 = vadd.f32 %v4044_v26, %v7140_v52  ;;  %v3821_v18 = vpop.f32.mrb[243].mxu1  ;;  %v4046_v27 = vpop.f32.mrb[211].mxu0 }
 0x37f   : > { %v4475_v14 = vadd.f32 %v7192_v33, %v4045_v29  ;;  %4256 = vmatmul.mubr.bf16.gmra.mrb[60].mxu0 %v5337_v22  ;;  %v4538_v55 = vmax.f32 %v4474_v23, 0.0  ;;  %v7546_v22 = vld [vmem:[#allocation5_spill] sm:$0xff] }
 0x381   : > { %v4539_v35 = vmax.f32 %v4475_v14, 0.0  ;;  %v7547_v14 = vld [vmem:[#allocation6_spill] sm:$0xff] }
 0x382   : > { %v3824_v20 = vpop.f32.mrb[244].mxu1  ;;  %v4049_v46 = vpop.f32.mrb[212].mxu0 }
 0x383   : > { %v5494_v48 = vpack.c.bf16 %v4539_v35, %v4538_v55  ;;  %v7261_v44 = vadd.f32 %v3824_v20, %v7544_v1  ;;  %v4050_v60 = vadd.f32 %v4049_v46, %v7148_v4  ;;  %v3826_v31 = vpop.f32.mrb[245].mxu1  ;;  %v4051_v15 = vpop.f32.mrb[213].mxu0 }
 0x384   : > { %v3827_v40 = vpop.f32.mrb[246].mxu1  ;;  %v4052_v52 = vpop.f32.mrb[214].mxu0 }
 0x385   : > { %5634 = vst [vmem:[%s7210_s14 + $0x20] sm:$0xff] %v5494_v48   ;;  %v4476_v54 = vadd.f32 %v7192_v33, %v4050_v60  ;;  %v7267_v30 = vadd.f32 %v3827_v40, %v7545_v7  ;;  %v4053_v58 = vadd.f32 %v4052_v52, %v7154_v41  ;;  %v3829_v32 = vpop.f32.mrb[247].mxu1  ;;  %v4054_v25 = vpop.f32.mrb[215].mxu0  ;;  %v7548_v40 = vld [vmem:[#allocation7_spill] sm:$0xff] }
 0x387   : > { %v4477_v12 = vadd.f32 %v7192_v33, %v4053_v58  ;;  %v4540_v53 = vmax.f32 %v4476_v54, 0.0 }
 0x389   : > { %v4541_v61 = vmax.f32 %v4477_v12, 0.0  ;;  %v7549_v12 = vld [vmem:[#allocation8_spill] sm:$0xff] }
 0x38a   : > { %v3832_v4 = vpop.f32.mrb[248].mxu1  ;;  %v4057_v2 = vpop.f32.mrb[216].mxu0 }
 0x38b   : > { %v5499_v63 = vpack.c.bf16 %v4541_v61, %v4540_v53  ;;  %v7272_v49 = vadd.f32 %v3832_v4, %v7546_v22  ;;  %v4058_v26 = vadd.f32 %v4057_v2, %v7162_v57  ;;  %v3834_v23 = vpop.f32.mrb[249].mxu1  ;;  %v4059_v29 = vpop.f32.mrb[217].mxu0 }
 0x38c   : > { %v3835_v18 = vpop.f32.mrb[250].mxu1  ;;  %v4060_v27 = vpop.f32.mrb[218].mxu0 }
 0x38d   : > { %5635 = vst [vmem:[%s7210_s14 + $0x28] sm:$0xff] %v5499_v63   ;;  %v4478_v41 = vadd.f32 %v7192_v33, %v4058_v26  ;;  %v7278_v55 = vadd.f32 %v3835_v18, %v7547_v14  ;;  %v4061_v35 = vadd.f32 %v4060_v27, %v7168_v45  ;;  %v3837_v20 = vpop.f32.mrb[251].mxu1  ;;  %v4062_v46 = vpop.f32.mrb[219].mxu0  ;;  %v7550_v18 = vld [vmem:[#allocation9_spill] sm:$0xff] }
 0x38f   : > { %v4479_v48 = vadd.f32 %v7192_v33, %v4061_v35  ;;  %v4542_v1 = vmax.f32 %v4478_v41, 0.0 }
 0x391   : > { %v4543_v60 = vmax.f32 %v4479_v48, 0.0  ;;  %v7551_v48 = vld [vmem:[#allocation10_spill] sm:$0xff] }
 0x392   : > { %v3840_v57 = vpop.f32.mrb[252].mxu1  ;;  %v4065_v31 = vpop.f32.mrb[220].mxu0 }
 0x393   : > { %v5504_v15 = vpack.c.bf16 %v4543_v60, %v4542_v1  ;;  %v7283_v52 = vadd.f32 %v3840_v57, %v7548_v40  ;;  %v4066_v54 = vadd.f32 %v4065_v31, %v7176_v11  ;;  %v3842_v7 = vpop.f32.mrb[253].mxu1  ;;  %v4067_v58 = vpop.f32.mrb[221].mxu0 }
 0x394   : > { %v3843_v32 = vpop.f32.mrb[254].mxu1  ;;  %v4068_v25 = vpop.f32.mrb[222].mxu0 }
 0x395   : > { %5636 = vst [vmem:[%s7210_s14 + $0x30] sm:$0xff] %v5504_v15   ;;  %v4480_v45 = vadd.f32 %v7192_v33, %v4066_v54  ;;  %v7289_v53 = vadd.f32 %v3843_v32, %v7549_v12  ;;  %v4069_v61 = vadd.f32 %v4068_v25, %v7182_v36  ;;  %v3845_v4 = vpop.f32.mrb[255].mxu1  ;;  %v4070_v2 = vpop.f32.mrb[223].mxu0  ;;  %v7552_v32 = vld [vmem:[#allocation11_spill] sm:$0xff] }
 0x397   : > { %v4481_v63 = vadd.f32 %v7192_v33, %v4069_v61  ;;  %v4544_v22 = vmax.f32 %v4480_v45, 0.0 }
 0x399   : > { %v4545_v26 = vmax.f32 %v4481_v63, 0.0  ;;  %v7553_v63 = vld [vmem:[#allocation12_spill] sm:$0xff] }
 0x39a   : > { %v3848_v11 = vpop.f32.mrb[0].mxu1  ;;  %v4073_v23 = vpop.f32.mrb[224].mxu0 }
 0x39b   : > { %v5509_v29 = vpack.c.bf16 %v4545_v26, %v4544_v22  ;;  %v7294_v27 = vadd.f32 %v3848_v11, %v7550_v18  ;;  %v4074_v41 = vadd.f32 %v4073_v23, %v7195_v59  ;;  %v3850_v14 = vpop.f32.mrb[1].mxu1  ;;  %v4075_v35 = vpop.f32.mrb[225].mxu0 }
 0x39c   : > { %v3851_v20 = vpop.f32.mrb[2].mxu1  ;;  %v4076_v46 = vpop.f32.mrb[226].mxu0 }
 0x39d   : > { %5637 = vst [vmem:[%s7210_s14 + $0x38] sm:$0xff] %v5509_v29   ;;  %v4482_v36 = vadd.f32 %v7192_v33, %v4074_v41  ;;  %v7300_v1 = vadd.f32 %v3851_v20, %v7551_v48  ;;  %v4077_v60 = vadd.f32 %v4076_v46, %v7200_v37  ;;  %v3853_v57 = vpop.f32.mrb[3].mxu1  ;;  %v4078_v31 = vpop.f32.mrb[227].mxu0  ;;  %v7554_v20 = vld [vmem:[#allocation13_spill] sm:$0xff] }
 0x39f   : > { %v4483_v15 = vadd.f32 %v7192_v33, %v4077_v60  ;;  %v4546_v40 = vmax.f32 %v4482_v36, 0.0 }
 0x3a1   : > { %v4547_v54 = vmax.f32 %v4483_v15, 0.0  ;;  %v7555_v15 = vld [vmem:[#allocation14_spill] sm:$0xff] }
 0x3a2   : > { %v3856_v59 = vpop.f32.mrb[4].mxu1  ;;  %v4081_v7 = vpop.f32.mrb[228].mxu0 }
 0x3a3   : > { %v5514_v58 = vpack.c.bf16 %v4547_v54, %v4546_v40  ;;  %v7305_v25 = vadd.f32 %v3856_v59, %v7552_v32  ;;  %v4082_v45 = vadd.f32 %v4081_v7, %v7213_v17  ;;  %v3858_v12 = vpop.f32.mrb[5].mxu1  ;;  %v4083_v61 = vpop.f32.mrb[229].mxu0 }
 0x3a4   : > { %v3859_v4 = vpop.f32.mrb[6].mxu1  ;;  %v4084_v2 = vpop.f32.mrb[230].mxu0 }
 0x3a5   : > { %5638 = vst [vmem:[%s7210_s14 + $0x40] sm:$0xff] %v5514_v58   ;;  %v4484_v37 = vadd.f32 %v7192_v33, %v4082_v45  ;;  %v7311_v22 = vadd.f32 %v3859_v4, %v7553_v63  ;;  %v4085_v26 = vadd.f32 %v4084_v2, %v7219_v42  ;;  %v3861_v11 = vpop.f32.mrb[7].mxu1  ;;  %v4086_v23 = vpop.f32.mrb[231].mxu0  ;;  %v7556_v4 = vld [vmem:[#allocation15_spill] sm:$0xff] }
 0x3a7   : > { %v4485_v29 = vadd.f32 %v7192_v33, %v4085_v26  ;;  %v4548_v18 = vmax.f32 %v4484_v37, 0.0 }
 0x3a9   : > { %v4549_v41 = vmax.f32 %v4485_v29, 0.0  ;;  %v7557_v29 = vld [vmem:[#allocation16_spill] sm:$0xff] }
 0x3aa   : > { %v3864_v17 = vpop.f32.mrb[8].mxu1  ;;  %v4089_v14 = vpop.f32.mrb[232].mxu0 }
 0x3ab   : > { %v5519_v35 = vpack.c.bf16 %v4549_v41, %v4548_v18  ;;  %v7316_v46 = vadd.f32 %v3864_v17, %v7554_v20  ;;  %v4090_v36 = vadd.f32 %v4089_v14, %v7226_v28  ;;  %v3866_v48 = vpop.f32.mrb[9].mxu1  ;;  %v4091_v60 = vpop.f32.mrb[233].mxu0 }
 0x3ac   : > { %v3867_v57 = vpop.f32.mrb[10].mxu1  ;;  %v4092_v31 = vpop.f32.mrb[234].mxu0 }
 0x3ad   : > { %5639 = vst [vmem:[%s7210_s14 + $0x48] sm:$0xff] %v5519_v35   ;;  %v4486_v42 = vadd.f32 %v7192_v33, %v4090_v36  ;;  %v7322_v40 = vadd.f32 %v3867_v57, %v7555_v15  ;;  %v4093_v54 = vadd.f32 %v4092_v31, %v7232_v6  ;;  %v3869_v59 = vpop.f32.mrb[11].mxu1  ;;  %v4094_v7 = vpop.f32.mrb[235].mxu0  ;;  %v7558_v57 = vld [vmem:[#allocation17_spill] sm:$0xff] }
 0x3af   : > { %v4487_v58 = vadd.f32 %v7192_v33, %v4093_v54  ;;  %v4550_v32 = vmax.f32 %v4486_v42, 0.0 }
 0x3b1   : > { %v4551_v45 = vmax.f32 %v4487_v58, 0.0  ;;  %v7559_v58 = vld [vmem:[#allocation18_spill] sm:$0xff] }
 0x3b2   : > { %v3872_v28 = vpop.f32.mrb[12].mxu1  ;;  %v4097_v12 = vpop.f32.mrb[236].mxu0 }
 0x3b3   : > { %v5524_v61 = vpack.c.bf16 %v4551_v45, %v4550_v32  ;;  %v7327_v2 = vadd.f32 %v3872_v28, %v7556_v4  ;;  %v4098_v37 = vadd.f32 %v4097_v12, %v7239_v8  ;;  %v3874_v63 = vpop.f32.mrb[13].mxu1  ;;  %v4099_v26 = vpop.f32.mrb[237].mxu0 }
 0x3b4   : > { %v3875_v11 = vpop.f32.mrb[14].mxu1  ;;  %v4100_v23 = vpop.f32.mrb[238].mxu0 }
 0x3b5   : > { %5640 = vst [vmem:[%s7210_s14 + $0x50] sm:$0xff] %v5524_v61   ;;  %v4488_v6 = vadd.f32 %v7192_v33, %v4098_v37  ;;  %v7333_v18 = vadd.f32 %v3875_v11, %v7557_v29  ;;  %v4101_v41 = vadd.f32 %v4100_v23, %v7245_v62  ;;  %v3877_v17 = vpop.f32.mrb[15].mxu1  ;;  %v4102_v14 = vpop.f32.mrb[239].mxu0  ;;  %v7560_v11 = vld [vmem:[#allocation19_spill] sm:$0xff] }
 0x3b7   : > { %v4489_v35 = vadd.f32 %v7192_v33, %v4101_v41  ;;  %v4552_v20 = vmax.f32 %v4488_v6, 0.0 }
 0x3b9   : > { %v4553_v36 = vmax.f32 %v4489_v35, 0.0  ;;  %v7561_v35 = vld [vmem:[#allocation20_spill] sm:$0xff] }
 0x3ba   : > { %v3880_v8 = vpop.f32.mrb[16].mxu1  ;;  %v4105_v48 = vpop.f32.mrb[240].mxu0 }
 0x3bb   : > { %v5529_v60 = vpack.c.bf16 %v4553_v36, %v4552_v20  ;;  %v7338_v31 = vadd.f32 %v3880_v8, %v7558_v57  ;;  %v4106_v42 = vadd.f32 %v4105_v48, %v7250_v56  ;;  %v3882_v15 = vpop.f32.mrb[17].mxu1  ;;  %v4107_v54 = vpop.f32.mrb[241].mxu0 }
 0x3bc   : > { %v3883_v59 = vpop.f32.mrb[18].mxu1  ;;  %v4108_v7 = vpop.f32.mrb[242].mxu0 }
 0x3bd   : > { %5641 = vst [vmem:[%s7210_s14 + $0x58] sm:$0xff] %v5529_v60   ;;  %v4490_v62 = vadd.f32 %v7192_v33, %v4106_v42  ;;  %v7344_v32 = vadd.f32 %v3883_v59, %v7559_v58  ;;  %v4109_v45 = vadd.f32 %v4108_v7, %v7256_v3  ;;  %v3885_v28 = vpop.f32.mrb[19].mxu1  ;;  %v4110_v12 = vpop.f32.mrb[243].mxu0  ;;  %v7562_v59 = vld [vmem:[#allocation21_spill] sm:$0xff] }
 0x3bf   : > { %v4491_v61 = vadd.f32 %v7192_v33, %v4109_v45  ;;  %v4554_v4 = vmax.f32 %v4490_v62, 0.0 }
 0x3c1   : > { %v4555_v37 = vmax.f32 %v4491_v61, 0.0  ;;  %v7563_v61 = vld [vmem:[#allocation22_spill] sm:$0xff] }
 0x3c2   : > { %v3888_v56 = vpop.f32.mrb[20].mxu1  ;;  %v4113_v63 = vpop.f32.mrb[244].mxu0 }
 0x3c3   : > { %v5534_v26 = vpack.c.bf16 %v4555_v37, %v4554_v4  ;;  %v7349_v23 = vadd.f32 %v3888_v56, %v7560_v11  ;;  %v4114_v6 = vadd.f32 %v4113_v63, %v7261_v44  ;;  %v3890_v29 = vpop.f32.mrb[21].mxu1  ;;  %v4115_v41 = vpop.f32.mrb[245].mxu0 }
 0x3c4   : > { %v3891_v17 = vpop.f32.mrb[22].mxu1  ;;  %v4116_v14 = vpop.f32.mrb[246].mxu0 }
 0x3c5   : > { %5642 = vst [vmem:[%s7210_s14 + $0x60] sm:$0xff] %v5534_v26   ;;  %v4492_v3 = vadd.f32 %v7192_v33, %v4114_v6  ;;  %v7355_v20 = vadd.f32 %v3891_v17, %v7561_v35  ;;  %v4117_v36 = vadd.f32 %v4116_v14, %v7267_v30  ;;  %v3893_v8 = vpop.f32.mrb[23].mxu1  ;;  %v4118_v48 = vpop.f32.mrb[247].mxu0  ;;  %v7564_v17 = vld [vmem:[#allocation23_spill] sm:$0xff] }
 0x3c7   : > { %v4493_v60 = vadd.f32 %v7192_v33, %v4117_v36  ;;  %v4556_v57 = vmax.f32 %v4492_v3, 0.0 }
 0x3c9   : > { %v4557_v42 = vmax.f32 %v4493_v60, 0.0 }
 0x3ca   : > { %v3896_v44 = vpop.f32.mrb[24].mxu1  ;;  %v4121_v15 = vpop.f32.mrb[248].mxu0 }
 0x3cb   : > { %v5539_v54 = vpack.c.bf16 %v4557_v42, %v4556_v57  ;;  %v7360_v7 = vadd.f32 %v3896_v44, %v7562_v59  ;;  %v4122_v62 = vadd.f32 %v4121_v15, %v7272_v49  ;;  %v3898_v58 = vpop.f32.mrb[25].mxu1  ;;  %v4123_v45 = vpop.f32.mrb[249].mxu0 }
 0x3cc   : > { %v3899_v28 = vpop.f32.mrb[26].mxu1  ;;  %v4124_v12 = vpop.f32.mrb[250].mxu0 }
 0x3cd   : > { %5643 = vst [vmem:[%s7210_s14 + $0x68] sm:$0xff] %v5539_v54   ;;  %v4494_v30 = vadd.f32 %v7192_v33, %v4122_v62  ;;  %v7366_v4 = vadd.f32 %v3899_v28, %v7563_v61  ;;  %v4125_v37 = vadd.f32 %v4124_v12, %v7278_v55  ;;  %v3901_v56 = vpop.f32.mrb[27].mxu1  ;;  %v4126_v63 = vpop.f32.mrb[251].mxu0 }
 0x3cf   : > { %v4495_v26 = vadd.f32 %v7192_v33, %v4125_v37  ;;  %v4558_v11 = vmax.f32 %v4494_v30, 0.0 }
 0x3d1   : > { %v4559_v6 = vmax.f32 %v4495_v26, 0.0 }
 0x3d2   : > { %v3904_v49 = vpop.f32.mrb[28].mxu1  ;;  %v4129_v29 = vpop.f32.mrb[252].mxu0 }
 0x3d3   : > { %v5544_v41 = vpack.c.bf16 %v4559_v6, %v4558_v11  ;;  %v7371_v14 = vadd.f32 %v3904_v49, %v7564_v17  ;;  %v4130_v3 = vadd.f32 %v4129_v29, %v7283_v52  ;;  %v3906_v35 = vpop.f32.mrb[29].mxu1  ;;  %v4131_v36 = vpop.f32.mrb[253].mxu0 }
 0x3d4   : > { %v3907_v8 = vpop.f32.mrb[30].mxu1  ;;  %v4132_v48 = vpop.f32.mrb[254].mxu0 }
 0x3d5   : > { %5644 = vst [vmem:[%s7210_s14 + $0x70] sm:$0xff] %v5544_v41   ;;  %v4496_v55 = vadd.f32 %v7192_v33, %v4130_v3  ;;  %v7377_v60 = vadd.f32 %v3907_v8, %v7065_v9  ;;  %v4133_v57 = vadd.f32 %v4132_v48, %v7289_v53  ;;  %v3909_v42 = vpop.f32.mrb[31].mxu1  ;;  %v4134_v44 = vpop.f32.mrb[255].mxu0 }
 0x3d7   : > { %v4497_v15 = vadd.f32 %v7192_v33, %v4133_v57  ;;  %v4560_v54 = vmax.f32 %v4496_v55, 0.0 }
 0x3d9   : > { %v4561_v59 = vmax.f32 %v4497_v15, 0.0 }
 0x3da   : > { %v3912_v52 = vpop.f32.mrb[32].mxu1  ;;  %v4137_v62 = vpop.f32.mrb[0].mxu0 }
 0x3db   : > { %v5549_v58 = vpack.c.bf16 %v4561_v59, %v4560_v54  ;;  %v7382_v45 = vadd.f32 %v3912_v52, %v7075_v38  ;;  %v4138_v28 = vadd.f32 %v4137_v62, %v7294_v27  ;;  %v3914_v12 = vpop.f32.mrb[33].mxu1  ;;  %v4139_v9 = vpop.f32.mrb[1].mxu0 }
 0x3dc   : > { %v3915_v30 = vpop.f32.mrb[34].mxu1  ;;  %v4140_v61 = vpop.f32.mrb[2].mxu0  ;;  %v7565_v12 = vld [vmem:[#allocation24_spill] sm:$0xff] }
 0x3dd   : > { %5645 = vst [vmem:[%s7210_s14 + $0x78] sm:$0xff] %v5549_v58   ;;  %v4498_v53 = vadd.f32 %v7192_v33, %v4138_v28  ;;  %v7388_v37 = vadd.f32 %v3915_v30, %v7081_v34  ;;  %v4141_v56 = vadd.f32 %v4140_v61, %v7300_v1  ;;  %v3917_v63 = vpop.f32.mrb[35].mxu1  ;;  %v4142_v26 = vpop.f32.mrb[3].mxu0 }
 0x3df   : > { %v4499_v38 = vadd.f32 %v7192_v33, %v4141_v56  ;;  %v4562_v11 = vmax.f32 %v4498_v53, 0.0 }
 0x3e1   : > { %v4563_v6 = vmax.f32 %v4499_v38, 0.0 }
 0x3e2   : > { %v3920_v27 = vpop.f32.mrb[36].mxu1  ;;  %v4145_v49 = vpop.f32.mrb[4].mxu0 }
 0x3e3   : > { %v5554_v29 = vpack.c.bf16 %v4563_v6, %v4562_v11  ;;  %v7393_v41 = vadd.f32 %v3920_v27, %v7091_v0  ;;  %v4146_v17 = vadd.f32 %v4145_v49, %v7305_v25  ;;  %v3922_v3 = vpop.f32.mrb[37].mxu1  ;;  %v4147_v34 = vpop.f32.mrb[5].mxu0 }
 0x3e4   : > { %v3923_v35 = vpop.f32.mrb[38].mxu1  ;;  %v4148_v36 = vpop.f32.mrb[6].mxu0 }
 0x3e5   : > { %5646 = vst [vmem:[%s7210_s14 + $0x80] sm:$0xff] %v5554_v29   ;;  %v4500_v1 = vadd.f32 %v7192_v33, %v4146_v17  ;;  %v7399_v8 = vadd.f32 %v3923_v35, %v7097_v47  ;;  %v4149_v48 = vadd.f32 %v4148_v36, %v7311_v22  ;;  %v3925_v55 = vpop.f32.mrb[39].mxu1  ;;  %v4150_v57 = vpop.f32.mrb[7].mxu0 }
 0x3e7   : > { %v4501_v0 = vadd.f32 %v7192_v33, %v4149_v48  ;;  %v4564_v42 = vmax.f32 %v4500_v1, 0.0 }
 0x3e9   : > { %v4565_v44 = vmax.f32 %v4501_v0, 0.0 }
 0x3ea   : > { %v3928_v25 = vpop.f32.mrb[40].mxu1  ;;  %v4153_v15 = vpop.f32.mrb[8].mxu0 }
 0x3eb   : > { %v5559_v54 = vpack.c.bf16 %v4565_v44, %v4564_v42  ;;  %v7404_v59 = vadd.f32 %v3928_v25, %v7107_v39  ;;  %v4154_v52 = vadd.f32 %v4153_v15, %v7316_v46  ;;  %v3930_v62 = vpop.f32.mrb[41].mxu1  ;;  %v4155_v47 = vpop.f32.mrb[9].mxu0 }
 0x3ec   : > { %v3931_v58 = vpop.f32.mrb[42].mxu1  ;;  %v4156_v28 = vpop.f32.mrb[10].mxu0 }
 0x3ed   : > { %5647 = vst [vmem:[%s7210_s14 + $0x88] sm:$0xff] %v5559_v54   ;;  %v4502_v22 = vadd.f32 %v7192_v33, %v4154_v52  ;;  %v7410_v9 = vadd.f32 %v3931_v58, %v7565_v12  ;;  %v4157_v30 = vadd.f32 %v4156_v28, %v7322_v40  ;;  %v3933_v61 = vpop.f32.mrb[43].mxu1  ;;  %v4158_v53 = vpop.f32.mrb[11].mxu0 }
 0x3ef   : > { %v4503_v39 = vadd.f32 %v7192_v33, %v4157_v30  ;;  %v4566_v56 = vmax.f32 %v4502_v22, 0.0 }
 0x3f1   : > { %v4567_v63 = vmax.f32 %v4503_v39, 0.0 }
 0x3f2   : > { %v3936_v46 = vpop.f32.mrb[44].mxu1  ;;  %v4161_v26 = vpop.f32.mrb[12].mxu0 }
 0x3f3   : > { %v5564_v38 = vpack.c.bf16 %v4567_v63, %v4566_v56  ;;  %v7415_v11 = vadd.f32 %v3936_v46, %v7123_v21  ;;  %v4162_v6 = vadd.f32 %v4161_v26, %v7327_v2  ;;  %v3938_v27 = vpop.f32.mrb[45].mxu1  ;;  %v4163_v49 = vpop.f32.mrb[13].mxu0 }
 0x3f4   : > { %v3939_v29 = vpop.f32.mrb[46].mxu1  ;;  %v4164_v17 = vpop.f32.mrb[14].mxu0 }
 0x3f5   : > { %5648 = vst [vmem:[%s7210_s14 + $0x90] sm:$0xff] %v5564_v38   ;;  %v4504_v40 = vadd.f32 %v7192_v33, %v4162_v6  ;;  %v7421_v3 = vadd.f32 %v3939_v29, %v7129_v51  ;;  %v4165_v34 = vadd.f32 %v4164_v17, %v7333_v18  ;;  %v3941_v35 = vpop.f32.mrb[47].mxu1  ;;  %v4166_v36 = vpop.f32.mrb[15].mxu0 }
 0x3f7   : > { %v4505_v21 = vadd.f32 %v7192_v33, %v4165_v34  ;;  %v4568_v1 = vmax.f32 %v4504_v40, 0.0 }
 0x3f9   : > { %v4569_v48 = vmax.f32 %v4505_v21, 0.0 }
 0x3fa   : > { %v3944_v2 = vpop.f32.mrb[48].mxu1  ;;  %v4169_v55 = vpop.f32.mrb[16].mxu0 }
 0x3fb   : > { %v5569_v57 = vpack.c.bf16 %v4569_v48, %v4568_v1  ;;  %v7426_v0 = vadd.f32 %v3944_v2, %v7137_v16  ;;  %v4170_v42 = vadd.f32 %v4169_v55, %v7338_v31  ;;  %v3946_v44 = vpop.f32.mrb[49].mxu1  ;;  %v4171_v51 = vpop.f32.mrb[17].mxu0 }
 0x3fc   : > { %v3947_v25 = vpop.f32.mrb[50].mxu1  ;;  %v4172_v15 = vpop.f32.mrb[18].mxu0 }
 0x3fd   : > { %5649 = vst [vmem:[%s7210_s14 + $0x98] sm:$0xff] %v5569_v57   ;;  %v4506_v18 = vadd.f32 %v7192_v33, %v4170_v42  ;;  %v7432_v54 = vadd.f32 %v3947_v25, %v7143_v19  ;;  %v4173_v52 = vadd.f32 %v4172_v15, %v7344_v32  ;;  %v3949_v62 = vpop.f32.mrb[51].mxu1  ;;  %v4174_v47 = vpop.f32.mrb[19].mxu0 }
 0x3ff   : > { %v4507_v16 = vadd.f32 %v7192_v33, %v4173_v52  ;;  %v4570_v58 = vmax.f32 %v4506_v18, 0.0 }
 0x401   : > { %v4571_v28 = vmax.f32 %v4507_v16, 0.0 }
 0x402   : > { %v3952_v31 = vpop.f32.mrb[52].mxu1  ;;  %v4177_v22 = vpop.f32.mrb[20].mxu0 }
 0x403   : > { %v5574_v12 = vpack.c.bf16 %v4571_v28, %v4570_v58  ;;  %v7437_v30 = vadd.f32 %v3952_v31, %v7151_v50  ;;  %v4178_v61 = vadd.f32 %v4177_v22, %v7349_v23  ;;  %v3954_v53 = vpop.f32.mrb[53].mxu1  ;;  %v4179_v19 = vpop.f32.mrb[21].mxu0 }
 0x404   : > { %v3955_v39 = vpop.f32.mrb[54].mxu1  ;;  %v4180_v56 = vpop.f32.mrb[22].mxu0 }
 0x405   : > { %5650 = vst [vmem:[%s7210_s14 + $0xa0] sm:$0xff] %v5574_v12   ;;  %v4508_v32 = vadd.f32 %v7192_v33, %v4178_v61  ;;  %v7443_v63 = vadd.f32 %v3955_v39, %v7157_v5  ;;  %v4181_v46 = vadd.f32 %v4180_v56, %v7355_v20  ;;  %v3957_v26 = vpop.f32.mrb[55].mxu1  ;;  %v4182_v38 = vpop.f32.mrb[23].mxu0 }
 0x407   : > { %v4509_v50 = vadd.f32 %v7192_v33, %v4181_v46  ;;  %v4572_v6 = vmax.f32 %v4508_v32, 0.0 }
 0x409   : > { %v4573_v27 = vmax.f32 %v4509_v50, 0.0 }
 0x40a   : > { %v3960_v23 = vpop.f32.mrb[56].mxu1  ;;  %v4185_v49 = vpop.f32.mrb[24].mxu0 }
 0x40b   : > { %v5579_v29 = vpack.c.bf16 %v4573_v27, %v4572_v6  ;;  %v7448_v17 = vadd.f32 %v3960_v23, %v7165_v13  ;;  %v4186_v40 = vadd.f32 %v4185_v49, %v7360_v7  ;;  %v3962_v34 = vpop.f32.mrb[57].mxu1  ;;  %v4187_v5 = vpop.f32.mrb[25].mxu0 }
 0x40c   : > { %v3963_v35 = vpop.f32.mrb[58].mxu1  ;;  %v4188_v36 = vpop.f32.mrb[26].mxu0 }
 0x40d   : > { %5651 = vst [vmem:[%s7210_s14 + $0xa8] sm:$0xff] %v5579_v29   ;;  %v4510_v20 = vadd.f32 %v7192_v33, %v4186_v40  ;;  %v7454_v21 = vadd.f32 %v3963_v35, %v7171_v24  ;;  %v4189_v1 = vadd.f32 %v4188_v36, %v7366_v4  ;;  %v3965_v48 = vpop.f32.mrb[59].mxu1  ;;  %v4190_v2 = vpop.f32.mrb[27].mxu0 }
 0x40f   : > { %v4511_v13 = vadd.f32 %v7192_v33, %v4189_v1  ;;  %v4574_v55 = vmax.f32 %v4510_v20, 0.0 }
 0x411   : > { %v4575_v57 = vmax.f32 %v4511_v13, 0.0 }
 0x412   : > { %v3968_v7 = vpop.f32.mrb[60].mxu1  ;;  %v4193_v42 = vpop.f32.mrb[28].mxu0 }
 0x413   : > { %v5584_v44 = vpack.c.bf16 %v4575_v57, %v4574_v55  ;;  %v7459_v51 = vadd.f32 %v3968_v7, %v7179_v10  ;;  %v4194_v25 = vadd.f32 %v4193_v42, %v7371_v14  ;;  %v3970_v15 = vpop.f32.mrb[61].mxu1  ;;  %v4195_v24 = vpop.f32.mrb[29].mxu0 }
 0x414   : > { %v3971_v18 = vpop.f32.mrb[62].mxu1  ;;  %v4196_v52 = vpop.f32.mrb[30].mxu0 }
 0x415   : > { %5652 = vst [vmem:[%s7210_s14 + $0xb0] sm:$0xff] %v5584_v44   ;;  %v4512_v4 = vadd.f32 %v7192_v33, %v4194_v25  ;;  %v7465_v62 = vadd.f32 %v3971_v18, %v7185_v43  ;;  %v4197_v47 = vadd.f32 %v4196_v52, %v7377_v60  ;;  %v4198_v16 = vpop.f32.mrb[31].mxu0  ;;  %v3973_v58 = vpop.f32.mrb[63].mxu1 }
 0x417   : > { %v4513_v10 = vadd.f32 %v7192_v33, %v4197_v47  ;;  %v4576_v28 = vmax.f32 %v4512_v4, 0.0 }
 0x419   : > { %v4577_v31 = vmax.f32 %v4513_v10, 0.0 }
 0x41a   : > { %v4201_v14 = vpop.f32.mrb[32].mxu0 }
 0x41b   : > { %v5589_v22 = vpack.c.bf16 %v4577_v31, %v4576_v28  ;;  %v4202_v12 = vadd.f32 %v4201_v14, %v7382_v45  ;;  %v4203_v61 = vpop.f32.mrb[33].mxu0 }
 0x41c   : > { %v4204_v53 = vpop.f32.mrb[34].mxu0 }
 0x41d   : > { %5653 = vst [vmem:[%s7210_s14 + $0xb8] sm:$0xff] %v5589_v22   ;;  %v4514_v19 = vadd.f32 %v7192_v33, %v4202_v12  ;;  %v4205_v43 = vadd.f32 %v4204_v53, %v7388_v37  ;;  %v4206_v39 = vpop.f32.mrb[35].mxu0 }
 0x41f   : > { %v4515_v60 = vadd.f32 %v7192_v33, %v4205_v43  ;;  %v4578_v56 = vmax.f32 %v4514_v19, 0.0 }
 0x421   : > { %v4579_v32 = vmax.f32 %v4515_v60, 0.0 }
 0x422   : > { %v4209_v46 = vpop.f32.mrb[36].mxu0 }
 0x423   : > { %v5594_v26 = vpack.c.bf16 %v4579_v32, %v4578_v56  ;;  %v4210_v38 = vadd.f32 %v4209_v46, %v7393_v41  ;;  %v4211_v50 = vpop.f32.mrb[37].mxu0 }
 0x424   : > { %v4212_v6 = vpop.f32.mrb[38].mxu0 }
 0x425   : > { %5654 = vst [vmem:[%s7210_s14 + $0xc0] sm:$0xff] %v5594_v26   ;;  %v4516_v45 = vadd.f32 %v7192_v33, %v4210_v38  ;;  %v4213_v27 = vadd.f32 %v4212_v6, %v7399_v8  ;;  %v4214_v23 = vpop.f32.mrb[39].mxu0 }
 0x427   : > { %v4517_v37 = vadd.f32 %v7192_v33, %v4213_v27  ;;  %v4580_v49 = vmax.f32 %v4516_v45, 0.0 }
 0x429   : > { %v4581_v29 = vmax.f32 %v4517_v37, 0.0 }
 0x42a   : > { %v4217_v40 = vpop.f32.mrb[40].mxu0 }
 0x42b   : > { %v5599_v34 = vpack.c.bf16 %v4581_v29, %v4580_v49  ;;  %v4218_v5 = vadd.f32 %v4217_v40, %v7404_v59  ;;  %v4219_v35 = vpop.f32.mrb[41].mxu0 }
 0x42c   : > { %v4220_v36 = vpop.f32.mrb[42].mxu0 }
 0x42d   : > { %5655 = vst [vmem:[%s7210_s14 + $0xc8] sm:$0xff] %v5599_v34   ;;  %v4518_v41 = vadd.f32 %v7192_v33, %v4218_v5  ;;  %v4221_v20 = vadd.f32 %v4220_v36, %v7410_v9  ;;  %v4222_v1 = vpop.f32.mrb[43].mxu0 }
 0x42f   : > { %v4519_v8 = vadd.f32 %v7192_v33, %v4221_v20  ;;  %v4582_v48 = vmax.f32 %v4518_v41, 0.0 }
 0x431   : > { %v4583_v2 = vmax.f32 %v4519_v8, 0.0 }
 0x432   : > { %v4225_v13 = vpop.f32.mrb[44].mxu0 }
 0x433   : > { %v5604_v55 = vpack.c.bf16 %v4583_v2, %v4582_v48  ;;  %v4226_v57 = vadd.f32 %v4225_v13, %v7415_v11  ;;  %v4227_v7 = vpop.f32.mrb[45].mxu0 }
 0x434   : > { %v4228_v42 = vpop.f32.mrb[46].mxu0 }
 0x435   : > { %5656 = vst [vmem:[%s7210_s14 + $0xd0] sm:$0xff] %v5604_v55   ;;  %v4520_v59 = vadd.f32 %v7192_v33, %v4226_v57  ;;  %v4229_v44 = vadd.f32 %v4228_v42, %v7421_v3  ;;  %v4230_v25 = vpop.f32.mrb[47].mxu0  ;;  %v5991_v3 = vld [vmem:[%s7518_s3] ss:$0 sm:$0xff] }
 0x437   : > { %v4521_v9 = vadd.f32 %v7192_v33, %v4229_v44  ;;  %v4584_v15 = vmax.f32 %v4520_v59, 0.0 }
 0x439   : > { %v4585_v24 = vmax.f32 %v4521_v9, 0.0 }
 0x43a   : > { %v4233_v18 = vpop.f32.mrb[48].mxu0 }
 0x43b   : > { %v5609_v52 = vpack.c.bf16 %v4585_v24, %v4584_v15  ;;  %v4234_v4 = vadd.f32 %v4233_v18, %v7426_v0  ;;  %v4235_v47 = vpop.f32.mrb[49].mxu0 }
 0x43c   : > { %v4236_v16 = vpop.f32.mrb[50].mxu0 }
 0x43d   : > { %5657 = vst [vmem:[%s7210_s14 + $0xd8] sm:$0xff] %v5609_v52   ;;  %v4522_v11 = vadd.f32 %v7192_v33, %v4234_v4  ;;  %v4237_v58 = vadd.f32 %v4236_v16, %v7432_v54  ;;  %v4238_v10 = vpop.f32.mrb[51].mxu0 }
 0x43f   : > { %v4523_v28 = vadd.f32 %v5991_v3, %v4237_v58  ;;  %v4586_v31 = vmax.f32 %v4522_v11, 0.0 }
 0x441   : > { %v4587_v14 = vmax.f32 %v4523_v28, 0.0 }
 0x442   : > { %v4241_v22 = vpop.f32.mrb[52].mxu0 }
 0x443   : > { %v5614_v12 = vpack.c.bf16 %v4587_v14, %v4586_v31  ;;  %v4242_v0 = vadd.f32 %v4241_v22, %v7437_v30  ;;  %v4243_v61 = vpop.f32.mrb[53].mxu0 }
 0x444   : > { %v4244_v53 = vpop.f32.mrb[54].mxu0 }
 0x445   : > { %5658 = vst [vmem:[%s7210_s14 + $0xe0] sm:$0xff] %v5614_v12   ;;  %v4524_v19 = vadd.f32 %v5991_v3, %v4242_v0  ;;  %v4245_v33 = vadd.f32 %v4244_v53, %v7443_v63  ;;  %v4246_v54 = vpop.f32.mrb[55].mxu0 }
 0x447   : > { %v4525_v43 = vadd.f32 %v5991_v3, %v4245_v33  ;;  %v4588_v39 = vmax.f32 %v4524_v19, 0.0 }
 0x449   : > { %v4589_v60 = vmax.f32 %v4525_v43, 0.0 }
 0x44a   : > { %v4249_v56 = vpop.f32.mrb[56].mxu0 }
 0x44b   : > { %v5619_v32 = vpack.c.bf16 %v4589_v60, %v4588_v39  ;;  %v4250_v46 = vadd.f32 %v4249_v56, %v7448_v17  ;;  %v4251_v26 = vpop.f32.mrb[57].mxu0 }
 0x44c   : > { %v4252_v38 = vpop.f32.mrb[58].mxu0 }
 0x44d   : > { %5659 = vst [vmem:[%s7210_s14 + $0xe8] sm:$0xff] %v5619_v32   ;;  %v4526_v50 = vadd.f32 %v5991_v3, %v4250_v46  ;;  %v4253_v30 = vadd.f32 %v4252_v38, %v7454_v21  ;;  %v4254_v6 = vpop.f32.mrb[59].mxu0 }
 0x44f   : > { %v4527_v45 = vadd.f32 %v5991_v3, %v4253_v30  ;;  %v4590_v27 = vmax.f32 %v4526_v50, 0.0 }
 0x451   : > { %v4591_v63 = vmax.f32 %v4527_v45, 0.0 }
 0x452   : > { %v4257_v23 = vpop.f32.mrb[60].mxu0 }
 0x453   : > { %v5624_v37 = vpack.c.bf16 %v4591_v63, %v4590_v27  ;;  %v4258_v49 = vadd.f32 %v4257_v23, %v7459_v51  ;;  %v4259_v29 = vpop.f32.mrb[61].mxu0 }
 0x454   : > { %v4260_v40 = vpop.f32.mrb[62].mxu0 }
 0x455   : > { %5660 = vst [vmem:[%s7210_s14 + $0xf0] sm:$0xff] %v5624_v37   ;;  %v4528_v34 = vadd.f32 %v5991_v3, %v4258_v49  ;;  %v4261_v17 = vadd.f32 %v4260_v40, %v7465_v62  ;;  %v4262_v5 = vpop.f32.mrb[63].mxu0 }
 0x457   : > { %v4529_v35 = vadd.f32 %v5991_v3, %v4261_v17  ;;  %v4592_v36 = vmax.f32 %v4528_v34, 0.0 }
 0x459   : > { %v4593_v41 = vmax.f32 %v4529_v35, 0.0 }
 0x45b   : > { %v5629_v21 = vpack.c.bf16 %v4593_v41, %v4592_v36 }
 0x45d   : > { %5661 = vst [vmem:[%s7210_s14 + $0xf8] sm:$0xff] %v5629_v21  }
 0x45e PF: > { %s14_s17 = sadd.s32 1, %s6014_s17   ;;  %s7566_s15 = smov %s6010_s16 }
 0x45f   : > { %p11_p5 = scmp.ge.s32.totalorder %s14_s17, 4   ;;  %s7567_s16 = smov %s7569_s18 }
 0x461   :  { %13 = sbr.rel (!%p11_p5) target bundleno = 2 (0x2), region = 77 }

</bundles_post_ra>
